<compile_context>
chip_gen: v6e
topology: v6e:2x2x1
jax: 0.10.0
libtpu: 0.0.40
codegen_flags: <defaults>
</compile_context>

<pallas_src>
import functools
import jax
import jax.numpy as jnp
from jax.experimental import pallas as pl
from jax.experimental.pallas import tpu as pltpu


def _round_up(x, m):
    return (x + m - 1) // m * m


# ----------------------------------------------------------------------------
# Pallas kernel 1: tiled fused matmul  out = maybe_relu(X @ W + shift [+ res])
# ----------------------------------------------------------------------------
def _mm_kernel(relu, has_res, *refs):
    if has_res:
        x_ref, w_ref, b_ref, r_ref, o_ref, acc_ref = refs
    else:
        x_ref, w_ref, b_ref, o_ref, acc_ref = refs
    k = pl.program_id(2)

    @pl.when(k == 0)
    def _():
        acc_ref[...] = jnp.zeros_like(acc_ref)

    acc_ref[...] += jnp.dot(x_ref[...], w_ref[...],
                            preferred_element_type=jnp.float32)

    @pl.when(k == pl.num_programs(2) - 1)
    def _():
        out = acc_ref[...] + b_ref[...]
        if has_res:
            out = out + r_ref[...].astype(jnp.float32)
        if relu:
            out = jnp.maximum(out, 0.0)
        o_ref[...] = out.astype(o_ref.dtype)


def fused_matmul(x, w, shift, residual=None, relu=False, out_dtype=jnp.bfloat16):
    """maybe_relu(x @ w + shift [+ residual]); bf16 MXU inputs, f32 accumulate."""
    M, K = x.shape
    K2, N = w.shape
    assert K == K2

    tm = min(512, _round_up(M, 16))          # sublane-aligned (bf16-safe)
    tn = min(512, _round_up(N, 128))         # lane-dense output tiles
    tk = _round_up(K, 128)
    if tk > 1024:
        tk = 512
    Mp, Np, Kp = _round_up(M, tm), _round_up(N, tn), _round_up(K, tk)

    xb = jnp.pad(x.astype(jnp.bfloat16), ((0, Mp - M), (0, Kp - K)))
    wb = jnp.pad(w.astype(jnp.bfloat16), ((0, Kp - K), (0, Np - N)))
    bb = jnp.pad(shift.reshape(1, N).astype(jnp.float32), ((0, 0), (0, Np - N)))

    args = [xb, wb, bb]
    in_specs = [
        pl.BlockSpec((tm, tk), lambda i, j, k: (i, k)),
        pl.BlockSpec((tk, tn), lambda i, j, k: (k, j)),
        pl.BlockSpec((1, tn), lambda i, j, k: (0, j)),
    ]
    if residual is not None:
        rb = jnp.pad(residual.astype(jnp.bfloat16), ((0, Mp - M), (0, Np - N)))
        args.append(rb)
        in_specs.append(pl.BlockSpec((tm, tn), lambda i, j, k: (i, j)))

    out = pl.pallas_call(
        functools.partial(_mm_kernel, relu, residual is not None),
        out_shape=jax.ShapeDtypeStruct((Mp, Np), out_dtype),
        grid=(Mp // tm, Np // tn, Kp // tk),
        in_specs=in_specs,
        out_specs=pl.BlockSpec((tm, tn), lambda i, j, k: (i, j)),
        scratch_shapes=[pltpu.VMEM((tm, tn), jnp.float32)],
        compiler_params=pltpu.CompilerParams(
            dimension_semantics=("parallel", "parallel", "arbitrary"),
            vmem_limit_bytes=32 * 1024 * 1024),
    )(*args)
    return out[:M, :N]


# ----------------------------------------------------------------------------
# Pallas kernel 2: fused text-encoder + fusion head (all weights VMEM-resident)
#   q = relu(q @ W1 + b1) @ W2 + b2
#   h = relu(img @ Wf[:512] + q @ Wf[512:] + bf)       (== relu(cat(img,q) @ Wf + bf))
#   out = h @ W3 + b3
# ----------------------------------------------------------------------------
def _head_kernel(img_ref, q_ref, w1_ref, b1_ref, w2_ref, b2_ref,
                 wf_img_ref, wf_q_ref, bf_ref, w3_ref, b3_ref, o_ref):
    f32, bf16 = jnp.float32, jnp.bfloat16
    q = jnp.dot(q_ref[...], w1_ref[...], preferred_element_type=f32) + b1_ref[...]
    q = jnp.maximum(q, 0.0)
    q = jnp.dot(q.astype(bf16), w2_ref[...], preferred_element_type=f32) + b2_ref[...]
    h = (jnp.dot(img_ref[...], wf_img_ref[...], preferred_element_type=f32)
         + jnp.dot(q.astype(bf16), wf_q_ref[...], preferred_element_type=f32)
         + bf_ref[...])
    h = jnp.maximum(h, 0.0)
    o_ref[...] = (jnp.dot(h.astype(bf16), w3_ref[...], preferred_element_type=f32)
                  + b3_ref[...])


def vqa_head(image_feature, question, params):
    bf16 = jnp.bfloat16
    B, V = question.shape
    Vp = _round_up(V, 128)
    w1, b1 = params["te1"]
    w2, b2 = params["te2"]
    wf1, bf1 = params["fc1"]
    w3, b3 = params["fc2"]
    n_answer = w3.shape[1]
    Np = _round_up(n_answer, 128)            # lane-dense final output, sliced after
    d_img = wf1.shape[0] - w2.shape[1]       # 512

    args = [
        image_feature.astype(bf16),
        jnp.pad(question.astype(bf16), ((0, 0), (0, Vp - V))),
        jnp.pad(w1.astype(bf16), ((0, Vp - V), (0, 0))),
        b1.reshape(1, -1).astype(jnp.float32),
        w2.astype(bf16), b2.reshape(1, -1).astype(jnp.float32),
        wf1[:d_img].astype(bf16), wf1[d_img:].astype(bf16),
        bf1.reshape(1, -1).astype(jnp.float32),
        jnp.pad(w3.astype(bf16), ((0, 0), (0, Np - n_answer))),
        jnp.pad(b3.reshape(1, -1).astype(jnp.float32), ((0, 0), (0, Np - n_answer))),
    ]
    vmem = pl.BlockSpec(memory_space=pltpu.MemorySpace.VMEM)
    out = pl.pallas_call(
        _head_kernel,
        out_shape=jax.ShapeDtypeStruct((B, Np), jnp.float32),
        in_specs=[vmem] * len(args),
        out_specs=vmem,
    )(*args)
    return out[:, :n_answer]


# ----------------------------------------------------------------------------
# JAX glue: im2col / pooling (static strides -> fixes the traced-slice crash)
# ----------------------------------------------------------------------------
def im2col(x, kh, kw, stride, pad):
    """x: NHWC (bf16) -> (N*OH*OW, KH*KW*C), kernel-position major, channel fastest."""
    N, H, W, C = x.shape
    if pad:
        x = jnp.pad(x, ((0, 0), (pad, pad), (pad, pad), (0, 0)))
    Hp, Wp = H + 2 * pad, W + 2 * pad
    oh = (Hp - kh) // stride + 1
    ow = (Wp - kw) // stride + 1
    cols = []
    for i in range(kh):
        for j in range(kw):
            cols.append(x[:, i:i + stride * (oh - 1) + 1:stride,
                          j:j + stride * (ow - 1) + 1:stride, :])
    patches = jnp.stack(cols, axis=3)                    # (N, oh, ow, kh*kw, C)
    return patches.reshape(N * oh * ow, kh * kw * C), oh, ow


def maxpool2d(x, k=3, stride=2, pad=1):
    return jax.lax.reduce_window(
        x, jnp.array(-jnp.inf, x.dtype), jax.lax.max,
        window_dimensions=(1, k, k, 1),
        window_strides=(1, stride, stride, 1),
        padding=((0, 0), (pad, pad), (pad, pad), (0, 0)))


# ----------------------------------------------------------------------------
# Deterministic parameter construction (synthetic "pretrained" weights)
# ----------------------------------------------------------------------------
RESNET18_CFG = ((64, 64, 1), (64, 64, 1), (64, 128, 2), (128, 128, 1),
                (128, 256, 2), (256, 256, 1), (256, 512, 2), (512, 512, 1))


class KeyGen:
    def __init__(self, key, n=512):
        self._keys = iter(jax.random.split(key, n))

    def __call__(self):
        return next(self._keys)


def conv_w_mat(kg, out_c, in_c, kh, kw):
    # PyTorch layout (out_c, in_c, kh, kw) -> im2col matmul layout (kh*kw*in_c, out_c)
    w = jax.random.normal(kg(), (out_c, in_c, kh, kw), jnp.float32)
    w = w * jnp.sqrt(2.0 / (in_c * kh * kw))
    return jnp.transpose(w, (2, 3, 1, 0)).reshape(kh * kw * in_c, out_c)


def bn_fold(kg, c, eps=1e-5):
    gamma = jax.random.uniform(kg(), (c,), minval=0.5, maxval=1.5)
    beta = jax.random.normal(kg(), (c,)) * 0.1
    mean = jax.random.normal(kg(), (c,)) * 0.1
    var = jax.random.uniform(kg(), (c,), minval=0.5, maxval=1.5)
    scale = gamma / jnp.sqrt(var + eps)
    shift = beta - mean * scale
    return scale, shift


def conv_bn(kg, out_c, in_c, kh, kw):
    """Conv weight with BN scale folded in: (X@W)*s + t == X@(W*s) + t."""
    w = conv_w_mat(kg, out_c, in_c, kh, kw)
    scale, shift = bn_fold(kg, out_c)
    return w * scale[None, :], shift


def linear_p(kg, in_f, out_f):
    w = jax.random.normal(kg(), (in_f, out_f), jnp.float32) / jnp.sqrt(in_f)
    b = jax.random.normal(kg(), (out_f,), jnp.float32) * 0.05
    return w, b


def make_basic_block(kg, in_c, out_c, stride):
    p = {"conv1": conv_bn(kg, out_c, in_c, 3, 3),
         "conv2": conv_bn(kg, out_c, out_c, 3, 3),
         "downsample": None}
    if stride != 1 or in_c != out_c:
        p["downsample"] = conv_bn(kg, out_c, in_c, 1, 1)
    return p


def make_vqa_params(key, vocab_size, n_answer):
    kg = KeyGen(key)
    return {
        "conv1": conv_bn(kg, 64, 3, 7, 7),
        "layers": [make_basic_block(kg, i, o, s) for i, o, s in RESNET18_CFG],
        "te1": linear_p(kg, vocab_size, 512), "te2": linear_p(kg, 512, 512),
        "fc1": linear_p(kg, 1024, 512), "fc2": linear_p(kg, 512, n_answer),
    }


# ----------------------------------------------------------------------------
# Forward pass
# ----------------------------------------------------------------------------
def basic_block_fwd(x, p, stride):
    N, H, W, C = x.shape
    out_c = p["conv1"][0].shape[1]
    # conv3x3/s + bn + relu
    patches, oh, ow = im2col(x, 3, 3, stride, 1)
    y = fused_matmul(patches, p["conv1"][0], p["conv1"][1], relu=True)
    # identity / downsample branch
    if p["downsample"] is not None:
        dp, _, _ = im2col(x, 1, 1, stride, 0)
        ident = fused_matmul(dp, p["downsample"][0], p["downsample"][1], relu=False)
    else:
        ident = x.reshape(N * H * W, C)
    # conv3x3/1 + bn + residual add + relu
    y = y.reshape(N, oh, ow, out_c)
    patches2, _, _ = im2col(y, 3, 3, 1, 1)
    out = fused_matmul(patches2, p["conv2"][0], p["conv2"][1],
                       residual=ident, relu=True)
    return out.reshape(N, oh, ow, out_c)


def vqa_forward(params, image_nchw, question):
    # --- ResNet18 trunk (fc = Identity) ---
    x = jnp.transpose(image_nchw, (0, 2, 3, 1)).astype(jnp.bfloat16)  # NCHW -> NHWC
    N = x.shape[0]
    patches, oh, ow = im2col(x, 7, 7, 2, 3)
    x = fused_matmul(patches, params["conv1"][0], params["conv1"][1],
                     relu=True).reshape(N, oh, ow, 64)
    x = maxpool2d(x, 3, 2, 1)
    for (_, _, stride), blk in zip(RESNET18_CFG, params["layers"]):
        x = basic_block_fwd(x, blk, stride)
    image_feature = jnp.mean(x.astype(jnp.float32), axis=(1, 2))      # avgpool(1,1) -> (N,512)

    # --- text encoder + concat + fusion head: single fused Pallas kernel ---
    return vqa_head(image_feature, question, params)


# ----------------------------------------------------------------------------
if __name__ == "__main__":
    VOCAB_SIZE = 50
    N_ANSWER = 10
    BATCH = 2

    root = jax.random.PRNGKey(0)
    k_params, k_img, k_q = jax.random.split(root, 3)

    params = make_vqa_params(k_params, VOCAB_SIZE, N_ANSWER)
    image = jax.random.normal(k_img, (BATCH, 3, 32, 32), jnp.float32)    # NCHW, like PyTorch
    question = jax.random.normal(k_q, (BATCH, VOCAB_SIZE), jnp.float32)  # bag-of-words vector

    fwd = jax.jit(vqa_forward)
    out = jax.block_until_ready(fwd(params, image, question))

    assert out.shape == (BATCH, N_ANSWER), out.shape
    assert bool(jnp.all(jnp.isfinite(out)))
    print("KERNEL_OK")
</pallas_src>

<mosaic_0001>
module attributes {stable_mosaic.version = 11 : i64} {
  func.func @_mm_kernel(%arg0: i32, %arg1: i32, %arg2: i32, %arg3: memref<512x256xbf16, #tpu.memory_space<vmem>>, %arg4: memref<256x128xbf16, #tpu.memory_space<vmem>>, %arg5: memref<1x128xf32, #tpu.memory_space<vmem>>, %arg6: memref<512x128xbf16, #tpu.memory_space<vmem>>, %arg7: memref<512x128xf32, #tpu.memory_space<vmem>>) attributes {dimension_semantics = [#tpu.dimension_semantics<parallel>, #tpu.dimension_semantics<parallel>, #tpu.dimension_semantics<arbitrary>], iteration_bounds = array<i64: 1, 1, 1>, scalar_prefetch = 0 : i64, scratch_operands = 1 : i64, tpu.core_type = #tpu.core_type<tc>, window_params = [{transform_indices = @transform_0, window_bounds = array<i64: 512, 256>}, {transform_indices = @transform_1, window_bounds = array<i64: 256, 128>}, {transform_indices = @transform_2, window_bounds = array<i64: 1, 128>}, {transform_indices = @transform_3, window_bounds = array<i64: 512, 128>}]} {
    %c0_i32 = arith.constant 0 : i32
    %0 = arith.cmpi eq, %arg2, %c0_i32 : i32
    %1 = arith.extui %0 : i1 to i32
    %c0_i32_0 = arith.constant 0 : i32
    %2 = arith.cmpi ne, %1, %c0_i32_0 : i32
    scf.if %2 {
      %cst_10 = arith.constant 0.000000e+00 : f32
      %12 = vector.broadcast %cst_10 : f32 to vector<512x128xf32>
      %c0_11 = arith.constant 0 : index
      %c0_12 = arith.constant 0 : index
      %13 = vector.load %arg7[%c0_11, %c0_12] : memref<512x128xf32, #tpu.memory_space<vmem>>, vector<512x128xf32>
      tpu.vector_store %arg7[%c0_11, %c0_12], %12 {strides = array<i32>} : memref<512x128xf32, #tpu.memory_space<vmem>>, vector<512x128xf32>,
    } else {
    }
    %c0 = arith.constant 0 : index
    %c0_1 = arith.constant 0 : index
    %3 = vector.load %arg7[%c0, %c0_1] : memref<512x128xf32, #tpu.memory_space<vmem>>, vector<512x128xf32>
    %c0_2 = arith.constant 0 : index
    %c0_3 = arith.constant 0 : index
    %4 = vector.load %arg3[%c0_2, %c0_3] : memref<512x256xbf16, #tpu.memory_space<vmem>>, vector<512x256xbf16>
    %c0_4 = arith.constant 0 : index
    %c0_5 = arith.constant 0 : index
    %5 = vector.load %arg4[%c0_4, %c0_5] : memref<256x128xbf16, #tpu.memory_space<vmem>>, vector<256x128xbf16>
    %cst = arith.constant dense<0.000000e+00> : vector<512x128xf32>
    %6 = tpu.matmul %4, %5, %cst {dimension_numbers = #tpu.dot_dimension_numbers<[1], [0], [0], [1], [0, 0, 1, 1], [], []>} : vector<512x256xbf16>, vector<256x128xbf16>, vector<512x128xf32> -> vector<512x128xf32>
    %7 = arith.addf %3, %6 : vector<512x128xf32>
    %c0_6 = arith.constant 0 : index
    %c0_7 = arith.constant 0 : index
    %8 = vector.load %arg7[%c0_6, %c0_7] : memref<512x128xf32, #tpu.memory_space<vmem>>, vector<512x128xf32>
    tpu.vector_store %arg7[%c0_6, %c0_7], %7 {strides = array<i32>} : memref<512x128xf32, #tpu.memory_space<vmem>>, vector<512x128xf32>,
    %c0_i32_8 = arith.constant 0 : i32
    %9 = arith.cmpi eq, %arg2, %c0_i32_8 : i32
    %10 = arith.extui %9 : i1 to i32
    %c0_i32_9 = arith.constant 0 : i32
    %11 = arith.cmpi ne, %10, %c0_i32_9 : i32
    scf.if %11 {
      %c0_10 = arith.constant 0 : index
      %c0_11 = arith.constant 0 : index
      %12 = vector.load %arg7[%c0_10, %c0_11] : memref<512x128xf32, #tpu.memory_space<vmem>>, vector<512x128xf32>
      %c0_12 = arith.constant 0 : index
      %c0_13 = arith.constant 0 : index
      %13 = vector.load %arg5[%c0_12, %c0_13] : memref<1x128xf32, #tpu.memory_space<vmem>>, vector<1x128xf32>
      %14 = vector.broadcast %13 : vector<1x128xf32> to vector<512x128xf32>
      %15 = arith.addf %12, %14 : vector<512x128xf32>
      %cst_14 = arith.constant 0.000000e+00 : f32
      %16 = vector.broadcast %cst_14 : f32 to vector<512x128xf32>
      %17 = arith.maximumf %15, %16 : vector<512x128xf32>
      %18 = arith.truncf %17 : vector<512x128xf32> to vector<512x128xbf16>
      %c0_15 = arith.constant 0 : index
      %c0_16 = arith.constant 0 : index
      %19 = vector.load %arg6[%c0_15, %c0_16] : memref<512x128xbf16, #tpu.memory_space<vmem>>, vector<512x128xbf16>
      tpu.vector_store %arg6[%c0_15, %c0_16], %18 {strides = array<i32>} : memref<512x128xbf16, #tpu.memory_space<vmem>>, vector<512x128xbf16>,
    } else {
    }
    return
  }
  func.func @transform_0(%arg0: i32, %arg1: i32, %arg2: i32) -> (i32, i32) {
    %c0_i32 = arith.constant 0 : i32
    return %arg0, %arg2 : i32, i32
  }
  func.func @transform_1(%arg0: i32, %arg1: i32, %arg2: i32) -> (i32, i32) {
    %c0_i32 = arith.constant 0 : i32
    return %arg2, %arg1 : i32, i32
  }
  func.func @transform_2(%arg0: i32, %arg1: i32, %arg2: i32) -> (i32, i32) {
    %c0_i32 = arith.constant 0 : i32
    %c0_i32_0 = arith.constant 0 : i32
    return %c0_i32, %arg1 : i32, i32
  }
  func.func @transform_3(%arg0: i32, %arg1: i32, %arg2: i32) -> (i32, i32) {
    %c0_i32 = arith.constant 0 : i32
    return %arg0, %arg1 : i32, i32
  }
}

module attributes {stable_mosaic.version = 11 : i64} {
  func.func @_mm_kernel(%arg0: i32, %arg1: i32, %arg2: i32, %arg3: memref<128x640xbf16, #tpu.memory_space<vmem>>, %arg4: memref<640x128xbf16, #tpu.memory_space<vmem>>, %arg5: memref<1x128xf32, #tpu.memory_space<vmem>>, %arg6: memref<128x128xbf16, #tpu.memory_space<vmem>>, %arg7: memref<128x128xbf16, #tpu.memory_space<vmem>>, %arg8: memref<128x128xf32, #tpu.memory_space<vmem>>) attributes {dimension_semantics = [#tpu.dimension_semantics<parallel>, #tpu.dimension_semantics<parallel>, #tpu.dimension_semantics<arbitrary>], iteration_bounds = array<i64: 1, 1, 1>, scalar_prefetch = 0 : i64, scratch_operands = 1 : i64, tpu.core_type = #tpu.core_type<tc>, window_params = [{transform_indices = @transform_0, window_bounds = array<i64: 128, 640>}, {transform_indices = @transform_1, window_bounds = array<i64: 640, 128>}, {transform_indices = @transform_2, window_bounds = array<i64: 1, 128>}, {transform_indices = @transform_3, window_bounds = array<i64: 128, 128>}, {transform_indices = @transform_4, window_bounds = array<i64: 128, 128>}]} {
    %c0_i32 = arith.constant 0 : i32
    %0 = arith.cmpi eq, %arg2, %c0_i32 : i32
    %1 = arith.extui %0 : i1 to i32
    %c0_i32_0 = arith.constant 0 : i32
    %2 = arith.cmpi ne, %1, %c0_i32_0 : i32
    scf.if %2 {
      %cst_10 = arith.constant 0.000000e+00 : f32
      %12 = vector.broadcast %cst_10 : f32 to vector<128x128xf32>
      %c0_11 = arith.constant 0 : index
      %c0_12 = arith.constant 0 : index
      %13 = vector.load %arg8[%c0_11, %c0_12] : memref<128x128xf32, #tpu.memory_space<vmem>>, vector<128x128xf32>
      tpu.vector_store %arg8[%c0_11, %c0_12], %12 {strides = array<i32>} : memref<128x128xf32, #tpu.memory_space<vmem>>, vector<128x128xf32>,
    } else {
    }
    %c0 = arith.constant 0 : index
    %c0_1 = arith.constant 0 : index
    %3 = vector.load %arg8[%c0, %c0_1] : memref<128x128xf32, #tpu.memory_space<vmem>>, vector<128x128xf32>
    %c0_2 = arith.constant 0 : index
    %c0_3 = arith.constant 0 : index
    %4 = vector.load %arg3[%c0_2, %c0_3] : memref<128x640xbf16, #tpu.memory_space<vmem>>, vector<128x640xbf16>
    %c0_4 = arith.constant 0 : index
    %c0_5 = arith.constant 0 : index
    %5 = vector.load %arg4[%c0_4, %c0_5] : memref<640x128xbf16, #tpu.memory_space<vmem>>, vector<640x128xbf16>
    %cst = arith.constant dense<0.000000e+00> : vector<128x128xf32>
    %6 = tpu.matmul %4, %5, %cst {dimension_numbers = #tpu.dot_dimension_numbers<[1], [0], [0], [1], [0, 0, 1, 1], [], []>} : vector<128x640xbf16>, vector<640x128xbf16>, vector<128x128xf32> -> vector<128x128xf32>
    %7 = arith.addf %3, %6 : vector<128x128xf32>
    %c0_6 = arith.constant 0 : index
    %c0_7 = arith.constant 0 : index
    %8 = vector.load %arg8[%c0_6, %c0_7] : memref<128x128xf32, #tpu.memory_space<vmem>>, vector<128x128xf32>
    tpu.vector_store %arg8[%c0_6, %c0_7], %7 {strides = array<i32>} : memref<128x128xf32, #tpu.memory_space<vmem>>, vector<128x128xf32>,
    %c0_i32_8 = arith.constant 0 : i32
    %9 = arith.cmpi eq, %arg2, %c0_i32_8 : i32
    %10 = arith.extui %9 : i1 to i32
    %c0_i32_9 = arith.constant 0 : i32
    %11 = arith.cmpi ne, %10, %c0_i32_9 : i32
    scf.if %11 {
      %c0_10 = arith.constant 0 : index
      %c0_11 = arith.constant 0 : index
      %12 = vector.load %arg8[%c0_10, %c0_11] : memref<128x128xf32, #tpu.memory_space<vmem>>, vector<128x128xf32>
      %c0_12 = arith.constant 0 : index
      %c0_13 = arith.constant 0 : index
      %13 = vector.load %arg5[%c0_12, %c0_13] : memref<1x128xf32, #tpu.memory_space<vmem>>, vector<1x128xf32>
      %14 = vector.broadcast %13 : vector<1x128xf32> to vector<128x128xf32>
      %15 = arith.addf %12, %14 : vector<128x128xf32>
      %c0_14 = arith.constant 0 : index
      %c0_15 = arith.constant 0 : index
      %16 = vector.load %arg6[%c0_14, %c0_15] : memref<128x128xbf16, #tpu.memory_space<vmem>>, vector<128x128xbf16>
      %17 = arith.extf %16 : vector<128x128xbf16> to vector<128x128xf32>
      %18 = arith.addf %15, %17 : vector<128x128xf32>
      %cst_16 = arith.constant 0.000000e+00 : f32
      %19 = vector.broadcast %cst_16 : f32 to vector<128x128xf32>
      %20 = arith.maximumf %18, %19 : vector<128x128xf32>
      %21 = arith.truncf %20 : vector<128x128xf32> to vector<128x128xbf16>
      %c0_17 = arith.constant 0 : index
      %c0_18 = arith.constant 0 : index
      %22 = vector.load %arg7[%c0_17, %c0_18] : memref<128x128xbf16, #tpu.memory_space<vmem>>, vector<128x128xbf16>
      tpu.vector_store %arg7[%c0_17, %c0_18], %21 {strides = array<i32>} : memref<128x128xbf16, #tpu.memory_space<vmem>>, vector<128x128xbf16>,
    } else {
    }
    return
  }
  func.func @transform_0(%arg0: i32, %arg1: i32, %arg2: i32) -> (i32, i32) {
    %c0_i32 = arith.constant 0 : i32
    return %arg0, %arg2 : i32, i32
  }
  func.func @transform_1(%arg0: i32, %arg1: i32, %arg2: i32) -> (i32, i32) {
    %c0_i32 = arith.constant 0 : i32
    return %arg2, %arg1 : i32, i32
  }
  func.func @transform_2(%arg0: i32, %arg1: i32, %arg2: i32) -> (i32, i32) {
    %c0_i32 = arith.constant 0 : i32
    %c0_i32_0 = arith.constant 0 : i32
    return %c0_i32, %arg1 : i32, i32
  }
  func.func @transform_3(%arg0: i32, %arg1: i32, %arg2: i32) -> (i32, i32) {
    %c0_i32 = arith.constant 0 : i32
    return %arg0, %arg1 : i32, i32
  }
  func.func @transform_4(%arg0: i32, %arg1: i32, %arg2: i32) -> (i32, i32) {
    %c0_i32 = arith.constant 0 : i32
    return %arg0, %arg1 : i32, i32
  }
}

module attributes {stable_mosaic.version = 11 : i64} {
  func.func @_mm_kernel(%arg0: i32, %arg1: i32, %arg2: i32, %arg3: memref<128x640xbf16, #tpu.memory_space<vmem>>, %arg4: memref<640x128xbf16, #tpu.memory_space<vmem>>, %arg5: memref<1x128xf32, #tpu.memory_space<vmem>>, %arg6: memref<128x128xbf16, #tpu.memory_space<vmem>>, %arg7: memref<128x128xf32, #tpu.memory_space<vmem>>) attributes {dimension_semantics = [#tpu.dimension_semantics<parallel>, #tpu.dimension_semantics<parallel>, #tpu.dimension_semantics<arbitrary>], iteration_bounds = array<i64: 1, 1, 1>, scalar_prefetch = 0 : i64, scratch_operands = 1 : i64, tpu.core_type = #tpu.core_type<tc>, window_params = [{transform_indices = @transform_0, window_bounds = array<i64: 128, 640>}, {transform_indices = @transform_1, window_bounds = array<i64: 640, 128>}, {transform_indices = @transform_2, window_bounds = array<i64: 1, 128>}, {transform_indices = @transform_3, window_bounds = array<i64: 128, 128>}]} {
    %c0_i32 = arith.constant 0 : i32
    %0 = arith.cmpi eq, %arg2, %c0_i32 : i32
    %1 = arith.extui %0 : i1 to i32
    %c0_i32_0 = arith.constant 0 : i32
    %2 = arith.cmpi ne, %1, %c0_i32_0 : i32
    scf.if %2 {
      %cst_10 = arith.constant 0.000000e+00 : f32
      %12 = vector.broadcast %cst_10 : f32 to vector<128x128xf32>
      %c0_11 = arith.constant 0 : index
      %c0_12 = arith.constant 0 : index
      %13 = vector.load %arg7[%c0_11, %c0_12] : memref<128x128xf32, #tpu.memory_space<vmem>>, vector<128x128xf32>
      tpu.vector_store %arg7[%c0_11, %c0_12], %12 {strides = array<i32>} : memref<128x128xf32, #tpu.memory_space<vmem>>, vector<128x128xf32>,
    } else {
    }
    %c0 = arith.constant 0 : index
    %c0_1 = arith.constant 0 : index
    %3 = vector.load %arg7[%c0, %c0_1] : memref<128x128xf32, #tpu.memory_space<vmem>>, vector<128x128xf32>
    %c0_2 = arith.constant 0 : index
    %c0_3 = arith.constant 0 : index
    %4 = vector.load %arg3[%c0_2, %c0_3] : memref<128x640xbf16, #tpu.memory_space<vmem>>, vector<128x640xbf16>
    %c0_4 = arith.constant 0 : index
    %c0_5 = arith.constant 0 : index
    %5 = vector.load %arg4[%c0_4, %c0_5] : memref<640x128xbf16, #tpu.memory_space<vmem>>, vector<640x128xbf16>
    %cst = arith.constant dense<0.000000e+00> : vector<128x128xf32>
    %6 = tpu.matmul %4, %5, %cst {dimension_numbers = #tpu.dot_dimension_numbers<[1], [0], [0], [1], [0, 0, 1, 1], [], []>} : vector<128x640xbf16>, vector<640x128xbf16>, vector<128x128xf32> -> vector<128x128xf32>
    %7 = arith.addf %3, %6 : vector<128x128xf32>
    %c0_6 = arith.constant 0 : index
    %c0_7 = arith.constant 0 : index
    %8 = vector.load %arg7[%c0_6, %c0_7] : memref<128x128xf32, #tpu.memory_space<vmem>>, vector<128x128xf32>
    tpu.vector_store %arg7[%c0_6, %c0_7], %7 {strides = array<i32>} : memref<128x128xf32, #tpu.memory_space<vmem>>, vector<128x128xf32>,
    %c0_i32_8 = arith.constant 0 : i32
    %9 = arith.cmpi eq, %arg2, %c0_i32_8 : i32
    %10 = arith.extui %9 : i1 to i32
    %c0_i32_9 = arith.constant 0 : i32
    %11 = arith.cmpi ne, %10, %c0_i32_9 : i32
    scf.if %11 {
      %c0_10 = arith.constant 0 : index
      %c0_11 = arith.constant 0 : index
      %12 = vector.load %arg7[%c0_10, %c0_11] : memref<128x128xf32, #tpu.memory_space<vmem>>, vector<128x128xf32>
      %c0_12 = arith.constant 0 : index
      %c0_13 = arith.constant 0 : index
      %13 = vector.load %arg5[%c0_12, %c0_13] : memref<1x128xf32, #tpu.memory_space<vmem>>, vector<1x128xf32>
      %14 = vector.broadcast %13 : vector<1x128xf32> to vector<128x128xf32>
      %15 = arith.addf %12, %14 : vector<128x128xf32>
      %cst_14 = arith.constant 0.000000e+00 : f32
      %16 = vector.broadcast %cst_14 : f32 to vector<128x128xf32>
      %17 = arith.maximumf %15, %16 : vector<128x128xf32>
      %18 = arith.truncf %17 : vector<128x128xf32> to vector<128x128xbf16>
      %c0_15 = arith.constant 0 : index
      %c0_16 = arith.constant 0 : index
      %19 = vector.load %arg6[%c0_15, %c0_16] : memref<128x128xbf16, #tpu.memory_space<vmem>>, vector<128x128xbf16>
      tpu.vector_store %arg6[%c0_15, %c0_16], %18 {strides = array<i32>} : memref<128x128xbf16, #tpu.memory_space<vmem>>, vector<128x128xbf16>,
    } else {
    }
    return
  }
  func.func @transform_0(%arg0: i32, %arg1: i32, %arg2: i32) -> (i32, i32) {
    %c0_i32 = arith.constant 0 : i32
    return %arg0, %arg2 : i32, i32
  }
  func.func @transform_1(%arg0: i32, %arg1: i32, %arg2: i32) -> (i32, i32) {
    %c0_i32 = arith.constant 0 : i32
    return %arg2, %arg1 : i32, i32
  }
  func.func @transform_2(%arg0: i32, %arg1: i32, %arg2: i32) -> (i32, i32) {
    %c0_i32 = arith.constant 0 : i32
    %c0_i32_0 = arith.constant 0 : i32
    return %c0_i32, %arg1 : i32, i32
  }
  func.func @transform_3(%arg0: i32, %arg1: i32, %arg2: i32) -> (i32, i32) {
    %c0_i32 = arith.constant 0 : i32
    return %arg0, %arg1 : i32, i32
  }
}

module attributes {stable_mosaic.version = 11 : i64} {
  func.func @_mm_kernel(%arg0: i32, %arg1: i32, %arg2: i32, %arg3: memref<32x640xbf16, #tpu.memory_space<vmem>>, %arg4: memref<640x128xbf16, #tpu.memory_space<vmem>>, %arg5: memref<1x128xf32, #tpu.memory_space<vmem>>, %arg6: memref<32x128xbf16, #tpu.memory_space<vmem>>, %arg7: memref<32x128xf32, #tpu.memory_space<vmem>>) attributes {dimension_semantics = [#tpu.dimension_semantics<parallel>, #tpu.dimension_semantics<parallel>, #tpu.dimension_semantics<arbitrary>], iteration_bounds = array<i64: 1, 1, 1>, scalar_prefetch = 0 : i64, scratch_operands = 1 : i64, tpu.core_type = #tpu.core_type<tc>, window_params = [{transform_indices = @transform_0, window_bounds = array<i64: 32, 640>}, {transform_indices = @transform_1, window_bounds = array<i64: 640, 128>}, {transform_indices = @transform_2, window_bounds = array<i64: 1, 128>}, {transform_indices = @transform_3, window_bounds = array<i64: 32, 128>}]} {
    %c0_i32 = arith.constant 0 : i32
    %0 = arith.cmpi eq, %arg2, %c0_i32 : i32
    %1 = arith.extui %0 : i1 to i32
    %c0_i32_0 = arith.constant 0 : i32
    %2 = arith.cmpi ne, %1, %c0_i32_0 : i32
    scf.if %2 {
      %cst_10 = arith.constant 0.000000e+00 : f32
      %12 = vector.broadcast %cst_10 : f32 to vector<32x128xf32>
      %c0_11 = arith.constant 0 : index
      %c0_12 = arith.constant 0 : index
      %13 = vector.load %arg7[%c0_11, %c0_12] : memref<32x128xf32, #tpu.memory_space<vmem>>, vector<32x128xf32>
      tpu.vector_store %arg7[%c0_11, %c0_12], %12 {strides = array<i32>} : memref<32x128xf32, #tpu.memory_space<vmem>>, vector<32x128xf32>,
    } else {
    }
    %c0 = arith.constant 0 : index
    %c0_1 = arith.constant 0 : index
    %3 = vector.load %arg7[%c0, %c0_1] : memref<32x128xf32, #tpu.memory_space<vmem>>, vector<32x128xf32>
    %c0_2 = arith.constant 0 : index
    %c0_3 = arith.constant 0 : index
    %4 = vector.load %arg3[%c0_2, %c0_3] : memref<32x640xbf16, #tpu.memory_space<vmem>>, vector<32x640xbf16>
    %c0_4 = arith.constant 0 : index
    %c0_5 = arith.constant 0 : index
    %5 = vector.load %arg4[%c0_4, %c0_5] : memref<640x128xbf16, #tpu.memory_space<vmem>>, vector<640x128xbf16>
    %cst = arith.constant dense<0.000000e+00> : vector<32x128xf32>
    %6 = tpu.matmul %4, %5, %cst {dimension_numbers = #tpu.dot_dimension_numbers<[1], [0], [0], [1], [0, 0, 1, 1], [], []>} : vector<32x640xbf16>, vector<640x128xbf16>, vector<32x128xf32> -> vector<32x128xf32>
    %7 = arith.addf %3, %6 : vector<32x128xf32>
    %c0_6 = arith.constant 0 : index
    %c0_7 = arith.constant 0 : index
    %8 = vector.load %arg7[%c0_6, %c0_7] : memref<32x128xf32, #tpu.memory_space<vmem>>, vector<32x128xf32>
    tpu.vector_store %arg7[%c0_6, %c0_7], %7 {strides = array<i32>} : memref<32x128xf32, #tpu.memory_space<vmem>>, vector<32x128xf32>,
    %c0_i32_8 = arith.constant 0 : i32
    %9 = arith.cmpi eq, %arg2, %c0_i32_8 : i32
    %10 = arith.extui %9 : i1 to i32
    %c0_i32_9 = arith.constant 0 : i32
    %11 = arith.cmpi ne, %10, %c0_i32_9 : i32
    scf.if %11 {
      %c0_10 = arith.constant 0 : index
      %c0_11 = arith.constant 0 : index
      %12 = vector.load %arg7[%c0_10, %c0_11] : memref<32x128xf32, #tpu.memory_space<vmem>>, vector<32x128xf32>
      %c0_12 = arith.constant 0 : index
      %c0_13 = arith.constant 0 : index
      %13 = vector.load %arg5[%c0_12, %c0_13] : memref<1x128xf32, #tpu.memory_space<vmem>>, vector<1x128xf32>
      %14 = vector.broadcast %13 : vector<1x128xf32> to vector<32x128xf32>
      %15 = arith.addf %12, %14 : vector<32x128xf32>
      %cst_14 = arith.constant 0.000000e+00 : f32
      %16 = vector.broadcast %cst_14 : f32 to vector<32x128xf32>
      %17 = arith.maximumf %15, %16 : vector<32x128xf32>
      %18 = arith.truncf %17 : vector<32x128xf32> to vector<32x128xbf16>
      %c0_15 = arith.constant 0 : index
      %c0_16 = arith.constant 0 : index
      %19 = vector.load %arg6[%c0_15, %c0_16] : memref<32x128xbf16, #tpu.memory_space<vmem>>, vector<32x128xbf16>
      tpu.vector_store %arg6[%c0_15, %c0_16], %18 {strides = array<i32>} : memref<32x128xbf16, #tpu.memory_space<vmem>>, vector<32x128xbf16>,
    } else {
    }
    return
  }
  func.func @transform_0(%arg0: i32, %arg1: i32, %arg2: i32) -> (i32, i32) {
    %c0_i32 = arith.constant 0 : i32
    return %arg0, %arg2 : i32, i32
  }
  func.func @transform_1(%arg0: i32, %arg1: i32, %arg2: i32) -> (i32, i32) {
    %c0_i32 = arith.constant 0 : i32
    return %arg2, %arg1 : i32, i32
  }
  func.func @transform_2(%arg0: i32, %arg1: i32, %arg2: i32) -> (i32, i32) {
    %c0_i32 = arith.constant 0 : i32
    %c0_i32_0 = arith.constant 0 : i32
    return %c0_i32, %arg1 : i32, i32
  }
  func.func @transform_3(%arg0: i32, %arg1: i32, %arg2: i32) -> (i32, i32) {
    %c0_i32 = arith.constant 0 : i32
    return %arg0, %arg1 : i32, i32
  }
}

module attributes {stable_mosaic.version = 11 : i64} {
  func.func @_mm_kernel(%arg0: i32, %arg1: i32, %arg2: i32, %arg3: memref<32x128xbf16, #tpu.memory_space<vmem>>, %arg4: memref<128x128xbf16, #tpu.memory_space<vmem>>, %arg5: memref<1x128xf32, #tpu.memory_space<vmem>>, %arg6: memref<32x128xbf16, #tpu.memory_space<vmem>>, %arg7: memref<32x128xf32, #tpu.memory_space<vmem>>) attributes {dimension_semantics = [#tpu.dimension_semantics<parallel>, #tpu.dimension_semantics<parallel>, #tpu.dimension_semantics<arbitrary>], iteration_bounds = array<i64: 1, 1, 1>, scalar_prefetch = 0 : i64, scratch_operands = 1 : i64, tpu.core_type = #tpu.core_type<tc>, window_params = [{transform_indices = @transform_0, window_bounds = array<i64: 32, 128>}, {transform_indices = @transform_1, window_bounds = array<i64: 128, 128>}, {transform_indices = @transform_2, window_bounds = array<i64: 1, 128>}, {transform_indices = @transform_3, window_bounds = array<i64: 32, 128>}]} {
    %c0_i32 = arith.constant 0 : i32
    %0 = arith.cmpi eq, %arg2, %c0_i32 : i32
    %1 = arith.extui %0 : i1 to i32
    %c0_i32_0 = arith.constant 0 : i32
    %2 = arith.cmpi ne, %1, %c0_i32_0 : i32
    scf.if %2 {
      %cst_10 = arith.constant 0.000000e+00 : f32
      %12 = vector.broadcast %cst_10 : f32 to vector<32x128xf32>
      %c0_11 = arith.constant 0 : index
      %c0_12 = arith.constant 0 : index
      %13 = vector.load %arg7[%c0_11, %c0_12] : memref<32x128xf32, #tpu.memory_space<vmem>>, vector<32x128xf32>
      tpu.vector_store %arg7[%c0_11, %c0_12], %12 {strides = array<i32>} : memref<32x128xf32, #tpu.memory_space<vmem>>, vector<32x128xf32>,
    } else {
    }
    %c0 = arith.constant 0 : index
    %c0_1 = arith.constant 0 : index
    %3 = vector.load %arg7[%c0, %c0_1] : memref<32x128xf32, #tpu.memory_space<vmem>>, vector<32x128xf32>
    %c0_2 = arith.constant 0 : index
    %c0_3 = arith.constant 0 : index
    %4 = vector.load %arg3[%c0_2, %c0_3] : memref<32x128xbf16, #tpu.memory_space<vmem>>, vector<32x128xbf16>
    %c0_4 = arith.constant 0 : index
    %c0_5 = arith.constant 0 : index
    %5 = vector.load %arg4[%c0_4, %c0_5] : memref<128x128xbf16, #tpu.memory_space<vmem>>, vector<128x128xbf16>
    %cst = arith.constant dense<0.000000e+00> : vector<32x128xf32>
    %6 = tpu.matmul %4, %5, %cst {dimension_numbers = #tpu.dot_dimension_numbers<[1], [0], [0], [1], [0, 0, 1, 1], [], []>} : vector<32x128xbf16>, vector<128x128xbf16>, vector<32x128xf32> -> vector<32x128xf32>
    %7 = arith.addf %3, %6 : vector<32x128xf32>
    %c0_6 = arith.constant 0 : index
    %c0_7 = arith.constant 0 : index
    %8 = vector.load %arg7[%c0_6, %c0_7] : memref<32x128xf32, #tpu.memory_space<vmem>>, vector<32x128xf32>
    tpu.vector_store %arg7[%c0_6, %c0_7], %7 {strides = array<i32>} : memref<32x128xf32, #tpu.memory_space<vmem>>, vector<32x128xf32>,
    %c0_i32_8 = arith.constant 0 : i32
    %9 = arith.cmpi eq, %arg2, %c0_i32_8 : i32
    %10 = arith.extui %9 : i1 to i32
    %c0_i32_9 = arith.constant 0 : i32
    %11 = arith.cmpi ne, %10, %c0_i32_9 : i32
    scf.if %11 {
      %c0_10 = arith.constant 0 : index
      %c0_11 = arith.constant 0 : index
      %12 = vector.load %arg7[%c0_10, %c0_11] : memref<32x128xf32, #tpu.memory_space<vmem>>, vector<32x128xf32>
      %c0_12 = arith.constant 0 : index
      %c0_13 = arith.constant 0 : index
      %13 = vector.load %arg5[%c0_12, %c0_13] : memref<1x128xf32, #tpu.memory_space<vmem>>, vector<1x128xf32>
      %14 = vector.broadcast %13 : vector<1x128xf32> to vector<32x128xf32>
      %15 = arith.addf %12, %14 : vector<32x128xf32>
      %16 = arith.truncf %15 : vector<32x128xf32> to vector<32x128xbf16>
      %c0_14 = arith.constant 0 : index
      %c0_15 = arith.constant 0 : index
      %17 = vector.load %arg6[%c0_14, %c0_15] : memref<32x128xbf16, #tpu.memory_space<vmem>>, vector<32x128xbf16>
      tpu.vector_store %arg6[%c0_14, %c0_15], %16 {strides = array<i32>} : memref<32x128xbf16, #tpu.memory_space<vmem>>, vector<32x128xbf16>,
    } else {
    }
    return
  }
  func.func @transform_0(%arg0: i32, %arg1: i32, %arg2: i32) -> (i32, i32) {
    %c0_i32 = arith.constant 0 : i32
    return %arg0, %arg2 : i32, i32
  }
  func.func @transform_1(%arg0: i32, %arg1: i32, %arg2: i32) -> (i32, i32) {
    %c0_i32 = arith.constant 0 : i32
    return %arg2, %arg1 : i32, i32
  }
  func.func @transform_2(%arg0: i32, %arg1: i32, %arg2: i32) -> (i32, i32) {
    %c0_i32 = arith.constant 0 : i32
    %c0_i32_0 = arith.constant 0 : i32
    return %c0_i32, %arg1 : i32, i32
  }
  func.func @transform_3(%arg0: i32, %arg1: i32, %arg2: i32) -> (i32, i32) {
    %c0_i32 = arith.constant 0 : i32
    return %arg0, %arg1 : i32, i32
  }
}

module attributes {stable_mosaic.version = 11 : i64} {
  func.func @_mm_kernel(%arg0: i32, %arg1: i32, %arg2: i32, %arg3: memref<32x512xbf16, #tpu.memory_space<vmem>>, %arg4: memref<512x128xbf16, #tpu.memory_space<vmem>>, %arg5: memref<1x128xf32, #tpu.memory_space<vmem>>, %arg6: memref<32x128xbf16, #tpu.memory_space<vmem>>, %arg7: memref<32x128xbf16, #tpu.memory_space<vmem>>, %arg8: memref<32x128xf32, #tpu.memory_space<vmem>>) attributes {dimension_semantics = [#tpu.dimension_semantics<parallel>, #tpu.dimension_semantics<parallel>, #tpu.dimension_semantics<arbitrary>], iteration_bounds = array<i64: 1, 1, 3>, scalar_prefetch = 0 : i64, scratch_operands = 1 : i64, tpu.core_type = #tpu.core_type<tc>, window_params = [{transform_indices = @transform_0, window_bounds = array<i64: 32, 512>}, {transform_indices = @transform_1, window_bounds = array<i64: 512, 128>}, {transform_indices = @transform_2, window_bounds = array<i64: 1, 128>}, {transform_indices = @transform_3, window_bounds = array<i64: 32, 128>}, {transform_indices = @transform_4, window_bounds = array<i64: 32, 128>}]} {
    %c0_i32 = arith.constant 0 : i32
    %0 = arith.cmpi eq, %arg2, %c0_i32 : i32
    %1 = arith.extui %0 : i1 to i32
    %c0_i32_0 = arith.constant 0 : i32
    %2 = arith.cmpi ne, %1, %c0_i32_0 : i32
    scf.if %2 {
      %cst_9 = arith.constant 0.000000e+00 : f32
      %12 = vector.broadcast %cst_9 : f32 to vector<32x128xf32>
      %c0_10 = arith.constant 0 : index
      %c0_11 = arith.constant 0 : index
      %13 = vector.load %arg8[%c0_10, %c0_11] : memref<32x128xf32, #tpu.memory_space<vmem>>, vector<32x128xf32>
      tpu.vector_store %arg8[%c0_10, %c0_11], %12 {strides = array<i32>} : memref<32x128xf32, #tpu.memory_space<vmem>>, vector<32x128xf32>,
    } else {
    }
    %c0 = arith.constant 0 : index
    %c0_1 = arith.constant 0 : index
    %3 = vector.load %arg8[%c0, %c0_1] : memref<32x128xf32, #tpu.memory_space<vmem>>, vector<32x128xf32>
    %c0_2 = arith.constant 0 : index
    %c0_3 = arith.constant 0 : index
    %4 = vector.load %arg3[%c0_2, %c0_3] : memref<32x512xbf16, #tpu.memory_space<vmem>>, vector<32x512xbf16>
    %c0_4 = arith.constant 0 : index
    %c0_5 = arith.constant 0 : index
    %5 = vector.load %arg4[%c0_4, %c0_5] : memref<512x128xbf16, #tpu.memory_space<vmem>>, vector<512x128xbf16>
    %cst = arith.constant dense<0.000000e+00> : vector<32x128xf32>
    %6 = tpu.matmul %4, %5, %cst {dimension_numbers = #tpu.dot_dimension_numbers<[1], [0], [0], [1], [0, 0, 1, 1], [], []>} : vector<32x512xbf16>, vector<512x128xbf16>, vector<32x128xf32> -> vector<32x128xf32>
    %7 = arith.addf %3, %6 : vector<32x128xf32>
    %c0_6 = arith.constant 0 : index
    %c0_7 = arith.constant 0 : index
    %8 = vector.load %arg8[%c0_6, %c0_7] : memref<32x128xf32, #tpu.memory_space<vmem>>, vector<32x128xf32>
    tpu.vector_store %arg8[%c0_6, %c0_7], %7 {strides = array<i32>} : memref<32x128xf32, #tpu.memory_space<vmem>>, vector<32x128xf32>,
    %c2_i32 = arith.constant 2 : i32
    %9 = arith.cmpi eq, %arg2, %c2_i32 : i32
    %10 = arith.extui %9 : i1 to i32
    %c0_i32_8 = arith.constant 0 : i32
    %11 = arith.cmpi ne, %10, %c0_i32_8 : i32
    scf.if %11 {
      %c0_9 = arith.constant 0 : index
      %c0_10 = arith.constant 0 : index
      %12 = vector.load %arg8[%c0_9, %c0_10] : memref<32x128xf32, #tpu.memory_space<vmem>>, vector<32x128xf32>
      %c0_11 = arith.constant 0 : index
      %c0_12 = arith.constant 0 : index
      %13 = vector.load %arg5[%c0_11, %c0_12] : memref<1x128xf32, #tpu.memory_space<vmem>>, vector<1x128xf32>
      %14 = vector.broadcast %13 : vector<1x128xf32> to vector<32x128xf32>
      %15 = arith.addf %12, %14 : vector<32x128xf32>
      %c0_13 = arith.constant 0 : index
      %c0_14 = arith.constant 0 : index
      %16 = vector.load %arg6[%c0_13, %c0_14] : memref<32x128xbf16, #tpu.memory_space<vmem>>, vector<32x128xbf16>
      %17 = arith.extf %16 : vector<32x128xbf16> to vector<32x128xf32>
      %18 = arith.addf %15, %17 : vector<32x128xf32>
      %cst_15 = arith.constant 0.000000e+00 : f32
      %19 = vector.broadcast %cst_15 : f32 to vector<32x128xf32>
      %20 = arith.maximumf %18, %19 : vector<32x128xf32>
      %21 = arith.truncf %20 : vector<32x128xf32> to vector<32x128xbf16>
      %c0_16 = arith.constant 0 : index
      %c0_17 = arith.constant 0 : index
      %22 = vector.load %arg7[%c0_16, %c0_17] : memref<32x128xbf16, #tpu.memory_space<vmem>>, vector<32x128xbf16>
      tpu.vector_store %arg7[%c0_16, %c0_17], %21 {strides = array<i32>} : memref<32x128xbf16, #tpu.memory_space<vmem>>, vector<32x128xbf16>,
    } else {
    }
    return
  }
  func.func @transform_0(%arg0: i32, %arg1: i32, %arg2: i32) -> (i32, i32) {
    %c0_i32 = arith.constant 0 : i32
    return %arg0, %arg2 : i32, i32
  }
  func.func @transform_1(%arg0: i32, %arg1: i32, %arg2: i32) -> (i32, i32) {
    %c0_i32 = arith.constant 0 : i32
    return %arg2, %arg1 : i32, i32
  }
  func.func @transform_2(%arg0: i32, %arg1: i32, %arg2: i32) -> (i32, i32) {
    %c0_i32 = arith.constant 0 : i32
    %c0_i32_0 = arith.constant 0 : i32
    return %c0_i32, %arg1 : i32, i32
  }
  func.func @transform_3(%arg0: i32, %arg1: i32, %arg2: i32) -> (i32, i32) {
    %c0_i32 = arith.constant 0 : i32
    return %arg0, %arg1 : i32, i32
  }
  func.func @transform_4(%arg0: i32, %arg1: i32, %arg2: i32) -> (i32, i32) {
    %c0_i32 = arith.constant 0 : i32
    return %arg0, %arg1 : i32, i32
  }
}

module attributes {stable_mosaic.version = 11 : i64} {
  func.func @_mm_kernel(%arg0: i32, %arg1: i32, %arg2: i32, %arg3: memref<32x512xbf16, #tpu.memory_space<vmem>>, %arg4: memref<512x128xbf16, #tpu.memory_space<vmem>>, %arg5: memref<1x128xf32, #tpu.memory_space<vmem>>, %arg6: memref<32x128xbf16, #tpu.memory_space<vmem>>, %arg7: memref<32x128xf32, #tpu.memory_space<vmem>>) attributes {dimension_semantics = [#tpu.dimension_semantics<parallel>, #tpu.dimension_semantics<parallel>, #tpu.dimension_semantics<arbitrary>], iteration_bounds = array<i64: 1, 1, 3>, scalar_prefetch = 0 : i64, scratch_operands = 1 : i64, tpu.core_type = #tpu.core_type<tc>, window_params = [{transform_indices = @transform_0, window_bounds = array<i64: 32, 512>}, {transform_indices = @transform_1, window_bounds = array<i64: 512, 128>}, {transform_indices = @transform_2, window_bounds = array<i64: 1, 128>}, {transform_indices = @transform_3, window_bounds = array<i64: 32, 128>}]} {
    %c0_i32 = arith.constant 0 : i32
    %0 = arith.cmpi eq, %arg2, %c0_i32 : i32
    %1 = arith.extui %0 : i1 to i32
    %c0_i32_0 = arith.constant 0 : i32
    %2 = arith.cmpi ne, %1, %c0_i32_0 : i32
    scf.if %2 {
      %cst_9 = arith.constant 0.000000e+00 : f32
      %12 = vector.broadcast %cst_9 : f32 to vector<32x128xf32>
      %c0_10 = arith.constant 0 : index
      %c0_11 = arith.constant 0 : index
      %13 = vector.load %arg7[%c0_10, %c0_11] : memref<32x128xf32, #tpu.memory_space<vmem>>, vector<32x128xf32>
      tpu.vector_store %arg7[%c0_10, %c0_11], %12 {strides = array<i32>} : memref<32x128xf32, #tpu.memory_space<vmem>>, vector<32x128xf32>,
    } else {
    }
    %c0 = arith.constant 0 : index
    %c0_1 = arith.constant 0 : index
    %3 = vector.load %arg7[%c0, %c0_1] : memref<32x128xf32, #tpu.memory_space<vmem>>, vector<32x128xf32>
    %c0_2 = arith.constant 0 : index
    %c0_3 = arith.constant 0 : index
    %4 = vector.load %arg3[%c0_2, %c0_3] : memref<32x512xbf16, #tpu.memory_space<vmem>>, vector<32x512xbf16>
    %c0_4 = arith.constant 0 : index
    %c0_5 = arith.constant 0 : index
    %5 = vector.load %arg4[%c0_4, %c0_5] : memref<512x128xbf16, #tpu.memory_space<vmem>>, vector<512x128xbf16>
    %cst = arith.constant dense<0.000000e+00> : vector<32x128xf32>
    %6 = tpu.matmul %4, %5, %cst {dimension_numbers = #tpu.dot_dimension_numbers<[1], [0], [0], [1], [0, 0, 1, 1], [], []>} : vector<32x512xbf16>, vector<512x128xbf16>, vector<32x128xf32> -> vector<32x128xf32>
    %7 = arith.addf %3, %6 : vector<32x128xf32>
    %c0_6 = arith.constant 0 : index
    %c0_7 = arith.constant 0 : index
    %8 = vector.load %arg7[%c0_6, %c0_7] : memref<32x128xf32, #tpu.memory_space<vmem>>, vector<32x128xf32>
    tpu.vector_store %arg7[%c0_6, %c0_7], %7 {strides = array<i32>} : memref<32x128xf32, #tpu.memory_space<vmem>>, vector<32x128xf32>,
    %c2_i32 = arith.constant 2 : i32
    %9 = arith.cmpi eq, %arg2, %c2_i32 : i32
    %10 = arith.extui %9 : i1 to i32
    %c0_i32_8 = arith.constant 0 : i32
    %11 = arith.cmpi ne, %10, %c0_i32_8 : i32
    scf.if %11 {
      %c0_9 = arith.constant 0 : index
      %c0_10 = arith.constant 0 : index
      %12 = vector.load %arg7[%c0_9, %c0_10] : memref<32x128xf32, #tpu.memory_space<vmem>>, vector<32x128xf32>
      %c0_11 = arith.constant 0 : index
      %c0_12 = arith.constant 0 : index
      %13 = vector.load %arg5[%c0_11, %c0_12] : memref<1x128xf32, #tpu.memory_space<vmem>>, vector<1x128xf32>
      %14 = vector.broadcast %13 : vector<1x128xf32> to vector<32x128xf32>
      %15 = arith.addf %12, %14 : vector<32x128xf32>
      %cst_13 = arith.constant 0.000000e+00 : f32
      %16 = vector.broadcast %cst_13 : f32 to vector<32x128xf32>
      %17 = arith.maximumf %15, %16 : vector<32x128xf32>
      %18 = arith.truncf %17 : vector<32x128xf32> to vector<32x128xbf16>
      %c0_14 = arith.constant 0 : index
      %c0_15 = arith.constant 0 : index
      %19 = vector.load %arg6[%c0_14, %c0_15] : memref<32x128xbf16, #tpu.memory_space<vmem>>, vector<32x128xbf16>
      tpu.vector_store %arg6[%c0_14, %c0_15], %18 {strides = array<i32>} : memref<32x128xbf16, #tpu.memory_space<vmem>>, vector<32x128xbf16>,
    } else {
    }
    return
  }
  func.func @transform_0(%arg0: i32, %arg1: i32, %arg2: i32) -> (i32, i32) {
    %c0_i32 = arith.constant 0 : i32
    return %arg0, %arg2 : i32, i32
  }
  func.func @transform_1(%arg0: i32, %arg1: i32, %arg2: i32) -> (i32, i32) {
    %c0_i32 = arith.constant 0 : i32
    return %arg2, %arg1 : i32, i32
  }
  func.func @transform_2(%arg0: i32, %arg1: i32, %arg2: i32) -> (i32, i32) {
    %c0_i32 = arith.constant 0 : i32
    %c0_i32_0 = arith.constant 0 : i32
    return %c0_i32, %arg1 : i32, i32
  }
  func.func @transform_3(%arg0: i32, %arg1: i32, %arg2: i32) -> (i32, i32) {
    %c0_i32 = arith.constant 0 : i32
    return %arg0, %arg1 : i32, i32
  }
}

module attributes {stable_mosaic.version = 11 : i64} {
  func.func @_mm_kernel(%arg0: i32, %arg1: i32, %arg2: i32, %arg3: memref<16x512xbf16, #tpu.memory_space<vmem>>, %arg4: memref<512x256xbf16, #tpu.memory_space<vmem>>, %arg5: memref<1x256xf32, #tpu.memory_space<vmem>>, %arg6: memref<16x256xbf16, #tpu.memory_space<vmem>>, %arg7: memref<16x256xf32, #tpu.memory_space<vmem>>) attributes {dimension_semantics = [#tpu.dimension_semantics<parallel>, #tpu.dimension_semantics<parallel>, #tpu.dimension_semantics<arbitrary>], iteration_bounds = array<i64: 1, 1, 3>, scalar_prefetch = 0 : i64, scratch_operands = 1 : i64, tpu.core_type = #tpu.core_type<tc>, window_params = [{transform_indices = @transform_0, window_bounds = array<i64: 16, 512>}, {transform_indices = @transform_1, window_bounds = array<i64: 512, 256>}, {transform_indices = @transform_2, window_bounds = array<i64: 1, 256>}, {transform_indices = @transform_3, window_bounds = array<i64: 16, 256>}]} {
    %c0_i32 = arith.constant 0 : i32
    %0 = arith.cmpi eq, %arg2, %c0_i32 : i32
    %1 = arith.extui %0 : i1 to i32
    %c0_i32_0 = arith.constant 0 : i32
    %2 = arith.cmpi ne, %1, %c0_i32_0 : i32
    scf.if %2 {
      %cst_9 = arith.constant 0.000000e+00 : f32
      %12 = vector.broadcast %cst_9 : f32 to vector<16x256xf32>
      %c0_10 = arith.constant 0 : index
      %c0_11 = arith.constant 0 : index
      %13 = vector.load %arg7[%c0_10, %c0_11] : memref<16x256xf32, #tpu.memory_space<vmem>>, vector<16x256xf32>
      tpu.vector_store %arg7[%c0_10, %c0_11], %12 {strides = array<i32>} : memref<16x256xf32, #tpu.memory_space<vmem>>, vector<16x256xf32>,
    } else {
    }
    %c0 = arith.constant 0 : index
    %c0_1 = arith.constant 0 : index
    %3 = vector.load %arg7[%c0, %c0_1] : memref<16x256xf32, #tpu.memory_space<vmem>>, vector<16x256xf32>
    %c0_2 = arith.constant 0 : index
    %c0_3 = arith.constant 0 : index
    %4 = vector.load %arg3[%c0_2, %c0_3] : memref<16x512xbf16, #tpu.memory_space<vmem>>, vector<16x512xbf16>
    %c0_4 = arith.constant 0 : index
    %c0_5 = arith.constant 0 : index
    %5 = vector.load %arg4[%c0_4, %c0_5] : memref<512x256xbf16, #tpu.memory_space<vmem>>, vector<512x256xbf16>
    %cst = arith.constant dense<0.000000e+00> : vector<16x256xf32>
    %6 = tpu.matmul %4, %5, %cst {dimension_numbers = #tpu.dot_dimension_numbers<[1], [0], [0], [1], [0, 0, 1, 1], [], []>} : vector<16x512xbf16>, vector<512x256xbf16>, vector<16x256xf32> -> vector<16x256xf32>
    %7 = arith.addf %3, %6 : vector<16x256xf32>
    %c0_6 = arith.constant 0 : index
    %c0_7 = arith.constant 0 : index
    %8 = vector.load %arg7[%c0_6, %c0_7] : memref<16x256xf32, #tpu.memory_space<vmem>>, vector<16x256xf32>
    tpu.vector_store %arg7[%c0_6, %c0_7], %7 {strides = array<i32>} : memref<16x256xf32, #tpu.memory_space<vmem>>, vector<16x256xf32>,
    %c2_i32 = arith.constant 2 : i32
    %9 = arith.cmpi eq, %arg2, %c2_i32 : i32
    %10 = arith.extui %9 : i1 to i32
    %c0_i32_8 = arith.constant 0 : i32
    %11 = arith.cmpi ne, %10, %c0_i32_8 : i32
    scf.if %11 {
      %c0_9 = arith.constant 0 : index
      %c0_10 = arith.constant 0 : index
      %12 = vector.load %arg7[%c0_9, %c0_10] : memref<16x256xf32, #tpu.memory_space<vmem>>, vector<16x256xf32>
      %c0_11 = arith.constant 0 : index
      %c0_12 = arith.constant 0 : index
      %13 = vector.load %arg5[%c0_11, %c0_12] : memref<1x256xf32, #tpu.memory_space<vmem>>, vector<1x256xf32>
      %14 = vector.broadcast %13 : vector<1x256xf32> to vector<16x256xf32>
      %15 = arith.addf %12, %14 : vector<16x256xf32>
      %cst_13 = arith.constant 0.000000e+00 : f32
      %16 = vector.broadcast %cst_13 : f32 to vector<16x256xf32>
      %17 = arith.maximumf %15, %16 : vector<16x256xf32>
      %18 = arith.truncf %17 : vector<16x256xf32> to vector<16x256xbf16>
      %c0_14 = arith.constant 0 : index
      %c0_15 = arith.constant 0 : index
      %19 = vector.load %arg6[%c0_14, %c0_15] : memref<16x256xbf16, #tpu.memory_space<vmem>>, vector<16x256xbf16>
      tpu.vector_store %arg6[%c0_14, %c0_15], %18 {strides = array<i32>} : memref<16x256xbf16, #tpu.memory_space<vmem>>, vector<16x256xbf16>,
    } else {
    }
    return
  }
  func.func @transform_0(%arg0: i32, %arg1: i32, %arg2: i32) -> (i32, i32) {
    %c0_i32 = arith.constant 0 : i32
    return %arg0, %arg2 : i32, i32
  }
  func.func @transform_1(%arg0: i32, %arg1: i32, %arg2: i32) -> (i32, i32) {
    %c0_i32 = arith.constant 0 : i32
    return %arg2, %arg1 : i32, i32
  }
  func.func @transform_2(%arg0: i32, %arg1: i32, %arg2: i32) -> (i32, i32) {
    %c0_i32 = arith.constant 0 : i32
    %c0_i32_0 = arith.constant 0 : i32
    return %c0_i32, %arg1 : i32, i32
  }
  func.func @transform_3(%arg0: i32, %arg1: i32, %arg2: i32) -> (i32, i32) {
    %c0_i32 = arith.constant 0 : i32
    return %arg0, %arg1 : i32, i32
  }
}

module attributes {stable_mosaic.version = 11 : i64} {
  func.func @_mm_kernel(%arg0: i32, %arg1: i32, %arg2: i32, %arg3: memref<16x128xbf16, #tpu.memory_space<vmem>>, %arg4: memref<128x256xbf16, #tpu.memory_space<vmem>>, %arg5: memref<1x256xf32, #tpu.memory_space<vmem>>, %arg6: memref<16x256xbf16, #tpu.memory_space<vmem>>, %arg7: memref<16x256xf32, #tpu.memory_space<vmem>>) attributes {dimension_semantics = [#tpu.dimension_semantics<parallel>, #tpu.dimension_semantics<parallel>, #tpu.dimension_semantics<arbitrary>], iteration_bounds = array<i64: 1, 1, 1>, scalar_prefetch = 0 : i64, scratch_operands = 1 : i64, tpu.core_type = #tpu.core_type<tc>, window_params = [{transform_indices = @transform_0, window_bounds = array<i64: 16, 128>}, {transform_indices = @transform_1, window_bounds = array<i64: 128, 256>}, {transform_indices = @transform_2, window_bounds = array<i64: 1, 256>}, {transform_indices = @transform_3, window_bounds = array<i64: 16, 256>}]} {
    %c0_i32 = arith.constant 0 : i32
    %0 = arith.cmpi eq, %arg2, %c0_i32 : i32
    %1 = arith.extui %0 : i1 to i32
    %c0_i32_0 = arith.constant 0 : i32
    %2 = arith.cmpi ne, %1, %c0_i32_0 : i32
    scf.if %2 {
      %cst_10 = arith.constant 0.000000e+00 : f32
      %12 = vector.broadcast %cst_10 : f32 to vector<16x256xf32>
      %c0_11 = arith.constant 0 : index
      %c0_12 = arith.constant 0 : index
      %13 = vector.load %arg7[%c0_11, %c0_12] : memref<16x256xf32, #tpu.memory_space<vmem>>, vector<16x256xf32>
      tpu.vector_store %arg7[%c0_11, %c0_12], %12 {strides = array<i32>} : memref<16x256xf32, #tpu.memory_space<vmem>>, vector<16x256xf32>,
    } else {
    }
    %c0 = arith.constant 0 : index
    %c0_1 = arith.constant 0 : index
    %3 = vector.load %arg7[%c0, %c0_1] : memref<16x256xf32, #tpu.memory_space<vmem>>, vector<16x256xf32>
    %c0_2 = arith.constant 0 : index
    %c0_3 = arith.constant 0 : index
    %4 = vector.load %arg3[%c0_2, %c0_3] : memref<16x128xbf16, #tpu.memory_space<vmem>>, vector<16x128xbf16>
    %c0_4 = arith.constant 0 : index
    %c0_5 = arith.constant 0 : index
    %5 = vector.load %arg4[%c0_4, %c0_5] : memref<128x256xbf16, #tpu.memory_space<vmem>>, vector<128x256xbf16>
    %cst = arith.constant dense<0.000000e+00> : vector<16x256xf32>
    %6 = tpu.matmul %4, %5, %cst {dimension_numbers = #tpu.dot_dimension_numbers<[1], [0], [0], [1], [0, 0, 1, 1], [], []>} : vector<16x128xbf16>, vector<128x256xbf16>, vector<16x256xf32> -> vector<16x256xf32>
    %7 = arith.addf %3, %6 : vector<16x256xf32>
    %c0_6 = arith.constant 0 : index
    %c0_7 = arith.constant 0 : index
    %8 = vector.load %arg7[%c0_6, %c0_7] : memref<16x256xf32, #tpu.memory_space<vmem>>, vector<16x256xf32>
    tpu.vector_store %arg7[%c0_6, %c0_7], %7 {strides = array<i32>} : memref<16x256xf32, #tpu.memory_space<vmem>>, vector<16x256xf32>,
    %c0_i32_8 = arith.constant 0 : i32
    %9 = arith.cmpi eq, %arg2, %c0_i32_8 : i32
    %10 = arith.extui %9 : i1 to i32
    %c0_i32_9 = arith.constant 0 : i32
    %11 = arith.cmpi ne, %10, %c0_i32_9 : i32
    scf.if %11 {
      %c0_10 = arith.constant 0 : index
      %c0_11 = arith.constant 0 : index
      %12 = vector.load %arg7[%c0_10, %c0_11] : memref<16x256xf32, #tpu.memory_space<vmem>>, vector<16x256xf32>
      %c0_12 = arith.constant 0 : index
      %c0_13 = arith.constant 0 : index
      %13 = vector.load %arg5[%c0_12, %c0_13] : memref<1x256xf32, #tpu.memory_space<vmem>>, vector<1x256xf32>
      %14 = vector.broadcast %13 : vector<1x256xf32> to vector<16x256xf32>
      %15 = arith.addf %12, %14 : vector<16x256xf32>
      %16 = arith.truncf %15 : vector<16x256xf32> to vector<16x256xbf16>
      %c0_14 = arith.constant 0 : index
      %c0_15 = arith.constant 0 : index
      %17 = vector.load %arg6[%c0_14, %c0_15] : memref<16x256xbf16, #tpu.memory_space<vmem>>, vector<16x256xbf16>
      tpu.vector_store %arg6[%c0_14, %c0_15], %16 {strides = array<i32>} : memref<16x256xbf16, #tpu.memory_space<vmem>>, vector<16x256xbf16>,
    } else {
    }
    return
  }
  func.func @transform_0(%arg0: i32, %arg1: i32, %arg2: i32) -> (i32, i32) {
    %c0_i32 = arith.constant 0 : i32
    return %arg0, %arg2 : i32, i32
  }
  func.func @transform_1(%arg0: i32, %arg1: i32, %arg2: i32) -> (i32, i32) {
    %c0_i32 = arith.constant 0 : i32
    return %arg2, %arg1 : i32, i32
  }
  func.func @transform_2(%arg0: i32, %arg1: i32, %arg2: i32) -> (i32, i32) {
    %c0_i32 = arith.constant 0 : i32
    %c0_i32_0 = arith.constant 0 : i32
    return %c0_i32, %arg1 : i32, i32
  }
  func.func @transform_3(%arg0: i32, %arg1: i32, %arg2: i32) -> (i32, i32) {
    %c0_i32 = arith.constant 0 : i32
    return %arg0, %arg1 : i32, i32
  }
}

module attributes {stable_mosaic.version = 11 : i64} {
  func.func @_mm_kernel(%arg0: i32, %arg1: i32, %arg2: i32, %arg3: memref<16x512xbf16, #tpu.memory_space<vmem>>, %arg4: memref<512x256xbf16, #tpu.memory_space<vmem>>, %arg5: memref<1x256xf32, #tpu.memory_space<vmem>>, %arg6: memref<16x256xbf16, #tpu.memory_space<vmem>>, %arg7: memref<16x256xbf16, #tpu.memory_space<vmem>>, %arg8: memref<16x256xf32, #tpu.memory_space<vmem>>) attributes {dimension_semantics = [#tpu.dimension_semantics<parallel>, #tpu.dimension_semantics<parallel>, #tpu.dimension_semantics<arbitrary>], iteration_bounds = array<i64: 1, 1, 5>, scalar_prefetch = 0 : i64, scratch_operands = 1 : i64, tpu.core_type = #tpu.core_type<tc>, window_params = [{transform_indices = @transform_0, window_bounds = array<i64: 16, 512>}, {transform_indices = @transform_1, window_bounds = array<i64: 512, 256>}, {transform_indices = @transform_2, window_bounds = array<i64: 1, 256>}, {transform_indices = @transform_3, window_bounds = array<i64: 16, 256>}, {transform_indices = @transform_4, window_bounds = array<i64: 16, 256>}]} {
    %c0_i32 = arith.constant 0 : i32
    %0 = arith.cmpi eq, %arg2, %c0_i32 : i32
    %1 = arith.extui %0 : i1 to i32
    %c0_i32_0 = arith.constant 0 : i32
    %2 = arith.cmpi ne, %1, %c0_i32_0 : i32
    scf.if %2 {
      %cst_9 = arith.constant 0.000000e+00 : f32
      %12 = vector.broadcast %cst_9 : f32 to vector<16x256xf32>
      %c0_10 = arith.constant 0 : index
      %c0_11 = arith.constant 0 : index
      %13 = vector.load %arg8[%c0_10, %c0_11] : memref<16x256xf32, #tpu.memory_space<vmem>>, vector<16x256xf32>
      tpu.vector_store %arg8[%c0_10, %c0_11], %12 {strides = array<i32>} : memref<16x256xf32, #tpu.memory_space<vmem>>, vector<16x256xf32>,
    } else {
    }
    %c0 = arith.constant 0 : index
    %c0_1 = arith.constant 0 : index
    %3 = vector.load %arg8[%c0, %c0_1] : memref<16x256xf32, #tpu.memory_space<vmem>>, vector<16x256xf32>
    %c0_2 = arith.constant 0 : index
    %c0_3 = arith.constant 0 : index
    %4 = vector.load %arg3[%c0_2, %c0_3] : memref<16x512xbf16, #tpu.memory_space<vmem>>, vector<16x512xbf16>
    %c0_4 = arith.constant 0 : index
    %c0_5 = arith.constant 0 : index
    %5 = vector.load %arg4[%c0_4, %c0_5] : memref<512x256xbf16, #tpu.memory_space<vmem>>, vector<512x256xbf16>
    %cst = arith.constant dense<0.000000e+00> : vector<16x256xf32>
    %6 = tpu.matmul %4, %5, %cst {dimension_numbers = #tpu.dot_dimension_numbers<[1], [0], [0], [1], [0, 0, 1, 1], [], []>} : vector<16x512xbf16>, vector<512x256xbf16>, vector<16x256xf32> -> vector<16x256xf32>
    %7 = arith.addf %3, %6 : vector<16x256xf32>
    %c0_6 = arith.constant 0 : index
    %c0_7 = arith.constant 0 : index
    %8 = vector.load %arg8[%c0_6, %c0_7] : memref<16x256xf32, #tpu.memory_space<vmem>>, vector<16x256xf32>
    tpu.vector_store %arg8[%c0_6, %c0_7], %7 {strides = array<i32>} : memref<16x256xf32, #tpu.memory_space<vmem>>, vector<16x256xf32>,
    %c4_i32 = arith.constant 4 : i32
    %9 = arith.cmpi eq, %arg2, %c4_i32 : i32
    %10 = arith.extui %9 : i1 to i32
    %c0_i32_8 = arith.constant 0 : i32
    %11 = arith.cmpi ne, %10, %c0_i32_8 : i32
    scf.if %11 {
      %c0_9 = arith.constant 0 : index
      %c0_10 = arith.constant 0 : index
      %12 = vector.load %arg8[%c0_9, %c0_10] : memref<16x256xf32, #tpu.memory_space<vmem>>, vector<16x256xf32>
      %c0_11 = arith.constant 0 : index
      %c0_12 = arith.constant 0 : index
      %13 = vector.load %arg5[%c0_11, %c0_12] : memref<1x256xf32, #tpu.memory_space<vmem>>, vector<1x256xf32>
      %14 = vector.broadcast %13 : vector<1x256xf32> to vector<16x256xf32>
      %15 = arith.addf %12, %14 : vector<16x256xf32>
      %c0_13 = arith.constant 0 : index
      %c0_14 = arith.constant 0 : index
      %16 = vector.load %arg6[%c0_13, %c0_14] : memref<16x256xbf16, #tpu.memory_space<vmem>>, vector<16x256xbf16>
      %17 = arith.extf %16 : vector<16x256xbf16> to vector<16x256xf32>
      %18 = arith.addf %15, %17 : vector<16x256xf32>
      %cst_15 = arith.constant 0.000000e+00 : f32
      %19 = vector.broadcast %cst_15 : f32 to vector<16x256xf32>
      %20 = arith.maximumf %18, %19 : vector<16x256xf32>
      %21 = arith.truncf %20 : vector<16x256xf32> to vector<16x256xbf16>
      %c0_16 = arith.constant 0 : index
      %c0_17 = arith.constant 0 : index
      %22 = vector.load %arg7[%c0_16, %c0_17] : memref<16x256xbf16, #tpu.memory_space<vmem>>, vector<16x256xbf16>
      tpu.vector_store %arg7[%c0_16, %c0_17], %21 {strides = array<i32>} : memref<16x256xbf16, #tpu.memory_space<vmem>>, vector<16x256xbf16>,
    } else {
    }
    return
  }
  func.func @transform_0(%arg0: i32, %arg1: i32, %arg2: i32) -> (i32, i32) {
    %c0_i32 = arith.constant 0 : i32
    return %arg0, %arg2 : i32, i32
  }
  func.func @transform_1(%arg0: i32, %arg1: i32, %arg2: i32) -> (i32, i32) {
    %c0_i32 = arith.constant 0 : i32
    return %arg2, %arg1 : i32, i32
  }
  func.func @transform_2(%arg0: i32, %arg1: i32, %arg2: i32) -> (i32, i32) {
    %c0_i32 = arith.constant 0 : i32
    %c0_i32_0 = arith.constant 0 : i32
    return %c0_i32, %arg1 : i32, i32
  }
  func.func @transform_3(%arg0: i32, %arg1: i32, %arg2: i32) -> (i32, i32) {
    %c0_i32 = arith.constant 0 : i32
    return %arg0, %arg1 : i32, i32
  }
  func.func @transform_4(%arg0: i32, %arg1: i32, %arg2: i32) -> (i32, i32) {
    %c0_i32 = arith.constant 0 : i32
    return %arg0, %arg1 : i32, i32
  }
}

module attributes {stable_mosaic.version = 11 : i64} {
  func.func @_mm_kernel(%arg0: i32, %arg1: i32, %arg2: i32, %arg3: memref<16x512xbf16, #tpu.memory_space<vmem>>, %arg4: memref<512x256xbf16, #tpu.memory_space<vmem>>, %arg5: memref<1x256xf32, #tpu.memory_space<vmem>>, %arg6: memref<16x256xbf16, #tpu.memory_space<vmem>>, %arg7: memref<16x256xf32, #tpu.memory_space<vmem>>) attributes {dimension_semantics = [#tpu.dimension_semantics<parallel>, #tpu.dimension_semantics<parallel>, #tpu.dimension_semantics<arbitrary>], iteration_bounds = array<i64: 1, 1, 5>, scalar_prefetch = 0 : i64, scratch_operands = 1 : i64, tpu.core_type = #tpu.core_type<tc>, window_params = [{transform_indices = @transform_0, window_bounds = array<i64: 16, 512>}, {transform_indices = @transform_1, window_bounds = array<i64: 512, 256>}, {transform_indices = @transform_2, window_bounds = array<i64: 1, 256>}, {transform_indices = @transform_3, window_bounds = array<i64: 16, 256>}]} {
    %c0_i32 = arith.constant 0 : i32
    %0 = arith.cmpi eq, %arg2, %c0_i32 : i32
    %1 = arith.extui %0 : i1 to i32
    %c0_i32_0 = arith.constant 0 : i32
    %2 = arith.cmpi ne, %1, %c0_i32_0 : i32
    scf.if %2 {
      %cst_9 = arith.constant 0.000000e+00 : f32
      %12 = vector.broadcast %cst_9 : f32 to vector<16x256xf32>
      %c0_10 = arith.constant 0 : index
      %c0_11 = arith.constant 0 : index
      %13 = vector.load %arg7[%c0_10, %c0_11] : memref<16x256xf32, #tpu.memory_space<vmem>>, vector<16x256xf32>
      tpu.vector_store %arg7[%c0_10, %c0_11], %12 {strides = array<i32>} : memref<16x256xf32, #tpu.memory_space<vmem>>, vector<16x256xf32>,
    } else {
    }
    %c0 = arith.constant 0 : index
    %c0_1 = arith.constant 0 : index
    %3 = vector.load %arg7[%c0, %c0_1] : memref<16x256xf32, #tpu.memory_space<vmem>>, vector<16x256xf32>
    %c0_2 = arith.constant 0 : index
    %c0_3 = arith.constant 0 : index
    %4 = vector.load %arg3[%c0_2, %c0_3] : memref<16x512xbf16, #tpu.memory_space<vmem>>, vector<16x512xbf16>
    %c0_4 = arith.constant 0 : index
    %c0_5 = arith.constant 0 : index
    %5 = vector.load %arg4[%c0_4, %c0_5] : memref<512x256xbf16, #tpu.memory_space<vmem>>, vector<512x256xbf16>
    %cst = arith.constant dense<0.000000e+00> : vector<16x256xf32>
    %6 = tpu.matmul %4, %5, %cst {dimension_numbers = #tpu.dot_dimension_numbers<[1], [0], [0], [1], [0, 0, 1, 1], [], []>} : vector<16x512xbf16>, vector<512x256xbf16>, vector<16x256xf32> -> vector<16x256xf32>
    %7 = arith.addf %3, %6 : vector<16x256xf32>
    %c0_6 = arith.constant 0 : index
    %c0_7 = arith.constant 0 : index
    %8 = vector.load %arg7[%c0_6, %c0_7] : memref<16x256xf32, #tpu.memory_space<vmem>>, vector<16x256xf32>
    tpu.vector_store %arg7[%c0_6, %c0_7], %7 {strides = array<i32>} : memref<16x256xf32, #tpu.memory_space<vmem>>, vector<16x256xf32>,
    %c4_i32 = arith.constant 4 : i32
    %9 = arith.cmpi eq, %arg2, %c4_i32 : i32
    %10 = arith.extui %9 : i1 to i32
    %c0_i32_8 = arith.constant 0 : i32
    %11 = arith.cmpi ne, %10, %c0_i32_8 : i32
    scf.if %11 {
      %c0_9 = arith.constant 0 : index
      %c0_10 = arith.constant 0 : index
      %12 = vector.load %arg7[%c0_9, %c0_10] : memref<16x256xf32, #tpu.memory_space<vmem>>, vector<16x256xf32>
      %c0_11 = arith.constant 0 : index
      %c0_12 = arith.constant 0 : index
      %13 = vector.load %arg5[%c0_11, %c0_12] : memref<1x256xf32, #tpu.memory_space<vmem>>, vector<1x256xf32>
      %14 = vector.broadcast %13 : vector<1x256xf32> to vector<16x256xf32>
      %15 = arith.addf %12, %14 : vector<16x256xf32>
      %cst_13 = arith.constant 0.000000e+00 : f32
      %16 = vector.broadcast %cst_13 : f32 to vector<16x256xf32>
      %17 = arith.maximumf %15, %16 : vector<16x256xf32>
      %18 = arith.truncf %17 : vector<16x256xf32> to vector<16x256xbf16>
      %c0_14 = arith.constant 0 : index
      %c0_15 = arith.constant 0 : index
      %19 = vector.load %arg6[%c0_14, %c0_15] : memref<16x256xbf16, #tpu.memory_space<vmem>>, vector<16x256xbf16>
      tpu.vector_store %arg6[%c0_14, %c0_15], %18 {strides = array<i32>} : memref<16x256xbf16, #tpu.memory_space<vmem>>, vector<16x256xbf16>,
    } else {
    }
    return
  }
  func.func @transform_0(%arg0: i32, %arg1: i32, %arg2: i32) -> (i32, i32) {
    %c0_i32 = arith.constant 0 : i32
    return %arg0, %arg2 : i32, i32
  }
  func.func @transform_1(%arg0: i32, %arg1: i32, %arg2: i32) -> (i32, i32) {
    %c0_i32 = arith.constant 0 : i32
    return %arg2, %arg1 : i32, i32
  }
  func.func @transform_2(%arg0: i32, %arg1: i32, %arg2: i32) -> (i32, i32) {
    %c0_i32 = arith.constant 0 : i32
    %c0_i32_0 = arith.constant 0 : i32
    return %c0_i32, %arg1 : i32, i32
  }
  func.func @transform_3(%arg0: i32, %arg1: i32, %arg2: i32) -> (i32, i32) {
    %c0_i32 = arith.constant 0 : i32
    return %arg0, %arg1 : i32, i32
  }
}

module attributes {stable_mosaic.version = 11 : i64} {
  func.func @_mm_kernel(%arg0: i32, %arg1: i32, %arg2: i32, %arg3: memref<16x512xbf16, #tpu.memory_space<vmem>>, %arg4: memref<512x512xbf16, #tpu.memory_space<vmem>>, %arg5: memref<1x512xf32, #tpu.memory_space<vmem>>, %arg6: memref<16x512xbf16, #tpu.memory_space<vmem>>, %arg7: memref<16x512xf32, #tpu.memory_space<vmem>>) attributes {dimension_semantics = [#tpu.dimension_semantics<parallel>, #tpu.dimension_semantics<parallel>, #tpu.dimension_semantics<arbitrary>], iteration_bounds = array<i64: 1, 1, 5>, scalar_prefetch = 0 : i64, scratch_operands = 1 : i64, tpu.core_type = #tpu.core_type<tc>, window_params = [{transform_indices = @transform_0, window_bounds = array<i64: 16, 512>}, {transform_indices = @transform_1, window_bounds = array<i64: 512, 512>}, {transform_indices = @transform_2, window_bounds = array<i64: 1, 512>}, {transform_indices = @transform_3, window_bounds = array<i64: 16, 512>}]} {
    %c0_i32 = arith.constant 0 : i32
    %0 = arith.cmpi eq, %arg2, %c0_i32 : i32
    %1 = arith.extui %0 : i1 to i32
    %c0_i32_0 = arith.constant 0 : i32
    %2 = arith.cmpi ne, %1, %c0_i32_0 : i32
    scf.if %2 {
      %cst_9 = arith.constant 0.000000e+00 : f32
      %12 = vector.broadcast %cst_9 : f32 to vector<16x512xf32>
      %c0_10 = arith.constant 0 : index
      %c0_11 = arith.constant 0 : index
      %13 = vector.load %arg7[%c0_10, %c0_11] : memref<16x512xf32, #tpu.memory_space<vmem>>, vector<16x512xf32>
      tpu.vector_store %arg7[%c0_10, %c0_11], %12 {strides = array<i32>} : memref<16x512xf32, #tpu.memory_space<vmem>>, vector<16x512xf32>,
    } else {
    }
    %c0 = arith.constant 0 : index
    %c0_1 = arith.constant 0 : index
    %3 = vector.load %arg7[%c0, %c0_1] : memref<16x512xf32, #tpu.memory_space<vmem>>, vector<16x512xf32>
    %c0_2 = arith.constant 0 : index
    %c0_3 = arith.constant 0 : index
    %4 = vector.load %arg3[%c0_2, %c0_3] : memref<16x512xbf16, #tpu.memory_space<vmem>>, vector<16x512xbf16>
    %c0_4 = arith.constant 0 : index
    %c0_5 = arith.constant 0 : index
    %5 = vector.load %arg4[%c0_4, %c0_5] : memref<512x512xbf16, #tpu.memory_space<vmem>>, vector<512x512xbf16>
    %cst = arith.constant dense<0.000000e+00> : vector<16x512xf32>
    %6 = tpu.matmul %4, %5, %cst {dimension_numbers = #tpu.dot_dimension_numbers<[1], [0], [0], [1], [0, 0, 1, 1], [], []>} : vector<16x512xbf16>, vector<512x512xbf16>, vector<16x512xf32> -> vector<16x512xf32>
    %7 = arith.addf %3, %6 : vector<16x512xf32>
    %c0_6 = arith.constant 0 : index
    %c0_7 = arith.constant 0 : index
    %8 = vector.load %arg7[%c0_6, %c0_7] : memref<16x512xf32, #tpu.memory_space<vmem>>, vector<16x512xf32>
    tpu.vector_store %arg7[%c0_6, %c0_7], %7 {strides = array<i32>} : memref<16x512xf32, #tpu.memory_space<vmem>>, vector<16x512xf32>,
    %c4_i32 = arith.constant 4 : i32
    %9 = arith.cmpi eq, %arg2, %c4_i32 : i32
    %10 = arith.extui %9 : i1 to i32
    %c0_i32_8 = arith.constant 0 : i32
    %11 = arith.cmpi ne, %10, %c0_i32_8 : i32
    scf.if %11 {
      %c0_9 = arith.constant 0 : index
      %c0_10 = arith.constant 0 : index
      %12 = vector.load %arg7[%c0_9, %c0_10] : memref<16x512xf32, #tpu.memory_space<vmem>>, vector<16x512xf32>
      %c0_11 = arith.constant 0 : index
      %c0_12 = arith.constant 0 : index
      %13 = vector.load %arg5[%c0_11, %c0_12] : memref<1x512xf32, #tpu.memory_space<vmem>>, vector<1x512xf32>
      %14 = vector.broadcast %13 : vector<1x512xf32> to vector<16x512xf32>
      %15 = arith.addf %12, %14 : vector<16x512xf32>
      %cst_13 = arith.constant 0.000000e+00 : f32
      %16 = vector.broadcast %cst_13 : f32 to vector<16x512xf32>
      %17 = arith.maximumf %15, %16 : vector<16x512xf32>
      %18 = arith.truncf %17 : vector<16x512xf32> to vector<16x512xbf16>
      %c0_14 = arith.constant 0 : index
      %c0_15 = arith.constant 0 : index
      %19 = vector.load %arg6[%c0_14, %c0_15] : memref<16x512xbf16, #tpu.memory_space<vmem>>, vector<16x512xbf16>
      tpu.vector_store %arg6[%c0_14, %c0_15], %18 {strides = array<i32>} : memref<16x512xbf16, #tpu.memory_space<vmem>>, vector<16x512xbf16>,
    } else {
    }
    return
  }
  func.func @transform_0(%arg0: i32, %arg1: i32, %arg2: i32) -> (i32, i32) {
    %c0_i32 = arith.constant 0 : i32
    return %arg0, %arg2 : i32, i32
  }
  func.func @transform_1(%arg0: i32, %arg1: i32, %arg2: i32) -> (i32, i32) {
    %c0_i32 = arith.constant 0 : i32
    return %arg2, %arg1 : i32, i32
  }
  func.func @transform_2(%arg0: i32, %arg1: i32, %arg2: i32) -> (i32, i32) {
    %c0_i32 = arith.constant 0 : i32
    %c0_i32_0 = arith.constant 0 : i32
    return %c0_i32, %arg1 : i32, i32
  }
  func.func @transform_3(%arg0: i32, %arg1: i32, %arg2: i32) -> (i32, i32) {
    %c0_i32 = arith.constant 0 : i32
    return %arg0, %arg1 : i32, i32
  }
}

module attributes {stable_mosaic.version = 11 : i64} {
  func.func @_mm_kernel(%arg0: i32, %arg1: i32, %arg2: i32, %arg3: memref<16x256xbf16, #tpu.memory_space<vmem>>, %arg4: memref<256x512xbf16, #tpu.memory_space<vmem>>, %arg5: memref<1x512xf32, #tpu.memory_space<vmem>>, %arg6: memref<16x512xbf16, #tpu.memory_space<vmem>>, %arg7: memref<16x512xf32, #tpu.memory_space<vmem>>) attributes {dimension_semantics = [#tpu.dimension_semantics<parallel>, #tpu.dimension_semantics<parallel>, #tpu.dimension_semantics<arbitrary>], iteration_bounds = array<i64: 1, 1, 1>, scalar_prefetch = 0 : i64, scratch_operands = 1 : i64, tpu.core_type = #tpu.core_type<tc>, window_params = [{transform_indices = @transform_0, window_bounds = array<i64: 16, 256>}, {transform_indices = @transform_1, window_bounds = array<i64: 256, 512>}, {transform_indices = @transform_2, window_bounds = array<i64: 1, 512>}, {transform_indices = @transform_3, window_bounds = array<i64: 16, 512>}]} {
    %c0_i32 = arith.constant 0 : i32
    %0 = arith.cmpi eq, %arg2, %c0_i32 : i32
    %1 = arith.extui %0 : i1 to i32
    %c0_i32_0 = arith.constant 0 : i32
    %2 = arith.cmpi ne, %1, %c0_i32_0 : i32
    scf.if %2 {
      %cst_10 = arith.constant 0.000000e+00 : f32
      %12 = vector.broadcast %cst_10 : f32 to vector<16x512xf32>
      %c0_11 = arith.constant 0 : index
      %c0_12 = arith.constant 0 : index
      %13 = vector.load %arg7[%c0_11, %c0_12] : memref<16x512xf32, #tpu.memory_space<vmem>>, vector<16x512xf32>
      tpu.vector_store %arg7[%c0_11, %c0_12], %12 {strides = array<i32>} : memref<16x512xf32, #tpu.memory_space<vmem>>, vector<16x512xf32>,
    } else {
    }
    %c0 = arith.constant 0 : index
    %c0_1 = arith.constant 0 : index
    %3 = vector.load %arg7[%c0, %c0_1] : memref<16x512xf32, #tpu.memory_space<vmem>>, vector<16x512xf32>
    %c0_2 = arith.constant 0 : index
    %c0_3 = arith.constant 0 : index
    %4 = vector.load %arg3[%c0_2, %c0_3] : memref<16x256xbf16, #tpu.memory_space<vmem>>, vector<16x256xbf16>
    %c0_4 = arith.constant 0 : index
    %c0_5 = arith.constant 0 : index
    %5 = vector.load %arg4[%c0_4, %c0_5] : memref<256x512xbf16, #tpu.memory_space<vmem>>, vector<256x512xbf16>
    %cst = arith.constant dense<0.000000e+00> : vector<16x512xf32>
    %6 = tpu.matmul %4, %5, %cst {dimension_numbers = #tpu.dot_dimension_numbers<[1], [0], [0], [1], [0, 0, 1, 1], [], []>} : vector<16x256xbf16>, vector<256x512xbf16>, vector<16x512xf32> -> vector<16x512xf32>
    %7 = arith.addf %3, %6 : vector<16x512xf32>
    %c0_6 = arith.constant 0 : index
    %c0_7 = arith.constant 0 : index
    %8 = vector.load %arg7[%c0_6, %c0_7] : memref<16x512xf32, #tpu.memory_space<vmem>>, vector<16x512xf32>
    tpu.vector_store %arg7[%c0_6, %c0_7], %7 {strides = array<i32>} : memref<16x512xf32, #tpu.memory_space<vmem>>, vector<16x512xf32>,
    %c0_i32_8 = arith.constant 0 : i32
    %9 = arith.cmpi eq, %arg2, %c0_i32_8 : i32
    %10 = arith.extui %9 : i1 to i32
    %c0_i32_9 = arith.constant 0 : i32
    %11 = arith.cmpi ne, %10, %c0_i32_9 : i32
    scf.if %11 {
      %c0_10 = arith.constant 0 : index
      %c0_11 = arith.constant 0 : index
      %12 = vector.load %arg7[%c0_10, %c0_11] : memref<16x512xf32, #tpu.memory_space<vmem>>, vector<16x512xf32>
      %c0_12 = arith.constant 0 : index
      %c0_13 = arith.constant 0 : index
      %13 = vector.load %arg5[%c0_12, %c0_13] : memref<1x512xf32, #tpu.memory_space<vmem>>, vector<1x512xf32>
      %14 = vector.broadcast %13 : vector<1x512xf32> to vector<16x512xf32>
      %15 = arith.addf %12, %14 : vector<16x512xf32>
      %16 = arith.truncf %15 : vector<16x512xf32> to vector<16x512xbf16>
      %c0_14 = arith.constant 0 : index
      %c0_15 = arith.constant 0 : index
      %17 = vector.load %arg6[%c0_14, %c0_15] : memref<16x512xbf16, #tpu.memory_space<vmem>>, vector<16x512xbf16>
      tpu.vector_store %arg6[%c0_14, %c0_15], %16 {strides = array<i32>} : memref<16x512xbf16, #tpu.memory_space<vmem>>, vector<16x512xbf16>,
    } else {
    }
    return
  }
  func.func @transform_0(%arg0: i32, %arg1: i32, %arg2: i32) -> (i32, i32) {
    %c0_i32 = arith.constant 0 : i32
    return %arg0, %arg2 : i32, i32
  }
  func.func @transform_1(%arg0: i32, %arg1: i32, %arg2: i32) -> (i32, i32) {
    %c0_i32 = arith.constant 0 : i32
    return %arg2, %arg1 : i32, i32
  }
  func.func @transform_2(%arg0: i32, %arg1: i32, %arg2: i32) -> (i32, i32) {
    %c0_i32 = arith.constant 0 : i32
    %c0_i32_0 = arith.constant 0 : i32
    return %c0_i32, %arg1 : i32, i32
  }
  func.func @transform_3(%arg0: i32, %arg1: i32, %arg2: i32) -> (i32, i32) {
    %c0_i32 = arith.constant 0 : i32
    return %arg0, %arg1 : i32, i32
  }
}

module attributes {stable_mosaic.version = 11 : i64} {
  func.func @_mm_kernel(%arg0: i32, %arg1: i32, %arg2: i32, %arg3: memref<16x512xbf16, #tpu.memory_space<vmem>>, %arg4: memref<512x512xbf16, #tpu.memory_space<vmem>>, %arg5: memref<1x512xf32, #tpu.memory_space<vmem>>, %arg6: memref<16x512xbf16, #tpu.memory_space<vmem>>, %arg7: memref<16x512xf32, #tpu.memory_space<vmem>>) attributes {dimension_semantics = [#tpu.dimension_semantics<parallel>, #tpu.dimension_semantics<parallel>, #tpu.dimension_semantics<arbitrary>], iteration_bounds = array<i64: 1, 1, 9>, scalar_prefetch = 0 : i64, scratch_operands = 1 : i64, tpu.core_type = #tpu.core_type<tc>, window_params = [{transform_indices = @transform_0, window_bounds = array<i64: 16, 512>}, {transform_indices = @transform_1, window_bounds = array<i64: 512, 512>}, {transform_indices = @transform_2, window_bounds = array<i64: 1, 512>}, {transform_indices = @transform_3, window_bounds = array<i64: 16, 512>}]} {
    %c0_i32 = arith.constant 0 : i32
    %0 = arith.cmpi eq, %arg2, %c0_i32 : i32
    %1 = arith.extui %0 : i1 to i32
    %c0_i32_0 = arith.constant 0 : i32
    %2 = arith.cmpi ne, %1, %c0_i32_0 : i32
    scf.if %2 {
      %cst_9 = arith.constant 0.000000e+00 : f32
      %12 = vector.broadcast %cst_9 : f32 to vector<16x512xf32>
      %c0_10 = arith.constant 0 : index
      %c0_11 = arith.constant 0 : index
      %13 = vector.load %arg7[%c0_10, %c0_11] : memref<16x512xf32, #tpu.memory_space<vmem>>, vector<16x512xf32>
      tpu.vector_store %arg7[%c0_10, %c0_11], %12 {strides = array<i32>} : memref<16x512xf32, #tpu.memory_space<vmem>>, vector<16x512xf32>,
    } else {
    }
    %c0 = arith.constant 0 : index
    %c0_1 = arith.constant 0 : index
    %3 = vector.load %arg7[%c0, %c0_1] : memref<16x512xf32, #tpu.memory_space<vmem>>, vector<16x512xf32>
    %c0_2 = arith.constant 0 : index
    %c0_3 = arith.constant 0 : index
    %4 = vector.load %arg3[%c0_2, %c0_3] : memref<16x512xbf16, #tpu.memory_space<vmem>>, vector<16x512xbf16>
    %c0_4 = arith.constant 0 : index
    %c0_5 = arith.constant 0 : index
    %5 = vector.load %arg4[%c0_4, %c0_5] : memref<512x512xbf16, #tpu.memory_space<vmem>>, vector<512x512xbf16>
    %cst = arith.constant dense<0.000000e+00> : vector<16x512xf32>
    %6 = tpu.matmul %4, %5, %cst {dimension_numbers = #tpu.dot_dimension_numbers<[1], [0], [0], [1], [0, 0, 1, 1], [], []>} : vector<16x512xbf16>, vector<512x512xbf16>, vector<16x512xf32> -> vector<16x512xf32>
    %7 = arith.addf %3, %6 : vector<16x512xf32>
    %c0_6 = arith.constant 0 : index
    %c0_7 = arith.constant 0 : index
    %8 = vector.load %arg7[%c0_6, %c0_7] : memref<16x512xf32, #tpu.memory_space<vmem>>, vector<16x512xf32>
    tpu.vector_store %arg7[%c0_6, %c0_7], %7 {strides = array<i32>} : memref<16x512xf32, #tpu.memory_space<vmem>>, vector<16x512xf32>,
    %c8_i32 = arith.constant 8 : i32
    %9 = arith.cmpi eq, %arg2, %c8_i32 : i32
    %10 = arith.extui %9 : i1 to i32
    %c0_i32_8 = arith.constant 0 : i32
    %11 = arith.cmpi ne, %10, %c0_i32_8 : i32
    scf.if %11 {
      %c0_9 = arith.constant 0 : index
      %c0_10 = arith.constant 0 : index
      %12 = vector.load %arg7[%c0_9, %c0_10] : memref<16x512xf32, #tpu.memory_space<vmem>>, vector<16x512xf32>
      %c0_11 = arith.constant 0 : index
      %c0_12 = arith.constant 0 : index
      %13 = vector.load %arg5[%c0_11, %c0_12] : memref<1x512xf32, #tpu.memory_space<vmem>>, vector<1x512xf32>
      %14 = vector.broadcast %13 : vector<1x512xf32> to vector<16x512xf32>
      %15 = arith.addf %12, %14 : vector<16x512xf32>
      %cst_13 = arith.constant 0.000000e+00 : f32
      %16 = vector.broadcast %cst_13 : f32 to vector<16x512xf32>
      %17 = arith.maximumf %15, %16 : vector<16x512xf32>
      %18 = arith.truncf %17 : vector<16x512xf32> to vector<16x512xbf16>
      %c0_14 = arith.constant 0 : index
      %c0_15 = arith.constant 0 : index
      %19 = vector.load %arg6[%c0_14, %c0_15] : memref<16x512xbf16, #tpu.memory_space<vmem>>, vector<16x512xbf16>
      tpu.vector_store %arg6[%c0_14, %c0_15], %18 {strides = array<i32>} : memref<16x512xbf16, #tpu.memory_space<vmem>>, vector<16x512xbf16>,
    } else {
    }
    return
  }
  func.func @transform_0(%arg0: i32, %arg1: i32, %arg2: i32) -> (i32, i32) {
    %c0_i32 = arith.constant 0 : i32
    return %arg0, %arg2 : i32, i32
  }
  func.func @transform_1(%arg0: i32, %arg1: i32, %arg2: i32) -> (i32, i32) {
    %c0_i32 = arith.constant 0 : i32
    return %arg2, %arg1 : i32, i32
  }
  func.func @transform_2(%arg0: i32, %arg1: i32, %arg2: i32) -> (i32, i32) {
    %c0_i32 = arith.constant 0 : i32
    %c0_i32_0 = arith.constant 0 : i32
    return %c0_i32, %arg1 : i32, i32
  }
  func.func @transform_3(%arg0: i32, %arg1: i32, %arg2: i32) -> (i32, i32) {
    %c0_i32 = arith.constant 0 : i32
    return %arg0, %arg1 : i32, i32
  }
}

module attributes {stable_mosaic.version = 11 : i64} {
  func.func @_mm_kernel(%arg0: i32, %arg1: i32, %arg2: i32, %arg3: memref<16x512xbf16, #tpu.memory_space<vmem>>, %arg4: memref<512x512xbf16, #tpu.memory_space<vmem>>, %arg5: memref<1x512xf32, #tpu.memory_space<vmem>>, %arg6: memref<16x512xbf16, #tpu.memory_space<vmem>>, %arg7: memref<16x512xbf16, #tpu.memory_space<vmem>>, %arg8: memref<16x512xf32, #tpu.memory_space<vmem>>) attributes {dimension_semantics = [#tpu.dimension_semantics<parallel>, #tpu.dimension_semantics<parallel>, #tpu.dimension_semantics<arbitrary>], iteration_bounds = array<i64: 1, 1, 9>, scalar_prefetch = 0 : i64, scratch_operands = 1 : i64, tpu.core_type = #tpu.core_type<tc>, window_params = [{transform_indices = @transform_0, window_bounds = array<i64: 16, 512>}, {transform_indices = @transform_1, window_bounds = array<i64: 512, 512>}, {transform_indices = @transform_2, window_bounds = array<i64: 1, 512>}, {transform_indices = @transform_3, window_bounds = array<i64: 16, 512>}, {transform_indices = @transform_4, window_bounds = array<i64: 16, 512>}]} {
    %c0_i32 = arith.constant 0 : i32
    %0 = arith.cmpi eq, %arg2, %c0_i32 : i32
    %1 = arith.extui %0 : i1 to i32
    %c0_i32_0 = arith.constant 0 : i32
    %2 = arith.cmpi ne, %1, %c0_i32_0 : i32
    scf.if %2 {
      %cst_9 = arith.constant 0.000000e+00 : f32
      %12 = vector.broadcast %cst_9 : f32 to vector<16x512xf32>
      %c0_10 = arith.constant 0 : index
      %c0_11 = arith.constant 0 : index
      %13 = vector.load %arg8[%c0_10, %c0_11] : memref<16x512xf32, #tpu.memory_space<vmem>>, vector<16x512xf32>
      tpu.vector_store %arg8[%c0_10, %c0_11], %12 {strides = array<i32>} : memref<16x512xf32, #tpu.memory_space<vmem>>, vector<16x512xf32>,
    } else {
    }
    %c0 = arith.constant 0 : index
    %c0_1 = arith.constant 0 : index
    %3 = vector.load %arg8[%c0, %c0_1] : memref<16x512xf32, #tpu.memory_space<vmem>>, vector<16x512xf32>
    %c0_2 = arith.constant 0 : index
    %c0_3 = arith.constant 0 : index
    %4 = vector.load %arg3[%c0_2, %c0_3] : memref<16x512xbf16, #tpu.memory_space<vmem>>, vector<16x512xbf16>
    %c0_4 = arith.constant 0 : index
    %c0_5 = arith.constant 0 : index
    %5 = vector.load %arg4[%c0_4, %c0_5] : memref<512x512xbf16, #tpu.memory_space<vmem>>, vector<512x512xbf16>
    %cst = arith.constant dense<0.000000e+00> : vector<16x512xf32>
    %6 = tpu.matmul %4, %5, %cst {dimension_numbers = #tpu.dot_dimension_numbers<[1], [0], [0], [1], [0, 0, 1, 1], [], []>} : vector<16x512xbf16>, vector<512x512xbf16>, vector<16x512xf32> -> vector<16x512xf32>
    %7 = arith.addf %3, %6 : vector<16x512xf32>
    %c0_6 = arith.constant 0 : index
    %c0_7 = arith.constant 0 : index
    %8 = vector.load %arg8[%c0_6, %c0_7] : memref<16x512xf32, #tpu.memory_space<vmem>>, vector<16x512xf32>
    tpu.vector_store %arg8[%c0_6, %c0_7], %7 {strides = array<i32>} : memref<16x512xf32, #tpu.memory_space<vmem>>, vector<16x512xf32>,
    %c8_i32 = arith.constant 8 : i32
    %9 = arith.cmpi eq, %arg2, %c8_i32 : i32
    %10 = arith.extui %9 : i1 to i32
    %c0_i32_8 = arith.constant 0 : i32
    %11 = arith.cmpi ne, %10, %c0_i32_8 : i32
    scf.if %11 {
      %c0_9 = arith.constant 0 : index
      %c0_10 = arith.constant 0 : index
      %12 = vector.load %arg8[%c0_9, %c0_10] : memref<16x512xf32, #tpu.memory_space<vmem>>, vector<16x512xf32>
      %c0_11 = arith.constant 0 : index
      %c0_12 = arith.constant 0 : index
      %13 = vector.load %arg5[%c0_11, %c0_12] : memref<1x512xf32, #tpu.memory_space<vmem>>, vector<1x512xf32>
      %14 = vector.broadcast %13 : vector<1x512xf32> to vector<16x512xf32>
      %15 = arith.addf %12, %14 : vector<16x512xf32>
      %c0_13 = arith.constant 0 : index
      %c0_14 = arith.constant 0 : index
      %16 = vector.load %arg6[%c0_13, %c0_14] : memref<16x512xbf16, #tpu.memory_space<vmem>>, vector<16x512xbf16>
      %17 = arith.extf %16 : vector<16x512xbf16> to vector<16x512xf32>
      %18 = arith.addf %15, %17 : vector<16x512xf32>
      %cst_15 = arith.constant 0.000000e+00 : f32
      %19 = vector.broadcast %cst_15 : f32 to vector<16x512xf32>
      %20 = arith.maximumf %18, %19 : vector<16x512xf32>
      %21 = arith.truncf %20 : vector<16x512xf32> to vector<16x512xbf16>
      %c0_16 = arith.constant 0 : index
      %c0_17 = arith.constant 0 : index
      %22 = vector.load %arg7[%c0_16, %c0_17] : memref<16x512xbf16, #tpu.memory_space<vmem>>, vector<16x512xbf16>
      tpu.vector_store %arg7[%c0_16, %c0_17], %21 {strides = array<i32>} : memref<16x512xbf16, #tpu.memory_space<vmem>>, vector<16x512xbf16>,
    } else {
    }
    return
  }
  func.func @transform_0(%arg0: i32, %arg1: i32, %arg2: i32) -> (i32, i32) {
    %c0_i32 = arith.constant 0 : i32
    return %arg0, %arg2 : i32, i32
  }
  func.func @transform_1(%arg0: i32, %arg1: i32, %arg2: i32) -> (i32, i32) {
    %c0_i32 = arith.constant 0 : i32
    return %arg2, %arg1 : i32, i32
  }
  func.func @transform_2(%arg0: i32, %arg1: i32, %arg2: i32) -> (i32, i32) {
    %c0_i32 = arith.constant 0 : i32
    %c0_i32_0 = arith.constant 0 : i32
    return %c0_i32, %arg1 : i32, i32
  }
  func.func @transform_3(%arg0: i32, %arg1: i32, %arg2: i32) -> (i32, i32) {
    %c0_i32 = arith.constant 0 : i32
    return %arg0, %arg1 : i32, i32
  }
  func.func @transform_4(%arg0: i32, %arg1: i32, %arg2: i32) -> (i32, i32) {
    %c0_i32 = arith.constant 0 : i32
    return %arg0, %arg1 : i32, i32
  }
}

module attributes {stable_mosaic.version = 11 : i64} {
  func.func @_head_kernel(%arg0: memref<2x512xbf16, #tpu.memory_space<vmem>>, %arg1: memref<2x128xbf16, #tpu.memory_space<vmem>>, %arg2: memref<128x512xbf16, #tpu.memory_space<vmem>>, %arg3: memref<1x512xf32, #tpu.memory_space<vmem>>, %arg4: memref<512x512xbf16, #tpu.memory_space<vmem>>, %arg5: memref<1x512xf32, #tpu.memory_space<vmem>>, %arg6: memref<512x512xbf16, #tpu.memory_space<vmem>>, %arg7: memref<512x512xbf16, #tpu.memory_space<vmem>>, %arg8: memref<1x512xf32, #tpu.memory_space<vmem>>, %arg9: memref<512x128xbf16, #tpu.memory_space<vmem>>, %arg10: memref<1x128xf32, #tpu.memory_space<vmem>>, %arg11: memref<2x128xf32, #tpu.memory_space<vmem>>) attributes {dimension_semantics = [], scalar_prefetch = 0 : i64, scratch_operands = 0 : i64, tpu.core_type = #tpu.core_type<tc>} {
    %c0 = arith.constant 0 : index
    %c0_0 = arith.constant 0 : index
    %0 = vector.load %arg1[%c0, %c0_0] : memref<2x128xbf16, #tpu.memory_space<vmem>>, vector<2x128xbf16>
    %c0_1 = arith.constant 0 : index
    %c0_2 = arith.constant 0 : index
    %1 = vector.load %arg2[%c0_1, %c0_2] : memref<128x512xbf16, #tpu.memory_space<vmem>>, vector<128x512xbf16>
    %cst = arith.constant dense<0.000000e+00> : vector<2x512xf32>
    %2 = tpu.matmul %0, %1, %cst {dimension_numbers = #tpu.dot_dimension_numbers<[1], [0], [0], [1], [0, 0, 1, 1], [], []>} : vector<2x128xbf16>, vector<128x512xbf16>, vector<2x512xf32> -> vector<2x512xf32>
    %c0_3 = arith.constant 0 : index
    %c0_4 = arith.constant 0 : index
    %3 = vector.load %arg3[%c0_3, %c0_4] : memref<1x512xf32, #tpu.memory_space<vmem>>, vector<1x512xf32>
    %4 = vector.broadcast %3 : vector<1x512xf32> to vector<2x512xf32>
    %5 = arith.addf %2, %4 : vector<2x512xf32>
    %cst_5 = arith.constant 0.000000e+00 : f32
    %6 = vector.broadcast %cst_5 : f32 to vector<2x512xf32>
    %7 = arith.maximumf %5, %6 : vector<2x512xf32>
    %8 = arith.truncf %7 : vector<2x512xf32> to vector<2x512xbf16>
    %c0_6 = arith.constant 0 : index
    %c0_7 = arith.constant 0 : index
    %9 = vector.load %arg4[%c0_6, %c0_7] : memref<512x512xbf16, #tpu.memory_space<vmem>>, vector<512x512xbf16>
    %cst_8 = arith.constant dense<0.000000e+00> : vector<2x512xf32>
    %10 = tpu.matmul %8, %9, %cst_8 {dimension_numbers = #tpu.dot_dimension_numbers<[1], [0], [0], [1], [0, 0, 1, 1], [], []>} : vector<2x512xbf16>, vector<512x512xbf16>, vector<2x512xf32> -> vector<2x512xf32>
    %c0_9 = arith.constant 0 : index
    %c0_10 = arith.constant 0 : index
    %11 = vector.load %arg5[%c0_9, %c0_10] : memref<1x512xf32, #tpu.memory_space<vmem>>, vector<1x512xf32>
    %12 = vector.broadcast %11 : vector<1x512xf32> to vector<2x512xf32>
    %13 = arith.addf %10, %12 : vector<2x512xf32>
    %c0_11 = arith.constant 0 : index
    %c0_12 = arith.constant 0 : index
    %14 = vector.load %arg0[%c0_11, %c0_12] : memref<2x512xbf16, #tpu.memory_space<vmem>>, vector<2x512xbf16>
    %c0_13 = arith.constant 0 : index
    %c0_14 = arith.constant 0 : index
    %15 = vector.load %arg6[%c0_13, %c0_14] : memref<512x512xbf16, #tpu.memory_space<vmem>>, vector<512x512xbf16>
    %cst_15 = arith.constant dense<0.000000e+00> : vector<2x512xf32>
    %16 = tpu.matmul %14, %15, %cst_15 {dimension_numbers = #tpu.dot_dimension_numbers<[1], [0], [0], [1], [0, 0, 1, 1], [], []>} : vector<2x512xbf16>, vector<512x512xbf16>, vector<2x512xf32> -> vector<2x512xf32>
    %17 = arith.truncf %13 : vector<2x512xf32> to vector<2x512xbf16>
    %c0_16 = arith.constant 0 : index
    %c0_17 = arith.constant 0 : index
    %18 = vector.load %arg7[%c0_16, %c0_17] : memref<512x512xbf16, #tpu.memory_space<vmem>>, vector<512x512xbf16>
    %cst_18 = arith.constant dense<0.000000e+00> : vector<2x512xf32>
    %19 = tpu.matmul %17, %18, %cst_18 {dimension_numbers = #tpu.dot_dimension_numbers<[1], [0], [0], [1], [0, 0, 1, 1], [], []>} : vector<2x512xbf16>, vector<512x512xbf16>, vector<2x512xf32> -> vector<2x512xf32>
    %20 = arith.addf %16, %19 : vector<2x512xf32>
    %c0_19 = arith.constant 0 : index
    %c0_20 = arith.constant 0 : index
    %21 = vector.load %arg8[%c0_19, %c0_20] : memref<1x512xf32, #tpu.memory_space<vmem>>, vector<1x512xf32>
    %22 = vector.broadcast %21 : vector<1x512xf32> to vector<2x512xf32>
    %23 = arith.addf %20, %22 : vector<2x512xf32>
    %cst_21 = arith.constant 0.000000e+00 : f32
    %24 = vector.broadcast %cst_21 : f32 to vector<2x512xf32>
    %25 = arith.maximumf %23, %24 : vector<2x512xf32>
    %26 = arith.truncf %25 : vector<2x512xf32> to vector<2x512xbf16>
    %c0_22 = arith.constant 0 : index
    %c0_23 = arith.constant 0 : index
    %27 = vector.load %arg9[%c0_22, %c0_23] : memref<512x128xbf16, #tpu.memory_space<vmem>>, vector<512x128xbf16>
    %cst_24 = arith.constant dense<0.000000e+00> : vector<2x128xf32>
    %28 = tpu.matmul %26, %27, %cst_24 {dimension_numbers = #tpu.dot_dimension_numbers<[1], [0], [0], [1], [0, 0, 1, 1], [], []>} : vector<2x512xbf16>, vector<512x128xbf16>, vector<2x128xf32> -> vector<2x128xf32>
    %c0_25 = arith.constant 0 : index
    %c0_26 = arith.constant 0 : index
    %29 = vector.load %arg10[%c0_25, %c0_26] : memref<1x128xf32, #tpu.memory_space<vmem>>, vector<1x128xf32>
    %30 = vector.broadcast %29 : vector<1x128xf32> to vector<2x128xf32>
    %31 = arith.addf %28, %30 : vector<2x128xf32>
    %c0_27 = arith.constant 0 : index
    %c0_28 = arith.constant 0 : index
    %32 = vector.load %arg11[%c0_27, %c0_28] : memref<2x128xf32, #tpu.memory_space<vmem>>, vector<2x128xf32>
    tpu.vector_store %arg11[%c0_27, %c0_28], %31 {strides = array<i32>} : memref<2x128xf32, #tpu.memory_space<vmem>>, vector<2x128xf32>,
    return
  }
}

</mosaic_0001>

<bundles_post_ra>
// kernel: vqa_forward.21
= control target key start
LH: loop header
LB: loop body
LE: loop exit
PB: predicated region body
PF: predicated region fallthrough
CT: control target
= control target key end

     0   :  { %v2147_v0 = vmov 0   ;;  %s2605_s1 = inlined_call_operand.vmem [shape: bf16[256,128], index: 1, kind: input, shape index: {}]   ;;  %s2606_s0 = inlined_call_operand.vmem [shape: bf16[512,256], index: 0, kind: input, shape index: {}]   ;;  %s2607_s2 = inlined_call_operand.vmem [shape: f32[1,128], index: 2, kind: input, shape index: {}]   ;;  %s2608_s3 = inlined_call_operand.vmem [shape: bf16[512,128], index: 3, kind: output, shape index: {}]  }
   0x1   :  { %659 = vmatprep.subr.bf16.mxu0 %v2147_v0  ;;  %2002 = vmatprep.subr.bf16.mxu1 %v2147_v0  ;;  %v2035_v1 = vld [vmem:[%s2605_s1 + $0x38] sm:$0xff]   ;;  %v2036_v2 = vld [vmem:[%s2605_s1 + $0x30] sm:$0xff]   ;;  %v2037_v3 = vld [vmem:[%s2605_s1 + $0x28] sm:$0xff]  }
   0x2   :  { %660 = vmatpush1.bf16.msra.mxu0 %v2035_v1  ;;  %2018 = vmatpush1.bf16.msra.mxu1 %v2035_v1  ;;  %v2038_v4 = vld [vmem:[%s2605_s1 + $0x20] sm:$0xff]   ;;  %v2039_v5 = vld [vmem:[%s2605_s1 + $0x18] sm:$0xff]   ;;  %v2040_v7 = vld [vmem:[%s2605_s1 + $0x10] sm:$0xff]  }
   0x3   :  { %661 = vmatprep.subr.bf16.mxu0 %v2147_v0  ;;  %2003 = vmatprep.subr.bf16.mxu1 %v2147_v0  ;;  %v2053_v6 = vld [vmem:[%s2606_s0 + $0x4] ss:$8 sps:$4 sm:$0xff]   ;;  %v2043_v11 = vld [vmem:[%s2605_s1 + $0x78] sm:$0xff]   ;;  %v2044_v12 = vld [vmem:[%s2605_s1 + $0x70] sm:$0xff]  }
   0x4   :  { %v2056_v8 = vld [vmem:[%s2606_s0 + $0x104] ss:$8 sps:$4 sm:$0xff]   ;;  %691 = vmatprep.mubr.bf16.mxu0 %v2053_v6  ;;  %v2047_v15 = vld [vmem:[%s2605_s1 + $0x58] sm:$0xff]   ;;  %v2048_v16 = vld [vmem:[%s2605_s1 + $0x50] sm:$0xff]  }
   0x5   :  { %819 = vmatprep.mubr.bf16.mxu1 %v2056_v8  ;;  %v2041_v9 = vld [vmem:[%s2605_s1 + $0x8] sm:$0xff]   ;;  %v2042_v10 = vld [vmem:[%s2605_s1] sm:$0xff]   ;;  %v2057_v21 = vld [vmem:[%s2606_s0 + $0x14] ss:$8 sps:$4 sm:$0xff]  }
   0x6   :  { %662 = vmatpush1.bf16.msra.mxu0 %v2036_v2  ;;  %2019 = vmatpush1.bf16.msra.mxu1 %v2036_v2  ;;  %v2045_v13 = vld [vmem:[%s2605_s1 + $0x68] sm:$0xff]   ;;  %v2046_v14 = vld [vmem:[%s2605_s1 + $0x60] sm:$0xff]   ;;  %v2059_v22 = vld [vmem:[%s2606_s0 + $0x114] ss:$8 sps:$4 sm:$0xff]  }
   0x7   :  { %663 = vmatprep.subr.bf16.mxu0 %v2147_v0  ;;  %2004 = vmatprep.subr.bf16.mxu1 %v2147_v0  ;;  %v2049_v17 = vld [vmem:[%s2605_s1 + $0x48] sm:$0xff]   ;;  %v2050_v18 = vld [vmem:[%s2605_s1 + $0x40] sm:$0xff]   ;;  %v2061_v23 = vld [vmem:[%s2606_s0 + $0x10] ss:$8 sps:$4 sm:$0xff]  }
   0x8   :  { %v2051_v19 = vld [vmem:[%s2606_s0] ss:$8 sps:$4 sm:$0xff]   ;;  %v2062_v24 = vld [vmem:[%s2606_s0 + $0x110] ss:$8 sps:$4 sm:$0xff]   ;;  %v2063_v25 = vld [vmem:[%s2606_s0 + $0x24] ss:$8 sps:$4 sm:$0xff]  }
   0x9   :  { %v2054_v20 = vld [vmem:[%s2606_s0 + $0x100] ss:$8 sps:$4 sm:$0xff]   ;;  %v2065_v26 = vld [vmem:[%s2606_s0 + $0x124] ss:$8 sps:$4 sm:$0xff]   ;;  %v2069_v29 = vld [vmem:[%s2606_s0 + $0x34] ss:$8 sps:$4 sm:$0xff]  }
   0xa   :  { %664 = vmatpush1.bf16.msra.mxu0 %v2037_v3  ;;  %2020 = vmatpush1.bf16.msra.mxu1 %v2037_v3  ;;  %v2067_v27 = vld [vmem:[%s2606_s0 + $0x20] ss:$8 sps:$4 sm:$0xff]   ;;  %v2071_v30 = vld [vmem:[%s2606_s0 + $0x134] ss:$8 sps:$4 sm:$0xff]   ;;  %v2073_v31 = vld [vmem:[%s2606_s0 + $0x30] ss:$8 sps:$4 sm:$0xff]  }
   0xb   :  { %665 = vmatprep.subr.bf16.mxu0 %v2147_v0  ;;  %2005 = vmatprep.subr.bf16.mxu1 %v2147_v0  ;;  %v2068_v28 = vld [vmem:[%s2606_s0 + $0x120] ss:$8 sps:$4 sm:$0xff]   ;;  %v2074_v32 = vld [vmem:[%s2606_s0 + $0x130] ss:$8 sps:$4 sm:$0xff]   ;;  %v2075_v33 = vld [vmem:[%s2606_s0 + $0x44] ss:$8 sps:$4 sm:$0xff]  }
   0xc   :  { %v2077_v34 = vld [vmem:[%s2606_s0 + $0x144] ss:$8 sps:$4 sm:$0xff]   ;;  %v2079_v35 = vld [vmem:[%s2606_s0 + $0x40] ss:$8 sps:$4 sm:$0xff]   ;;  %v2081_v37 = vld [vmem:[%s2606_s0 + $0x54] ss:$8 sps:$4 sm:$0xff]  }
   0xd   :  { %v2080_v36 = vld [vmem:[%s2606_s0 + $0x140] ss:$8 sps:$4 sm:$0xff]   ;;  %v2083_v38 = vld [vmem:[%s2606_s0 + $0x154] ss:$8 sps:$4 sm:$0xff]   ;;  %v2085_v39 = vld [vmem:[%s2606_s0 + $0x50] ss:$8 sps:$4 sm:$0xff]  }
   0xe   :  { %666 = vmatpush1.bf16.msra.mxu0 %v2038_v4  ;;  %2021 = vmatpush1.bf16.msra.mxu1 %v2038_v4  ;;  %v2086_v40 = vld [vmem:[%s2606_s0 + $0x150] ss:$8 sps:$4 sm:$0xff]   ;;  %v2087_v41 = vld [vmem:[%s2606_s0 + $0x64] ss:$8 sps:$4 sm:$0xff]   ;;  %v2091_v43 = vld [vmem:[%s2606_s0 + $0x60] ss:$8 sps:$4 sm:$0xff]  }
   0xf   :  { %667 = vmatprep.subr.bf16.mxu0 %v2147_v0  ;;  %2006 = vmatprep.subr.bf16.mxu1 %v2147_v0  ;;  %v2089_v42 = vld [vmem:[%s2606_s0 + $0x164] ss:$8 sps:$4 sm:$0xff]   ;;  %v2092_v44 = vld [vmem:[%s2606_s0 + $0x160] ss:$8 sps:$4 sm:$0xff]   ;;  %v2093_v45 = vld [vmem:[%s2606_s0 + $0x74] ss:$8 sps:$4 sm:$0xff]  }
  0x10   :  { %v2095_v46 = vld [vmem:[%s2606_s0 + $0x174] ss:$8 sps:$4 sm:$0xff]   ;;  %v2097_v47 = vld [vmem:[%s2606_s0 + $0x70] ss:$8 sps:$4 sm:$0xff]   ;;  %v2099_v49 = vld [vmem:[%s2606_s0 + $0x84] ss:$8 sps:$4 sm:$0xff]  }
  0x11   :  { %v2098_v48 = vld [vmem:[%s2606_s0 + $0x170] ss:$8 sps:$4 sm:$0xff]   ;;  %v2101_v50 = vld [vmem:[%s2606_s0 + $0x184] ss:$8 sps:$4 sm:$0xff]   ;;  %v2103_v51 = vld [vmem:[%s2606_s0 + $0x80] ss:$8 sps:$4 sm:$0xff]  }
  0x12   :  { %668 = vmatpush1.bf16.msra.mxu0 %v2039_v5  ;;  %2022 = vmatpush1.bf16.msra.mxu1 %v2039_v5  ;;  %v2104_v52 = vld [vmem:[%s2606_s0 + $0x180] ss:$8 sps:$4 sm:$0xff]   ;;  %v2105_v53 = vld [vmem:[%s2606_s0 + $0x94] ss:$8 sps:$4 sm:$0xff]   ;;  %v2109_v55 = vld [vmem:[%s2606_s0 + $0x90] ss:$8 sps:$4 sm:$0xff]  }
  0x13   :  { %669 = vmatprep.subr.bf16.mxu0 %v2147_v0  ;;  %2007 = vmatprep.subr.bf16.mxu1 %v2147_v0  ;;  %v2107_v54 = vld [vmem:[%s2606_s0 + $0x194] ss:$8 sps:$4 sm:$0xff]   ;;  %v2110_v56 = vld [vmem:[%s2606_s0 + $0x190] ss:$8 sps:$4 sm:$0xff]   ;;  %v2111_v57 = vld [vmem:[%s2606_s0 + $0xa4] ss:$8 sps:$4 sm:$0xff]  }
  0x14   :  { %v2113_v58 = vld [vmem:[%s2606_s0 + $0x1a4] ss:$8 sps:$4 sm:$0xff]   ;;  %v2115_v59 = vld [vmem:[%s2606_s0 + $0xa0] ss:$8 sps:$4 sm:$0xff]   ;;  %v2117_v61 = vld [vmem:[%s2606_s0 + $0xb4] ss:$8 sps:$4 sm:$0xff]  }
  0x15   :  { %v2116_v60 = vld [vmem:[%s2606_s0 + $0x1a0] ss:$8 sps:$4 sm:$0xff]   ;;  %v2119_v62 = vld [vmem:[%s2606_s0 + $0x1b4] ss:$8 sps:$4 sm:$0xff]   ;;  %v2121_v63 = vld [vmem:[%s2606_s0 + $0xb0] ss:$8 sps:$4 sm:$0xff]  }
  0x16   :  { %670 = vmatpush1.bf16.msra.mxu0 %v2040_v7  ;;  %2023 = vmatpush1.bf16.msra.mxu1 %v2040_v7  ;;  %v2123_v1 = vld [vmem:[%s2606_s0 + $0xc4] ss:$8 sps:$4 sm:$0xff]   ;;  %v2127_v3 = vld [vmem:[%s2606_s0 + $0xc0] ss:$8 sps:$4 sm:$0xff]   ;;  %v2129_v5 = vld [vmem:[%s2606_s0 + $0xd4] ss:$8 sps:$4 sm:$0xff]  }
  0x17   :  { %671 = vmatprep.subr.bf16.mxu0 %v2147_v0  ;;  %2008 = vmatprep.subr.bf16.mxu1 %v2147_v0  ;;  %v2125_v2 = vld [vmem:[%s2606_s0 + $0x1c4] ss:$8 sps:$4 sm:$0xff]   ;;  %v2128_v4 = vld [vmem:[%s2606_s0 + $0x1c0] ss:$8 sps:$4 sm:$0xff]   ;;  %v2131_v6 = vld [vmem:[%s2606_s0 + $0x1d4] ss:$8 sps:$4 sm:$0xff]  }
  0x18   :  { %v2133_v7 = vld [vmem:[%s2606_s0 + $0xd0] ss:$8 sps:$4 sm:$0xff]  }
  0x19   :  { %v2134_v8 = vld [vmem:[%s2606_s0 + $0x1d0] ss:$8 sps:$4 sm:$0xff]  }
  0x1a   :  { %672 = vmatpush1.bf16.msra.mxu0 %v2041_v9  ;;  %2024 = vmatpush1.bf16.msra.mxu1 %v2041_v9  ;;  %v2135_v9 = vld [vmem:[%s2606_s0 + $0xe4] ss:$8 sps:$4 sm:$0xff]  }
  0x1b   :  { %673 = vmatprep.subr.bf16.mxu0 %v2147_v0  ;;  %2009 = vmatprep.subr.bf16.mxu1 %v2147_v0 }
  0x1e   :  { %674 = vmatpush1.bf16.msra.mxu0 %v2042_v10  ;;  %2025 = vmatpush1.bf16.msra.mxu1 %v2042_v10  ;;  %v2137_v10 = vld [vmem:[%s2606_s0 + $0x1e4] ss:$8 sps:$4 sm:$0xff]  }
  0x1f   :  { %675 = vmatprep.subr.bf16.mxu0 %v2147_v0  ;;  %2010 = vmatprep.subr.bf16.mxu1 %v2147_v0 }
  0x22   :  { %676 = vmatpush2.bf16.msra.mxu0 %v2043_v11  ;;  %2026 = vmatpush2.bf16.msra.mxu1 %v2043_v11  ;;  %v2139_v11 = vld [vmem:[%s2606_s0 + $0xe0] ss:$8 sps:$4 sm:$0xff]  }
  0x23   :  { %677 = vmatprep.subr.bf16.mxu0 %v2147_v0  ;;  %2011 = vmatprep.subr.bf16.mxu1 %v2147_v0 }
  0x26   :  { %678 = vmatpush2.bf16.msra.mxu0 %v2044_v12  ;;  %2027 = vmatpush2.bf16.msra.mxu1 %v2044_v12  ;;  %v2140_v12 = vld [vmem:[%s2606_s0 + $0x1e0] ss:$8 sps:$4 sm:$0xff]  }
  0x27   :  { %679 = vmatprep.subr.bf16.mxu0 %v2147_v0  ;;  %2012 = vmatprep.subr.bf16.mxu1 %v2147_v0 }
  0x2a   :  { %680 = vmatpush2.bf16.msra.mxu0 %v2045_v13  ;;  %2028 = vmatpush2.bf16.msra.mxu1 %v2045_v13  ;;  %v2141_v13 = vld [vmem:[%s2606_s0 + $0xf4] ss:$8 sps:$4 sm:$0xff]  }
  0x2b   :  { %681 = vmatprep.subr.bf16.mxu0 %v2147_v0  ;;  %2013 = vmatprep.subr.bf16.mxu1 %v2147_v0 }
  0x2e   :  { %682 = vmatpush2.bf16.msra.mxu0 %v2046_v14  ;;  %2029 = vmatpush2.bf16.msra.mxu1 %v2046_v14  ;;  %v2143_v14 = vld [vmem:[%s2606_s0 + $0x1f4] ss:$8 sps:$4 sm:$0xff]  }
  0x2f   :  { %683 = vmatprep.subr.bf16.mxu0 %v2147_v0  ;;  %2014 = vmatprep.subr.bf16.mxu1 %v2147_v0 }
  0x32   :  { %684 = vmatpush2.bf16.msra.mxu0 %v2047_v15  ;;  %2030 = vmatpush2.bf16.msra.mxu1 %v2047_v15  ;;  %v2145_v15 = vld [vmem:[%s2606_s0 + $0xf0] ss:$8 sps:$4 sm:$0xff]  }
  0x33   :  { %685 = vmatprep.subr.bf16.mxu0 %v2147_v0  ;;  %2015 = vmatprep.subr.bf16.mxu1 %v2147_v0 }
  0x36   :  { %686 = vmatpush2.bf16.msra.mxu0 %v2048_v16  ;;  %2031 = vmatpush2.bf16.msra.mxu1 %v2048_v16  ;;  %v2146_v16 = vld [vmem:[%s2606_s0 + $0x1f0] ss:$8 sps:$4 sm:$0xff]  }
  0x37   :  { %687 = vmatprep.subr.bf16.mxu0 %v2147_v0  ;;  %2016 = vmatprep.subr.bf16.mxu1 %v2147_v0 }
  0x3a   :  { %688 = vmatpush2.bf16.msra.mxu0 %v2049_v17  ;;  %2032 = vmatpush2.bf16.msra.mxu1 %v2049_v17 }
  0x3b   :  { %689 = vmatprep.subr.bf16.mxu0 %v2147_v0  ;;  %2017 = vmatprep.subr.bf16.mxu1 %v2147_v0  ;;  %v2122_v0 = vld [vmem:[%s2606_s0 + $0x1b0] ss:$8 sps:$4 sm:$0xff]  }
  0x3e   :  { %690 = vmatpush2.bf16.msra.mxu0 %v2050_v18  ;;  %2033 = vmatpush2.bf16.msra.mxu1 %v2050_v18  ;;  %v2443_v18 = vld [vmem:[%s2607_s2] ss:$0 sm:$0xff] }
  0x41   :  { %692 = vmatmul.mubr.bf16.vlgmr.msra.gmra.mxu0 %v2051_v19  ;;  %820 = vmatmul.mubr.bf16.vlgmr.msra.gmra.mxu1 %v2054_v20 }
  0x42   :  { %699 = vmatprep.mubr.bf16.mxu0 %v2057_v21  ;;  %827 = vmatprep.mubr.bf16.mxu1 %v2059_v22 }
  0x49   :  { %700 = vmatmul.mubr.bf16.gmra.mxu0 %v2061_v23  ;;  %828 = vmatmul.mubr.bf16.gmra.mxu1 %v2062_v24 }
  0x4a   :  { %707 = vmatprep.mubr.bf16.mxu0 %v2063_v25  ;;  %835 = vmatprep.mubr.bf16.mxu1 %v2065_v26 }
  0x51   :  { %708 = vmatmul.mubr.bf16.gmra.mxu0 %v2067_v27  ;;  %836 = vmatmul.mubr.bf16.gmra.mxu1 %v2068_v28 }
  0x52   :  { %715 = vmatprep.mubr.bf16.mxu0 %v2069_v29  ;;  %843 = vmatprep.mubr.bf16.mxu1 %v2071_v30 }
  0x59   :  { %716 = vmatmul.mubr.bf16.gmra.mxu0 %v2073_v31  ;;  %844 = vmatmul.mubr.bf16.gmra.mxu1 %v2074_v32 }
  0x5a   :  { %723 = vmatprep.mubr.bf16.mxu0 %v2075_v33  ;;  %851 = vmatprep.mubr.bf16.mxu1 %v2077_v34 }
  0x61   :  { %724 = vmatmul.mubr.bf16.gmra.mxu0 %v2079_v35  ;;  %852 = vmatmul.mubr.bf16.gmra.mxu1 %v2080_v36 }
  0x62   :  { %731 = vmatprep.mubr.bf16.mxu0 %v2081_v37  ;;  %859 = vmatprep.mubr.bf16.mxu1 %v2083_v38 }
  0x69   :  { %732 = vmatmul.mubr.bf16.gmra.mxu0 %v2085_v39  ;;  %860 = vmatmul.mubr.bf16.gmra.mxu1 %v2086_v40 }
  0x6a   :  { %739 = vmatprep.mubr.bf16.mxu0 %v2087_v41  ;;  %867 = vmatprep.mubr.bf16.mxu1 %v2089_v42 }
  0x71   :  { %740 = vmatmul.mubr.bf16.gmra.mxu0 %v2091_v43  ;;  %868 = vmatmul.mubr.bf16.gmra.mxu1 %v2092_v44 }
  0x72   :  { %747 = vmatprep.mubr.bf16.mxu0 %v2093_v45  ;;  %875 = vmatprep.mubr.bf16.mxu1 %v2095_v46 }
  0x79   :  { %748 = vmatmul.mubr.bf16.gmra.mxu0 %v2097_v47  ;;  %876 = vmatmul.mubr.bf16.gmra.mxu1 %v2098_v48 }
  0x7a   :  { %755 = vmatprep.mubr.bf16.mxu0 %v2099_v49  ;;  %883 = vmatprep.mubr.bf16.mxu1 %v2101_v50 }
  0x81   :  { %756 = vmatmul.mubr.bf16.gmra.mxu0 %v2103_v51  ;;  %884 = vmatmul.mubr.bf16.gmra.mxu1 %v2104_v52 }
  0x82   :  { %763 = vmatprep.mubr.bf16.mxu0 %v2105_v53  ;;  %891 = vmatprep.mubr.bf16.mxu1 %v2107_v54 }
  0x89   :  { %764 = vmatmul.mubr.bf16.gmra.mxu0 %v2109_v55  ;;  %892 = vmatmul.mubr.bf16.gmra.mxu1 %v2110_v56 }
  0x8a   :  { %771 = vmatprep.mubr.bf16.mxu0 %v2111_v57  ;;  %899 = vmatprep.mubr.bf16.mxu1 %v2113_v58 }
  0x91   :  { %772 = vmatmul.mubr.bf16.gmra.mxu0 %v2115_v59  ;;  %900 = vmatmul.mubr.bf16.gmra.mxu1 %v2116_v60 }
  0x92   :  { %779 = vmatprep.mubr.bf16.mxu0 %v2117_v61  ;;  %907 = vmatprep.mubr.bf16.mxu1 %v2119_v62 }
  0x99   :  { %780 = vmatmul.mubr.bf16.gmra.mxu0 %v2121_v63  ;;  %908 = vmatmul.mubr.bf16.gmra.mxu1 %v2122_v0 }
  0x9a   :  { %787 = vmatprep.mubr.bf16.mxu0 %v2123_v1  ;;  %915 = vmatprep.mubr.bf16.mxu1 %v2125_v2 }
  0xa1   :  { %788 = vmatmul.mubr.bf16.gmra.mxu0 %v2127_v3  ;;  %916 = vmatmul.mubr.bf16.gmra.mxu1 %v2128_v4 }
  0xa2   :  { %795 = vmatprep.mubr.bf16.mxu0 %v2129_v5  ;;  %923 = vmatprep.mubr.bf16.mxu1 %v2131_v6 }
  0xa9   :  { %796 = vmatmul.mubr.bf16.gmra.mxu0 %v2133_v7  ;;  %924 = vmatmul.mubr.bf16.gmra.mxu1 %v2134_v8 }
  0xaa   :  { %803 = vmatprep.mubr.bf16.mxu0 %v2135_v9  ;;  %931 = vmatprep.mubr.bf16.mxu1 %v2137_v10 }
  0xb1   :  { %804 = vmatmul.mubr.bf16.gmra.mxu0 %v2139_v11  ;;  %932 = vmatmul.mubr.bf16.gmra.mxu1 %v2140_v12 }
  0xb2   :  { %811 = vmatprep.mubr.bf16.mxu0 %v2141_v13  ;;  %939 = vmatprep.mubr.bf16.mxu1 %v2143_v14 }
  0xb9   :  { %812 = vmatmul.mubr.bf16.gmra.mxu0 %v2145_v15  ;;  %940 = vmatmul.mubr.bf16.gmra.mxu1 %v2146_v16 }
 0x101   :  { %v693_v17 = vpop.f32.mrf.mxu0  ;;  %v821_v19 = vpop.f32.mrf.mxu1 }
 0x102   :  { %v1150_v22 = vadd.f32 %v2443_v18, %v693_v17  ;;  %v1182_v23 = vadd.f32 %v2443_v18, %v821_v19 }
 0x103   :  { %v695_v20 = vpop.f32.mrf.mxu0  ;;  %v823_v21 = vpop.f32.mrf.mxu1 }
 0x104   :  { %v1214_v30 = vmax.f32 %v1150_v22, 0.0  ;;  %v1246_v31 = vmax.f32 %v1182_v23, 0.0 }
 0x105   :  { %v696_v24 = vpop.f32.mrf.mxu0  ;;  %v824_v25 = vpop.f32.mrf.mxu1 }
 0x106   :  { %v1151_v26 = vadd.f32 %v2443_v18, %v696_v24  ;;  %v1183_v27 = vadd.f32 %v2443_v18, %v824_v25 }
 0x107   :  { %v698_v28 = vpop.f32.mrf.mxu0  ;;  %v826_v29 = vpop.f32.mrf.mxu1 }
 0x108   :  { %v1215_v32 = vmax.f32 %v1151_v26, 0.0  ;;  %v1247_v33 = vmax.f32 %v1183_v27, 0.0 }
 0x109   :  { %v701_v34 = vpop.f32.mrf.mxu0  ;;  %v829_v35 = vpop.f32.mrf.mxu1 }
 0x10a   :  { %v1814_v36 = vpack.c.bf16 %v1215_v32, %v1214_v30  ;;  %v1894_v37 = vpack.c.bf16 %v1247_v33, %v1246_v31  ;;  %v1152_v40 = vadd.f32 %v2443_v18, %v701_v34  ;;  %v1184_v41 = vadd.f32 %v2443_v18, %v829_v35 }
 0x10b   :  { %v703_v38 = vpop.f32.mrf.mxu0  ;;  %v831_v39 = vpop.f32.mrf.mxu1 }
 0x10c   :  { %1815 = vst [vmem:[%s2608_s3] sm:$0xff] %v1814_v36   ;;  %1986 = vst [vmem:[%s2608_s3 + $0x80] sm:$0xff] %v1894_v37   ;;  %v1216_v48 = vmax.f32 %v1152_v40, 0.0  ;;  %v1248_v49 = vmax.f32 %v1184_v41, 0.0 }
 0x10d   :  { %v704_v42 = vpop.f32.mrf.mxu0  ;;  %v832_v43 = vpop.f32.mrf.mxu1 }
 0x10e   :  { %v1153_v44 = vadd.f32 %v2443_v18, %v704_v42  ;;  %v1185_v45 = vadd.f32 %v2443_v18, %v832_v43 }
 0x10f   :  { %v706_v46 = vpop.f32.mrf.mxu0  ;;  %v834_v47 = vpop.f32.mrf.mxu1 }
 0x110   :  { %v1217_v50 = vmax.f32 %v1153_v44, 0.0  ;;  %v1249_v51 = vmax.f32 %v1185_v45, 0.0 }
 0x111   :  { %v709_v52 = vpop.f32.mrf.mxu0  ;;  %v837_v53 = vpop.f32.mrf.mxu1 }
 0x112   :  { %v1819_v54 = vpack.c.bf16 %v1217_v50, %v1216_v48  ;;  %v1899_v55 = vpack.c.bf16 %v1249_v51, %v1248_v49  ;;  %v1154_v58 = vadd.f32 %v2443_v18, %v709_v52  ;;  %v1186_v59 = vadd.f32 %v2443_v18, %v837_v53 }
 0x113   :  { %v711_v56 = vpop.f32.mrf.mxu0  ;;  %v839_v57 = vpop.f32.mrf.mxu1 }
 0x114   :  { %1971 = vst [vmem:[%s2608_s3 + $0x8] sm:$0xff] %v1819_v54   ;;  %1987 = vst [vmem:[%s2608_s3 + $0x88] sm:$0xff] %v1899_v55   ;;  %v1218_v2 = vmax.f32 %v1154_v58, 0.0  ;;  %v1250_v3 = vmax.f32 %v1186_v59, 0.0 }
 0x115   :  { %v712_v60 = vpop.f32.mrf.mxu0  ;;  %v840_v61 = vpop.f32.mrf.mxu1 }
 0x116   :  { %v1155_v62 = vadd.f32 %v2443_v18, %v712_v60  ;;  %v1187_v63 = vadd.f32 %v2443_v18, %v840_v61 }
 0x117   :  { %v714_v0 = vpop.f32.mrf.mxu0  ;;  %v842_v1 = vpop.f32.mrf.mxu1 }
 0x118   :  { %v1219_v4 = vmax.f32 %v1155_v62, 0.0  ;;  %v1251_v5 = vmax.f32 %v1187_v63, 0.0 }
 0x119   :  { %v717_v6 = vpop.f32.mrf.mxu0  ;;  %v845_v7 = vpop.f32.mrf.mxu1 }
 0x11a   :  { %v1824_v8 = vpack.c.bf16 %v1219_v4, %v1218_v2  ;;  %v1904_v9 = vpack.c.bf16 %v1251_v5, %v1250_v3  ;;  %v1156_v12 = vadd.f32 %v2443_v18, %v717_v6  ;;  %v1188_v13 = vadd.f32 %v2443_v18, %v845_v7 }
 0x11b   :  { %v719_v10 = vpop.f32.mrf.mxu0  ;;  %v847_v11 = vpop.f32.mrf.mxu1 }
 0x11c   :  { %1972 = vst [vmem:[%s2608_s3 + $0x10] sm:$0xff] %v1824_v8   ;;  %1988 = vst [vmem:[%s2608_s3 + $0x90] sm:$0xff] %v1904_v9   ;;  %v1220_v21 = vmax.f32 %v1156_v12, 0.0  ;;  %v1252_v22 = vmax.f32 %v1188_v13, 0.0 }
 0x11d   :  { %v720_v14 = vpop.f32.mrf.mxu0  ;;  %v848_v15 = vpop.f32.mrf.mxu1 }
 0x11e   :  { %v1157_v16 = vadd.f32 %v2443_v18, %v720_v14  ;;  %v1189_v17 = vadd.f32 %v2443_v18, %v848_v15 }
 0x11f   :  { %v722_v19 = vpop.f32.mrf.mxu0  ;;  %v850_v20 = vpop.f32.mrf.mxu1 }
 0x120   :  { %v1221_v23 = vmax.f32 %v1157_v16, 0.0  ;;  %v1253_v24 = vmax.f32 %v1189_v17, 0.0 }
 0x121   :  { %v725_v25 = vpop.f32.mrf.mxu0  ;;  %v853_v26 = vpop.f32.mrf.mxu1 }
 0x122   :  { %v1829_v27 = vpack.c.bf16 %v1221_v23, %v1220_v21  ;;  %v1909_v28 = vpack.c.bf16 %v1253_v24, %v1252_v22  ;;  %v1158_v31 = vadd.f32 %v2443_v18, %v725_v25  ;;  %v1190_v32 = vadd.f32 %v2443_v18, %v853_v26 }
 0x123   :  { %v727_v29 = vpop.f32.mrf.mxu0  ;;  %v855_v30 = vpop.f32.mrf.mxu1 }
 0x124   :  { %1973 = vst [vmem:[%s2608_s3 + $0x18] sm:$0xff] %v1829_v27   ;;  %1989 = vst [vmem:[%s2608_s3 + $0x98] sm:$0xff] %v1909_v28   ;;  %v1222_v39 = vmax.f32 %v1158_v31, 0.0  ;;  %v1254_v40 = vmax.f32 %v1190_v32, 0.0 }
 0x125   :  { %v728_v33 = vpop.f32.mrf.mxu0  ;;  %v856_v34 = vpop.f32.mrf.mxu1 }
 0x126   :  { %v1159_v35 = vadd.f32 %v2443_v18, %v728_v33  ;;  %v1191_v36 = vadd.f32 %v2443_v18, %v856_v34 }
 0x127   :  { %v730_v37 = vpop.f32.mrf.mxu0  ;;  %v858_v38 = vpop.f32.mrf.mxu1 }
 0x128   :  { %v1223_v41 = vmax.f32 %v1159_v35, 0.0  ;;  %v1255_v42 = vmax.f32 %v1191_v36, 0.0 }
 0x129   :  { %v733_v43 = vpop.f32.mrf.mxu0  ;;  %v861_v44 = vpop.f32.mrf.mxu1 }
 0x12a   :  { %v1834_v45 = vpack.c.bf16 %v1223_v41, %v1222_v39  ;;  %v1914_v46 = vpack.c.bf16 %v1255_v42, %v1254_v40  ;;  %v1160_v49 = vadd.f32 %v2443_v18, %v733_v43  ;;  %v1192_v50 = vadd.f32 %v2443_v18, %v861_v44 }
 0x12b   :  { %v735_v47 = vpop.f32.mrf.mxu0  ;;  %v863_v48 = vpop.f32.mrf.mxu1 }
 0x12c   :  { %1974 = vst [vmem:[%s2608_s3 + $0x20] sm:$0xff] %v1834_v45   ;;  %1990 = vst [vmem:[%s2608_s3 + $0xa0] sm:$0xff] %v1914_v46   ;;  %v1224_v57 = vmax.f32 %v1160_v49, 0.0  ;;  %v1256_v58 = vmax.f32 %v1192_v50, 0.0 }
 0x12d   :  { %v736_v51 = vpop.f32.mrf.mxu0  ;;  %v864_v52 = vpop.f32.mrf.mxu1 }
 0x12e   :  { %v1161_v53 = vadd.f32 %v2443_v18, %v736_v51  ;;  %v1193_v54 = vadd.f32 %v2443_v18, %v864_v52 }
 0x12f   :  { %v738_v55 = vpop.f32.mrf.mxu0  ;;  %v866_v56 = vpop.f32.mrf.mxu1 }
 0x130   :  { %v1225_v59 = vmax.f32 %v1161_v53, 0.0  ;;  %v1257_v60 = vmax.f32 %v1193_v54, 0.0 }
 0x131   :  { %v741_v61 = vpop.f32.mrf.mxu0  ;;  %v869_v62 = vpop.f32.mrf.mxu1 }
 0x132   :  { %v1839_v63 = vpack.c.bf16 %v1225_v59, %v1224_v57  ;;  %v1919_v0 = vpack.c.bf16 %v1257_v60, %v1256_v58  ;;  %v1162_v3 = vadd.f32 %v2443_v18, %v741_v61  ;;  %v1194_v4 = vadd.f32 %v2443_v18, %v869_v62 }
 0x133   :  { %v743_v1 = vpop.f32.mrf.mxu0  ;;  %v871_v2 = vpop.f32.mrf.mxu1 }
 0x134   :  { %1975 = vst [vmem:[%s2608_s3 + $0x28] sm:$0xff] %v1839_v63   ;;  %1991 = vst [vmem:[%s2608_s3 + $0xa8] sm:$0xff] %v1919_v0   ;;  %v1226_v11 = vmax.f32 %v1162_v3, 0.0  ;;  %v1258_v12 = vmax.f32 %v1194_v4, 0.0 }
 0x135   :  { %v744_v5 = vpop.f32.mrf.mxu0  ;;  %v872_v6 = vpop.f32.mrf.mxu1 }
 0x136   :  { %v1163_v7 = vadd.f32 %v2443_v18, %v744_v5  ;;  %v1195_v8 = vadd.f32 %v2443_v18, %v872_v6 }
 0x137   :  { %v746_v9 = vpop.f32.mrf.mxu0  ;;  %v874_v10 = vpop.f32.mrf.mxu1 }
 0x138   :  { %v1227_v13 = vmax.f32 %v1163_v7, 0.0  ;;  %v1259_v14 = vmax.f32 %v1195_v8, 0.0 }
 0x139   :  { %v749_v15 = vpop.f32.mrf.mxu0  ;;  %v877_v16 = vpop.f32.mrf.mxu1 }
 0x13a   :  { %v1844_v17 = vpack.c.bf16 %v1227_v13, %v1226_v11  ;;  %v1924_v19 = vpack.c.bf16 %v1259_v14, %v1258_v12  ;;  %v1164_v22 = vadd.f32 %v2443_v18, %v749_v15  ;;  %v1196_v23 = vadd.f32 %v2443_v18, %v877_v16 }
 0x13b   :  { %v751_v20 = vpop.f32.mrf.mxu0  ;;  %v879_v21 = vpop.f32.mrf.mxu1 }
 0x13c   :  { %1976 = vst [vmem:[%s2608_s3 + $0x30] sm:$0xff] %v1844_v17   ;;  %1992 = vst [vmem:[%s2608_s3 + $0xb0] sm:$0xff] %v1924_v19   ;;  %v1228_v30 = vmax.f32 %v1164_v22, 0.0  ;;  %v1260_v31 = vmax.f32 %v1196_v23, 0.0 }
 0x13d   :  { %v752_v24 = vpop.f32.mrf.mxu0  ;;  %v880_v25 = vpop.f32.mrf.mxu1 }
 0x13e   :  { %v1165_v26 = vadd.f32 %v2443_v18, %v752_v24  ;;  %v1197_v27 = vadd.f32 %v2443_v18, %v880_v25 }
 0x13f   :  { %v754_v28 = vpop.f32.mrf.mxu0  ;;  %v882_v29 = vpop.f32.mrf.mxu1 }
 0x140   :  { %v1229_v32 = vmax.f32 %v1165_v26, 0.0  ;;  %v1261_v33 = vmax.f32 %v1197_v27, 0.0 }
 0x141   :  { %v757_v34 = vpop.f32.mrf.mxu0  ;;  %v885_v35 = vpop.f32.mrf.mxu1 }
 0x142   :  { %v1849_v36 = vpack.c.bf16 %v1229_v32, %v1228_v30  ;;  %v1929_v37 = vpack.c.bf16 %v1261_v33, %v1260_v31  ;;  %v1166_v40 = vadd.f32 %v2443_v18, %v757_v34  ;;  %v1198_v41 = vadd.f32 %v2443_v18, %v885_v35 }
 0x143   :  { %v759_v38 = vpop.f32.mrf.mxu0  ;;  %v887_v39 = vpop.f32.mrf.mxu1 }
 0x144   :  { %1977 = vst [vmem:[%s2608_s3 + $0x38] sm:$0xff] %v1849_v36   ;;  %1993 = vst [vmem:[%s2608_s3 + $0xb8] sm:$0xff] %v1929_v37   ;;  %v1230_v48 = vmax.f32 %v1166_v40, 0.0  ;;  %v1262_v49 = vmax.f32 %v1198_v41, 0.0 }
 0x145   :  { %v760_v42 = vpop.f32.mrf.mxu0  ;;  %v888_v43 = vpop.f32.mrf.mxu1 }
 0x146   :  { %v1167_v44 = vadd.f32 %v2443_v18, %v760_v42  ;;  %v1199_v45 = vadd.f32 %v2443_v18, %v888_v43 }
 0x147   :  { %v762_v46 = vpop.f32.mrf.mxu0  ;;  %v890_v47 = vpop.f32.mrf.mxu1 }
 0x148   :  { %v1231_v50 = vmax.f32 %v1167_v44, 0.0  ;;  %v1263_v51 = vmax.f32 %v1199_v45, 0.0 }
 0x149   :  { %v765_v52 = vpop.f32.mrf.mxu0  ;;  %v893_v53 = vpop.f32.mrf.mxu1 }
 0x14a   :  { %v1854_v54 = vpack.c.bf16 %v1231_v50, %v1230_v48  ;;  %v1934_v55 = vpack.c.bf16 %v1263_v51, %v1262_v49  ;;  %v1168_v58 = vadd.f32 %v2443_v18, %v765_v52  ;;  %v1200_v59 = vadd.f32 %v2443_v18, %v893_v53 }
 0x14b   :  { %v767_v56 = vpop.f32.mrf.mxu0  ;;  %v895_v57 = vpop.f32.mrf.mxu1 }
 0x14c   :  { %1978 = vst [vmem:[%s2608_s3 + $0x40] sm:$0xff] %v1854_v54   ;;  %1994 = vst [vmem:[%s2608_s3 + $0xc0] sm:$0xff] %v1934_v55   ;;  %v1232_v2 = vmax.f32 %v1168_v58, 0.0  ;;  %v1264_v3 = vmax.f32 %v1200_v59, 0.0 }
 0x14d   :  { %v768_v60 = vpop.f32.mrf.mxu0  ;;  %v896_v61 = vpop.f32.mrf.mxu1 }
 0x14e   :  { %v1169_v62 = vadd.f32 %v2443_v18, %v768_v60  ;;  %v1201_v63 = vadd.f32 %v2443_v18, %v896_v61 }
 0x14f   :  { %v770_v0 = vpop.f32.mrf.mxu0  ;;  %v898_v1 = vpop.f32.mrf.mxu1 }
 0x150   :  { %v1233_v4 = vmax.f32 %v1169_v62, 0.0  ;;  %v1265_v5 = vmax.f32 %v1201_v63, 0.0 }
 0x151   :  { %v773_v6 = vpop.f32.mrf.mxu0  ;;  %v901_v7 = vpop.f32.mrf.mxu1 }
 0x152   :  { %v1859_v8 = vpack.c.bf16 %v1233_v4, %v1232_v2  ;;  %v1939_v9 = vpack.c.bf16 %v1265_v5, %v1264_v3  ;;  %v1170_v12 = vadd.f32 %v2443_v18, %v773_v6  ;;  %v1202_v13 = vadd.f32 %v2443_v18, %v901_v7 }
 0x153   :  { %v775_v10 = vpop.f32.mrf.mxu0  ;;  %v903_v11 = vpop.f32.mrf.mxu1 }
 0x154   :  { %1979 = vst [vmem:[%s2608_s3 + $0x48] sm:$0xff] %v1859_v8   ;;  %1995 = vst [vmem:[%s2608_s3 + $0xc8] sm:$0xff] %v1939_v9   ;;  %v1234_v21 = vmax.f32 %v1170_v12, 0.0  ;;  %v1266_v22 = vmax.f32 %v1202_v13, 0.0 }
 0x155   :  { %v776_v14 = vpop.f32.mrf.mxu0  ;;  %v904_v15 = vpop.f32.mrf.mxu1 }
 0x156   :  { %v1171_v16 = vadd.f32 %v2443_v18, %v776_v14  ;;  %v1203_v17 = vadd.f32 %v2443_v18, %v904_v15 }
 0x157   :  { %v778_v19 = vpop.f32.mrf.mxu0  ;;  %v906_v20 = vpop.f32.mrf.mxu1 }
 0x158   :  { %v1235_v23 = vmax.f32 %v1171_v16, 0.0  ;;  %v1267_v24 = vmax.f32 %v1203_v17, 0.0 }
 0x159   :  { %v781_v25 = vpop.f32.mrf.mxu0  ;;  %v909_v26 = vpop.f32.mrf.mxu1 }
 0x15a   :  { %v1864_v27 = vpack.c.bf16 %v1235_v23, %v1234_v21  ;;  %v1944_v28 = vpack.c.bf16 %v1267_v24, %v1266_v22  ;;  %v1172_v31 = vadd.f32 %v2443_v18, %v781_v25  ;;  %v1204_v32 = vadd.f32 %v2443_v18, %v909_v26 }
 0x15b   :  { %v783_v29 = vpop.f32.mrf.mxu0  ;;  %v911_v30 = vpop.f32.mrf.mxu1 }
 0x15c   :  { %1980 = vst [vmem:[%s2608_s3 + $0x50] sm:$0xff] %v1864_v27   ;;  %1996 = vst [vmem:[%s2608_s3 + $0xd0] sm:$0xff] %v1944_v28   ;;  %v1236_v39 = vmax.f32 %v1172_v31, 0.0  ;;  %v1268_v40 = vmax.f32 %v1204_v32, 0.0 }
 0x15d   :  { %v784_v33 = vpop.f32.mrf.mxu0  ;;  %v912_v34 = vpop.f32.mrf.mxu1 }
 0x15e   :  { %v1173_v35 = vadd.f32 %v2443_v18, %v784_v33  ;;  %v1205_v36 = vadd.f32 %v2443_v18, %v912_v34 }
 0x15f   :  { %v786_v37 = vpop.f32.mrf.mxu0  ;;  %v914_v38 = vpop.f32.mrf.mxu1 }
 0x160   :  { %v1237_v41 = vmax.f32 %v1173_v35, 0.0  ;;  %v1269_v42 = vmax.f32 %v1205_v36, 0.0 }
 0x161   :  { %v789_v43 = vpop.f32.mrf.mxu0  ;;  %v917_v44 = vpop.f32.mrf.mxu1 }
 0x162   :  { %v1869_v45 = vpack.c.bf16 %v1237_v41, %v1236_v39  ;;  %v1949_v46 = vpack.c.bf16 %v1269_v42, %v1268_v40  ;;  %v1174_v49 = vadd.f32 %v2443_v18, %v789_v43  ;;  %v1206_v50 = vadd.f32 %v2443_v18, %v917_v44 }
 0x163   :  { %v791_v47 = vpop.f32.mrf.mxu0  ;;  %v919_v48 = vpop.f32.mrf.mxu1 }
 0x164   :  { %1981 = vst [vmem:[%s2608_s3 + $0x58] sm:$0xff] %v1869_v45   ;;  %1997 = vst [vmem:[%s2608_s3 + $0xd8] sm:$0xff] %v1949_v46   ;;  %v1238_v57 = vmax.f32 %v1174_v49, 0.0  ;;  %v1270_v58 = vmax.f32 %v1206_v50, 0.0 }
 0x165   :  { %v792_v51 = vpop.f32.mrf.mxu0  ;;  %v920_v52 = vpop.f32.mrf.mxu1 }
 0x166   :  { %v1175_v53 = vadd.f32 %v2443_v18, %v792_v51  ;;  %v1207_v54 = vadd.f32 %v2443_v18, %v920_v52 }
 0x167   :  { %v794_v55 = vpop.f32.mrf.mxu0  ;;  %v922_v56 = vpop.f32.mrf.mxu1 }
 0x168   :  { %v1239_v59 = vmax.f32 %v1175_v53, 0.0  ;;  %v1271_v60 = vmax.f32 %v1207_v54, 0.0 }
 0x169   :  { %v797_v61 = vpop.f32.mrf.mxu0  ;;  %v925_v62 = vpop.f32.mrf.mxu1 }
 0x16a   :  { %v1874_v63 = vpack.c.bf16 %v1239_v59, %v1238_v57  ;;  %v1954_v0 = vpack.c.bf16 %v1271_v60, %v1270_v58  ;;  %v1176_v3 = vadd.f32 %v2443_v18, %v797_v61  ;;  %v1208_v4 = vadd.f32 %v2443_v18, %v925_v62 }
 0x16b   :  { %v799_v1 = vpop.f32.mrf.mxu0  ;;  %v927_v2 = vpop.f32.mrf.mxu1 }
 0x16c   :  { %1982 = vst [vmem:[%s2608_s3 + $0x60] sm:$0xff] %v1874_v63   ;;  %1998 = vst [vmem:[%s2608_s3 + $0xe0] sm:$0xff] %v1954_v0   ;;  %v1240_v11 = vmax.f32 %v1176_v3, 0.0  ;;  %v1272_v12 = vmax.f32 %v1208_v4, 0.0 }
 0x16d   :  { %v800_v5 = vpop.f32.mrf.mxu0  ;;  %v928_v6 = vpop.f32.mrf.mxu1 }
 0x16e   :  { %v1177_v7 = vadd.f32 %v2443_v18, %v800_v5  ;;  %v1209_v8 = vadd.f32 %v2443_v18, %v928_v6 }
 0x16f   :  { %v802_v9 = vpop.f32.mrf.mxu0  ;;  %v930_v10 = vpop.f32.mrf.mxu1 }
 0x170   :  { %v1241_v13 = vmax.f32 %v1177_v7, 0.0  ;;  %v1273_v14 = vmax.f32 %v1209_v8, 0.0 }
 0x171   :  { %v805_v15 = vpop.f32.mrf.mxu0  ;;  %v933_v16 = vpop.f32.mrf.mxu1 }
 0x172   :  { %v1879_v17 = vpack.c.bf16 %v1241_v13, %v1240_v11  ;;  %v1959_v19 = vpack.c.bf16 %v1273_v14, %v1272_v12  ;;  %v1178_v22 = vadd.f32 %v2443_v18, %v805_v15  ;;  %v1210_v23 = vadd.f32 %v2443_v18, %v933_v16 }
 0x173   :  { %v807_v20 = vpop.f32.mrf.mxu0  ;;  %v935_v21 = vpop.f32.mrf.mxu1 }
 0x174   :  { %1983 = vst [vmem:[%s2608_s3 + $0x68] sm:$0xff] %v1879_v17   ;;  %1999 = vst [vmem:[%s2608_s3 + $0xe8] sm:$0xff] %v1959_v19   ;;  %v1242_v30 = vmax.f32 %v1178_v22, 0.0  ;;  %v1274_v31 = vmax.f32 %v1210_v23, 0.0 }
 0x175   :  { %v808_v24 = vpop.f32.mrf.mxu0  ;;  %v936_v25 = vpop.f32.mrf.mxu1 }
 0x176   :  { %v1179_v26 = vadd.f32 %v2443_v18, %v808_v24  ;;  %v1211_v27 = vadd.f32 %v2443_v18, %v936_v25 }
 0x177   :  { %v810_v28 = vpop.f32.mrf.mxu0  ;;  %v938_v29 = vpop.f32.mrf.mxu1 }
 0x178   :  { %v1243_v32 = vmax.f32 %v1179_v26, 0.0  ;;  %v1275_v33 = vmax.f32 %v1211_v27, 0.0 }
 0x179   :  { %v813_v34 = vpop.f32.mrf.mxu0  ;;  %v941_v35 = vpop.f32.mrf.mxu1 }
 0x17a   :  { %v1884_v36 = vpack.c.bf16 %v1243_v32, %v1242_v30  ;;  %v1964_v37 = vpack.c.bf16 %v1275_v33, %v1274_v31  ;;  %v1180_v40 = vadd.f32 %v2443_v18, %v813_v34  ;;  %v1212_v41 = vadd.f32 %v2443_v18, %v941_v35 }
 0x17b   :  { %v815_v38 = vpop.f32.mrf.mxu0  ;;  %v943_v39 = vpop.f32.mrf.mxu1 }
 0x17c   :  { %1984 = vst [vmem:[%s2608_s3 + $0x70] sm:$0xff] %v1884_v36   ;;  %2000 = vst [vmem:[%s2608_s3 + $0xf0] sm:$0xff] %v1964_v37   ;;  %v1244_v48 = vmax.f32 %v1180_v40, 0.0  ;;  %v1276_v49 = vmax.f32 %v1212_v41, 0.0 }
 0x17d   :  { %v816_v42 = vpop.f32.mrf.mxu0  ;;  %v944_v43 = vpop.f32.mrf.mxu1 }
 0x17e   :  { %v1181_v44 = vadd.f32 %v2443_v18, %v816_v42  ;;  %v1213_v45 = vadd.f32 %v2443_v18, %v944_v43 }
 0x17f   :  { %v818_v46 = vpop.f32.mrf.mxu0  ;;  %v946_v47 = vpop.f32.mrf.mxu1 }
 0x180   :  { %v1245_v50 = vmax.f32 %v1181_v44, 0.0  ;;  %v1277_v51 = vmax.f32 %v1213_v45, 0.0 }
 0x182   :  { %v1889_v52 = vpack.c.bf16 %v1245_v50, %v1244_v48  ;;  %v1969_v53 = vpack.c.bf16 %v1277_v51, %v1276_v49 }
 0x184   :  { %1985 = vst [vmem:[%s2608_s3 + $0x78] sm:$0xff] %v1889_v52   ;;  %2001 = vst [vmem:[%s2608_s3 + $0xf8] sm:$0xff] %v1969_v53  }

// kernel: vqa_forward.23
= control target key start
LH: loop header
LB: loop body
LE: loop exit
PB: predicated region body
PF: predicated region fallthrough
CT: control target
= control target key end

     0   :  { %s2165_s1 = inlined_call_operand.vmem [shape: bf16[640,128], index: 1, kind: input, shape index: {}]   ;;  %s2166_s0 = inlined_call_operand.vmem [shape: bf16[128,640], index: 0, kind: input, shape index: {}]   ;;  %s2167_s3 = inlined_call_operand.vmem [shape: bf16[128,128], index: 3, kind: input, shape index: {}]   ;;  %s2168_s2 = inlined_call_operand.vmem [shape: f32[1,128], index: 2, kind: input, shape index: {}]   ;;  %s2169_s4 = inlined_call_operand.vmem [shape: bf16[128,128], index: 4, kind: output, shape index: {}]  }
   0x1   :  { %v1534_v0 = vld [vmem:[%s2165_s1 + $0x78] sm:$0xff]   ;;  %v1538_v4 = vld [vmem:[%s2165_s1 + $0x70] sm:$0xff]   ;;  %v1542_v8 = vld [vmem:[%s2165_s1 + $0x68] sm:$0xff]  }
   0x2   :  { %v1535_v1 = vld [vmem:[%s2165_s1 + $0xf8] sm:$0xff]   ;;  %1342 = vmatprep.subr.bf16.mxu0 %v1534_v0  ;;  %v1539_v5 = vld [vmem:[%s2165_s1 + $0xf0] sm:$0xff]   ;;  %v1543_v9 = vld [vmem:[%s2165_s1 + $0xe8] sm:$0xff]  }
   0x3   :  { %v1536_v2 = vld [vmem:[%s2165_s1 + $0x38] sm:$0xff]   ;;  %1406 = vmatprep.subr.bf16.mxu1 %v1535_v1  ;;  %v1540_v6 = vld [vmem:[%s2165_s1 + $0x30] sm:$0xff]   ;;  %v1544_v10 = vld [vmem:[%s2165_s1 + $0x28] sm:$0xff]  }
   0x4   :  { %v1537_v3 = vld [vmem:[%s2165_s1 + $0xb8] sm:$0xff]   ;;  %1343 = vmatpush3.bf16.msra.mxu0 %v1536_v2  ;;  %v1541_v7 = vld [vmem:[%s2165_s1 + $0xb0] sm:$0xff]   ;;  %v1545_v11 = vld [vmem:[%s2165_s1 + $0xa8] sm:$0xff]  }
   0x5   :  { %1407 = vmatpush3.bf16.msra.mxu1 %v1537_v3  ;;  %1344 = vmatprep.subr.bf16.mxu0 %v1538_v4  ;;  %v1546_v12 = vld [vmem:[%s2165_s1 + $0x60] sm:$0xff]   ;;  %v1550_v16 = vld [vmem:[%s2165_s1 + $0x58] sm:$0xff]   ;;  %v1554_v20 = vld [vmem:[%s2165_s1 + $0x50] sm:$0xff]  }
   0x6   :  { %1408 = vmatprep.subr.bf16.mxu1 %v1539_v5  ;;  %v1547_v13 = vld [vmem:[%s2165_s1 + $0xe0] sm:$0xff]   ;;  %v1551_v17 = vld [vmem:[%s2165_s1 + $0xd8] sm:$0xff]   ;;  %v1555_v21 = vld [vmem:[%s2165_s1 + $0xd0] sm:$0xff]  }
   0x7   :  { %v1548_v14 = vld [vmem:[%s2165_s1 + $0x20] sm:$0xff]   ;;  %v1552_v18 = vld [vmem:[%s2165_s1 + $0x18] sm:$0xff]   ;;  %v1556_v22 = vld [vmem:[%s2165_s1 + $0x10] sm:$0xff]  }
   0x8   :  { %1345 = vmatpush3.bf16.msra.mxu0 %v1540_v6  ;;  %v1549_v15 = vld [vmem:[%s2165_s1 + $0xa0] sm:$0xff]   ;;  %v1553_v19 = vld [vmem:[%s2165_s1 + $0x98] sm:$0xff]   ;;  %v1557_v23 = vld [vmem:[%s2165_s1 + $0x90] sm:$0xff]  }
   0x9   :  { %1409 = vmatpush3.bf16.msra.mxu1 %v1541_v7  ;;  %1346 = vmatprep.subr.bf16.mxu0 %v1542_v8  ;;  %v1558_v24 = vld [vmem:[%s2165_s1 + $0x48] sm:$0xff]   ;;  %v1562_v28 = vld [vmem:[%s2165_s1 + $0x40] sm:$0xff]   ;;  %v1572_v36 = vld [vmem:[%s2165_s1 + $0x138] sm:$0xff]  }
   0xa   :  { %1410 = vmatprep.subr.bf16.mxu1 %v1543_v9  ;;  %v1559_v25 = vld [vmem:[%s2165_s1 + $0xc8] sm:$0xff]   ;;  %v1563_v29 = vld [vmem:[%s2165_s1 + $0xc0] sm:$0xff]   ;;  %v1579_v39 = vld [vmem:[%s2165_s1 + $0x130] sm:$0xff]  }
   0xb   :  { %v1560_v26 = vld [vmem:[%s2165_s1 + $0x8] sm:$0xff]   ;;  %v1564_v30 = vld [vmem:[%s2165_s1] sm:$0xff]   ;;  %v1582_v43 = vld [vmem:[%s2166_s0 + $0x5c] ss:$20 sps:$4 sm:$0xff]  }
   0xc   :  { %1347 = vmatpush3.bf16.msra.mxu0 %v1544_v10  ;;  %v1561_v27 = vld [vmem:[%s2165_s1 + $0x88] sm:$0xff]   ;;  %v1565_v31 = vld [vmem:[%s2165_s1 + $0x80] sm:$0xff]   ;;  %v1587_v48 = vld [vmem:[%s2166_s0 + $0x7c] ss:$20 sps:$4 sm:$0xff]  }
   0xd   :  { %1411 = vmatpush3.bf16.msra.mxu1 %v1545_v11  ;;  %1348 = vmatprep.subr.bf16.mxu0 %v1546_v12  ;;  %v1566_v32 = vld [vmem:[%s2166_s0] ss:$20 sps:$4 sm:$0xff]   ;;  %v1568_v33 = vld [vmem:[%s2166_s0 + $0x4] ss:$20 sps:$4 sm:$0xff]   ;;  %v1569_v34 = vld [vmem:[%s2166_s0 + $0x8] ss:$20 sps:$4 sm:$0xff]  }
   0xe   :  { %1412 = vmatprep.subr.bf16.mxu1 %v1547_v13  ;;  %v1571_v35 = vld [vmem:[%s2166_s0 + $0xc] ss:$20 sps:$4 sm:$0xff]   ;;  %662 = vmatprep.mubr.bf16.mxu0 %v1568_v33  ;;  %v1575_v38 = vld [vmem:[%s2166_s0 + $0x34] ss:$20 sps:$4 sm:$0xff]   ;;  %v1578_v41 = vld [vmem:[%s2166_s0 + $0x30] ss:$20 sps:$4 sm:$0xff]  }
   0xf   :  { %759 = vmatprep.mubr.bf16.mxu1 %v1571_v35  ;;  %v1573_v37 = vld [vmem:[%s2166_s0 + $0x2c] ss:$20 sps:$4 sm:$0xff]   ;;  %v1577_v40 = vld [vmem:[%s2166_s0 + $0x28] ss:$20 sps:$4 sm:$0xff]   ;;  %v1584_v46 = vld [vmem:[%s2166_s0 + $0x50] ss:$20 sps:$4 sm:$0xff]  }
  0x10   :  { %1349 = vmatpush3.bf16.msra.mxu0 %v1548_v14  ;;  %v1580_v42 = vld [vmem:[%s2166_s0 + $0x54] ss:$20 sps:$4 sm:$0xff]   ;;  %v1593_v45 = vld [vmem:[%s2165_s1 + $0x120] sm:$0xff]   ;;  %v1585_v47 = vld [vmem:[%s2166_s0 + $0x58] ss:$20 sps:$4 sm:$0xff]  }
  0x11   :  { %1413 = vmatpush3.bf16.msra.mxu1 %v1549_v15  ;;  %1350 = vmatprep.subr.bf16.mxu0 %v1550_v16  ;;  %v1586_v44 = vld [vmem:[%s2165_s1 + $0x128] sm:$0xff]   ;;  %v1589_v49 = vld [vmem:[%s2166_s0 + $0x84] ss:$20 sps:$4 sm:$0xff]   ;;  %v1607_v51 = vld [vmem:[%s2165_s1 + $0x110] sm:$0xff]  }
  0x12   :  { %1414 = vmatprep.subr.bf16.mxu1 %v1551_v17  ;;  %v1600_v50 = vld [vmem:[%s2165_s1 + $0x118] sm:$0xff]   ;;  %v1592_v53 = vld [vmem:[%s2166_s0 + $0x80] ss:$20 sps:$4 sm:$0xff]   ;;  %v1614_v55 = vld [vmem:[%s2165_s1 + $0x108] sm:$0xff]  }
  0x13   :  { %v1591_v52 = vld [vmem:[%s2166_s0 + $0x78] ss:$20 sps:$4 sm:$0xff]   ;;  %v1621_v57 = vld [vmem:[%s2165_s1 + $0x100] sm:$0xff]   ;;  %v1599_v59 = vld [vmem:[%s2166_s0 + $0xa8] ss:$20 sps:$4 sm:$0xff]  }
  0x14   :  { %1351 = vmatpush3.bf16.msra.mxu0 %v1552_v18  ;;  %v1594_v54 = vld [vmem:[%s2166_s0 + $0xa4] ss:$20 sps:$4 sm:$0xff]   ;;  %v1596_v56 = vld [vmem:[%s2166_s0 + $0xac] ss:$20 sps:$4 sm:$0xff]   ;;  %v1603_v61 = vld [vmem:[%s2166_s0 + $0xd4] ss:$20 sps:$4 sm:$0xff]  }
  0x15   :  { %1415 = vmatpush3.bf16.msra.mxu1 %v1553_v19  ;;  %1352 = vmatprep.subr.bf16.mxu0 %v1554_v20  ;;  %v1598_v58 = vld [vmem:[%s2166_s0 + $0xa0] ss:$20 sps:$4 sm:$0xff]   ;;  %v1605_v62 = vld [vmem:[%s2166_s0 + $0xc8] ss:$20 sps:$4 sm:$0xff]   ;;  %v1606_v63 = vld [vmem:[%s2166_s0 + $0xd0] ss:$20 sps:$4 sm:$0xff]  }
  0x16   :  { %1416 = vmatprep.subr.bf16.mxu1 %v1555_v21  ;;  %v1601_v60 = vld [vmem:[%s2166_s0 + $0xcc] ss:$20 sps:$4 sm:$0xff]   ;;  %v1608_v0 = vld [vmem:[%s2166_s0 + $0xf4] ss:$20 sps:$4 sm:$0xff]   ;;  %v1610_v1 = vld [vmem:[%s2166_s0 + $0xfc] ss:$20 sps:$4 sm:$0xff]  }
  0x17   :  { %v1612_v2 = vld [vmem:[%s2166_s0 + $0xf0] ss:$20 sps:$4 sm:$0xff]   ;;  %v1613_v3 = vld [vmem:[%s2166_s0 + $0xf8] ss:$20 sps:$4 sm:$0xff]   ;;  %v1620_v7 = vld [vmem:[%s2166_s0 + $0x120] ss:$20 sps:$4 sm:$0xff]  }
  0x18   :  { %1353 = vmatpush3.bf16.msra.mxu0 %v1556_v22  ;;  %v1615_v4 = vld [vmem:[%s2166_s0 + $0x11c] ss:$20 sps:$4 sm:$0xff]   ;;  %v1617_v5 = vld [vmem:[%s2166_s0 + $0x124] ss:$20 sps:$4 sm:$0xff]   ;;  %v1626_v12 = vld [vmem:[%s2166_s0 + $0x60] ss:$20 sps:$4 sm:$0xff]  }
  0x19   :  { %1417 = vmatpush3.bf16.msra.mxu1 %v1557_v23  ;;  %1354 = vmatprep.subr.bf16.mxu0 %v1558_v24  ;;  %v1619_v6 = vld [vmem:[%s2166_s0 + $0x118] ss:$20 sps:$4 sm:$0xff]   ;;  %v1622_v8 = vld [vmem:[%s2166_s0 + $0x10] ss:$20 sps:$4 sm:$0xff]   ;;  %v1627_v13 = vld [vmem:[%s2166_s0 + $0x100] ss:$20 sps:$4 sm:$0xff]  }
  0x1a   :  { %1418 = vmatprep.subr.bf16.mxu1 %v1559_v25  ;;  %v1623_v9 = vld [vmem:[%s2166_s0 + $0xb0] ss:$20 sps:$4 sm:$0xff]   ;;  %v1624_v10 = vld [vmem:[%s2166_s0 + $0x38] ss:$20 sps:$4 sm:$0xff]   ;;  %v1628_v14 = vld [vmem:[%s2166_s0 + $0x88] ss:$20 sps:$4 sm:$0xff]  }
  0x1b   :  { %v1625_v11 = vld [vmem:[%s2166_s0 + $0xd8] ss:$20 sps:$4 sm:$0xff]   ;;  %v1629_v15 = vld [vmem:[%s2166_s0 + $0x128] ss:$20 sps:$4 sm:$0xff]  }
  0x1c   :  { %1355 = vmatpush3.bf16.msra.mxu0 %v1560_v26 }
  0x1d   :  { %1419 = vmatpush3.bf16.msra.mxu1 %v1561_v27  ;;  %1356 = vmatprep.subr.bf16.mxu0 %v1562_v28 }
  0x1e   :  { %1420 = vmatprep.subr.bf16.mxu1 %v1563_v29 }
  0x20   :  { %1357 = vmatpush3.bf16.msra.mxu0 %v1564_v30 }
  0x21   :  { %1421 = vmatpush3.bf16.msra.mxu1 %v1565_v31  ;;  %1486 = vmatprep.subr.bf16.mxu0 %v1572_v36 }
  0x22   :  { %1518 = vmatprep.subr.bf16.mxu1 %v1572_v36 }
  0x23   :  { %663 = vmatmul.mubr.bf16.vlgmr.msra.gmra.mxu0 %v1566_v32 }
  0x24   :  { %760 = vmatmul.mubr.bf16.vlgmr.msra.gmra.mxu1 %v1569_v34  ;;  %1487 = vmatpush3.bf16.msra.mxu0 %v1572_v36 }
  0x25   :  { %1526 = vmatpush3.bf16.msra.mxu1 %v1572_v36  ;;  %670 = vmatprep.mubr.bf16.mxu0 %v1573_v37 }
  0x26   :  { %767 = vmatprep.mubr.bf16.mxu1 %v1575_v38  ;;  %1488 = vmatprep.subr.bf16.mxu0 %v1579_v39 }
  0x27   :  { %1519 = vmatprep.subr.bf16.mxu1 %v1579_v39 }
  0x28   :  { %1489 = vmatpush3.bf16.msra.mxu0 %v1579_v39 }
  0x29   :  { %1527 = vmatpush3.bf16.msra.mxu1 %v1579_v39  ;;  %1490 = vmatprep.subr.bf16.mxu0 %v1586_v44 }
  0x2a   :  { %1520 = vmatprep.subr.bf16.mxu1 %v1586_v44 }
  0x2b   :  { %671 = vmatmul.mubr.bf16.gmra.mxu0 %v1577_v40 }
  0x2c   :  { %768 = vmatmul.mubr.bf16.gmra.mxu1 %v1578_v41  ;;  %678 = vmatprep.mubr.bf16.mxu0 %v1580_v42 }
  0x2d   :  { %775 = vmatprep.mubr.bf16.mxu1 %v1582_v43  ;;  %1491 = vmatpush3.bf16.msra.mxu0 %v1586_v44 }
  0x2e   :  { %1528 = vmatpush3.bf16.msra.mxu1 %v1586_v44  ;;  %1492 = vmatprep.subr.bf16.mxu0 %v1593_v45 }
  0x2f   :  { %1521 = vmatprep.subr.bf16.mxu1 %v1593_v45 }
  0x31   :  { %1493 = vmatpush3.bf16.msra.mxu0 %v1593_v45 }
  0x32   :  { %1529 = vmatpush3.bf16.msra.mxu1 %v1593_v45  ;;  %1494 = vmatprep.subr.bf16.mxu0 %v1600_v50 }
  0x33   :  { %679 = vmatmul.mubr.bf16.gmra.mxu0 %v1584_v46  ;;  %1522 = vmatprep.subr.bf16.mxu1 %v1600_v50 }
  0x34   :  { %776 = vmatmul.mubr.bf16.gmra.mxu1 %v1585_v47  ;;  %686 = vmatprep.mubr.bf16.mxu0 %v1587_v48 }
  0x35   :  { %783 = vmatprep.mubr.bf16.mxu1 %v1589_v49  ;;  %1495 = vmatpush3.bf16.msra.mxu0 %v1600_v50 }
  0x36   :  { %1530 = vmatpush3.bf16.msra.mxu1 %v1600_v50  ;;  %1496 = vmatprep.subr.bf16.mxu0 %v1607_v51 }
  0x37   :  { %1523 = vmatprep.subr.bf16.mxu1 %v1607_v51 }
  0x39   :  { %1497 = vmatpush3.bf16.msra.mxu0 %v1607_v51 }
  0x3a   :  { %1531 = vmatpush3.bf16.msra.mxu1 %v1607_v51  ;;  %1498 = vmatprep.subr.bf16.mxu0 %v1614_v55 }
  0x3b   :  { %687 = vmatmul.mubr.bf16.gmra.mxu0 %v1591_v52  ;;  %1524 = vmatprep.subr.bf16.mxu1 %v1614_v55 }
  0x3c   :  { %784 = vmatmul.mubr.bf16.gmra.mxu1 %v1592_v53  ;;  %694 = vmatprep.mubr.bf16.mxu0 %v1594_v54 }
  0x3d   :  { %791 = vmatprep.mubr.bf16.mxu1 %v1596_v56  ;;  %1499 = vmatpush3.bf16.msra.mxu0 %v1614_v55 }
  0x3e   :  { %1532 = vmatpush3.bf16.msra.mxu1 %v1614_v55  ;;  %1500 = vmatprep.subr.bf16.mxu0 %v1621_v57 }
  0x3f   :  { %1525 = vmatprep.subr.bf16.mxu1 %v1621_v57 }
  0x41   :  { %1501 = vmatpush3.bf16.msra.mxu0 %v1621_v57 }
  0x42   :  { %1533 = vmatpush3.bf16.msra.mxu1 %v1621_v57 }
  0x43   :  { %695 = vmatmul.mubr.bf16.gmra.mxu0 %v1598_v58 }
  0x44   :  { %792 = vmatmul.mubr.bf16.gmra.mxu1 %v1599_v59  ;;  %702 = vmatprep.mubr.bf16.mxu0 %v1601_v60 }
  0x45   :  { %799 = vmatprep.mubr.bf16.mxu1 %v1603_v61 }
  0x4b   :  { %703 = vmatmul.mubr.bf16.gmra.mxu0 %v1605_v62 }
  0x4c   :  { %800 = vmatmul.mubr.bf16.gmra.mxu1 %v1606_v63  ;;  %710 = vmatprep.mubr.bf16.mxu0 %v1608_v0 }
  0x4d   :  { %807 = vmatprep.mubr.bf16.mxu1 %v1610_v1 }
  0x53   :  { %711 = vmatmul.mubr.bf16.gmra.mxu0 %v1612_v2 }
  0x54   :  { %808 = vmatmul.mubr.bf16.gmra.mxu1 %v1613_v3  ;;  %718 = vmatprep.mubr.bf16.mxu0 %v1615_v4 }
  0x55   :  { %815 = vmatprep.mubr.bf16.mxu1 %v1617_v5 }
  0x5b   :  { %719 = vmatmul.mubr.bf16.gmra.mxu0 %v1619_v6 }
  0x5c   :  { %816 = vmatmul.mubr.bf16.gmra.mxu1 %v1620_v7  ;;  %1502 = vmatprep.mubr.bf16.mxu0 %v1622_v8  ;;  %v1980_v7 = vld [vmem:[%s2167_s3 + $0x8] sm:$0xff]  }
  0x5d   :  { %1510 = vmatprep.mubr.bf16.mxu1 %v1623_v9  ;;  %v1985_v8 = vld [vmem:[%s2167_s3 + $0x28] sm:$0xff]   ;;  %v1990_v9 = vld [vmem:[%s2167_s3] sm:$0xff]  }
  0x63   :  { %1503 = vmatmul.mubr.bf16.vlgmr.msra.gmra.mxu0 %v1624_v10 }
  0x64   :  { %1511 = vmatmul.mubr.bf16.vlgmr.msra.gmra.mxu1 %v1625_v11  ;;  %1506 = vmatprep.mubr.bf16.mxu0 %v1626_v12  ;;  %v1997_v11 = vld [vmem:[%s2167_s3 + $0x20] sm:$0xff]  }
  0x65   :  { %1514 = vmatprep.mubr.bf16.mxu1 %v1627_v13  ;;  %v2004_v13 = vld [vmem:[%s2167_s3 + $0x18] sm:$0xff]  }
  0x6b   :  { %1507 = vmatmul.mubr.bf16.gmra.mxu0 %v1628_v14  ;;  %v2009_v14 = vld [vmem:[%s2167_s3 + $0x38] sm:$0xff]  }
  0x6c   :  { %1515 = vmatmul.mubr.bf16.gmra.mxu1 %v1629_v15  ;;  %v2014_v15 = vld [vmem:[%s2167_s3 + $0x10] sm:$0xff]  }
  0xe3   :  { %v1358_v16 = vpop.f32.mrf.mxu0 }
  0xe4   :  { %v1422_v17 = vpop.f32.mrf.mxu1 }
  0xe5   :  { %v1359_v18 = vpop.f32.mrf.mxu0 }
  0xe6   :  { %v1360_v19 = vadd.f32 %v1359_v18, %v1358_v16  ;;  %v1423_v20 = vpop.f32.mrf.mxu1 }
  0xe7   :  { %v1424_v21 = vadd.f32 %v1423_v20, %v1422_v17  ;;  %v1895_v22 = vpop.f32.mrf.mxu0  ;;  %v2024_v20 = vld [vmem:[%s2167_s3 + $0x30] sm:$0xff]  }
  0xe8   :  { %v1897_v23 = vpop.f32.mrf.mxu1 }
  0xe9   :  { %v1899_v24 = vpop.f32.mrf.mxu0  ;;  %v1901_v25 = vadd.f32 %v1424_v21, %v1360_v19 }
  0xea   :  { %v1903_v26 = vpop.f32.mrf.mxu1 }
  0xeb   :  { %2170 = vst [vmem:[#allocation3_spill] sm:$0xff] %v1901_v25  ;;  %v1905_v27 = vpop.f32.mrf.mxu0  ;;  %v1282_v25 = vunpack.c.l.bf16 %v2024_v20 }
  0xec   :  { %v1907_v28 = vpop.f32.mrf.mxu1 }
  0xed   :  { %v1909_v29 = vpop.f32.mrf.mxu0 }
  0xee   :  { %v1911_v30 = vpop.f32.mrf.mxu1  ;;  %v1366_v18 = vadd.f32 %v1909_v29, %v1905_v27 }
  0xef   :  { %v1913_v31 = vpop.f32.mrf.mxu0  ;;  %v1430_v19 = vadd.f32 %v1911_v30, %v1907_v28 }
  0xf0   :  { %v1915_v32 = vpop.f32.mrf.mxu1 }
  0xf1   :  { %v1917_v33 = vpop.f32.mrf.mxu0 }
  0xf2   :  { %v1919_v34 = vpop.f32.mrf.mxu1 }
  0xf3   :  { %v1921_v35 = vpop.f32.mrf.mxu0 }
  0xf4   :  { %v1923_v36 = vpop.f32.mrf.mxu1 }
  0xf5   :  { %v1925_v37 = vpop.f32.mrf.mxu0 }
  0xf6   :  { %v1927_v38 = vpop.f32.mrf.mxu1 }
  0xf7   :  { %v1929_v39 = vpop.f32.mrf.mxu0 }
  0xf8   :  { %v1931_v40 = vpop.f32.mrf.mxu1 }
  0xf9   :  { %v1933_v41 = vpop.f32.mrf.mxu0 }
  0xfa   :  { %v1935_v42 = vpop.f32.mrf.mxu1 }
  0xfb   :  { %v1937_v43 = vpop.f32.mrf.mxu0  ;;  %v1439_v27 = vadd.f32 %v1935_v42, %v1931_v40 }
  0xfc   :  { %v1939_v44 = vpop.f32.mrf.mxu1 }
  0xfd   :  { %v1941_v45 = vpop.f32.mrf.mxu0 }
  0xfe   :  { %v1943_v46 = vpop.f32.mrf.mxu1  ;;  %v1378_v29 = vadd.f32 %v1941_v45, %v1937_v43  ;;  %v770_v45 = vadd.f32 %v1430_v19, %v1366_v18  ;;  %v2179_v18 = vld [vmem:[#allocation3_spill] sm:$0xff] }
  0xff   :  { %v1945_v47 = vpop.f32.mrf.mxu0  ;;  %v1442_v30 = vadd.f32 %v1943_v46, %v1939_v44 }
 0x100   :  { %v1947_v48 = vpop.f32.mrf.mxu1 }
 0x101   :  { %v1949_v49 = vpop.f32.mrf.mxu0 }
 0x102   :  { %v1951_v50 = vpop.f32.mrf.mxu1 }
 0x103   :  { %v1953_v51 = vpop.f32.mrf.mxu0 }
 0x104   :  { %v1955_v52 = vpop.f32.mrf.mxu1 }
 0x105   :  { %v1957_v53 = vpop.f32.mrf.mxu0 }
 0x106   :  { %v1959_v54 = vpop.f32.mrf.mxu1 }
 0x107   :  { %v1961_v55 = vpop.f32.mrf.mxu0 }
 0x108   :  { %v1963_v56 = vpop.f32.mrf.mxu1 }
 0x109   :  { %v1965_v57 = vpop.f32.mrf.mxu0 }
 0x10a   :  { %v1967_v58 = vpop.f32.mrf.mxu1 }
 0x10b   :  { %v1388_v59 = vpop.f32.mrf.mxu0  ;;  %v1451_v40 = vadd.f32 %v1967_v58, %v1963_v56 }
 0x10c   :  { %v1452_v60 = vpop.f32.mrf.mxu1 }
 0x10d   :  { %v1389_v61 = vpop.f32.mrf.mxu0 }
 0x10e   :  { %v1453_v62 = vpop.f32.mrf.mxu1 }
 0x10f   :  { %v1391_v63 = vpop.f32.mrf.mxu0 }
 0x110   :  { %v1455_v0 = vpop.f32.mrf.mxu1 }
 0x111   :  { %v1392_v1 = vpop.f32.mrf.mxu0 }
 0x112   :  { %v1456_v2 = vpop.f32.mrf.mxu1 }
 0x113   :  { %v1969_v3 = vpop.f32.mrf.mxu0  ;;  %v1457_v42 = vadd.f32 %v1456_v2, %v1455_v0 }
 0x114   :  { %v1971_v4 = vpop.f32.mrf.mxu1 }
 0x115   :  { %2171 = vst [vmem:[#allocation4_spill] sm:$0xff] %v1971_v4  ;;  %v1973_v5 = vpop.f32.mrf.mxu0  ;;  %v1369_v4 = vadd.f32 %v1917_v33, %v1913_v31  ;;  %v1390_v31 = vadd.f32 %v1389_v61, %v1388_v59 }
 0x116   :  { %v1975_v6 = vpop.f32.mrf.mxu1 }
 0x117   :  { %2172 = vst [vmem:[#allocation5_spill] sm:$0xff] %v1975_v6  ;;  %v1992_v10 = vpop.f32.mrf.mxu0  ;;  %v1286_v6 = vunpack.c.l.bf16 %v2009_v14 }
 0x118   :  { %2173 = vst [vmem:[#allocation6_spill] sm:$0xff] %v1992_v10  ;;  %v1999_v12 = vpop.f32.mrf.mxu1 }
 0x119   :  { %2174 = vst [vmem:[#allocation7_spill] sm:$0xff] %v1999_v12  ;;  %v2016_v16 = vpop.f32.mrf.mxu0  ;;  %v1427_v12 = vadd.f32 %v1903_v26, %v1897_v23  ;;  %v1372_v23 = vadd.f32 %v1925_v37, %v1921_v35  ;;  %v1436_v26 = vadd.f32 %v1927_v38, %v1923_v36  ;;  %v1445_v35 = vadd.f32 %v1951_v50, %v1947_v48  ;;  %v2078_v50 = vld [vmem:[%s2168_s2] ss:$0 sm:$0xff] }
 0x11a   :  { %2175 = vst [vmem:[#allocation8_spill] sm:$0xff] %v2016_v16  ;;  %v2026_v21 = vpop.f32.mrf.mxu1  ;;  %v1375_v16 = vadd.f32 %v1933_v41, %v1929_v39  ;;  %v1384_v36 = vadd.f32 %v1957_v53, %v1953_v51  ;;  %v1448_v37 = vadd.f32 %v1959_v54, %v1955_v52  ;;  %v1387_v39 = vadd.f32 %v1965_v57, %v1961_v55 }
 0x11b   :  { %2176 = vst [vmem:[#allocation9_spill] sm:$0xff] %v2026_v21  ;;  %v1400_v17 = vpop.f32.mrf.mxu0  ;;  %v1363_v21 = vadd.f32 %v1899_v24, %v1895_v22  ;;  %v1433_v22 = vadd.f32 %v1919_v34, %v1915_v32  ;;  %v1454_v32 = vadd.f32 %v1453_v62, %v1452_v60  ;;  %v1381_v34 = vadd.f32 %v1949_v49, %v1945_v47 }
 0x11c   :  { %v1464_v10 = vpop.f32.mrf.mxu1  ;;  %v1393_v41 = vadd.f32 %v1392_v1, %v1391_v63  ;;  %v1287_v48 = vunpack.c.h.bf16 %v2009_v14  ;;  %v786_v52 = vadd.f32 %v1442_v30, %v1378_v29  ;;  %v778_v53 = vadd.f32 %v1436_v26, %v1372_v23  ;;  %v2177_v56 = vld [vmem:[#allocation4_spill] sm:$0xff] }
 0x11d   :  { %v1401_v24 = vpop.f32.mrf.mxu0  ;;  %v773_v46 = vadd.f32 %v1433_v22, %v1369_v4  ;;  %v765_v47 = vadd.f32 %v1427_v12, %v1363_v21  ;;  %v802_v51 = vadd.f32 %v1454_v32, %v1390_v31  ;;  %v2080_v54 = vadd.f32 %v1439_v27, %v1375_v16 }
 0x11e   :  { %v1465_v28 = vpop.f32.mrf.mxu1  ;;  %v1396_v55 = vadd.f32 %v1973_v5, %v1969_v3  ;;  %v2178_v57 = vld [vmem:[#allocation5_spill] sm:$0xff]  ;;  %v2086_v61 = vadd.f32 %v1445_v35, %v1381_v34  ;;  %v794_v0 = vadd.f32 %v1448_v37, %v1384_v36  ;;  %v805_v1 = vadd.f32 %v1457_v42, %v1393_v41 }
 0x11f   :  { %v1403_v33 = vpop.f32.mrf.mxu0  ;;  %v1460_v58 = vadd.f32 %v2178_v57, %v2177_v56  ;;  %v797_v2 = vadd.f32 %v1451_v40, %v1387_v39  ;;  %v1402_v4 = vadd.f32 %v1401_v24, %v1400_v17  ;;  %v1466_v12 = vadd.f32 %v1465_v28, %v1464_v10  ;;  %v2180_v27 = vld [vmem:[#allocation6_spill] sm:$0xff] }
 0x120   :  { %v1467_v38 = vpop.f32.mrf.mxu1  ;;  %v2182_v10 = vld [vmem:[#allocation7_spill] sm:$0xff]  ;;  %v2184_v35 = vunpack.c.l.bf16 %v1980_v7  ;;  %v2185_v39 = vunpack.c.l.bf16 %v1985_v8  ;;  %v2187_v57 = vunpack.c.l.bf16 %v1997_v11 }
 0x121   :  { %v1404_v43 = vpop.f32.mrf.mxu0  ;;  %v2181_v29 = vld [vmem:[#allocation8_spill] sm:$0xff]  ;;  %v810_v17 = vadd.f32 %v1460_v58, %v1396_v55 }
 0x122   :  { %v1468_v44 = vpop.f32.mrf.mxu1  ;;  %v1405_v3 = vadd.f32 %v1404_v43, %v1403_v33  ;;  %v1399_v30 = vadd.f32 %v2181_v29, %v2180_v27  ;;  %v2183_v24 = vld [vmem:[#allocation9_spill] sm:$0xff] }
 0x123   :  { %v1504_v49 = vpop.f32.mrf.mxu0  ;;  %v1469_v5 = vadd.f32 %v1468_v44, %v1467_v38  ;;  %v1463_v28 = vadd.f32 %v2183_v24, %v2182_v10  ;;  %v818_v44 = vadd.f32 %v1466_v12, %v1402_v4 }
 0x124   :  { %v867_v59 = vadd.f32 %v1504_v49, %v770_v45  ;;  %v1512_v60 = vpop.f32.mrf.mxu1  ;;  %v2186_v45 = vunpack.c.l.bf16 %v1990_v9 }
 0x125   :  { %v899_v62 = vadd.f32 %v1512_v60, %v802_v51  ;;  %v858_v63 = vpop.f32.mrf.mxu0  ;;  %v821_v56 = vadd.f32 %v1469_v5, %v1405_v3 }
 0x126   :  { %v981_v16 = vadd.f32 %v2078_v50, %v867_v59  ;;  %v859_v19 = vadd.f32 %v858_v63, %v2179_v18  ;;  %v890_v21 = vpop.f32.mrf.mxu1  ;;  %v2188_v59 = vunpack.c.h.bf16 %v1980_v7 }
 0x127   :  { %v989_v22 = vadd.f32 %v2078_v50, %v899_v62  ;;  %v891_v23 = vadd.f32 %v890_v21, %v794_v0  ;;  %v1505_v26 = vpop.f32.mrf.mxu0  ;;  %v2190_v21 = vunpack.c.h.bf16 %v1990_v9 }
 0x128   :  { %v979_v31 = vadd.f32 %v2078_v50, %v859_v19  ;;  %v870_v32 = vadd.f32 %v1505_v26, %v773_v46  ;;  %v1513_v34 = vpop.f32.mrf.mxu1  ;;  %v1029_v36 = vadd.f32 %v2184_v35, %v981_v16 }
 0x129   :  { %v987_v33 = vadd.f32 %v2078_v50, %v891_v23  ;;  %v902_v37 = vadd.f32 %v1513_v34, %v805_v1  ;;  %v861_v38 = vpop.f32.mrf.mxu0  ;;  %v1037_v40 = vadd.f32 %v2185_v39, %v989_v22  ;;  %v2189_v1 = vunpack.c.h.bf16 %v1985_v8 }
 0x12a   :  { %v982_v41 = vadd.f32 %v2078_v50, %v870_v32  ;;  %v862_v42 = vadd.f32 %v861_v38, %v765_v47  ;;  %v893_v43 = vpop.f32.mrf.mxu1  ;;  %v1027_v46 = vadd.f32 %v2186_v45, %v979_v31  ;;  %v1045_v0 = vmax.f32 %v1029_v36, 0.0 }
 0x12b   :  { %v990_v49 = vadd.f32 %v2078_v50, %v902_v37  ;;  %v894_v51 = vadd.f32 %v893_v43, %v797_v2  ;;  %v1508_v55 = vpop.f32.mrf.mxu0  ;;  %v1035_v58 = vadd.f32 %v2187_v57, %v987_v33  ;;  %v1053_v18 = vmax.f32 %v1037_v40, 0.0 }
 0x12c   :  { %v1030_v60 = vadd.f32 %v2188_v59, %v982_v41  ;;  %v980_v62 = vadd.f32 %v2078_v50, %v862_v42  ;;  %v883_v63 = vadd.f32 %v1508_v55, %v786_v52  ;;  %v1516_v47 = vpop.f32.mrf.mxu1  ;;  %v1043_v22 = vmax.f32 %v1027_v46, 0.0 }
 0x12d   :  { %v1038_v4 = vadd.f32 %v2189_v1, %v990_v49  ;;  %v988_v12 = vadd.f32 %v2078_v50, %v894_v51  ;;  %v915_v16 = vadd.f32 %v1516_v47, %v818_v44  ;;  %v874_v2 = vpop.f32.mrf.mxu0  ;;  %v2191_v52 = vunpack.c.h.bf16 %v1997_v11 }
 0x12e   :  { %v1046_v19 = vmax.f32 %v1030_v60, 0.0  ;;  %v1028_v3 = vadd.f32 %v2190_v21, %v980_v62  ;;  %v875_v5 = vadd.f32 %v874_v2, %v778_v53  ;;  %v906_v7 = vpop.f32.mrf.mxu1  ;;  %v1051_v8 = vmax.f32 %v1035_v58, 0.0 }
 0x12f   :  { %v1054_v23 = vmax.f32 %v1038_v4, 0.0  ;;  %v1036_v26 = vadd.f32 %v2191_v52, %v988_v12  ;;  %v907_v27 = vadd.f32 %v906_v7, %v810_v17  ;;  %v1509_v29 = vpop.f32.mrf.mxu0  ;;  %v985_v34 = vadd.f32 %v2078_v50, %v883_v63 }
 0x130   :  { %v1296_v31 = vpack.c.bf16 %v1046_v19, %v1045_v0  ;;  %v1044_v32 = vmax.f32 %v1028_v3, 0.0  ;;  %v1517_v10 = vpop.f32.mrf.mxu1  ;;  %v993_v9 = vadd.f32 %v2078_v50, %v915_v16  ;;  %v983_v53 = vadd.f32 %v2078_v50, %v875_v5 }
 0x131   :  { %v1316_v24 = vpack.c.bf16 %v1054_v23, %v1053_v18  ;;  %v1052_v35 = vmax.f32 %v1036_v26, 0.0  ;;  %v877_v36 = vpop.f32.mrf.mxu0  ;;  %v991_v17 = vadd.f32 %v2078_v50, %v907_v27  ;;  %v886_v33 = vadd.f32 %v1509_v29, %v2086_v61 }
 0x132   :  { %1335 = vst [vmem:[%s2169_s4 + $0x8] sm:$0xff] %v1296_v31   ;;  %v1291_v11 = vpack.c.bf16 %v1044_v32, %v1043_v22  ;;  %v813_v37 = vadd.f32 %v1463_v28, %v1399_v30  ;;  %v909_v38 = vpop.f32.mrf.mxu1  ;;  %v918_v40 = vadd.f32 %v1517_v10, %v821_v56  ;;  %v1267_v41 = vunpack.c.h.bf16 %v2014_v15 }
 0x133   :  { %1339 = vst [vmem:[%s2169_s4 + $0x28] sm:$0xff] %v1316_v24   ;;  %v1311_v39 = vpack.c.bf16 %v1052_v35, %v1051_v8  ;;  %v1283_v42 = vunpack.c.h.bf16 %v2024_v20  ;;  %v2192_v43 = vunpack.c.l.bf16 %v2004_v13  ;;  %v986_v61 = vadd.f32 %v2078_v50, %v886_v33 }
 0x134   :  { %1292 = vst [vmem:[%s2169_s4] sm:$0xff] %v1291_v11   ;;  %v878_v30 = vadd.f32 %v877_v36, %v2080_v54  ;;  %v910_v28 = vadd.f32 %v909_v38, %v813_v37  ;;  %v1041_v45 = vadd.f32 %v1286_v6, %v993_v9  ;;  %v2193_v46 = vunpack.c.l.bf16 %v2014_v15 }
 0x135   :  { %v1033_v44 = vadd.f32 %v2192_v43, %v985_v34  ;;  %1338 = vst [vmem:[%s2169_s4 + $0x20] sm:$0xff] %v1311_v39   ;;  %v994_v51 = vadd.f32 %v2078_v50, %v918_v40  ;;  %v1039_v55 = vadd.f32 %v1282_v25, %v991_v17  ;;  %v2194_v56 = vunpack.c.h.bf16 %v2004_v13 }
 0x136   :  { %v1031_v49 = vadd.f32 %v2193_v46, %v983_v53  ;;  %v984_v54 = vadd.f32 %v2078_v50, %v878_v30  ;;  %v992_v58 = vadd.f32 %v2078_v50, %v910_v28  ;;  %v1057_v63 = vmax.f32 %v1041_v45, 0.0 }
 0x137   :  { %v1034_v57 = vadd.f32 %v2194_v56, %v986_v61  ;;  %v1042_v59 = vadd.f32 %v1287_v48, %v994_v51  ;;  %v1049_v60 = vmax.f32 %v1033_v44, 0.0  ;;  %v1055_v1 = vmax.f32 %v1039_v55, 0.0 }
 0x138   :  { %v1032_v62 = vadd.f32 %v1267_v41, %v984_v54  ;;  %v1040_v15 = vadd.f32 %v1283_v42, %v992_v58  ;;  %v1047_v47 = vmax.f32 %v1031_v49, 0.0 }
 0x139   :  { %v1050_v6 = vmax.f32 %v1034_v57, 0.0  ;;  %v1058_v0 = vmax.f32 %v1042_v59, 0.0 }
 0x13a   :  { %v1048_v25 = vmax.f32 %v1032_v62, 0.0  ;;  %v1056_v4 = vmax.f32 %v1040_v15, 0.0 }
 0x13b   :  { %v1306_v20 = vpack.c.bf16 %v1050_v6, %v1049_v60  ;;  %v1326_v13 = vpack.c.bf16 %v1058_v0, %v1057_v63 }
 0x13c   :  { %v1301_v50 = vpack.c.bf16 %v1048_v25, %v1047_v47  ;;  %v1321_v12 = vpack.c.bf16 %v1056_v4, %v1055_v1 }
 0x13d   :  { %1337 = vst [vmem:[%s2169_s4 + $0x18] sm:$0xff] %v1306_v20   ;;  %1341 = vst [vmem:[%s2169_s4 + $0x38] sm:$0xff] %v1326_v13  }
 0x13e   :  { %1336 = vst [vmem:[%s2169_s4 + $0x10] sm:$0xff] %v1301_v50   ;;  %1340 = vst [vmem:[%s2169_s4 + $0x30] sm:$0xff] %v1321_v12  }

// kernel: vqa_forward.22
= control target key start
LH: loop header
LB: loop body
LE: loop exit
PB: predicated region body
PF: predicated region fallthrough
CT: control target
= control target key end

     0   :  { %s1869_s1 = inlined_call_operand.vmem [shape: bf16[640,128], index: 1, kind: input, shape index: {}]   ;;  %s1870_s0 = inlined_call_operand.vmem [shape: bf16[128,640], index: 0, kind: input, shape index: {}]   ;;  %s1871_s2 = inlined_call_operand.vmem [shape: f32[1,128], index: 2, kind: input, shape index: {}]   ;;  %s1872_s3 = inlined_call_operand.vmem [shape: bf16[128,128], index: 3, kind: output, shape index: {}]  }
   0x1   :  { %v1444_v0 = vld [vmem:[%s1869_s1 + $0x78] sm:$0xff]   ;;  %v1448_v4 = vld [vmem:[%s1869_s1 + $0x70] sm:$0xff]   ;;  %v1452_v8 = vld [vmem:[%s1869_s1 + $0x68] sm:$0xff]  }
   0x2   :  { %v1445_v1 = vld [vmem:[%s1869_s1 + $0xf8] sm:$0xff]   ;;  %1252 = vmatprep.subr.bf16.mxu0 %v1444_v0  ;;  %v1449_v5 = vld [vmem:[%s1869_s1 + $0xf0] sm:$0xff]   ;;  %v1453_v9 = vld [vmem:[%s1869_s1 + $0xe8] sm:$0xff]  }
   0x3   :  { %v1446_v2 = vld [vmem:[%s1869_s1 + $0x38] sm:$0xff]   ;;  %1316 = vmatprep.subr.bf16.mxu1 %v1445_v1  ;;  %v1450_v6 = vld [vmem:[%s1869_s1 + $0x30] sm:$0xff]   ;;  %v1454_v10 = vld [vmem:[%s1869_s1 + $0x28] sm:$0xff]  }
   0x4   :  { %v1447_v3 = vld [vmem:[%s1869_s1 + $0xb8] sm:$0xff]   ;;  %1253 = vmatpush3.bf16.msra.mxu0 %v1446_v2  ;;  %v1451_v7 = vld [vmem:[%s1869_s1 + $0xb0] sm:$0xff]   ;;  %v1455_v11 = vld [vmem:[%s1869_s1 + $0xa8] sm:$0xff]  }
   0x5   :  { %1317 = vmatpush3.bf16.msra.mxu1 %v1447_v3  ;;  %1254 = vmatprep.subr.bf16.mxu0 %v1448_v4  ;;  %v1456_v12 = vld [vmem:[%s1869_s1 + $0x60] sm:$0xff]   ;;  %v1460_v16 = vld [vmem:[%s1869_s1 + $0x58] sm:$0xff]   ;;  %v1464_v20 = vld [vmem:[%s1869_s1 + $0x50] sm:$0xff]  }
   0x6   :  { %1318 = vmatprep.subr.bf16.mxu1 %v1449_v5  ;;  %v1457_v13 = vld [vmem:[%s1869_s1 + $0xe0] sm:$0xff]   ;;  %v1461_v17 = vld [vmem:[%s1869_s1 + $0xd8] sm:$0xff]   ;;  %v1465_v21 = vld [vmem:[%s1869_s1 + $0xd0] sm:$0xff]  }
   0x7   :  { %v1458_v14 = vld [vmem:[%s1869_s1 + $0x20] sm:$0xff]   ;;  %v1462_v18 = vld [vmem:[%s1869_s1 + $0x18] sm:$0xff]   ;;  %v1466_v22 = vld [vmem:[%s1869_s1 + $0x10] sm:$0xff]  }
   0x8   :  { %1255 = vmatpush3.bf16.msra.mxu0 %v1450_v6  ;;  %v1459_v15 = vld [vmem:[%s1869_s1 + $0xa0] sm:$0xff]   ;;  %v1463_v19 = vld [vmem:[%s1869_s1 + $0x98] sm:$0xff]   ;;  %v1467_v23 = vld [vmem:[%s1869_s1 + $0x90] sm:$0xff]  }
   0x9   :  { %1319 = vmatpush3.bf16.msra.mxu1 %v1451_v7  ;;  %1256 = vmatprep.subr.bf16.mxu0 %v1452_v8  ;;  %v1468_v24 = vld [vmem:[%s1869_s1 + $0x48] sm:$0xff]   ;;  %v1472_v28 = vld [vmem:[%s1869_s1 + $0x40] sm:$0xff]   ;;  %v1482_v36 = vld [vmem:[%s1869_s1 + $0x138] sm:$0xff]  }
   0xa   :  { %1320 = vmatprep.subr.bf16.mxu1 %v1453_v9  ;;  %v1469_v25 = vld [vmem:[%s1869_s1 + $0xc8] sm:$0xff]   ;;  %v1473_v29 = vld [vmem:[%s1869_s1 + $0xc0] sm:$0xff]   ;;  %v1489_v39 = vld [vmem:[%s1869_s1 + $0x130] sm:$0xff]  }
   0xb   :  { %v1470_v26 = vld [vmem:[%s1869_s1 + $0x8] sm:$0xff]   ;;  %v1474_v30 = vld [vmem:[%s1869_s1] sm:$0xff]   ;;  %v1492_v43 = vld [vmem:[%s1870_s0 + $0x5c] ss:$20 sps:$4 sm:$0xff]  }
   0xc   :  { %1257 = vmatpush3.bf16.msra.mxu0 %v1454_v10  ;;  %v1471_v27 = vld [vmem:[%s1869_s1 + $0x88] sm:$0xff]   ;;  %v1475_v31 = vld [vmem:[%s1869_s1 + $0x80] sm:$0xff]   ;;  %v1497_v48 = vld [vmem:[%s1870_s0 + $0x7c] ss:$20 sps:$4 sm:$0xff]  }
   0xd   :  { %1321 = vmatpush3.bf16.msra.mxu1 %v1455_v11  ;;  %1258 = vmatprep.subr.bf16.mxu0 %v1456_v12  ;;  %v1476_v32 = vld [vmem:[%s1870_s0] ss:$20 sps:$4 sm:$0xff]   ;;  %v1478_v33 = vld [vmem:[%s1870_s0 + $0x4] ss:$20 sps:$4 sm:$0xff]   ;;  %v1479_v34 = vld [vmem:[%s1870_s0 + $0x8] ss:$20 sps:$4 sm:$0xff]  }
   0xe   :  { %1322 = vmatprep.subr.bf16.mxu1 %v1457_v13  ;;  %v1481_v35 = vld [vmem:[%s1870_s0 + $0xc] ss:$20 sps:$4 sm:$0xff]   ;;  %659 = vmatprep.mubr.bf16.mxu0 %v1478_v33  ;;  %v1485_v38 = vld [vmem:[%s1870_s0 + $0x34] ss:$20 sps:$4 sm:$0xff]   ;;  %v1488_v41 = vld [vmem:[%s1870_s0 + $0x30] ss:$20 sps:$4 sm:$0xff]  }
   0xf   :  { %756 = vmatprep.mubr.bf16.mxu1 %v1481_v35  ;;  %v1483_v37 = vld [vmem:[%s1870_s0 + $0x2c] ss:$20 sps:$4 sm:$0xff]   ;;  %v1487_v40 = vld [vmem:[%s1870_s0 + $0x28] ss:$20 sps:$4 sm:$0xff]   ;;  %v1494_v46 = vld [vmem:[%s1870_s0 + $0x50] ss:$20 sps:$4 sm:$0xff]  }
  0x10   :  { %1259 = vmatpush3.bf16.msra.mxu0 %v1458_v14  ;;  %v1490_v42 = vld [vmem:[%s1870_s0 + $0x54] ss:$20 sps:$4 sm:$0xff]   ;;  %v1503_v45 = vld [vmem:[%s1869_s1 + $0x120] sm:$0xff]   ;;  %v1495_v47 = vld [vmem:[%s1870_s0 + $0x58] ss:$20 sps:$4 sm:$0xff]  }
  0x11   :  { %1323 = vmatpush3.bf16.msra.mxu1 %v1459_v15  ;;  %1260 = vmatprep.subr.bf16.mxu0 %v1460_v16  ;;  %v1496_v44 = vld [vmem:[%s1869_s1 + $0x128] sm:$0xff]   ;;  %v1499_v49 = vld [vmem:[%s1870_s0 + $0x84] ss:$20 sps:$4 sm:$0xff]   ;;  %v1517_v51 = vld [vmem:[%s1869_s1 + $0x110] sm:$0xff]  }
  0x12   :  { %1324 = vmatprep.subr.bf16.mxu1 %v1461_v17  ;;  %v1510_v50 = vld [vmem:[%s1869_s1 + $0x118] sm:$0xff]   ;;  %v1502_v53 = vld [vmem:[%s1870_s0 + $0x80] ss:$20 sps:$4 sm:$0xff]   ;;  %v1524_v55 = vld [vmem:[%s1869_s1 + $0x108] sm:$0xff]  }
  0x13   :  { %v1501_v52 = vld [vmem:[%s1870_s0 + $0x78] ss:$20 sps:$4 sm:$0xff]   ;;  %v1531_v57 = vld [vmem:[%s1869_s1 + $0x100] sm:$0xff]   ;;  %v1509_v59 = vld [vmem:[%s1870_s0 + $0xa8] ss:$20 sps:$4 sm:$0xff]  }
  0x14   :  { %1261 = vmatpush3.bf16.msra.mxu0 %v1462_v18  ;;  %v1504_v54 = vld [vmem:[%s1870_s0 + $0xa4] ss:$20 sps:$4 sm:$0xff]   ;;  %v1506_v56 = vld [vmem:[%s1870_s0 + $0xac] ss:$20 sps:$4 sm:$0xff]   ;;  %v1513_v61 = vld [vmem:[%s1870_s0 + $0xd4] ss:$20 sps:$4 sm:$0xff]  }
  0x15   :  { %1325 = vmatpush3.bf16.msra.mxu1 %v1463_v19  ;;  %1262 = vmatprep.subr.bf16.mxu0 %v1464_v20  ;;  %v1508_v58 = vld [vmem:[%s1870_s0 + $0xa0] ss:$20 sps:$4 sm:$0xff]   ;;  %v1515_v62 = vld [vmem:[%s1870_s0 + $0xc8] ss:$20 sps:$4 sm:$0xff]   ;;  %v1516_v63 = vld [vmem:[%s1870_s0 + $0xd0] ss:$20 sps:$4 sm:$0xff]  }
  0x16   :  { %1326 = vmatprep.subr.bf16.mxu1 %v1465_v21  ;;  %v1511_v60 = vld [vmem:[%s1870_s0 + $0xcc] ss:$20 sps:$4 sm:$0xff]   ;;  %v1518_v0 = vld [vmem:[%s1870_s0 + $0xf4] ss:$20 sps:$4 sm:$0xff]   ;;  %v1520_v1 = vld [vmem:[%s1870_s0 + $0xfc] ss:$20 sps:$4 sm:$0xff]  }
  0x17   :  { %v1522_v2 = vld [vmem:[%s1870_s0 + $0xf0] ss:$20 sps:$4 sm:$0xff]   ;;  %v1523_v3 = vld [vmem:[%s1870_s0 + $0xf8] ss:$20 sps:$4 sm:$0xff]   ;;  %v1530_v7 = vld [vmem:[%s1870_s0 + $0x120] ss:$20 sps:$4 sm:$0xff]  }
  0x18   :  { %1263 = vmatpush3.bf16.msra.mxu0 %v1466_v22  ;;  %v1525_v4 = vld [vmem:[%s1870_s0 + $0x11c] ss:$20 sps:$4 sm:$0xff]   ;;  %v1527_v5 = vld [vmem:[%s1870_s0 + $0x124] ss:$20 sps:$4 sm:$0xff]   ;;  %v1536_v12 = vld [vmem:[%s1870_s0 + $0x60] ss:$20 sps:$4 sm:$0xff]  }
  0x19   :  { %1327 = vmatpush3.bf16.msra.mxu1 %v1467_v23  ;;  %1264 = vmatprep.subr.bf16.mxu0 %v1468_v24  ;;  %v1529_v6 = vld [vmem:[%s1870_s0 + $0x118] ss:$20 sps:$4 sm:$0xff]   ;;  %v1532_v8 = vld [vmem:[%s1870_s0 + $0x10] ss:$20 sps:$4 sm:$0xff]   ;;  %v1537_v13 = vld [vmem:[%s1870_s0 + $0x100] ss:$20 sps:$4 sm:$0xff]  }
  0x1a   :  { %1328 = vmatprep.subr.bf16.mxu1 %v1469_v25  ;;  %v1533_v9 = vld [vmem:[%s1870_s0 + $0xb0] ss:$20 sps:$4 sm:$0xff]   ;;  %v1534_v10 = vld [vmem:[%s1870_s0 + $0x38] ss:$20 sps:$4 sm:$0xff]   ;;  %v1538_v14 = vld [vmem:[%s1870_s0 + $0x88] ss:$20 sps:$4 sm:$0xff]  }
  0x1b   :  { %v1535_v11 = vld [vmem:[%s1870_s0 + $0xd8] ss:$20 sps:$4 sm:$0xff]   ;;  %v1539_v15 = vld [vmem:[%s1870_s0 + $0x128] ss:$20 sps:$4 sm:$0xff]  }
  0x1c   :  { %1265 = vmatpush3.bf16.msra.mxu0 %v1470_v26 }
  0x1d   :  { %1329 = vmatpush3.bf16.msra.mxu1 %v1471_v27  ;;  %1266 = vmatprep.subr.bf16.mxu0 %v1472_v28 }
  0x1e   :  { %1330 = vmatprep.subr.bf16.mxu1 %v1473_v29 }
  0x20   :  { %1267 = vmatpush3.bf16.msra.mxu0 %v1474_v30 }
  0x21   :  { %1331 = vmatpush3.bf16.msra.mxu1 %v1475_v31  ;;  %1396 = vmatprep.subr.bf16.mxu0 %v1482_v36 }
  0x22   :  { %1428 = vmatprep.subr.bf16.mxu1 %v1482_v36 }
  0x23   :  { %660 = vmatmul.mubr.bf16.vlgmr.msra.gmra.mxu0 %v1476_v32 }
  0x24   :  { %757 = vmatmul.mubr.bf16.vlgmr.msra.gmra.mxu1 %v1479_v34  ;;  %1397 = vmatpush3.bf16.msra.mxu0 %v1482_v36 }
  0x25   :  { %1436 = vmatpush3.bf16.msra.mxu1 %v1482_v36  ;;  %667 = vmatprep.mubr.bf16.mxu0 %v1483_v37 }
  0x26   :  { %764 = vmatprep.mubr.bf16.mxu1 %v1485_v38  ;;  %1398 = vmatprep.subr.bf16.mxu0 %v1489_v39 }
  0x27   :  { %1429 = vmatprep.subr.bf16.mxu1 %v1489_v39 }
  0x28   :  { %1399 = vmatpush3.bf16.msra.mxu0 %v1489_v39 }
  0x29   :  { %1437 = vmatpush3.bf16.msra.mxu1 %v1489_v39  ;;  %1400 = vmatprep.subr.bf16.mxu0 %v1496_v44 }
  0x2a   :  { %1430 = vmatprep.subr.bf16.mxu1 %v1496_v44 }
  0x2b   :  { %668 = vmatmul.mubr.bf16.gmra.mxu0 %v1487_v40 }
  0x2c   :  { %765 = vmatmul.mubr.bf16.gmra.mxu1 %v1488_v41  ;;  %675 = vmatprep.mubr.bf16.mxu0 %v1490_v42 }
  0x2d   :  { %772 = vmatprep.mubr.bf16.mxu1 %v1492_v43  ;;  %1401 = vmatpush3.bf16.msra.mxu0 %v1496_v44 }
  0x2e   :  { %1438 = vmatpush3.bf16.msra.mxu1 %v1496_v44  ;;  %1402 = vmatprep.subr.bf16.mxu0 %v1503_v45 }
  0x2f   :  { %1431 = vmatprep.subr.bf16.mxu1 %v1503_v45 }
  0x31   :  { %1403 = vmatpush3.bf16.msra.mxu0 %v1503_v45 }
  0x32   :  { %1439 = vmatpush3.bf16.msra.mxu1 %v1503_v45  ;;  %1404 = vmatprep.subr.bf16.mxu0 %v1510_v50 }
  0x33   :  { %676 = vmatmul.mubr.bf16.gmra.mxu0 %v1494_v46  ;;  %1432 = vmatprep.subr.bf16.mxu1 %v1510_v50 }
  0x34   :  { %773 = vmatmul.mubr.bf16.gmra.mxu1 %v1495_v47  ;;  %683 = vmatprep.mubr.bf16.mxu0 %v1497_v48 }
  0x35   :  { %780 = vmatprep.mubr.bf16.mxu1 %v1499_v49  ;;  %1405 = vmatpush3.bf16.msra.mxu0 %v1510_v50 }
  0x36   :  { %1440 = vmatpush3.bf16.msra.mxu1 %v1510_v50  ;;  %1406 = vmatprep.subr.bf16.mxu0 %v1517_v51 }
  0x37   :  { %1433 = vmatprep.subr.bf16.mxu1 %v1517_v51 }
  0x39   :  { %1407 = vmatpush3.bf16.msra.mxu0 %v1517_v51 }
  0x3a   :  { %1441 = vmatpush3.bf16.msra.mxu1 %v1517_v51  ;;  %1408 = vmatprep.subr.bf16.mxu0 %v1524_v55 }
  0x3b   :  { %684 = vmatmul.mubr.bf16.gmra.mxu0 %v1501_v52  ;;  %1434 = vmatprep.subr.bf16.mxu1 %v1524_v55 }
  0x3c   :  { %781 = vmatmul.mubr.bf16.gmra.mxu1 %v1502_v53  ;;  %691 = vmatprep.mubr.bf16.mxu0 %v1504_v54 }
  0x3d   :  { %788 = vmatprep.mubr.bf16.mxu1 %v1506_v56  ;;  %1409 = vmatpush3.bf16.msra.mxu0 %v1524_v55 }
  0x3e   :  { %1442 = vmatpush3.bf16.msra.mxu1 %v1524_v55  ;;  %1410 = vmatprep.subr.bf16.mxu0 %v1531_v57 }
  0x3f   :  { %1435 = vmatprep.subr.bf16.mxu1 %v1531_v57 }
  0x41   :  { %1411 = vmatpush3.bf16.msra.mxu0 %v1531_v57 }
  0x42   :  { %1443 = vmatpush3.bf16.msra.mxu1 %v1531_v57 }
  0x43   :  { %692 = vmatmul.mubr.bf16.gmra.mxu0 %v1508_v58 }
  0x44   :  { %789 = vmatmul.mubr.bf16.gmra.mxu1 %v1509_v59  ;;  %699 = vmatprep.mubr.bf16.mxu0 %v1511_v60 }
  0x45   :  { %796 = vmatprep.mubr.bf16.mxu1 %v1513_v61 }
  0x4b   :  { %700 = vmatmul.mubr.bf16.gmra.mxu0 %v1515_v62 }
  0x4c   :  { %797 = vmatmul.mubr.bf16.gmra.mxu1 %v1516_v63  ;;  %707 = vmatprep.mubr.bf16.mxu0 %v1518_v0 }
  0x4d   :  { %804 = vmatprep.mubr.bf16.mxu1 %v1520_v1 }
  0x53   :  { %708 = vmatmul.mubr.bf16.gmra.mxu0 %v1522_v2 }
  0x54   :  { %805 = vmatmul.mubr.bf16.gmra.mxu1 %v1523_v3  ;;  %715 = vmatprep.mubr.bf16.mxu0 %v1525_v4 }
  0x55   :  { %812 = vmatprep.mubr.bf16.mxu1 %v1527_v5 }
  0x5b   :  { %716 = vmatmul.mubr.bf16.gmra.mxu0 %v1529_v6 }
  0x5c   :  { %813 = vmatmul.mubr.bf16.gmra.mxu1 %v1530_v7  ;;  %1412 = vmatprep.mubr.bf16.mxu0 %v1532_v8 }
  0x5d   :  { %1420 = vmatprep.mubr.bf16.mxu1 %v1533_v9 }
  0x63   :  { %1413 = vmatmul.mubr.bf16.vlgmr.msra.gmra.mxu0 %v1534_v10 }
  0x64   :  { %1421 = vmatmul.mubr.bf16.vlgmr.msra.gmra.mxu1 %v1535_v11  ;;  %1416 = vmatprep.mubr.bf16.mxu0 %v1536_v12 }
  0x65   :  { %1424 = vmatprep.mubr.bf16.mxu1 %v1537_v13 }
  0x6b   :  { %1417 = vmatmul.mubr.bf16.gmra.mxu0 %v1538_v14 }
  0x6c   :  { %1425 = vmatmul.mubr.bf16.gmra.mxu1 %v1539_v15 }
  0xe3   :  { %v1268_v16 = vpop.f32.mrf.mxu0 }
  0xe4   :  { %v1332_v17 = vpop.f32.mrf.mxu1 }
  0xe5   :  { %v1269_v18 = vpop.f32.mrf.mxu0 }
  0xe6   :  { %v1270_v19 = vadd.f32 %v1269_v18, %v1268_v16  ;;  %v1333_v20 = vpop.f32.mrf.mxu1 }
  0xe7   :  { %v1334_v21 = vadd.f32 %v1333_v20, %v1332_v17  ;;  %v1271_v22 = vpop.f32.mrf.mxu0 }
  0xe8   :  { %v1335_v23 = vpop.f32.mrf.mxu1 }
  0xe9   :  { %v1272_v24 = vpop.f32.mrf.mxu0  ;;  %v1800_v25 = vadd.f32 %v1334_v21, %v1270_v19 }
  0xea   :  { %v1336_v26 = vpop.f32.mrf.mxu1  ;;  %v1273_v11 = vadd.f32 %v1272_v24, %v1271_v22 }
  0xeb   :  { %1873 = vst [vmem:[#allocation3_spill] sm:$0xff] %v1800_v25  ;;  %v1274_v27 = vpop.f32.mrf.mxu0  ;;  %v1337_v12 = vadd.f32 %v1336_v26, %v1335_v23 }
  0xec   :  { %v1338_v28 = vpop.f32.mrf.mxu1 }
  0xed   :  { %v1275_v29 = vpop.f32.mrf.mxu0  ;;  %v762_v22 = vadd.f32 %v1337_v12, %v1273_v11 }
  0xee   :  { %v1339_v30 = vpop.f32.mrf.mxu1  ;;  %v1276_v14 = vadd.f32 %v1275_v29, %v1274_v27 }
  0xef   :  { %v1277_v31 = vpop.f32.mrf.mxu0  ;;  %v1340_v15 = vadd.f32 %v1339_v30, %v1338_v28 }
  0xf0   :  { %v1341_v32 = vpop.f32.mrf.mxu1 }
  0xf1   :  { %v1278_v33 = vpop.f32.mrf.mxu0 }
  0xf2   :  { %v1342_v34 = vpop.f32.mrf.mxu1  ;;  %v1279_v16 = vadd.f32 %v1278_v33, %v1277_v31 }
  0xf3   :  { %v1280_v35 = vpop.f32.mrf.mxu0  ;;  %v1343_v17 = vadd.f32 %v1342_v34, %v1341_v32 }
  0xf4   :  { %v1344_v36 = vpop.f32.mrf.mxu1 }
  0xf5   :  { %v1281_v37 = vpop.f32.mrf.mxu0 }
  0xf6   :  { %v1345_v38 = vpop.f32.mrf.mxu1  ;;  %v1282_v20 = vadd.f32 %v1281_v37, %v1280_v35 }
  0xf7   :  { %v1283_v39 = vpop.f32.mrf.mxu0  ;;  %v1346_v21 = vadd.f32 %v1345_v38, %v1344_v36 }
  0xf8   :  { %v1802_v40 = vpop.f32.mrf.mxu1 }
  0xf9   :  { %1874 = vst [vmem:[#allocation4_spill] sm:$0xff] %v1802_v40  ;;  %v1284_v41 = vpop.f32.mrf.mxu0  ;;  %v775_v33 = vadd.f32 %v1346_v21, %v1282_v20 }
  0xfa   :  { %v1804_v42 = vpop.f32.mrf.mxu1  ;;  %v1814_v28 = vadd.f32 %v1284_v41, %v1283_v39  ;;  %v1821_v39 = vld [vmem:[%s1871_s2] ss:$0 sm:$0xff] }
  0xfb   :  { %1875 = vst [vmem:[#allocation5_spill] sm:$0xff] %v1804_v42  ;;  %v1286_v43 = vpop.f32.mrf.mxu0 }
  0xfc   :  { %v1350_v44 = vpop.f32.mrf.mxu1 }
  0xfd   :  { %v1287_v45 = vpop.f32.mrf.mxu0 }
  0xfe   :  { %v1351_v46 = vpop.f32.mrf.mxu1  ;;  %v1288_v24 = vadd.f32 %v1287_v45, %v1286_v43 }
  0xff   :  { %v1289_v47 = vpop.f32.mrf.mxu0  ;;  %v1352_v23 = vadd.f32 %v1351_v46, %v1350_v44 }
 0x100   :  { %v1353_v48 = vpop.f32.mrf.mxu1  ;;  %v1880_v44 = vld [vmem:[#allocation4_spill] sm:$0xff] }
 0x101   :  { %v1290_v49 = vpop.f32.mrf.mxu0 }
 0x102   :  { %v1354_v50 = vpop.f32.mrf.mxu1  ;;  %v1291_v30 = vadd.f32 %v1290_v49, %v1289_v47  ;;  %v1881_v45 = vld [vmem:[#allocation5_spill] sm:$0xff]  ;;  %v783_v49 = vadd.f32 %v1352_v23, %v1288_v24 }
 0x103   :  { %v1292_v51 = vpop.f32.mrf.mxu0  ;;  %v1355_v31 = vadd.f32 %v1354_v50, %v1353_v48  ;;  %v1349_v46 = vadd.f32 %v1881_v45, %v1880_v44 }
 0x104   :  { %v1356_v52 = vpop.f32.mrf.mxu1 }
 0x105   :  { %v1293_v53 = vpop.f32.mrf.mxu0 }
 0x106   :  { %v1357_v54 = vpop.f32.mrf.mxu1  ;;  %v1294_v26 = vadd.f32 %v1293_v53, %v1292_v51 }
 0x107   :  { %v1295_v55 = vpop.f32.mrf.mxu0  ;;  %v1358_v27 = vadd.f32 %v1357_v54, %v1356_v52  ;;  %v786_v54 = vadd.f32 %v1355_v31, %v1291_v30 }
 0x108   :  { %v1359_v56 = vpop.f32.mrf.mxu1 }
 0x109   :  { %v1296_v57 = vpop.f32.mrf.mxu0  ;;  %v791_v48 = vadd.f32 %v1358_v27, %v1294_v26 }
 0x10a   :  { %v1360_v58 = vpop.f32.mrf.mxu1  ;;  %v1297_v34 = vadd.f32 %v1296_v57, %v1295_v55 }
 0x10b   :  { %v1298_v59 = vpop.f32.mrf.mxu0 }
 0x10c   :  { %v1362_v60 = vpop.f32.mrf.mxu1 }
 0x10d   :  { %v1299_v61 = vpop.f32.mrf.mxu0 }
 0x10e   :  { %v1363_v62 = vpop.f32.mrf.mxu1  ;;  %v1300_v42 = vadd.f32 %v1299_v61, %v1298_v59  ;;  %v1361_v59 = vadd.f32 %v1360_v58, %v1359_v56 }
 0x10f   :  { %v1301_v63 = vpop.f32.mrf.mxu0 }
 0x110   :  { %v1365_v0 = vpop.f32.mrf.mxu1 }
 0x111   :  { %v1302_v1 = vpop.f32.mrf.mxu0 }
 0x112   :  { %v1366_v2 = vpop.f32.mrf.mxu1  ;;  %v1303_v35 = vadd.f32 %v1302_v1, %v1301_v63 }
 0x113   :  { %v1304_v3 = vpop.f32.mrf.mxu0  ;;  %v1367_v36 = vadd.f32 %v1366_v2, %v1365_v0 }
 0x114   :  { %v1368_v4 = vpop.f32.mrf.mxu1 }
 0x115   :  { %v1305_v5 = vpop.f32.mrf.mxu0  ;;  %v802_v63 = vadd.f32 %v1367_v36, %v1303_v35 }
 0x116   :  { %v1369_v6 = vpop.f32.mrf.mxu1 }
 0x117   :  { %v1806_v7 = vpop.f32.mrf.mxu0  ;;  %v1370_v61 = vadd.f32 %v1369_v6, %v1368_v4 }
 0x118   :  { %1876 = vst [vmem:[#allocation6_spill] sm:$0xff] %v1806_v7  ;;  %v1808_v8 = vpop.f32.mrf.mxu1  ;;  %v1364_v7 = vadd.f32 %v1363_v62, %v1362_v60  ;;  %v1306_v60 = vadd.f32 %v1305_v5, %v1304_v3  ;;  %v794_v3 = vadd.f32 %v1361_v59, %v1297_v34 }
 0x119   :  { %1877 = vst [vmem:[#allocation7_spill] sm:$0xff] %v1808_v8  ;;  %v1810_v9 = vpop.f32.mrf.mxu0 }
 0x11a   :  { %1878 = vst [vmem:[#allocation8_spill] sm:$0xff] %v1810_v9  ;;  %v1812_v10 = vpop.f32.mrf.mxu1  ;;  %v767_v9 = vadd.f32 %v1340_v15, %v1276_v14  ;;  %v799_v38 = vadd.f32 %v1364_v7, %v1300_v42  ;;  %v1882_v42 = vld [vmem:[#allocation3_spill] sm:$0xff]  ;;  %v807_v4 = vadd.f32 %v1370_v61, %v1306_v60 }
 0x11b   :  { %1879 = vst [vmem:[#allocation9_spill] sm:$0xff] %v1812_v10  ;;  %v1310_v13 = vpop.f32.mrf.mxu0  ;;  %v770_v10 = vadd.f32 %v1343_v17, %v1279_v16 }
 0x11c   :  { %v1374_v18 = vpop.f32.mrf.mxu1 }
 0x11d   :  { %v1311_v19 = vpop.f32.mrf.mxu0 }
 0x11e   :  { %v1375_v25 = vpop.f32.mrf.mxu1  ;;  %v1312_v50 = vadd.f32 %v1311_v19, %v1310_v13 }
 0x11f   :  { %v1313_v40 = vpop.f32.mrf.mxu0  ;;  %v1376_v51 = vadd.f32 %v1375_v25, %v1374_v18  ;;  %v1883_v5 = vld [vmem:[#allocation6_spill] sm:$0xff] }
 0x120   :  { %v1377_v8 = vpop.f32.mrf.mxu1 }
 0x121   :  { %v1314_v29 = vpop.f32.mrf.mxu0  ;;  %v1884_v6 = vld [vmem:[#allocation8_spill] sm:$0xff] }
 0x122   :  { %v1378_v32 = vpop.f32.mrf.mxu1  ;;  %v1315_v55 = vadd.f32 %v1314_v29, %v1313_v40  ;;  %v1309_v7 = vadd.f32 %v1884_v6, %v1883_v5  ;;  %v1886_v25 = vld [vmem:[#allocation9_spill] sm:$0xff] }
 0x123   :  { %v1414_v37 = vpop.f32.mrf.mxu0  ;;  %v1379_v56 = vadd.f32 %v1378_v32, %v1377_v8 }
 0x124   :  { %v864_v62 = vadd.f32 %v1414_v37, %v767_v9  ;;  %v1422_v43 = vpop.f32.mrf.mxu1  ;;  %v1885_v9 = vld [vmem:[#allocation7_spill] sm:$0xff] }
 0x125   :  { %v896_v41 = vadd.f32 %v1422_v43, %v799_v38  ;;  %v855_v47 = vpop.f32.mrf.mxu0  ;;  %v1373_v11 = vadd.f32 %v1886_v25, %v1885_v9  ;;  %v818_v21 = vadd.f32 %v1379_v56, %v1315_v55 }
 0x126   :  { %v856_v52 = vadd.f32 %v855_v47, %v1882_v42  ;;  %v887_v53 = vpop.f32.mrf.mxu1  ;;  %v978_v0 = vadd.f32 %v1821_v39, %v864_v62 }
 0x127   :  { %v888_v57 = vadd.f32 %v887_v53, %v791_v48  ;;  %v1415_v58 = vpop.f32.mrf.mxu0  ;;  %v986_v12 = vadd.f32 %v1821_v39, %v896_v41 }
 0x128   :  { %v867_v1 = vadd.f32 %v1415_v58, %v770_v10  ;;  %v1423_v2 = vpop.f32.mrf.mxu1  ;;  %v976_v8 = vadd.f32 %v1821_v39, %v856_v52  ;;  %v815_v10 = vadd.f32 %v1376_v51, %v1312_v50  ;;  %v994_v24 = vmax.f32 %v978_v0, 0.0 }
 0x129   :  { %v899_v13 = vadd.f32 %v1423_v2, %v802_v63  ;;  %v858_v40 = vpop.f32.mrf.mxu0  ;;  %v984_v17 = vadd.f32 %v1821_v39, %v888_v57  ;;  %v1002_v30 = vmax.f32 %v986_v12, 0.0  ;;  %v810_v52 = vadd.f32 %v1373_v11, %v1309_v7 }
 0x12a   :  { %v979_v14 = vadd.f32 %v1821_v39, %v867_v1  ;;  %v859_v15 = vadd.f32 %v858_v40, %v762_v22  ;;  %v890_v16 = vpop.f32.mrf.mxu1  ;;  %v992_v35 = vmax.f32 %v976_v8, 0.0 }
 0x12b   :  { %v987_v18 = vadd.f32 %v1821_v39, %v899_v13  ;;  %v891_v19 = vadd.f32 %v890_v16, %v794_v3  ;;  %v1418_v20 = vpop.f32.mrf.mxu0  ;;  %v1000_v60 = vmax.f32 %v984_v17, 0.0 }
 0x12c   :  { %v995_v23 = vmax.f32 %v979_v14, 0.0  ;;  %v977_v26 = vadd.f32 %v1821_v39, %v859_v15  ;;  %v880_v27 = vadd.f32 %v1418_v20, %v783_v49  ;;  %v1426_v29 = vpop.f32.mrf.mxu1  ;;  %v778_v49 = vadd.f32 %v1349_v46, %v1814_v28 }
 0x12d   :  { %v1003_v31 = vmax.f32 %v987_v18, 0.0  ;;  %v985_v32 = vadd.f32 %v1821_v39, %v891_v19  ;;  %v912_v22 = vadd.f32 %v1426_v29, %v815_v10  ;;  %v871_v34 = vpop.f32.mrf.mxu0 }
 0x12e   :  { %v1213_v36 = vpack.c.bf16 %v995_v23, %v994_v24  ;;  %v993_v37 = vmax.f32 %v977_v26, 0.0  ;;  %v872_v38 = vadd.f32 %v871_v34, %v775_v33  ;;  %v903_v59 = vpop.f32.mrf.mxu1  ;;  %v982_v41 = vadd.f32 %v1821_v39, %v880_v27 }
 0x12f   :  { %v1233_v61 = vpack.c.bf16 %v1003_v31, %v1002_v30  ;;  %v1001_v62 = vmax.f32 %v985_v32, 0.0  ;;  %v904_v43 = vadd.f32 %v903_v59, %v807_v4  ;;  %v1419_v44 = vpop.f32.mrf.mxu0  ;;  %v990_v50 = vadd.f32 %v1821_v39, %v912_v22 }
 0x130   :  { %1245 = vst [vmem:[%s1872_s3 + $0x8] sm:$0xff] %v1213_v36   ;;  %v1208_v45 = vpack.c.bf16 %v993_v37, %v992_v35  ;;  %v883_v47 = vadd.f32 %v1419_v44, %v786_v54  ;;  %v1427_v48 = vpop.f32.mrf.mxu1  ;;  %v980_v53 = vadd.f32 %v1821_v39, %v872_v38  ;;  %v998_v58 = vmax.f32 %v982_v41, 0.0 }
 0x131   :  { %1249 = vst [vmem:[%s1872_s3 + $0x28] sm:$0xff] %v1233_v61   ;;  %v1228_v33 = vpack.c.bf16 %v1001_v62, %v1000_v60  ;;  %v915_v51 = vadd.f32 %v1427_v48, %v818_v21  ;;  %v874_v42 = vpop.f32.mrf.mxu0  ;;  %v988_v46 = vadd.f32 %v1821_v39, %v904_v43  ;;  %v1006_v1 = vmax.f32 %v990_v50, 0.0 }
 0x132   :  { %1209 = vst [vmem:[%s1872_s3] sm:$0xff] %v1208_v45   ;;  %v983_v54 = vadd.f32 %v1821_v39, %v883_v47  ;;  %v875_v55 = vadd.f32 %v874_v42, %v778_v49  ;;  %v906_v28 = vpop.f32.mrf.mxu1  ;;  %v996_v4 = vmax.f32 %v980_v53, 0.0 }
 0x133   :  { %1248 = vst [vmem:[%s1872_s3 + $0x20] sm:$0xff] %v1228_v33   ;;  %v991_v56 = vadd.f32 %v1821_v39, %v915_v51  ;;  %v907_v57 = vadd.f32 %v906_v28, %v810_v52  ;;  %v1004_v7 = vmax.f32 %v988_v46, 0.0 }
 0x134   :  { %v999_v63 = vmax.f32 %v983_v54, 0.0  ;;  %v981_v0 = vadd.f32 %v1821_v39, %v875_v55 }
 0x135   :  { %v1007_v2 = vmax.f32 %v991_v56, 0.0  ;;  %v989_v3 = vadd.f32 %v1821_v39, %v907_v57 }
 0x136   :  { %v1223_v5 = vpack.c.bf16 %v999_v63, %v998_v58  ;;  %v997_v6 = vmax.f32 %v981_v0, 0.0 }
 0x137   :  { %v1243_v9 = vpack.c.bf16 %v1007_v2, %v1006_v1  ;;  %v1005_v25 = vmax.f32 %v989_v3, 0.0 }
 0x138   :  { %1247 = vst [vmem:[%s1872_s3 + $0x18] sm:$0xff] %v1223_v5   ;;  %v1218_v11 = vpack.c.bf16 %v997_v6, %v996_v4 }
 0x139   :  { %1251 = vst [vmem:[%s1872_s3 + $0x38] sm:$0xff] %v1243_v9   ;;  %v1238_v12 = vpack.c.bf16 %v1005_v25, %v1004_v7 }
 0x13a   :  { %1246 = vst [vmem:[%s1872_s3 + $0x10] sm:$0xff] %v1218_v11  }
 0x13b   :  { %1250 = vst [vmem:[%s1872_s3 + $0x30] sm:$0xff] %v1238_v12  }

// kernel: vqa_forward.26
= control target key start
LH: loop header
LB: loop body
LE: loop exit
PB: predicated region body
PF: predicated region fallthrough
CT: control target
= control target key end

     0   :  { %s1001_s1 = inlined_call_operand.vmem [shape: bf16[640,128], index: 1, kind: input, shape index: {}]   ;;  %s1002_s0 = inlined_call_operand.vmem [shape: bf16[32,640], index: 0, kind: input, shape index: {}]   ;;  %s1003_s2 = inlined_call_operand.vmem [shape: f32[1,128], index: 2, kind: input, shape index: {}]   ;;  %s1004_s3 = inlined_call_operand.vmem [shape: bf16[32,128], index: 3, kind: output, shape index: {}]  }
   0x1   :  { %v768_v0 = vld [vmem:[%s1001_s1 + $0x78] sm:$0xff]   ;;  %v772_v4 = vld [vmem:[%s1001_s1 + $0x70] sm:$0xff]   ;;  %v776_v8 = vld [vmem:[%s1001_s1 + $0x68] sm:$0xff]  }
   0x2   :  { %v769_v1 = vld [vmem:[%s1001_s1 + $0xf8] sm:$0xff]   ;;  %682 = vmatprep.subr.bf16.mxu0 %v768_v0  ;;  %v773_v5 = vld [vmem:[%s1001_s1 + $0xf0] sm:$0xff]   ;;  %v777_v9 = vld [vmem:[%s1001_s1 + $0xe8] sm:$0xff]  }
   0x3   :  { %v770_v2 = vld [vmem:[%s1001_s1 + $0x38] sm:$0xff]   ;;  %710 = vmatprep.subr.bf16.mxu1 %v769_v1  ;;  %v774_v6 = vld [vmem:[%s1001_s1 + $0x30] sm:$0xff]   ;;  %v778_v10 = vld [vmem:[%s1001_s1 + $0x28] sm:$0xff]  }
   0x4   :  { %v771_v3 = vld [vmem:[%s1001_s1 + $0xb8] sm:$0xff]   ;;  %683 = vmatpush3.bf16.msra.mxu0 %v770_v2  ;;  %v775_v7 = vld [vmem:[%s1001_s1 + $0xb0] sm:$0xff]   ;;  %v779_v11 = vld [vmem:[%s1001_s1 + $0xa8] sm:$0xff]  }
   0x5   :  { %711 = vmatpush3.bf16.msra.mxu1 %v771_v3  ;;  %684 = vmatprep.subr.bf16.mxu0 %v772_v4  ;;  %v780_v12 = vld [vmem:[%s1001_s1 + $0x60] sm:$0xff]   ;;  %v784_v16 = vld [vmem:[%s1001_s1 + $0x58] sm:$0xff]   ;;  %v788_v20 = vld [vmem:[%s1001_s1 + $0x50] sm:$0xff]  }
   0x6   :  { %712 = vmatprep.subr.bf16.mxu1 %v773_v5  ;;  %v781_v13 = vld [vmem:[%s1001_s1 + $0xe0] sm:$0xff]   ;;  %v785_v17 = vld [vmem:[%s1001_s1 + $0xd8] sm:$0xff]   ;;  %v789_v21 = vld [vmem:[%s1001_s1 + $0xd0] sm:$0xff]  }
   0x7   :  { %v782_v14 = vld [vmem:[%s1001_s1 + $0x20] sm:$0xff]   ;;  %v786_v18 = vld [vmem:[%s1001_s1 + $0x18] sm:$0xff]   ;;  %v790_v22 = vld [vmem:[%s1001_s1 + $0x10] sm:$0xff]  }
   0x8   :  { %685 = vmatpush3.bf16.msra.mxu0 %v774_v6  ;;  %v783_v15 = vld [vmem:[%s1001_s1 + $0xa0] sm:$0xff]   ;;  %v787_v19 = vld [vmem:[%s1001_s1 + $0x98] sm:$0xff]   ;;  %v791_v23 = vld [vmem:[%s1001_s1 + $0x90] sm:$0xff]  }
   0x9   :  { %713 = vmatpush3.bf16.msra.mxu1 %v775_v7  ;;  %686 = vmatprep.subr.bf16.mxu0 %v776_v8  ;;  %v792_v24 = vld [vmem:[%s1001_s1 + $0x48] sm:$0xff]   ;;  %v796_v28 = vld [vmem:[%s1001_s1 + $0x40] sm:$0xff]   ;;  %v806_v36 = vld [vmem:[%s1001_s1 + $0x138] sm:$0xff]  }
   0xa   :  { %714 = vmatprep.subr.bf16.mxu1 %v777_v9  ;;  %v793_v25 = vld [vmem:[%s1001_s1 + $0xc8] sm:$0xff]   ;;  %v797_v29 = vld [vmem:[%s1001_s1 + $0xc0] sm:$0xff]   ;;  %v807_v37 = vld [vmem:[%s1001_s1 + $0x130] sm:$0xff]  }
   0xb   :  { %v794_v26 = vld [vmem:[%s1001_s1 + $0x8] sm:$0xff]   ;;  %v798_v30 = vld [vmem:[%s1001_s1] sm:$0xff]   ;;  %v810_v45 = vld [vmem:[%s1001_s1 + $0x118] sm:$0xff]  }
   0xc   :  { %687 = vmatpush3.bf16.msra.mxu0 %v778_v10  ;;  %v795_v27 = vld [vmem:[%s1001_s1 + $0x88] sm:$0xff]   ;;  %v799_v31 = vld [vmem:[%s1001_s1 + $0x80] sm:$0xff]   ;;  %v817_v46 = vld [vmem:[%s1001_s1 + $0x110] sm:$0xff]  }
   0xd   :  { %715 = vmatpush3.bf16.msra.mxu1 %v779_v11  ;;  %688 = vmatprep.subr.bf16.mxu0 %v780_v12  ;;  %v800_v32 = vld [vmem:[%s1002_s0] ss:$20 sps:$4 sm:$0xff]   ;;  %v802_v33 = vld [vmem:[%s1002_s0 + $0x4] ss:$20 sps:$4 sm:$0xff]   ;;  %v803_v34 = vld [vmem:[%s1002_s0 + $0x8] ss:$20 sps:$4 sm:$0xff]  }
   0xe   :  { %716 = vmatprep.subr.bf16.mxu1 %v781_v13  ;;  %v805_v35 = vld [vmem:[%s1002_s0 + $0xc] ss:$20 sps:$4 sm:$0xff]   ;;  %443 = vmatprep.mubr.bf16.mxu0 %v802_v33  ;;  %v813_v40 = vld [vmem:[%s1002_s0 + $0x34] ss:$20 sps:$4 sm:$0xff]   ;;  %v816_v42 = vld [vmem:[%s1002_s0 + $0x30] ss:$20 sps:$4 sm:$0xff]  }
   0xf   :  { %492 = vmatprep.mubr.bf16.mxu1 %v805_v35  ;;  %v808_v38 = vld [vmem:[%s1001_s1 + $0x128] sm:$0xff]   ;;  %v809_v43 = vld [vmem:[%s1001_s1 + $0x120] sm:$0xff]  }
  0x10   :  { %689 = vmatpush3.bf16.msra.mxu0 %v782_v14  ;;  %v811_v39 = vld [vmem:[%s1002_s0 + $0x2c] ss:$20 sps:$4 sm:$0xff]   ;;  %v815_v41 = vld [vmem:[%s1002_s0 + $0x28] ss:$20 sps:$4 sm:$0xff]   ;;  %v820_v44 = vld [vmem:[%s1002_s0 + $0x10] ss:$20 sps:$4 sm:$0xff]  }
  0x11   :  { %717 = vmatpush3.bf16.msra.mxu1 %v783_v15  ;;  %690 = vmatprep.subr.bf16.mxu0 %v784_v16  ;;  %v818_v47 = vld [vmem:[%s1001_s1 + $0x108] sm:$0xff]   ;;  %v819_v48 = vld [vmem:[%s1001_s1 + $0x100] sm:$0xff]  }
  0x12   :  { %718 = vmatprep.subr.bf16.mxu1 %v785_v17  ;;  %v821_v49 = vld [vmem:[%s1002_s0 + $0x38] ss:$20 sps:$4 sm:$0xff]   ;;  %v662_v14 = vld [vmem:[%s1003_s2] ss:$0 sm:$0xff] }
  0x14   :  { %691 = vmatpush3.bf16.msra.mxu0 %v786_v18 }
  0x15   :  { %719 = vmatpush3.bf16.msra.mxu1 %v787_v19  ;;  %692 = vmatprep.subr.bf16.mxu0 %v788_v20 }
  0x16   :  { %720 = vmatprep.subr.bf16.mxu1 %v789_v21 }
  0x18   :  { %693 = vmatpush3.bf16.msra.mxu0 %v790_v22 }
  0x19   :  { %721 = vmatpush3.bf16.msra.mxu1 %v791_v23  ;;  %694 = vmatprep.subr.bf16.mxu0 %v792_v24 }
  0x1a   :  { %722 = vmatprep.subr.bf16.mxu1 %v793_v25 }
  0x1c   :  { %695 = vmatpush3.bf16.msra.mxu0 %v794_v26 }
  0x1d   :  { %723 = vmatpush3.bf16.msra.mxu1 %v795_v27  ;;  %696 = vmatprep.subr.bf16.mxu0 %v796_v28 }
  0x1e   :  { %724 = vmatprep.subr.bf16.mxu1 %v797_v29 }
  0x20   :  { %697 = vmatpush3.bf16.msra.mxu0 %v798_v30 }
  0x21   :  { %725 = vmatpush3.bf16.msra.mxu1 %v799_v31  ;;  %748 = vmatprep.subr.bf16.mxu0 %v806_v36 }
  0x23   :  { %444 = vmatmul.mubr.bf16.vlgmr.msra.gmra.mxu0 %v800_v32 }
  0x24   :  { %493 = vmatmul.mubr.bf16.vlgmr.msra.gmra.mxu1 %v803_v34  ;;  %749 = vmatpush3.bf16.msra.mxu0 %v806_v36 }
  0x25   :  { %750 = vmatprep.subr.bf16.mxu0 %v807_v37  ;;  %451 = vmatprep.mubr.bf16.mxu0 %v811_v39 }
  0x26   :  { %500 = vmatprep.mubr.bf16.mxu1 %v813_v40 }
  0x28   :  { %751 = vmatpush3.bf16.msra.mxu0 %v807_v37 }
  0x29   :  { %752 = vmatprep.subr.bf16.mxu0 %v808_v38 }
  0x2b   :  { %452 = vmatmul.mubr.bf16.gmra.mxu0 %v815_v41 }
  0x2c   :  { %501 = vmatmul.mubr.bf16.gmra.mxu1 %v816_v42  ;;  %753 = vmatpush3.bf16.msra.mxu0 %v808_v38 }
  0x2d   :  { %754 = vmatprep.subr.bf16.mxu0 %v809_v43  ;;  %764 = vmatprep.mubr.bf16.mxu0 %v820_v44 }
  0x30   :  { %755 = vmatpush3.bf16.msra.mxu0 %v809_v43 }
  0x31   :  { %756 = vmatprep.subr.bf16.mxu0 %v810_v45 }
  0x34   :  { %757 = vmatpush3.bf16.msra.mxu0 %v810_v45 }
  0x35   :  { %758 = vmatprep.subr.bf16.mxu0 %v817_v46 }
  0x38   :  { %759 = vmatpush3.bf16.msra.mxu0 %v817_v46 }
  0x39   :  { %760 = vmatprep.subr.bf16.mxu0 %v818_v47 }
  0x3c   :  { %761 = vmatpush3.bf16.msra.mxu0 %v818_v47 }
  0x3d   :  { %762 = vmatprep.subr.bf16.mxu0 %v819_v48 }
  0x40   :  { %763 = vmatpush3.bf16.msra.mxu0 %v819_v48 }
  0x43   :  { %765 = vmatmul.mubr.bf16.vlgmr.msra.gmra.mxu0 %v821_v49 }
  0xe3   :  { %v698_v50 = vpop.f32.mrf.mxu0 }
  0xe4   :  { %v726_v51 = vpop.f32.mrf.mxu1 }
  0xe5   :  { %v699_v52 = vpop.f32.mrf.mxu0 }
  0xe6   :  { %v727_v53 = vpop.f32.mrf.mxu1  ;;  %v700_v4 = vadd.f32 %v699_v52, %v698_v50 }
  0xe7   :  { %v701_v54 = vpop.f32.mrf.mxu0  ;;  %v728_v5 = vadd.f32 %v727_v53, %v726_v51 }
  0xe8   :  { %v729_v55 = vpop.f32.mrf.mxu1 }
  0xe9   :  { %v702_v56 = vpop.f32.mrf.mxu0  ;;  %v495_v13 = vadd.f32 %v728_v5, %v700_v4 }
  0xea   :  { %v730_v57 = vpop.f32.mrf.mxu1  ;;  %v703_v10 = vadd.f32 %v702_v56, %v701_v54 }
  0xeb   :  { %v704_v58 = vpop.f32.mrf.mxu0  ;;  %v731_v11 = vadd.f32 %v730_v57, %v729_v55 }
  0xec   :  { %v732_v59 = vpop.f32.mrf.mxu1 }
  0xed   :  { %v705_v60 = vpop.f32.mrf.mxu0  ;;  %v498_v21 = vadd.f32 %v731_v11, %v703_v10 }
  0xee   :  { %v733_v61 = vpop.f32.mrf.mxu1  ;;  %v706_v0 = vadd.f32 %v705_v60, %v704_v58 }
  0xef   :  { %v707_v62 = vpop.f32.mrf.mxu0  ;;  %v734_v1 = vadd.f32 %v733_v61, %v732_v59 }
  0xf0   :  { %v735_v63 = vpop.f32.mrf.mxu1 }
  0xf1   :  { %v708_v2 = vpop.f32.mrf.mxu0  ;;  %v503_v8 = vadd.f32 %v734_v1, %v706_v0 }
  0xf2   :  { %v736_v3 = vpop.f32.mrf.mxu1  ;;  %v709_v6 = vadd.f32 %v708_v2, %v707_v62 }
  0xf3   :  { %v737_v7 = vadd.f32 %v736_v3, %v735_v63 }
  0xf5   :  { %v506_v17 = vadd.f32 %v737_v7, %v709_v6 }
 0x103   :  { %v766_v9 = vpop.f32.mrf.mxu0 }
 0x104   :  { %v552_v12 = vadd.f32 %v766_v9, %v503_v8 }
 0x105   :  { %v543_v15 = vpop.f32.mrf.mxu0 }
 0x106   :  { %v544_v16 = vadd.f32 %v543_v15, %v495_v13  ;;  %v582_v19 = vadd.f32 %v662_v14, %v552_v12 }
 0x107   :  { %v767_v18 = vpop.f32.mrf.mxu0 }
 0x108   :  { %v555_v20 = vadd.f32 %v767_v18, %v506_v17  ;;  %v580_v23 = vadd.f32 %v662_v14, %v544_v16  ;;  %v586_v26 = vmax.f32 %v582_v19, 0.0 }
 0x109   :  { %v546_v22 = vpop.f32.mrf.mxu0 }
 0x10a   :  { %v583_v24 = vadd.f32 %v662_v14, %v555_v20  ;;  %v547_v25 = vadd.f32 %v546_v22, %v498_v21  ;;  %v584_v29 = vmax.f32 %v580_v23, 0.0 }
 0x10c   :  { %v587_v27 = vmax.f32 %v583_v24, 0.0  ;;  %v581_v28 = vadd.f32 %v662_v14, %v547_v25 }
 0x10e   :  { %v679_v30 = vpack.c.bf16 %v587_v27, %v586_v26  ;;  %v585_v31 = vmax.f32 %v581_v28, 0.0 }
 0x110   :  { %681 = vst [vmem:[%s1004_s3 + $0x8] sm:$0xff] %v679_v30   ;;  %v674_v32 = vpack.c.bf16 %v585_v31, %v584_v29 }
 0x112   :  { %675 = vst [vmem:[%s1004_s3] sm:$0xff] %v674_v32  }

// kernel: vqa_forward.27
= control target key start
LH: loop header
LB: loop body
LE: loop exit
PB: predicated region body
PF: predicated region fallthrough
CT: control target
= control target key end

     0   :  { %s335_s1 = inlined_call_operand.vmem [shape: bf16[128,128], index: 1, kind: input, shape index: {}]   ;;  %s336_s0 = inlined_call_operand.vmem [shape: bf16[32,128], index: 0, kind: input, shape index: {}]   ;;  %s337_s2 = inlined_call_operand.vmem [shape: f32[1,128], index: 2, kind: input, shape index: {}]   ;;  %s338_s3 = inlined_call_operand.vmem [shape: bf16[32,128], index: 3, kind: output, shape index: {}]  }
   0x1   :  { %v266_v0 = vld [vmem:[%s335_s1 + $0x38] sm:$0xff]   ;;  %v267_v1 = vld [vmem:[%s335_s1 + $0x30] sm:$0xff]   ;;  %v268_v2 = vld [vmem:[%s335_s1 + $0x28] sm:$0xff]  }
   0x2   :  { %246 = vmatprep.subr.bf16.mxu0 %v266_v0  ;;  %v269_v3 = vld [vmem:[%s335_s1 + $0x20] sm:$0xff]   ;;  %v270_v5 = vld [vmem:[%s335_s1 + $0x18] sm:$0xff]   ;;  %v271_v6 = vld [vmem:[%s335_s1 + $0x10] sm:$0xff]  }
   0x3   :  { %247 = vmatpush3.bf16.msra.mxu0 %v266_v0  ;;  %v274_v4 = vld [vmem:[%s336_s0] sm:$0xff]   ;;  %v272_v7 = vld [vmem:[%s335_s1 + $0x8] sm:$0xff]  }
   0x4   :  { %248 = vmatprep.subr.bf16.mxu0 %v267_v1  ;;  %262 = vmatprep.mubr.bf16.mxu0 %v274_v4  ;;  %v273_v8 = vld [vmem:[%s335_s1] sm:$0xff]   ;;  %v275_v9 = vld [vmem:[%s336_s0 + $0x8] sm:$0xff]  }
   0x5   :  { %v216_v11 = vld [vmem:[%s337_s2] ss:$0 sm:$0xff] }
   0x7   :  { %249 = vmatpush3.bf16.msra.mxu0 %v267_v1 }
   0x8   :  { %250 = vmatprep.subr.bf16.mxu0 %v268_v2 }
   0xb   :  { %251 = vmatpush3.bf16.msra.mxu0 %v268_v2 }
   0xc   :  { %252 = vmatprep.subr.bf16.mxu0 %v269_v3 }
   0xf   :  { %253 = vmatpush3.bf16.msra.mxu0 %v269_v3 }
  0x10   :  { %254 = vmatprep.subr.bf16.mxu0 %v270_v5 }
  0x13   :  { %255 = vmatpush3.bf16.msra.mxu0 %v270_v5 }
  0x14   :  { %256 = vmatprep.subr.bf16.mxu0 %v271_v6 }
  0x17   :  { %257 = vmatpush3.bf16.msra.mxu0 %v271_v6 }
  0x18   :  { %258 = vmatprep.subr.bf16.mxu0 %v272_v7 }
  0x1b   :  { %259 = vmatpush3.bf16.msra.mxu0 %v272_v7 }
  0x1c   :  { %260 = vmatprep.subr.bf16.mxu0 %v273_v8 }
  0x1f   :  { %261 = vmatpush3.bf16.msra.mxu0 %v273_v8 }
  0x22   :  { %263 = vmatmul.mubr.bf16.vlgmr.msra.gmra.mxu0 %v275_v9 }
  0xe2   :  { %v264_v10 = vpop.f32.mrf.mxu0 }
  0xe3   :  { %v180_v14 = vadd.f32 %v264_v10, %v216_v11 }
  0xe4   :  { %v141_v12 = vpop.f32.mrf.mxu0 }
  0xe5   :  { %v178_v17 = vadd.f32 %v216_v11, %v141_v12 }
  0xe6   :  { %v265_v13 = vpop.f32.mrf.mxu0 }
  0xe7   :  { %v181_v15 = vadd.f32 %v265_v13, %v216_v11 }
  0xe8   :  { %v144_v16 = vpop.f32.mrf.mxu0 }
  0xe9   :  { %v233_v18 = vpack.c.bf16 %v181_v15, %v180_v14  ;;  %v179_v19 = vadd.f32 %v216_v11, %v144_v16 }
  0xeb   :  { %235 = vst [vmem:[%s338_s3 + $0x8] sm:$0xff] %v233_v18   ;;  %v228_v20 = vpack.c.bf16 %v179_v19, %v178_v17 }
  0xed   :  { %229 = vst [vmem:[%s338_s3] sm:$0xff] %v228_v20  }

// kernel: vqa_forward.28
= control target key start
LH: loop header
LB: loop body
LE: loop exit
PB: predicated region body
PF: predicated region fallthrough
CT: control target
= control target key end

     0   :  { %s1249_s15 = smov 0   ;;  %s1251_s16 = smov 0   ;;  %s1375_s0 = inlined_call_operand.vmem [shape: bf16[32,1536], index: 0, kind: input, shape index: {}]   ;;  %s1376_s1 = inlined_call_operand.vmem [shape: bf16[1536,128], index: 1, kind: input, shape index: {}]   ;;  %s1377_s2 = inlined_call_operand.vmem [shape: f32[1,128], index: 2, kind: input, shape index: {}]   ;;  %s1378_s3 = inlined_call_operand.vmem [shape: bf16[32,128], index: 3, kind: input, shape index: {}]   ;;  %s1379_s4 = inlined_call_operand.vmem [shape: bf16[32,128], index: 4, kind: output, shape index: {}]  }
   0x1   :  { %s1253_s17 = smov 0   ;;  %s1255_s18 = smov 0  }
   0x2   :  { %s1257_s19 = smov 0  }
   0x3 LB: > { %s26_s20 = sadd.s32 1, %s1217_s18  ;;  %p49_p1 = scmp.ne.s32.totalorder %s1209_s16, %s1205_s15  ;;  %s1221_s19 = sphi %s1257_s19, %s14_s19   ;;  %s1217_s18 = sphi %s1255_s18, %s1383_s18   ;;  %s1213_s17 = sphi %s1253_s17, %s1382_s17   ;;  %s1209_s16 = sphi %s1251_s16, %s1381_s16   ;;  %s1205_s15 = sphi %s1249_s15, %s1380_s15  }
   0x4   : > { %p27_p0 = scmp.ge.s32.totalorder %s26_s20, 3  ;;  %p50_p2 = scmp.eq.s32.totalorder %s1221_s19, 0 }
   0x5   : > { %s42_s22 = sadd.s32 1, %s1209_s16  ;;  %p958_p5 = scmp.ge.s32.totalorder %s1221_s19, 3 }
   0x6   : > { %s1385_s20 = smov (%p27_p0, %s26_s20), 0  ;;  %p51_p3 = por %p50_p2, %p49_p1 }
   0x7   : > { %s38_s21 = ssub.s32 %s1217_s18, %s1385_s20  ;;  %203 = sbr.rel (%p958_p5) target bundleno = 20 (0x14), region = 24 }
   0x8   : > { %p40_p4 = scmp.eq.s32.totalorder %s38_s21, 0 }
   0xa   : > { %s1284_s23 = scalar_select %p40_p4, %s1209_s16, %s42_s22  }
   0xc   : > { %206 = sbr.rel (!%p51_p3) target bundleno = 20 (0x14), region = 28  ;;  %s208_s24 = sand.u32 (%p51_p3), 1, %s1209_s16  }
   0xd   : > { %s1017_s25 = sshll.u32 (%p51_p3), %s1217_s18, 4  ;;  %s959_s26 = sshll.u32 (%p51_p3), %s208_s24, 6 }
   0xe   : > { %s216_s29 = scalar_lea.vmem (%p51_p3), %s1375_s0, %s1017_s25  ;;  %s210_s30 = scalar_lea.vmem (%p51_p3), [#allocation3], %s959_s26 }
   0xf   : > { %v229_v0 = vld [vmem:[%s216_s29] sm:$0xff] (%p51_p3)  ;;  %v231_v1 = vld [vmem:[%s216_s29 + $0x8] sm:$0xff] (%p51_p3)  ;;  %v233_v2 = vld [vmem:[%s216_s29 + $0x30] sm:$0xff] (%p51_p3) }
  0x10   : > { %230 = vst [vmem:[%s210_s30] sm:$0xff] (%p51_p3), %v229_v0  ;;  %232 = vst [vmem:[%s210_s30 + $0x8] sm:$0xff] (%p51_p3), %v231_v1  ;;  %v235_v3 = vld [vmem:[%s216_s29 + $0x38] sm:$0xff] (%p51_p3)  ;;  %v237_v4 = vld [vmem:[%s216_s29 + $0x60] sm:$0xff] (%p51_p3) }
  0x11   : > { %234 = vst [vmem:[%s210_s30 + $0x10] sm:$0xff] %v233_v2  ;;  %v239_v5 = vld [vmem:[%s216_s29 + $0x68] sm:$0xff]  ;;  %236 = vst [vmem:[%s210_s30 + $0x18] sm:$0xff] %v235_v3  ;;  %v241_v6 = vld [vmem:[%s216_s29 + $0x90] sm:$0xff] }
  0x12   : > { %238 = vst [vmem:[%s210_s30 + $0x20] sm:$0xff] %v237_v4  ;;  %240 = vst [vmem:[%s210_s30 + $0x28] sm:$0xff] %v239_v5  ;;  %v243_v7 = vld [vmem:[%s216_s29 + $0x98] sm:$0xff] }
  0x13   : > { %242 = vst [vmem:[%s210_s30 + $0x30] sm:$0xff] %v241_v6  ;;  %244 = vst [vmem:[%s210_s30 + $0x38] sm:$0xff] %v243_v7 }
  0x14 PF: > { %p962_p6 = scmp.ge.s32.totalorder %s1221_s19, 1  ;;  %p261_p7 = scmp.lt.s32.totalorder %s1221_s19, 4 }
  0x16   : > { %p262_p8 = pnand %p962_p6, %p261_p7 }
  0x17   : > { %s268_s5 = sand.u32 (!%p262_p8), 1, %s1205_s15   ;;  %s964_s6 = sshll.u32 (!%p262_p8), %s1213_s17, 6 }
  0x18   : > { %265 = sbr.rel (%p262_p8) target bundleno = 302 (0x12e), region = 55  ;;  %s963_s7 = sshll.u32 (!%p262_p8), %s268_s5, 6 }
  0x19   : > { %p318_p9 = scmp.lt.s32.totalorder (!%p262_p8), %s964_s6, 191  ;;  %s1301_s12 = scalar_lea.vmem (!%p262_p8), [#allocation3], %s963_s7 }
  0x1a   : > { %p966_p10 = scmp.ne.s32.totalorder (!%p262_p8), %s1213_s17, 0 }
  0x1d   : > { %s1387_s6 = smov (!%p318_p9, %s964_s6), 191  ;;  %351 = sbr.rel (%p966_p10) target bundleno = 37 (0x25), region = 63 }
  0x1e   : > { %s965_s8 = sshll.u32 %s1387_s6, 2 }
  0x1f   : > { %s1299_s11 = scalar_lea.vmem %s1376_s1, %s965_s8 }
  0x22   : > { %v1223_v8 = vmov 0.0  }
  0x23   : > { %352 = vst [vmem:[#allocation2 + $0x10] sm:$0xff] %v1223_v8  ;;  %353 = vst [vmem:[#allocation2] sm:$0xff] %v1223_v8 }
  0x24   : > { %354 = vst [vmem:[#allocation2 + $0x18] sm:$0xff] %v1223_v8  ;;  %355 = vst [vmem:[#allocation2 + $0x8] sm:$0xff] %v1223_v8 }
  0x25 PF: > { %v1139_v9 = vld [vmem:[%s1299_s11 + $0x78] sm:$0xff]   ;;  %v1143_v13 = vld [vmem:[%s1299_s11 + $0x70] sm:$0xff]   ;;  %v1147_v17 = vld [vmem:[%s1299_s11 + $0x68] sm:$0xff]   ;;  %p1007_p11 = scmp.ne.s32.totalorder %s1213_s17, 2 }
  0x26   : > { %v1140_v10 = vld [vmem:[%s1299_s11 + $0xf8] sm:$0xff]   ;;  %1042 = vmatprep.subr.bf16.mxu0 %v1139_v9  ;;  %v1144_v14 = vld [vmem:[%s1299_s11 + $0xf0] sm:$0xff]   ;;  %v1148_v18 = vld [vmem:[%s1299_s11 + $0xe8] sm:$0xff]  }
  0x27   : > { %v1141_v11 = vld [vmem:[%s1299_s11 + $0x38] sm:$0xff]   ;;  %1070 = vmatprep.subr.bf16.mxu1 %v1140_v10  ;;  %v1145_v15 = vld [vmem:[%s1299_s11 + $0x30] sm:$0xff]   ;;  %v1149_v19 = vld [vmem:[%s1299_s11 + $0x28] sm:$0xff]  }
  0x28   : > { %v1142_v12 = vld [vmem:[%s1299_s11 + $0xb8] sm:$0xff]   ;;  %1043 = vmatpush3.bf16.msra.mxu0 %v1141_v11  ;;  %v1146_v16 = vld [vmem:[%s1299_s11 + $0xb0] sm:$0xff]   ;;  %v1150_v20 = vld [vmem:[%s1299_s11 + $0xa8] sm:$0xff]  }
  0x29   : > { %1071 = vmatpush3.bf16.msra.mxu1 %v1142_v12  ;;  %1044 = vmatprep.subr.bf16.mxu0 %v1143_v13  ;;  %v1151_v21 = vld [vmem:[%s1299_s11 + $0x60] sm:$0xff]   ;;  %v1155_v25 = vld [vmem:[%s1299_s11 + $0x58] sm:$0xff]   ;;  %v1159_v29 = vld [vmem:[%s1299_s11 + $0x50] sm:$0xff]  }
  0x2a   : > { %1072 = vmatprep.subr.bf16.mxu1 %v1144_v14  ;;  %v1152_v22 = vld [vmem:[%s1299_s11 + $0xe0] sm:$0xff]   ;;  %v1156_v26 = vld [vmem:[%s1299_s11 + $0xd8] sm:$0xff]   ;;  %v1160_v30 = vld [vmem:[%s1299_s11 + $0xd0] sm:$0xff]  }
  0x2b   : > { %v1153_v23 = vld [vmem:[%s1299_s11 + $0x20] sm:$0xff]   ;;  %v1157_v27 = vld [vmem:[%s1299_s11 + $0x18] sm:$0xff]   ;;  %v1161_v31 = vld [vmem:[%s1299_s11 + $0x10] sm:$0xff]  }
  0x2c   : > { %1045 = vmatpush3.bf16.msra.mxu0 %v1145_v15  ;;  %v1154_v24 = vld [vmem:[%s1299_s11 + $0xa0] sm:$0xff]   ;;  %v1158_v28 = vld [vmem:[%s1299_s11 + $0x98] sm:$0xff]   ;;  %v1162_v32 = vld [vmem:[%s1299_s11 + $0x90] sm:$0xff]  }
  0x2d   : > { %1073 = vmatpush3.bf16.msra.mxu1 %v1146_v16  ;;  %1046 = vmatprep.subr.bf16.mxu0 %v1147_v17  ;;  %v1163_v33 = vld [vmem:[%s1299_s11 + $0x48] sm:$0xff]   ;;  %v1167_v37 = vld [vmem:[%s1299_s11 + $0x40] sm:$0xff]   ;;  %v356_v56 = vld [vmem:[#allocation2 + $0x10] sm:$0xff] }
  0x2e   : > { %1074 = vmatprep.subr.bf16.mxu1 %v1148_v18  ;;  %v1164_v34 = vld [vmem:[%s1299_s11 + $0xc8] sm:$0xff]   ;;  %v1168_v38 = vld [vmem:[%s1299_s11 + $0xc0] sm:$0xff]   ;;  %v358_v10 = vld [vmem:[#allocation2 + $0x18] sm:$0xff] }
  0x2f   : > { %v1165_v35 = vld [vmem:[%s1299_s11 + $0x8] sm:$0xff]   ;;  %v1169_v39 = vld [vmem:[%s1299_s11] sm:$0xff]  }
  0x30   : > { %1047 = vmatpush3.bf16.msra.mxu0 %v1149_v19  ;;  %v1166_v36 = vld [vmem:[%s1299_s11 + $0x88] sm:$0xff]   ;;  %v1170_v40 = vld [vmem:[%s1299_s11 + $0x80] sm:$0xff]  }
  0x31   : > { %1075 = vmatpush3.bf16.msra.mxu1 %v1150_v20  ;;  %1048 = vmatprep.subr.bf16.mxu0 %v1151_v21  ;;  %v1171_v41 = vld [vmem:[%s1301_s12] ss:$16 sps:$4 sm:$0xff]   ;;  %v1173_v42 = vld [vmem:[%s1301_s12 + $0x4] ss:$16 sps:$4 sm:$0xff]   ;;  %v1174_v43 = vld [vmem:[%s1301_s12 + $0x8] ss:$16 sps:$4 sm:$0xff]  }
  0x32   : > { %1076 = vmatprep.subr.bf16.mxu1 %v1152_v22  ;;  %v1176_v44 = vld [vmem:[%s1301_s12 + $0xc] ss:$16 sps:$4 sm:$0xff]   ;;  %696 = vmatprep.mubr.bf16.mxu0 %v1173_v42  ;;  %v1177_v45 = vld [vmem:[%s1301_s12 + $0x24] ss:$16 sps:$4 sm:$0xff]   ;;  %v1181_v47 = vld [vmem:[%s1301_s12 + $0x20] ss:$16 sps:$4 sm:$0xff]  }
  0x33   : > { %745 = vmatprep.mubr.bf16.mxu1 %v1176_v44  ;;  %v1179_v46 = vld [vmem:[%s1301_s12 + $0x2c] ss:$16 sps:$4 sm:$0xff]   ;;  %v1182_v48 = vld [vmem:[%s1301_s12 + $0x28] ss:$16 sps:$4 sm:$0xff]   ;;  %v357_v1 = vld [vmem:[#allocation2] sm:$0xff] }
  0x34   : > { %1049 = vmatpush3.bf16.msra.mxu0 %v1153_v23  ;;  %v359_v18 = vld [vmem:[#allocation2 + $0x8] sm:$0xff] }
  0x35   : > { %1077 = vmatpush3.bf16.msra.mxu1 %v1154_v24  ;;  %1050 = vmatprep.subr.bf16.mxu0 %v1155_v25 }
  0x36   : > { %1078 = vmatprep.subr.bf16.mxu1 %v1156_v26 }
  0x38   : > { %1051 = vmatpush3.bf16.msra.mxu0 %v1157_v27 }
  0x39   : > { %1079 = vmatpush3.bf16.msra.mxu1 %v1158_v28  ;;  %1052 = vmatprep.subr.bf16.mxu0 %v1159_v29 }
  0x3a   : > { %1080 = vmatprep.subr.bf16.mxu1 %v1160_v30 }
  0x3c   : > { %1053 = vmatpush3.bf16.msra.mxu0 %v1161_v31 }
  0x3d   : > { %1081 = vmatpush3.bf16.msra.mxu1 %v1162_v32  ;;  %1054 = vmatprep.subr.bf16.mxu0 %v1163_v33 }
  0x3e   : > { %1082 = vmatprep.subr.bf16.mxu1 %v1164_v34 }
  0x40   : > { %1055 = vmatpush3.bf16.msra.mxu0 %v1165_v35 }
  0x41   : > { %1083 = vmatpush3.bf16.msra.mxu1 %v1166_v36  ;;  %1056 = vmatprep.subr.bf16.mxu0 %v1167_v37 }
  0x42   : > { %1084 = vmatprep.subr.bf16.mxu1 %v1168_v38 }
  0x44   : > { %1057 = vmatpush3.bf16.msra.mxu0 %v1169_v39 }
  0x45   : > { %1085 = vmatpush3.bf16.msra.mxu1 %v1170_v40 }
  0x47   : > { %697 = vmatmul.mubr.bf16.vlgmr.msra.gmra.mxu0 %v1171_v41 }
  0x48   : > { %746 = vmatmul.mubr.bf16.vlgmr.msra.gmra.mxu1 %v1174_v43  ;;  %704 = vmatprep.mubr.bf16.mxu0 %v1177_v45 }
  0x49   : > { %753 = vmatprep.mubr.bf16.mxu1 %v1179_v46 }
  0x4f   : > { %705 = vmatmul.mubr.bf16.gmra.mxu0 %v1181_v47 }
  0x50   : > { %754 = vmatmul.mubr.bf16.gmra.mxu1 %v1182_v48 }
 0x107   : > { %v1058_v49 = vpop.f32.mrf.mxu0 }
 0x108   : > { %v1086_v50 = vpop.f32.mrf.mxu1 }
 0x109   : > { %v1059_v51 = vpop.f32.mrf.mxu0 }
 0x10a   : > { %v1060_v52 = vadd.f32 %v1059_v51, %v1058_v49  ;;  %v1087_v53 = vpop.f32.mrf.mxu1 }
 0x10b   : > { %v1088_v54 = vadd.f32 %v1087_v53, %v1086_v50  ;;  %v1061_v55 = vpop.f32.mrf.mxu0 }
 0x10c   : > { %v1089_v57 = vpop.f32.mrf.mxu1 }
 0x10d   : > { %v748_v58 = vadd.f32 %v1088_v54, %v1060_v52  ;;  %v1062_v59 = vpop.f32.mrf.mxu0 }
 0x10e   : > { %v1063_v60 = vadd.f32 %v1062_v59, %v1061_v55  ;;  %v1090_v61 = vpop.f32.mrf.mxu1 }
 0x10f   : > { %v762_v62 = vadd.f32 %v748_v58, %v356_v56  ;;  %v1091_v63 = vadd.f32 %v1090_v61, %v1089_v57  ;;  %v1064_v0 = vpop.f32.mrf.mxu0 }
 0x110   : > { %v1092_v2 = vpop.f32.mrf.mxu1 }
 0x111   : > { %766 = vst [vmem:[#allocation2 + $0x10] sm:$0xff] %v762_v62  ;;  %v751_v3 = vadd.f32 %v1091_v63, %v1063_v60  ;;  %v1065_v4 = vpop.f32.mrf.mxu0 }
 0x112   : > { %v1066_v5 = vadd.f32 %v1065_v4, %v1064_v0  ;;  %v1093_v6 = vpop.f32.mrf.mxu1 }
 0x113   : > { %v763_v7 = vadd.f32 %v751_v3, %v357_v1  ;;  %v1094_v8 = vadd.f32 %v1093_v6, %v1092_v2  ;;  %v1067_v9 = vpop.f32.mrf.mxu0 }
 0x114   : > { %v1095_v11 = vpop.f32.mrf.mxu1 }
 0x115   : > { %767 = vst [vmem:[#allocation2] sm:$0xff] %v763_v7  ;;  %v756_v12 = vadd.f32 %v1094_v8, %v1066_v5  ;;  %v1068_v13 = vpop.f32.mrf.mxu0 }
 0x116   : > { %v1069_v14 = vadd.f32 %v1068_v13, %v1067_v9  ;;  %v1096_v15 = vpop.f32.mrf.mxu1 }
 0x117   : > { %v764_v16 = vadd.f32 %v756_v12, %v358_v10  ;;  %v1097_v17 = vadd.f32 %v1096_v15, %v1095_v11 }
 0x119   : > { %768 = vst [vmem:[#allocation2 + $0x18] sm:$0xff] %v764_v16  ;;  %v759_v19 = vadd.f32 %v1097_v17, %v1069_v14  ;;  %773 = sbr.rel (%p1007_p11) target bundleno = 302 (0x12e), region = 67 }
 0x11b   : > { %v765_v20 = vadd.f32 %v759_v19, %v359_v18 }
 0x11d   : > { %769 = vst [vmem:[#allocation2 + $0x8] sm:$0xff] %v765_v20 }
 0x11e   : > { %v774_v21 = vld [vmem:[#allocation2 + $0x10] sm:$0xff]  ;;  %v775_v22 = vld [vmem:[#allocation2] sm:$0xff]  ;;  %v1040_v33 = vld [vmem:[%s1378_s3 + $0x8] sm:$0xff]  }
 0x11f   : > { %v1008_v23 = vld [vmem:[%s1377_s2] ss:$0 sm:$0xff]  ;;  %v1028_v34 = vunpack.c.l.bf16 %v1040_v33  ;;  %v1029_v35 = vunpack.c.h.bf16 %v1040_v33 }
 0x120   : > { %v785_v24 = vadd.f32 %v1008_v23, %v774_v21  ;;  %v786_v25 = vadd.f32 %v1008_v23, %v775_v22  ;;  %v1023_v26 = vld [vmem:[%s1378_s3] sm:$0xff]   ;;  %v776_v27 = vld [vmem:[#allocation2 + $0x18] sm:$0xff] }
 0x121   : > { %v1024_v29 = vunpack.c.l.bf16 %v1023_v26  ;;  %v1025_v30 = vunpack.c.h.bf16 %v1023_v26  ;;  %v787_v31 = vadd.f32 %v1008_v23, %v776_v27 }
 0x123   : > { %v797_v36 = vadd.f32 %v1024_v29, %v785_v24  ;;  %v798_v37 = vadd.f32 %v1025_v30, %v786_v25  ;;  %v799_v38 = vadd.f32 %v1028_v34, %v787_v31 }
 0x124   : > { %v777_v28 = vld [vmem:[#allocation2 + $0x8] sm:$0xff] }
 0x125   : > { %v788_v32 = vadd.f32 %v1008_v23, %v777_v28  ;;  %v801_v40 = vmax.f32 %v797_v36, 0.0  ;;  %v802_v41 = vmax.f32 %v798_v37, 0.0  ;;  %v803_v42 = vmax.f32 %v799_v38, 0.0 }
 0x127   : > { %v800_v39 = vadd.f32 %v1029_v35, %v788_v32  ;;  %v1033_v44 = vpack.c.bf16 %v802_v41, %v801_v40 }
 0x129   : > { %v804_v43 = vmax.f32 %v800_v39, 0.0  ;;  %1034 = vst [vmem:[%s1379_s4] sm:$0xff] %v1033_v44  }
 0x12b   : > { %v1038_v45 = vpack.c.bf16 %v804_v43, %v803_v42 }
 0x12d   : > { %1041 = vst [vmem:[%s1379_s4 + $0x8] sm:$0xff] %v1038_v45  }
 0x12e PF: > { %s14_s19 = sadd.s32 1, %s1221_s19   ;;  %s1380_s15 = smov %s1209_s16 }
 0x12f   : > { %p11_p12 = scmp.ge.s32.totalorder %s14_s19, 5   ;;  %s1381_s16 = smov %s1284_s23 }
 0x130   : > { %s1382_s17 = smov %s1217_s18  ;;  %s1383_s18 = smov %s1385_s20 }
 0x131   :  { %13 = sbr.rel (!%p11_p12) target bundleno = 3 (0x3), region = 111 }

// kernel: vqa_forward.29
= control target key start
LH: loop header
LB: loop body
LE: loop exit
PB: predicated region body
PF: predicated region fallthrough
CT: control target
= control target key end

     0   :  { %s1144_s12 = smov 0   ;;  %s1146_s13 = smov 0   ;;  %s1264_s0 = inlined_call_operand.vmem [shape: bf16[32,1536], index: 0, kind: input, shape index: {}]   ;;  %s1265_s1 = inlined_call_operand.vmem [shape: bf16[1536,128], index: 1, kind: input, shape index: {}]   ;;  %s1266_s2 = inlined_call_operand.vmem [shape: f32[1,128], index: 2, kind: input, shape index: {}]   ;;  %s1267_s3 = inlined_call_operand.vmem [shape: bf16[32,128], index: 3, kind: output, shape index: {}]  }
   0x1   :  { %s1148_s14 = smov 0   ;;  %s1150_s15 = smov 0  }
   0x2   :  { %s1152_s16 = smov 0  }
   0x3 LB: > { %s25_s17 = sadd.s32 1, %s1117_s15  ;;  %p48_p1 = scmp.ne.s32.totalorder %s1109_s13, %s1105_s12  ;;  %s1121_s16 = sphi %s1152_s16, %s13_s16   ;;  %s1117_s15 = sphi %s1150_s15, %s1271_s15   ;;  %s1113_s14 = sphi %s1148_s14, %s1270_s14   ;;  %s1109_s13 = sphi %s1146_s13, %s1269_s13   ;;  %s1105_s12 = sphi %s1144_s12, %s1268_s12  }
   0x4   : > { %p26_p0 = scmp.ge.s32.totalorder %s25_s17, 3  ;;  %p49_p2 = scmp.eq.s32.totalorder %s1121_s16, 0 }
   0x5   : > { %s41_s19 = sadd.s32 1, %s1109_s13  ;;  %p867_p5 = scmp.ge.s32.totalorder %s1121_s16, 3 }
   0x6   : > { %s1273_s17 = smov (%p26_p0, %s25_s17), 0  ;;  %p50_p3 = por %p49_p2, %p48_p1 }
   0x7   : > { %s37_s18 = ssub.s32 %s1117_s15, %s1273_s17  ;;  %162 = sbr.rel (%p867_p5) target bundleno = 20 (0x14), region = 20 }
   0x8   : > { %p39_p4 = scmp.eq.s32.totalorder %s37_s18, 0 }
   0xa   : > { %s1179_s20 = scalar_select %p39_p4, %s1109_s13, %s41_s19  }
   0xc   : > { %165 = sbr.rel (!%p50_p3) target bundleno = 20 (0x14), region = 24  ;;  %s167_s21 = sand.u32 (%p50_p3), 1, %s1109_s13  }
   0xd   : > { %s926_s22 = sshll.u32 (%p50_p3), %s1117_s15, 4  ;;  %s868_s23 = sshll.u32 (%p50_p3), %s167_s21, 6 }
   0xe   : > { %s175_s26 = scalar_lea.vmem (%p50_p3), %s1264_s0, %s926_s22  ;;  %s169_s27 = scalar_lea.vmem (%p50_p3), [#allocation3], %s868_s23 }
   0xf   : > { %v188_v0 = vld [vmem:[%s175_s26] sm:$0xff] (%p50_p3)  ;;  %v190_v1 = vld [vmem:[%s175_s26 + $0x8] sm:$0xff] (%p50_p3)  ;;  %v192_v2 = vld [vmem:[%s175_s26 + $0x30] sm:$0xff] (%p50_p3) }
  0x10   : > { %189 = vst [vmem:[%s169_s27] sm:$0xff] (%p50_p3), %v188_v0  ;;  %191 = vst [vmem:[%s169_s27 + $0x8] sm:$0xff] (%p50_p3), %v190_v1  ;;  %v194_v3 = vld [vmem:[%s175_s26 + $0x38] sm:$0xff] (%p50_p3)  ;;  %v196_v4 = vld [vmem:[%s175_s26 + $0x60] sm:$0xff] (%p50_p3) }
  0x11   : > { %193 = vst [vmem:[%s169_s27 + $0x10] sm:$0xff] %v192_v2  ;;  %v198_v5 = vld [vmem:[%s175_s26 + $0x68] sm:$0xff]  ;;  %195 = vst [vmem:[%s169_s27 + $0x18] sm:$0xff] %v194_v3  ;;  %v200_v6 = vld [vmem:[%s175_s26 + $0x90] sm:$0xff] }
  0x12   : > { %197 = vst [vmem:[%s169_s27 + $0x20] sm:$0xff] %v196_v4  ;;  %199 = vst [vmem:[%s169_s27 + $0x28] sm:$0xff] %v198_v5  ;;  %v202_v7 = vld [vmem:[%s175_s26 + $0x98] sm:$0xff] }
  0x13   : > { %201 = vst [vmem:[%s169_s27 + $0x30] sm:$0xff] %v200_v6  ;;  %203 = vst [vmem:[%s169_s27 + $0x38] sm:$0xff] %v202_v7 }
  0x14 PF: > { %p871_p6 = scmp.ge.s32.totalorder %s1121_s16, 1  ;;  %p220_p7 = scmp.lt.s32.totalorder %s1121_s16, 4 }
  0x16   : > { %p221_p8 = pnand %p871_p6, %p220_p7 }
  0x17   : > { %s227_s28 = sand.u32 (!%p221_p8), 1, %s1105_s12   ;;  %s873_s29 = sshll.u32 (!%p221_p8), %s1113_s14, 6 }
  0x18   : > { %224 = sbr.rel (%p221_p8) target bundleno = 300 (0x12c), region = 51  ;;  %s872_s30 = sshll.u32 (!%p221_p8), %s227_s28, 6 }
  0x19   : > { %p267_p9 = scmp.lt.s32.totalorder (!%p221_p8), %s873_s29, 191  ;;  %s1196_s8 = scalar_lea.vmem (!%p221_p8), [#allocation3], %s872_s30 }
  0x1a   : > { %p875_p10 = scmp.ne.s32.totalorder (!%p221_p8), %s1113_s14, 0 }
  0x1d   : > { %s1275_s29 = smov (!%p267_p9, %s873_s29), 191  ;;  %291 = sbr.rel (%p875_p10) target bundleno = 37 (0x25), region = 59 }
  0x1e   : > { %s874_s4 = sshll.u32 %s1275_s29, 2 }
  0x1f   : > { %s1194_s7 = scalar_lea.vmem %s1265_s1, %s874_s4 }
  0x22   : > { %v1123_v8 = vmov 0.0  }
  0x23   : > { %292 = vst [vmem:[#allocation2 + $0x10] sm:$0xff] %v1123_v8  ;;  %293 = vst [vmem:[#allocation2] sm:$0xff] %v1123_v8 }
  0x24   : > { %294 = vst [vmem:[#allocation2 + $0x18] sm:$0xff] %v1123_v8  ;;  %295 = vst [vmem:[#allocation2 + $0x8] sm:$0xff] %v1123_v8 }
  0x25 PF: > { %v1039_v9 = vld [vmem:[%s1194_s7 + $0x78] sm:$0xff]   ;;  %v1043_v13 = vld [vmem:[%s1194_s7 + $0x70] sm:$0xff]   ;;  %v1047_v17 = vld [vmem:[%s1194_s7 + $0x68] sm:$0xff]   ;;  %p916_p11 = scmp.ne.s32.totalorder %s1113_s14, 2 }
  0x26   : > { %v1040_v10 = vld [vmem:[%s1194_s7 + $0xf8] sm:$0xff]   ;;  %942 = vmatprep.subr.bf16.mxu0 %v1039_v9  ;;  %v1044_v14 = vld [vmem:[%s1194_s7 + $0xf0] sm:$0xff]   ;;  %v1048_v18 = vld [vmem:[%s1194_s7 + $0xe8] sm:$0xff]  }
  0x27   : > { %v1041_v11 = vld [vmem:[%s1194_s7 + $0x38] sm:$0xff]   ;;  %970 = vmatprep.subr.bf16.mxu1 %v1040_v10  ;;  %v1045_v15 = vld [vmem:[%s1194_s7 + $0x30] sm:$0xff]   ;;  %v1049_v19 = vld [vmem:[%s1194_s7 + $0x28] sm:$0xff]  }
  0x28   : > { %v1042_v12 = vld [vmem:[%s1194_s7 + $0xb8] sm:$0xff]   ;;  %943 = vmatpush3.bf16.msra.mxu0 %v1041_v11  ;;  %v1046_v16 = vld [vmem:[%s1194_s7 + $0xb0] sm:$0xff]   ;;  %v1050_v20 = vld [vmem:[%s1194_s7 + $0xa8] sm:$0xff]  }
  0x29   : > { %971 = vmatpush3.bf16.msra.mxu1 %v1042_v12  ;;  %944 = vmatprep.subr.bf16.mxu0 %v1043_v13  ;;  %v1051_v21 = vld [vmem:[%s1194_s7 + $0x60] sm:$0xff]   ;;  %v1055_v25 = vld [vmem:[%s1194_s7 + $0x58] sm:$0xff]   ;;  %v1059_v29 = vld [vmem:[%s1194_s7 + $0x50] sm:$0xff]  }
  0x2a   : > { %972 = vmatprep.subr.bf16.mxu1 %v1044_v14  ;;  %v1052_v22 = vld [vmem:[%s1194_s7 + $0xe0] sm:$0xff]   ;;  %v1056_v26 = vld [vmem:[%s1194_s7 + $0xd8] sm:$0xff]   ;;  %v1060_v30 = vld [vmem:[%s1194_s7 + $0xd0] sm:$0xff]  }
  0x2b   : > { %v1053_v23 = vld [vmem:[%s1194_s7 + $0x20] sm:$0xff]   ;;  %v1057_v27 = vld [vmem:[%s1194_s7 + $0x18] sm:$0xff]   ;;  %v1061_v31 = vld [vmem:[%s1194_s7 + $0x10] sm:$0xff]  }
  0x2c   : > { %945 = vmatpush3.bf16.msra.mxu0 %v1045_v15  ;;  %v1054_v24 = vld [vmem:[%s1194_s7 + $0xa0] sm:$0xff]   ;;  %v1058_v28 = vld [vmem:[%s1194_s7 + $0x98] sm:$0xff]   ;;  %v1062_v32 = vld [vmem:[%s1194_s7 + $0x90] sm:$0xff]  }
  0x2d   : > { %973 = vmatpush3.bf16.msra.mxu1 %v1046_v16  ;;  %946 = vmatprep.subr.bf16.mxu0 %v1047_v17  ;;  %v1063_v33 = vld [vmem:[%s1194_s7 + $0x48] sm:$0xff]   ;;  %v1067_v37 = vld [vmem:[%s1194_s7 + $0x40] sm:$0xff]   ;;  %v296_v56 = vld [vmem:[#allocation2 + $0x10] sm:$0xff] }
  0x2e   : > { %974 = vmatprep.subr.bf16.mxu1 %v1048_v18  ;;  %v1064_v34 = vld [vmem:[%s1194_s7 + $0xc8] sm:$0xff]   ;;  %v1068_v38 = vld [vmem:[%s1194_s7 + $0xc0] sm:$0xff]   ;;  %v298_v10 = vld [vmem:[#allocation2 + $0x18] sm:$0xff] }
  0x2f   : > { %v1065_v35 = vld [vmem:[%s1194_s7 + $0x8] sm:$0xff]   ;;  %v1069_v39 = vld [vmem:[%s1194_s7] sm:$0xff]  }
  0x30   : > { %947 = vmatpush3.bf16.msra.mxu0 %v1049_v19  ;;  %v1066_v36 = vld [vmem:[%s1194_s7 + $0x88] sm:$0xff]   ;;  %v1070_v40 = vld [vmem:[%s1194_s7 + $0x80] sm:$0xff]  }
  0x31   : > { %975 = vmatpush3.bf16.msra.mxu1 %v1050_v20  ;;  %948 = vmatprep.subr.bf16.mxu0 %v1051_v21  ;;  %v1071_v41 = vld [vmem:[%s1196_s8] ss:$16 sps:$4 sm:$0xff]   ;;  %v1073_v42 = vld [vmem:[%s1196_s8 + $0x4] ss:$16 sps:$4 sm:$0xff]   ;;  %v1074_v43 = vld [vmem:[%s1196_s8 + $0x8] ss:$16 sps:$4 sm:$0xff]  }
  0x32   : > { %976 = vmatprep.subr.bf16.mxu1 %v1052_v22  ;;  %v1076_v44 = vld [vmem:[%s1196_s8 + $0xc] ss:$16 sps:$4 sm:$0xff]   ;;  %636 = vmatprep.mubr.bf16.mxu0 %v1073_v42  ;;  %v1077_v45 = vld [vmem:[%s1196_s8 + $0x24] ss:$16 sps:$4 sm:$0xff]   ;;  %v1081_v47 = vld [vmem:[%s1196_s8 + $0x20] ss:$16 sps:$4 sm:$0xff]  }
  0x33   : > { %685 = vmatprep.mubr.bf16.mxu1 %v1076_v44  ;;  %v1079_v46 = vld [vmem:[%s1196_s8 + $0x2c] ss:$16 sps:$4 sm:$0xff]   ;;  %v1082_v48 = vld [vmem:[%s1196_s8 + $0x28] ss:$16 sps:$4 sm:$0xff]   ;;  %v297_v1 = vld [vmem:[#allocation2] sm:$0xff] }
  0x34   : > { %949 = vmatpush3.bf16.msra.mxu0 %v1053_v23  ;;  %v299_v18 = vld [vmem:[#allocation2 + $0x8] sm:$0xff] }
  0x35   : > { %977 = vmatpush3.bf16.msra.mxu1 %v1054_v24  ;;  %950 = vmatprep.subr.bf16.mxu0 %v1055_v25 }
  0x36   : > { %978 = vmatprep.subr.bf16.mxu1 %v1056_v26 }
  0x38   : > { %951 = vmatpush3.bf16.msra.mxu0 %v1057_v27 }
  0x39   : > { %979 = vmatpush3.bf16.msra.mxu1 %v1058_v28  ;;  %952 = vmatprep.subr.bf16.mxu0 %v1059_v29 }
  0x3a   : > { %980 = vmatprep.subr.bf16.mxu1 %v1060_v30 }
  0x3c   : > { %953 = vmatpush3.bf16.msra.mxu0 %v1061_v31 }
  0x3d   : > { %981 = vmatpush3.bf16.msra.mxu1 %v1062_v32  ;;  %954 = vmatprep.subr.bf16.mxu0 %v1063_v33 }
  0x3e   : > { %982 = vmatprep.subr.bf16.mxu1 %v1064_v34 }
  0x40   : > { %955 = vmatpush3.bf16.msra.mxu0 %v1065_v35 }
  0x41   : > { %983 = vmatpush3.bf16.msra.mxu1 %v1066_v36  ;;  %956 = vmatprep.subr.bf16.mxu0 %v1067_v37 }
  0x42   : > { %984 = vmatprep.subr.bf16.mxu1 %v1068_v38 }
  0x44   : > { %957 = vmatpush3.bf16.msra.mxu0 %v1069_v39 }
  0x45   : > { %985 = vmatpush3.bf16.msra.mxu1 %v1070_v40 }
  0x47   : > { %637 = vmatmul.mubr.bf16.vlgmr.msra.gmra.mxu0 %v1071_v41 }
  0x48   : > { %686 = vmatmul.mubr.bf16.vlgmr.msra.gmra.mxu1 %v1074_v43  ;;  %644 = vmatprep.mubr.bf16.mxu0 %v1077_v45 }
  0x49   : > { %693 = vmatprep.mubr.bf16.mxu1 %v1079_v46 }
  0x4f   : > { %645 = vmatmul.mubr.bf16.gmra.mxu0 %v1081_v47 }
  0x50   : > { %694 = vmatmul.mubr.bf16.gmra.mxu1 %v1082_v48 }
 0x107   : > { %v958_v49 = vpop.f32.mrf.mxu0 }
 0x108   : > { %v986_v50 = vpop.f32.mrf.mxu1 }
 0x109   : > { %v959_v51 = vpop.f32.mrf.mxu0 }
 0x10a   : > { %v960_v52 = vadd.f32 %v959_v51, %v958_v49  ;;  %v987_v53 = vpop.f32.mrf.mxu1 }
 0x10b   : > { %v988_v54 = vadd.f32 %v987_v53, %v986_v50  ;;  %v961_v55 = vpop.f32.mrf.mxu0 }
 0x10c   : > { %v989_v57 = vpop.f32.mrf.mxu1 }
 0x10d   : > { %v688_v58 = vadd.f32 %v988_v54, %v960_v52  ;;  %v962_v59 = vpop.f32.mrf.mxu0 }
 0x10e   : > { %v963_v60 = vadd.f32 %v962_v59, %v961_v55  ;;  %v990_v61 = vpop.f32.mrf.mxu1 }
 0x10f   : > { %v702_v62 = vadd.f32 %v688_v58, %v296_v56  ;;  %v991_v63 = vadd.f32 %v990_v61, %v989_v57  ;;  %v964_v0 = vpop.f32.mrf.mxu0 }
 0x110   : > { %v992_v2 = vpop.f32.mrf.mxu1 }
 0x111   : > { %706 = vst [vmem:[#allocation2 + $0x10] sm:$0xff] %v702_v62  ;;  %v691_v3 = vadd.f32 %v991_v63, %v963_v60  ;;  %v965_v4 = vpop.f32.mrf.mxu0 }
 0x112   : > { %v966_v5 = vadd.f32 %v965_v4, %v964_v0  ;;  %v993_v6 = vpop.f32.mrf.mxu1 }
 0x113   : > { %v703_v7 = vadd.f32 %v691_v3, %v297_v1  ;;  %v994_v8 = vadd.f32 %v993_v6, %v992_v2  ;;  %v967_v9 = vpop.f32.mrf.mxu0 }
 0x114   : > { %v995_v11 = vpop.f32.mrf.mxu1 }
 0x115   : > { %707 = vst [vmem:[#allocation2] sm:$0xff] %v703_v7  ;;  %v696_v12 = vadd.f32 %v994_v8, %v966_v5  ;;  %v968_v13 = vpop.f32.mrf.mxu0 }
 0x116   : > { %v969_v14 = vadd.f32 %v968_v13, %v967_v9  ;;  %v996_v15 = vpop.f32.mrf.mxu1 }
 0x117   : > { %v704_v16 = vadd.f32 %v696_v12, %v298_v10  ;;  %v997_v17 = vadd.f32 %v996_v15, %v995_v11 }
 0x119   : > { %708 = vst [vmem:[#allocation2 + $0x18] sm:$0xff] %v704_v16  ;;  %v699_v19 = vadd.f32 %v997_v17, %v969_v14  ;;  %713 = sbr.rel (%p916_p11) target bundleno = 300 (0x12c), region = 63 }
 0x11b   : > { %v705_v20 = vadd.f32 %v699_v19, %v299_v18 }
 0x11d   : > { %709 = vst [vmem:[#allocation2 + $0x8] sm:$0xff] %v705_v20 }
 0x11e   : > { %v714_v21 = vld [vmem:[#allocation2 + $0x10] sm:$0xff]  ;;  %v715_v22 = vld [vmem:[#allocation2] sm:$0xff] }
 0x11f   : > { %v917_v23 = vld [vmem:[%s1266_s2] ss:$0 sm:$0xff] }
 0x120   : > { %v725_v24 = vadd.f32 %v917_v23, %v714_v21  ;;  %v726_v25 = vadd.f32 %v917_v23, %v715_v22  ;;  %v716_v26 = vld [vmem:[#allocation2 + $0x18] sm:$0xff] }
 0x121   : > { %v727_v28 = vadd.f32 %v917_v23, %v716_v26 }
 0x122   : > { %v729_v30 = vmax.f32 %v725_v24, 0.0  ;;  %v730_v31 = vmax.f32 %v726_v25, 0.0 }
 0x123   : > { %v731_v32 = vmax.f32 %v727_v28, 0.0 }
 0x124   : > { %v717_v27 = vld [vmem:[#allocation2 + $0x8] sm:$0xff]  ;;  %v934_v34 = vpack.c.bf16 %v730_v31, %v729_v30 }
 0x125   : > { %v728_v29 = vadd.f32 %v917_v23, %v717_v27 }
 0x126   : > { %935 = vst [vmem:[%s1267_s3] sm:$0xff] %v934_v34  }
 0x127   : > { %v732_v33 = vmax.f32 %v728_v29, 0.0 }
 0x129   : > { %v939_v35 = vpack.c.bf16 %v732_v33, %v731_v32 }
 0x12b   : > { %941 = vst [vmem:[%s1267_s3 + $0x8] sm:$0xff] %v939_v35  }
 0x12c PF: > { %s13_s16 = sadd.s32 1, %s1121_s16   ;;  %s1268_s12 = smov %s1109_s13 }
 0x12d   : > { %p10_p12 = scmp.ge.s32.totalorder %s13_s16, 5   ;;  %s1269_s13 = smov %s1179_s20 }
 0x12e   : > { %s1270_s14 = smov %s1117_s15  ;;  %s1271_s15 = smov %s1273_s17 }
 0x12f   :  { %12 = sbr.rel (!%p10_p12) target bundleno = 3 (0x3), region = 104 }

// kernel: vqa_forward.31
= control target key start
LH: loop header
LB: loop body
LE: loop exit
PB: predicated region body
PF: predicated region fallthrough
CT: control target
= control target key end

     0   :  { %s1272_s12 = smov 0   ;;  %s1274_s13 = smov 0   ;;  %s1420_s0 = inlined_call_operand.vmem [shape: bf16[16,1536], index: 0, kind: input, shape index: {}]   ;;  %s1421_s1 = inlined_call_operand.vmem [shape: bf16[1536,256], index: 1, kind: input, shape index: {}]   ;;  %s1422_s2 = inlined_call_operand.vmem [shape: f32[1,256], index: 2, kind: input, shape index: {}]   ;;  %s1423_s3 = inlined_call_operand.vmem [shape: bf16[16,256], index: 3, kind: output, shape index: {}]  }
   0x1   :  { %s1276_s14 = smov 0   ;;  %s1278_s15 = smov 0  }
   0x2   :  { %s1280_s16 = smov 0  }
   0x3 LB: > { %s25_s17 = sadd.s32 1, %s1245_s15  ;;  %p48_p1 = scmp.ne.s32.totalorder %s1237_s13, %s1233_s12  ;;  %s1249_s16 = sphi %s1280_s16, %s13_s16   ;;  %s1245_s15 = sphi %s1278_s15, %s1427_s15   ;;  %s1241_s14 = sphi %s1276_s14, %s1426_s14   ;;  %s1237_s13 = sphi %s1274_s13, %s1425_s13   ;;  %s1233_s12 = sphi %s1272_s12, %s1424_s12  }
   0x4   : > { %p26_p0 = scmp.ge.s32.totalorder %s25_s17, 3  ;;  %p49_p2 = scmp.eq.s32.totalorder %s1249_s16, 0 }
   0x5   : > { %s41_s19 = sadd.s32 1, %s1237_s13  ;;  %p979_p5 = scmp.ge.s32.totalorder %s1249_s16, 3 }
   0x6   : > { %s1429_s17 = smov (%p26_p0, %s25_s17), 0  ;;  %p50_p3 = por %p49_p2, %p48_p1 }
   0x7   : > { %s37_s18 = ssub.s32 %s1245_s15, %s1429_s17  ;;  %164 = sbr.rel (%p979_p5) target bundleno = 18 (0x12), region = 20 }
   0x8   : > { %p39_p4 = scmp.eq.s32.totalorder %s37_s18, 0 }
   0xa   : > { %s1307_s20 = scalar_select %p39_p4, %s1237_s13, %s41_s19  }
   0xc   : > { %167 = sbr.rel (!%p50_p3) target bundleno = 18 (0x12), region = 24  ;;  %s169_s21 = sand.u32 (%p50_p3), 1, %s1237_s13  }
   0xd   : > { %s1064_s22 = sshll.u32 (%p50_p3), %s1245_s15, 4  ;;  %s980_s23 = sshll.u32 (%p50_p3), %s169_s21, 5 }
   0xe   : > { %s177_s26 = scalar_lea.vmem (%p50_p3), %s1420_s0, %s1064_s22  ;;  %s171_s27 = scalar_lea.vmem (%p50_p3), [#allocation3], %s980_s23 }
   0xf   : > { %v190_v0 = vld [vmem:[%s177_s26] sm:$0xff] (%p50_p3)  ;;  %v192_v1 = vld [vmem:[%s177_s26 + $0x8] sm:$0xff] (%p50_p3)  ;;  %v194_v2 = vld [vmem:[%s177_s26 + $0x30] sm:$0xff] (%p50_p3) }
  0x10   : > { %191 = vst [vmem:[%s171_s27] sm:$0xff] (%p50_p3), %v190_v0  ;;  %193 = vst [vmem:[%s171_s27 + $0x8] sm:$0xff] (%p50_p3), %v192_v1  ;;  %v196_v3 = vld [vmem:[%s177_s26 + $0x38] sm:$0xff] (%p50_p3) }
  0x11   : > { %195 = vst [vmem:[%s171_s27 + $0x10] sm:$0xff] %v194_v2  ;;  %197 = vst [vmem:[%s171_s27 + $0x18] sm:$0xff] %v196_v3 }
  0x12 PF: > { %p983_p6 = scmp.ge.s32.totalorder %s1249_s16, 1  ;;  %p217_p7 = scmp.lt.s32.totalorder %s1249_s16, 4 }
  0x14   : > { %p218_p8 = pnand %p983_p6, %p217_p7 }
  0x15   : > { %s224_s28 = sand.u32 (!%p218_p8), 1, %s1233_s12   ;;  %s985_s29 = sshll.u32 (!%p218_p8), %s1241_s14, 6 }
  0x16   : > { %221 = sbr.rel (%p218_p8) target bundleno = 320 (0x140), region = 51  ;;  %s984_s30 = sshll.u32 (!%p218_p8), %s224_s28, 5 }
  0x17   : > { %p270_p9 = scmp.lt.s32.totalorder (!%p218_p8), %s985_s29, 191  ;;  %s1324_s8 = scalar_lea.vmem (!%p218_p8), [#allocation3], %s984_s30 }
  0x18   : > { %p988_p10 = scmp.ne.s32.totalorder (!%p218_p8), %s1241_s14, 0 }
  0x1b   : > { %s1431_s29 = smov (!%p270_p9, %s985_s29), 191  ;;  %300 = sbr.rel (%p988_p10) target bundleno = 35 (0x23), region = 59 }
  0x1c   : > { %s1065_s4 = sshll.u32 %s1431_s29, 3 }
  0x1d   : > { %s1322_s7 = scalar_lea.vmem %s1421_s1, %s1065_s4 }
  0x20   : > { %v1251_v4 = vmov 0.0  }
  0x21   : > { %301 = vst [vmem:[#allocation2 + $0x10] sm:$0xff] %v1251_v4  ;;  %302 = vst [vmem:[#allocation2] sm:$0xff] %v1251_v4 }
  0x22   : > { %303 = vst [vmem:[#allocation2 + $0x18] sm:$0xff] %v1251_v4  ;;  %304 = vst [vmem:[#allocation2 + $0x8] sm:$0xff] %v1251_v4 }
  0x23 PF: > { %v1109_v5 = vld [vmem:[%s1322_s7 + $0x74] ss:$8 sps:$4 sm:$0xff]   ;;  %v1113_v7 = vld [vmem:[%s1322_s7 + $0x70] ss:$8 sps:$4 sm:$0xff]   ;;  %v1115_v9 = vld [vmem:[%s1322_s7 + $0x64] ss:$8 sps:$4 sm:$0xff]  }
  0x24   : > { %v1111_v6 = vld [vmem:[%s1322_s7 + $0x174] ss:$8 sps:$4 sm:$0xff]   ;;  %717 = vmatprep.subr.bf16.mxu0 %v1109_v5  ;;  %v1114_v8 = vld [vmem:[%s1322_s7 + $0x170] ss:$8 sps:$4 sm:$0xff]   ;;  %v1117_v10 = vld [vmem:[%s1322_s7 + $0x164] ss:$8 sps:$4 sm:$0xff]  }
  0x25   : > { %760 = vmatprep.subr.bf16.mxu1 %v1111_v6  ;;  %718 = vmatpush1.bf16.msra.mxu0 %v1113_v7  ;;  %v1119_v11 = vld [vmem:[%s1322_s7 + $0x60] ss:$8 sps:$4 sm:$0xff]   ;;  %v1121_v13 = vld [vmem:[%s1322_s7 + $0x54] ss:$8 sps:$4 sm:$0xff]   ;;  %v1125_v15 = vld [vmem:[%s1322_s7 + $0x50] ss:$8 sps:$4 sm:$0xff]  }
  0x26   : > { %761 = vmatpush1.bf16.msra.mxu1 %v1114_v8  ;;  %719 = vmatprep.subr.bf16.mxu0 %v1115_v9  ;;  %v1120_v12 = vld [vmem:[%s1322_s7 + $0x160] ss:$8 sps:$4 sm:$0xff]   ;;  %v1123_v14 = vld [vmem:[%s1322_s7 + $0x154] ss:$8 sps:$4 sm:$0xff]   ;;  %v1126_v16 = vld [vmem:[%s1322_s7 + $0x150] ss:$8 sps:$4 sm:$0xff]  }
  0x27   : > { %762 = vmatprep.subr.bf16.mxu1 %v1117_v10  ;;  %v1127_v17 = vld [vmem:[%s1322_s7 + $0x44] ss:$8 sps:$4 sm:$0xff]   ;;  %v1131_v19 = vld [vmem:[%s1322_s7 + $0x40] ss:$8 sps:$4 sm:$0xff]   ;;  %v1133_v21 = vld [vmem:[%s1322_s7 + $0x34] ss:$8 sps:$4 sm:$0xff]  }
  0x28   : > { %v1129_v18 = vld [vmem:[%s1322_s7 + $0x144] ss:$8 sps:$4 sm:$0xff]   ;;  %v1132_v20 = vld [vmem:[%s1322_s7 + $0x140] ss:$8 sps:$4 sm:$0xff]   ;;  %v1135_v22 = vld [vmem:[%s1322_s7 + $0x134] ss:$8 sps:$4 sm:$0xff]  }
  0x29   : > { %720 = vmatpush1.bf16.msra.mxu0 %v1119_v11  ;;  %v1137_v23 = vld [vmem:[%s1322_s7 + $0x30] ss:$8 sps:$4 sm:$0xff]   ;;  %v1139_v25 = vld [vmem:[%s1322_s7 + $0x24] ss:$8 sps:$4 sm:$0xff]   ;;  %v1143_v27 = vld [vmem:[%s1322_s7 + $0x20] ss:$8 sps:$4 sm:$0xff]  }
  0x2a   : > { %763 = vmatpush1.bf16.msra.mxu1 %v1120_v12  ;;  %721 = vmatprep.subr.bf16.mxu0 %v1121_v13  ;;  %v1138_v24 = vld [vmem:[%s1322_s7 + $0x130] ss:$8 sps:$4 sm:$0xff]   ;;  %v1141_v26 = vld [vmem:[%s1322_s7 + $0x124] ss:$8 sps:$4 sm:$0xff]   ;;  %v1144_v28 = vld [vmem:[%s1322_s7 + $0x120] ss:$8 sps:$4 sm:$0xff]  }
  0x2b   : > { %764 = vmatprep.subr.bf16.mxu1 %v1123_v14  ;;  %v1145_v29 = vld [vmem:[%s1322_s7 + $0x14] ss:$8 sps:$4 sm:$0xff]   ;;  %v1149_v31 = vld [vmem:[%s1322_s7 + $0x10] ss:$8 sps:$4 sm:$0xff]   ;;  %v1151_v33 = vld [vmem:[%s1322_s7 + $0x4] ss:$8 sps:$4 sm:$0xff]  }
  0x2c   : > { %v1147_v30 = vld [vmem:[%s1322_s7 + $0x114] ss:$8 sps:$4 sm:$0xff]   ;;  %v1150_v32 = vld [vmem:[%s1322_s7 + $0x110] ss:$8 sps:$4 sm:$0xff]   ;;  %v1153_v34 = vld [vmem:[%s1322_s7 + $0x104] ss:$8 sps:$4 sm:$0xff]  }
  0x2d   : > { %722 = vmatpush1.bf16.msra.mxu0 %v1125_v15  ;;  %v1155_v35 = vld [vmem:[%s1322_s7] ss:$8 sps:$4 sm:$0xff]   ;;  %v1157_v37 = vld [vmem:[%s1322_s7 + $0xf4] ss:$8 sps:$4 sm:$0xff]   ;;  %v1161_v39 = vld [vmem:[%s1322_s7 + $0xf0] ss:$8 sps:$4 sm:$0xff]  }
  0x2e   : > { %765 = vmatpush1.bf16.msra.mxu1 %v1126_v16  ;;  %723 = vmatprep.subr.bf16.mxu0 %v1127_v17  ;;  %v1156_v36 = vld [vmem:[%s1322_s7 + $0x100] ss:$8 sps:$4 sm:$0xff]   ;;  %v1159_v38 = vld [vmem:[%s1322_s7 + $0x1f4] ss:$8 sps:$4 sm:$0xff]   ;;  %v1162_v40 = vld [vmem:[%s1322_s7 + $0x1f0] ss:$8 sps:$4 sm:$0xff]  }
  0x2f   : > { %766 = vmatprep.subr.bf16.mxu1 %v1129_v18  ;;  %v1163_v41 = vld [vmem:[%s1322_s7 + $0xe4] ss:$8 sps:$4 sm:$0xff]   ;;  %v1167_v43 = vld [vmem:[%s1322_s7 + $0xe0] ss:$8 sps:$4 sm:$0xff]   ;;  %v1169_v45 = vld [vmem:[%s1322_s7 + $0xd4] ss:$8 sps:$4 sm:$0xff]  }
  0x30   : > { %v1165_v42 = vld [vmem:[%s1322_s7 + $0x1e4] ss:$8 sps:$4 sm:$0xff]   ;;  %v1168_v44 = vld [vmem:[%s1322_s7 + $0x1e0] ss:$8 sps:$4 sm:$0xff]   ;;  %v1171_v46 = vld [vmem:[%s1322_s7 + $0x1d4] ss:$8 sps:$4 sm:$0xff]  }
  0x31   : > { %724 = vmatpush1.bf16.msra.mxu0 %v1131_v19  ;;  %v1173_v47 = vld [vmem:[%s1322_s7 + $0xd0] ss:$8 sps:$4 sm:$0xff]   ;;  %v1175_v49 = vld [vmem:[%s1322_s7 + $0xc4] ss:$8 sps:$4 sm:$0xff]   ;;  %v1179_v51 = vld [vmem:[%s1322_s7 + $0xc0] ss:$8 sps:$4 sm:$0xff]  }
  0x32   : > { %767 = vmatpush1.bf16.msra.mxu1 %v1132_v20  ;;  %725 = vmatprep.subr.bf16.mxu0 %v1133_v21  ;;  %v1174_v48 = vld [vmem:[%s1322_s7 + $0x1d0] ss:$8 sps:$4 sm:$0xff]   ;;  %v1177_v50 = vld [vmem:[%s1322_s7 + $0x1c4] ss:$8 sps:$4 sm:$0xff]   ;;  %v1180_v53 = vld [vmem:[%s1322_s7 + $0x1c0] ss:$8 sps:$4 sm:$0xff]  }
  0x33   : > { %768 = vmatprep.subr.bf16.mxu1 %v1135_v22  ;;  %v1207_v52 = vld [vmem:[%s1324_s8 + $0x4] ss:$16 sps:$4 sm:$0xff]   ;;  %v1210_v56 = vld [vmem:[%s1324_s8 + $0xc] ss:$16 sps:$4 sm:$0xff]   ;;  %v1185_v57 = vld [vmem:[%s1322_s7 + $0xb0] ss:$8 sps:$4 sm:$0xff]  }
  0x34   : > { %v1181_v54 = vld [vmem:[%s1322_s7 + $0xb4] ss:$8 sps:$4 sm:$0xff]   ;;  %749 = vmatprep.mubr.bf16.mxu0 %v1207_v52  ;;  %792 = vmatprep.mubr.bf16.mxu1 %v1210_v56  ;;  %v1186_v58 = vld [vmem:[%s1322_s7 + $0x1b0] ss:$8 sps:$4 sm:$0xff]   ;;  %v1187_v59 = vld [vmem:[%s1322_s7 + $0xa4] ss:$8 sps:$4 sm:$0xff]  }
  0x35   : > { %726 = vmatpush1.bf16.msra.mxu0 %v1137_v23  ;;  %v1183_v55 = vld [vmem:[%s1322_s7 + $0x1b4] ss:$8 sps:$4 sm:$0xff]   ;;  %v1189_v60 = vld [vmem:[%s1322_s7 + $0x1a4] ss:$8 sps:$4 sm:$0xff]   ;;  %v1191_v61 = vld [vmem:[%s1322_s7 + $0xa0] ss:$8 sps:$4 sm:$0xff]  }
  0x36   : > { %769 = vmatpush1.bf16.msra.mxu1 %v1138_v24  ;;  %727 = vmatprep.subr.bf16.mxu0 %v1139_v25  ;;  %v1192_v62 = vld [vmem:[%s1322_s7 + $0x1a0] ss:$8 sps:$4 sm:$0xff]   ;;  %v1193_v63 = vld [vmem:[%s1322_s7 + $0x94] ss:$8 sps:$4 sm:$0xff]   ;;  %v1197_v1 = vld [vmem:[%s1322_s7 + $0x90] ss:$8 sps:$4 sm:$0xff]  }
  0x37   : > { %770 = vmatprep.subr.bf16.mxu1 %v1141_v26  ;;  %v1195_v0 = vld [vmem:[%s1322_s7 + $0x194] ss:$8 sps:$4 sm:$0xff]   ;;  %v1198_v2 = vld [vmem:[%s1322_s7 + $0x190] ss:$8 sps:$4 sm:$0xff]   ;;  %v1199_v3 = vld [vmem:[%s1322_s7 + $0x84] ss:$8 sps:$4 sm:$0xff]  }
  0x38   : > { %v1201_v4 = vld [vmem:[%s1322_s7 + $0x184] ss:$8 sps:$4 sm:$0xff]   ;;  %v1203_v5 = vld [vmem:[%s1322_s7 + $0x80] ss:$8 sps:$4 sm:$0xff]   ;;  %v305_v10 = vld [vmem:[#allocation2 + $0x10] sm:$0xff]  ;;  %p1057_p11 = scmp.ne.s32.totalorder %s1241_s14, 2 }
  0x39   : > { %728 = vmatpush1.bf16.msra.mxu0 %v1143_v27  ;;  %v1204_v6 = vld [vmem:[%s1322_s7 + $0x180] ss:$8 sps:$4 sm:$0xff]   ;;  %v307_v19 = vld [vmem:[#allocation2 + $0x18] sm:$0xff] }
  0x3a   : > { %771 = vmatpush1.bf16.msra.mxu1 %v1144_v28  ;;  %729 = vmatprep.subr.bf16.mxu0 %v1145_v29  ;;  %v1205_v7 = vld [vmem:[%s1324_s8] ss:$16 sps:$4 sm:$0xff]   ;;  %v1208_v8 = vld [vmem:[%s1324_s8 + $0x8] ss:$16 sps:$4 sm:$0xff]  }
  0x3b   : > { %772 = vmatprep.subr.bf16.mxu1 %v1147_v30  ;;  %v306_v14 = vld [vmem:[#allocation2] sm:$0xff]  ;;  %v308_v24 = vld [vmem:[#allocation2 + $0x8] sm:$0xff] }
  0x3d   : > { %730 = vmatpush1.bf16.msra.mxu0 %v1149_v31 }
  0x3e   : > { %773 = vmatpush1.bf16.msra.mxu1 %v1150_v32  ;;  %731 = vmatprep.subr.bf16.mxu0 %v1151_v33 }
  0x3f   : > { %774 = vmatprep.subr.bf16.mxu1 %v1153_v34 }
  0x41   : > { %732 = vmatpush1.bf16.msra.mxu0 %v1155_v35 }
  0x42   : > { %775 = vmatpush1.bf16.msra.mxu1 %v1156_v36  ;;  %733 = vmatprep.subr.bf16.mxu0 %v1157_v37 }
  0x43   : > { %776 = vmatprep.subr.bf16.mxu1 %v1159_v38 }
  0x45   : > { %734 = vmatpush2.bf16.msra.mxu0 %v1161_v39 }
  0x46   : > { %777 = vmatpush2.bf16.msra.mxu1 %v1162_v40  ;;  %735 = vmatprep.subr.bf16.mxu0 %v1163_v41 }
  0x47   : > { %778 = vmatprep.subr.bf16.mxu1 %v1165_v42 }
  0x49   : > { %736 = vmatpush2.bf16.msra.mxu0 %v1167_v43 }
  0x4a   : > { %779 = vmatpush2.bf16.msra.mxu1 %v1168_v44  ;;  %737 = vmatprep.subr.bf16.mxu0 %v1169_v45 }
  0x4b   : > { %780 = vmatprep.subr.bf16.mxu1 %v1171_v46 }
  0x4d   : > { %738 = vmatpush2.bf16.msra.mxu0 %v1173_v47 }
  0x4e   : > { %781 = vmatpush2.bf16.msra.mxu1 %v1174_v48  ;;  %739 = vmatprep.subr.bf16.mxu0 %v1175_v49 }
  0x4f   : > { %782 = vmatprep.subr.bf16.mxu1 %v1177_v50 }
  0x51   : > { %740 = vmatpush2.bf16.msra.mxu0 %v1179_v51 }
  0x52   : > { %783 = vmatpush2.bf16.msra.mxu1 %v1180_v53  ;;  %741 = vmatprep.subr.bf16.mxu0 %v1181_v54 }
  0x53   : > { %784 = vmatprep.subr.bf16.mxu1 %v1183_v55 }
  0x55   : > { %742 = vmatpush2.bf16.msra.mxu0 %v1185_v57 }
  0x56   : > { %785 = vmatpush2.bf16.msra.mxu1 %v1186_v58  ;;  %743 = vmatprep.subr.bf16.mxu0 %v1187_v59 }
  0x57   : > { %786 = vmatprep.subr.bf16.mxu1 %v1189_v60 }
  0x59   : > { %744 = vmatpush2.bf16.msra.mxu0 %v1191_v61 }
  0x5a   : > { %787 = vmatpush2.bf16.msra.mxu1 %v1192_v62  ;;  %745 = vmatprep.subr.bf16.mxu0 %v1193_v63 }
  0x5b   : > { %788 = vmatprep.subr.bf16.mxu1 %v1195_v0 }
  0x5d   : > { %746 = vmatpush2.bf16.msra.mxu0 %v1197_v1 }
  0x5e   : > { %789 = vmatpush2.bf16.msra.mxu1 %v1198_v2  ;;  %747 = vmatprep.subr.bf16.mxu0 %v1199_v3 }
  0x5f   : > { %790 = vmatprep.subr.bf16.mxu1 %v1201_v4 }
  0x61   : > { %748 = vmatpush2.bf16.msra.mxu0 %v1203_v5 }
  0x62   : > { %791 = vmatpush2.bf16.msra.mxu1 %v1204_v6 }
  0x64   : > { %750 = vmatmul.mubr.bf16.vlgmr.msra.gmra.mxu0 %v1205_v7 }
  0x65   : > { %793 = vmatmul.mubr.bf16.vlgmr.msra.gmra.mxu1 %v1208_v8 }
 0x124   : > { %v751_v9 = vpop.f32.mrf.mxu0 }
 0x125   : > { %v794_v11 = vpop.f32.mrf.mxu1 }
 0x126   : > { %v795_v12 = vadd.f32 %v794_v11, %v751_v9  ;;  %v753_v13 = vpop.f32.mrf.mxu0 }
 0x127   : > { %v796_v15 = vpop.f32.mrf.mxu1 }
 0x128   : > { %v803_v16 = vadd.f32 %v795_v12, %v305_v10  ;;  %v797_v17 = vadd.f32 %v796_v15, %v753_v13  ;;  %v755_v18 = vpop.f32.mrf.mxu0 }
 0x129   : > { %v798_v20 = vpop.f32.mrf.mxu1 }
 0x12a   : > { %807 = vst [vmem:[#allocation2 + $0x10] sm:$0xff] %v803_v16  ;;  %v804_v21 = vadd.f32 %v797_v17, %v306_v14  ;;  %v799_v22 = vadd.f32 %v798_v20, %v755_v18  ;;  %v757_v23 = vpop.f32.mrf.mxu0 }
 0x12b   : > { %v800_v25 = vpop.f32.mrf.mxu1 }
 0x12c   : > { %808 = vst [vmem:[#allocation2] sm:$0xff] %v804_v21  ;;  %v805_v26 = vadd.f32 %v799_v22, %v307_v19  ;;  %v801_v27 = vadd.f32 %v800_v25, %v757_v23  ;;  %814 = sbr.rel (%p1057_p11) target bundleno = 320 (0x140), region = 63 }
 0x12e   : > { %809 = vst [vmem:[#allocation2 + $0x18] sm:$0xff] %v805_v26  ;;  %v806_v28 = vadd.f32 %v801_v27, %v308_v24 }
 0x130   : > { %810 = vst [vmem:[#allocation2 + $0x8] sm:$0xff] %v806_v28 }
 0x131   : > { %v821_v29 = vlaneseq  ;;  %v819_v31 = vld [vmem:[%s1422_s2] sm:$0x3]  ;;  %v815_v32 = vld [vmem:[#allocation2 + $0x10] sm:$0xff] }
 0x133   : > { %v822_v30 = vshrl.u32 %v821_v29, 7  ;;  %v816_v35 = vld [vmem:[#allocation2] sm:$0xff] }
 0x135   : > { %v823_v33 = vsub.s32 0, %v822_v30  ;;  %v827_v34 = vsub.s32 1, %v822_v30  ;;  %v817_v36 = vld [vmem:[#allocation2 + $0x18] sm:$0xff] }
 0x137   : > { %v818_v37 = vld [vmem:[#allocation2 + $0x8] sm:$0xff]  ;;  %v824_v38 = vrot.slane %v819_v31, %v823_v33  ;;  %v828_v39 = vrot.slane %v819_v31, %v827_v34 }
 0x139   : > { %v831_v40 = vadd.f32 %v824_v38, %v815_v32  ;;  %v832_v41 = vadd.f32 %v828_v39, %v816_v35  ;;  %v833_v42 = vadd.f32 %v824_v38, %v817_v36  ;;  %v834_v43 = vadd.f32 %v828_v39, %v818_v37 }
 0x13b   : > { %v835_v44 = vmax.f32 %v831_v40, 0.0  ;;  %v836_v45 = vmax.f32 %v832_v41, 0.0  ;;  %v837_v46 = vmax.f32 %v833_v42, 0.0  ;;  %v838_v47 = vmax.f32 %v834_v43, 0.0 }
 0x13d   : > { %v1066_v48 = vpack.c.bf16 %v836_v45, %v835_v44  ;;  %v1067_v49 = vpack.c.bf16 %v838_v47, %v837_v46 }
 0x13f   : > { %851 = vst [vmem:[%s1423_s3] sm:$0xff] %v1066_v48  ;;  %852 = vst [vmem:[%s1423_s3 + $0x8] sm:$0xff] %v1067_v49 }
 0x140 PF: > { %s13_s16 = sadd.s32 1, %s1249_s16   ;;  %s1424_s12 = smov %s1237_s13 }
 0x141   : > { %p10_p12 = scmp.ge.s32.totalorder %s13_s16, 5   ;;  %s1425_s13 = smov %s1307_s20 }
 0x142   : > { %s1426_s14 = smov %s1245_s15  ;;  %s1427_s15 = smov %s1429_s17 }
 0x143   :  { %12 = sbr.rel (!%p10_p12) target bundleno = 3 (0x3), region = 104 }

// kernel: vqa_forward.32
= control target key start
LH: loop header
LB: loop body
LE: loop exit
PB: predicated region body
PF: predicated region fallthrough
CT: control target
= control target key end

     0   :  { %v270_v1 = vmov 0   ;;  %v191_v18 = vlaneseq  ;;  %s351_s1 = inlined_call_operand.vmem [shape: bf16[128,256], index: 1, kind: input, shape index: {}]   ;;  %s352_s0 = inlined_call_operand.vmem [shape: bf16[16,128], index: 0, kind: input, shape index: {}]   ;;  %s353_s2 = inlined_call_operand.vmem [shape: f32[1,256], index: 2, kind: input, shape index: {}]   ;;  %s354_s3 = inlined_call_operand.vmem [shape: bf16[16,256], index: 3, kind: output, shape index: {}]  }
   0x1   :  { %v245_v0 = vld [vmem:[%s351_s1 + $0x74] ss:$8 sps:$4 sm:$0xff]   ;;  %163 = vmatprep.mubr.bf16.mxu0 %v270_v1  ;;  %v247_v2 = vld [vmem:[%s351_s1 + $0x70] ss:$8 sps:$4 sm:$0xff]   ;;  %v248_v3 = vld [vmem:[%s351_s1 + $0x64] ss:$8 sps:$4 sm:$0xff]  }
   0x2   :  { %131 = vmatprep.subr.bf16.mxu0 %v245_v0  ;;  %v250_v4 = vld [vmem:[%s351_s1 + $0x60] ss:$8 sps:$4 sm:$0xff]   ;;  %v251_v5 = vld [vmem:[%s351_s1 + $0x54] ss:$8 sps:$4 sm:$0xff]   ;;  %v253_v6 = vld [vmem:[%s351_s1 + $0x50] ss:$8 sps:$4 sm:$0xff]  }
   0x3   :  { %132 = vmatpush1.bf16.msra.mxu0 %v247_v2  ;;  %v254_v7 = vld [vmem:[%s351_s1 + $0x44] ss:$8 sps:$4 sm:$0xff]   ;;  %v256_v8 = vld [vmem:[%s351_s1 + $0x40] ss:$8 sps:$4 sm:$0xff]   ;;  %v257_v9 = vld [vmem:[%s351_s1 + $0x34] ss:$8 sps:$4 sm:$0xff]  }
   0x4   :  { %133 = vmatprep.subr.bf16.mxu0 %v248_v3  ;;  %v259_v10 = vld [vmem:[%s351_s1 + $0x30] ss:$8 sps:$4 sm:$0xff]   ;;  %v260_v11 = vld [vmem:[%s351_s1 + $0x24] ss:$8 sps:$4 sm:$0xff]   ;;  %v262_v12 = vld [vmem:[%s351_s1 + $0x20] ss:$8 sps:$4 sm:$0xff]  }
   0x5   :  { %v263_v13 = vld [vmem:[%s351_s1 + $0x14] ss:$8 sps:$4 sm:$0xff]   ;;  %v265_v14 = vld [vmem:[%s351_s1 + $0x10] ss:$8 sps:$4 sm:$0xff]   ;;  %v266_v15 = vld [vmem:[%s351_s1 + $0x4] ss:$8 sps:$4 sm:$0xff]  }
   0x6   :  { %v268_v16 = vld [vmem:[%s351_s1] ss:$8 sps:$4 sm:$0xff]   ;;  %v192_v19 = vshrl.u32 %v191_v18, 7 }
   0x7   :  { %134 = vmatpush1.bf16.msra.mxu0 %v250_v4  ;;  %v269_v17 = vld [vmem:[%s352_s0] sm:$0xff]  }
   0x8   :  { %135 = vmatprep.subr.bf16.mxu0 %v251_v5  ;;  %v193_v20 = vsub.s32 0, %v192_v19  ;;  %v197_v21 = vsub.s32 1, %v192_v19  ;;  %v189_v22 = vld [vmem:[%s353_s2] sm:$0x3] }
   0xa   :  { %v194_v23 = vrot.slane %v189_v22, %v193_v20  ;;  %v198_v24 = vrot.slane %v189_v22, %v197_v21 }
   0xb   :  { %136 = vmatpush1.bf16.msra.mxu0 %v253_v6 }
   0xc   :  { %137 = vmatprep.subr.bf16.mxu0 %v254_v7 }
   0xf   :  { %138 = vmatpush1.bf16.msra.mxu0 %v256_v8 }
  0x10   :  { %139 = vmatprep.subr.bf16.mxu0 %v257_v9 }
  0x13   :  { %140 = vmatpush1.bf16.msra.mxu0 %v259_v10 }
  0x14   :  { %141 = vmatprep.subr.bf16.mxu0 %v260_v11 }
  0x17   :  { %142 = vmatpush1.bf16.msra.mxu0 %v262_v12 }
  0x18   :  { %143 = vmatprep.subr.bf16.mxu0 %v263_v13 }
  0x1b   :  { %144 = vmatpush1.bf16.msra.mxu0 %v265_v14 }
  0x1c   :  { %145 = vmatprep.subr.bf16.mxu0 %v266_v15 }
  0x1f   :  { %146 = vmatpush1.bf16.msra.mxu0 %v268_v16 }
  0x22   :  { %164 = vmatmul.mubr.bf16.vlgmr.msra.gmra.mxu0 %v269_v17 }
  0xe2   :  { %v165_v25 = vpop.f32.mrf.mxu0 }
  0xe3   :  { %v201_v27 = vadd.f32 %v194_v23, %v165_v25 }
  0xe4   :  { %v167_v26 = vpop.f32.mrf.mxu0 }
  0xe5   :  { %v202_v28 = vadd.f32 %v198_v24, %v167_v26 }
  0xe6   :  { %v169_v29 = vpop.f32.mrf.mxu0 }
  0xe7   :  { %v242_v30 = vpack.c.bf16 %v202_v28, %v201_v27  ;;  %v203_v32 = vadd.f32 %v194_v23, %v169_v29 }
  0xe8   :  { %v171_v31 = vpop.f32.mrf.mxu0 }
  0xe9   :  { %217 = vst [vmem:[%s354_s3] sm:$0xff] %v242_v30  ;;  %v204_v33 = vadd.f32 %v198_v24, %v171_v31 }
  0xeb   :  { %v243_v34 = vpack.c.bf16 %v204_v33, %v203_v32 }
  0xed   :  { %218 = vst [vmem:[%s354_s3 + $0x8] sm:$0xff] %v243_v34 }

// kernel: vqa_forward.33
= control target key start
LH: loop header
LB: loop body
LE: loop exit
PB: predicated region body
PF: predicated region fallthrough
CT: control target
= control target key end

     0   :  { %s1377_s15 = smov 0   ;;  %s1379_s16 = smov 0   ;;  %s1531_s0 = inlined_call_operand.vmem [shape: bf16[16,2560], index: 0, kind: input, shape index: {}]   ;;  %s1532_s1 = inlined_call_operand.vmem [shape: bf16[2560,256], index: 1, kind: input, shape index: {}]   ;;  %s1533_s2 = inlined_call_operand.vmem [shape: f32[1,256], index: 2, kind: input, shape index: {}]   ;;  %s1534_s3 = inlined_call_operand.vmem [shape: bf16[16,256], index: 3, kind: input, shape index: {}]   ;;  %s1535_s4 = inlined_call_operand.vmem [shape: bf16[16,256], index: 4, kind: output, shape index: {}]  }
   0x1   :  { %s1381_s17 = smov 0   ;;  %s1383_s18 = smov 0  }
   0x2   :  { %s1385_s19 = smov 0  }
   0x3 LB: > { %s26_s20 = sadd.s32 1, %s1345_s18  ;;  %p49_p1 = scmp.ne.s32.totalorder %s1337_s16, %s1333_s15  ;;  %s1349_s19 = sphi %s1385_s19, %s14_s19   ;;  %s1345_s18 = sphi %s1383_s18, %s1539_s18   ;;  %s1341_s17 = sphi %s1381_s17, %s1538_s17   ;;  %s1337_s16 = sphi %s1379_s16, %s1537_s16   ;;  %s1333_s15 = sphi %s1377_s15, %s1536_s15  }
   0x4   : > { %p27_p0 = scmp.ge.s32.totalorder %s26_s20, 5  ;;  %p50_p2 = scmp.eq.s32.totalorder %s1349_s19, 0 }
   0x5   : > { %s42_s22 = sadd.s32 1, %s1337_s16  ;;  %p1079_p5 = scmp.ge.s32.totalorder %s1349_s19, 5 }
   0x6   : > { %s1541_s20 = smov (%p27_p0, %s26_s20), 0  ;;  %p51_p3 = por %p50_p2, %p49_p1 }
   0x7   : > { %s38_s21 = ssub.s32 %s1345_s18, %s1541_s20  ;;  %208 = sbr.rel (%p1079_p5) target bundleno = 18 (0x12), region = 24 }
   0x8   : > { %p40_p4 = scmp.eq.s32.totalorder %s38_s21, 0 }
   0xa   : > { %s1412_s23 = scalar_select %p40_p4, %s1337_s16, %s42_s22  }
   0xc   : > { %211 = sbr.rel (!%p51_p3) target bundleno = 18 (0x12), region = 28  ;;  %s213_s24 = sand.u32 (%p51_p3), 1, %s1337_s16  }
   0xd   : > { %s1164_s25 = sshll.u32 (%p51_p3), %s1345_s18, 4  ;;  %s1080_s26 = sshll.u32 (%p51_p3), %s213_s24, 5 }
   0xe   : > { %s221_s29 = scalar_lea.vmem (%p51_p3), %s1531_s0, %s1164_s25  ;;  %s215_s30 = scalar_lea.vmem (%p51_p3), [#allocation3], %s1080_s26 }
   0xf   : > { %v234_v0 = vld [vmem:[%s221_s29] sm:$0xff] (%p51_p3)  ;;  %v236_v1 = vld [vmem:[%s221_s29 + $0x8] sm:$0xff] (%p51_p3)  ;;  %v238_v2 = vld [vmem:[%s221_s29 + $0x50] sm:$0xff] (%p51_p3) }
  0x10   : > { %235 = vst [vmem:[%s215_s30] sm:$0xff] (%p51_p3), %v234_v0  ;;  %237 = vst [vmem:[%s215_s30 + $0x8] sm:$0xff] (%p51_p3), %v236_v1  ;;  %v240_v3 = vld [vmem:[%s221_s29 + $0x58] sm:$0xff] (%p51_p3) }
  0x11   : > { %239 = vst [vmem:[%s215_s30 + $0x10] sm:$0xff] %v238_v2  ;;  %241 = vst [vmem:[%s215_s30 + $0x18] sm:$0xff] %v240_v3 }
  0x12 PF: > { %p1083_p6 = scmp.ge.s32.totalorder %s1349_s19, 1  ;;  %p261_p7 = scmp.lt.s32.totalorder %s1349_s19, 6 }
  0x14   : > { %p262_p8 = pnand %p1083_p6, %p261_p7 }
  0x15   : > { %s268_s5 = sand.u32 (!%p262_p8), 1, %s1333_s15   ;;  %s1085_s6 = sshll.u32 (!%p262_p8), %s1341_s17, 6 }
  0x16   : > { %265 = sbr.rel (%p262_p8) target bundleno = 322 (0x142), region = 55  ;;  %s1084_s7 = sshll.u32 (!%p262_p8), %s268_s5, 5 }
  0x17   : > { %p326_p9 = scmp.lt.s32.totalorder (!%p262_p8), %s1085_s6, 319  ;;  %s1429_s12 = scalar_lea.vmem (!%p262_p8), [#allocation3], %s1084_s7 }
  0x18   : > { %p1088_p10 = scmp.ne.s32.totalorder (!%p262_p8), %s1341_s17, 0 }
  0x1b   : > { %s1543_s6 = smov (!%p326_p9, %s1085_s6), 319  ;;  %368 = sbr.rel (%p1088_p10) target bundleno = 35 (0x23), region = 63 }
  0x1c   : > { %s1165_s8 = sshll.u32 %s1543_s6, 3 }
  0x1d   : > { %s1427_s11 = scalar_lea.vmem %s1532_s1, %s1165_s8 }
  0x20   : > { %v1351_v4 = vmov 0.0  }
  0x21   : > { %369 = vst [vmem:[#allocation2 + $0x10] sm:$0xff] %v1351_v4  ;;  %370 = vst [vmem:[#allocation2] sm:$0xff] %v1351_v4 }
  0x22   : > { %371 = vst [vmem:[#allocation2 + $0x18] sm:$0xff] %v1351_v4  ;;  %372 = vst [vmem:[#allocation2 + $0x8] sm:$0xff] %v1351_v4 }
  0x23 PF: > { %v1209_v5 = vld [vmem:[%s1427_s11 + $0x74] ss:$8 sps:$4 sm:$0xff]   ;;  %v1213_v7 = vld [vmem:[%s1427_s11 + $0x70] ss:$8 sps:$4 sm:$0xff]   ;;  %v1215_v9 = vld [vmem:[%s1427_s11 + $0x64] ss:$8 sps:$4 sm:$0xff]  }
  0x24   : > { %v1211_v6 = vld [vmem:[%s1427_s11 + $0x174] ss:$8 sps:$4 sm:$0xff]   ;;  %785 = vmatprep.subr.bf16.mxu0 %v1209_v5  ;;  %v1214_v8 = vld [vmem:[%s1427_s11 + $0x170] ss:$8 sps:$4 sm:$0xff]   ;;  %v1217_v10 = vld [vmem:[%s1427_s11 + $0x164] ss:$8 sps:$4 sm:$0xff]  }
  0x25   : > { %828 = vmatprep.subr.bf16.mxu1 %v1211_v6  ;;  %786 = vmatpush1.bf16.msra.mxu0 %v1213_v7  ;;  %v1219_v11 = vld [vmem:[%s1427_s11 + $0x60] ss:$8 sps:$4 sm:$0xff]   ;;  %v1221_v13 = vld [vmem:[%s1427_s11 + $0x54] ss:$8 sps:$4 sm:$0xff]   ;;  %v1225_v15 = vld [vmem:[%s1427_s11 + $0x50] ss:$8 sps:$4 sm:$0xff]  }
  0x26   : > { %829 = vmatpush1.bf16.msra.mxu1 %v1214_v8  ;;  %787 = vmatprep.subr.bf16.mxu0 %v1215_v9  ;;  %v1220_v12 = vld [vmem:[%s1427_s11 + $0x160] ss:$8 sps:$4 sm:$0xff]   ;;  %v1223_v14 = vld [vmem:[%s1427_s11 + $0x154] ss:$8 sps:$4 sm:$0xff]   ;;  %v1226_v16 = vld [vmem:[%s1427_s11 + $0x150] ss:$8 sps:$4 sm:$0xff]  }
  0x27   : > { %830 = vmatprep.subr.bf16.mxu1 %v1217_v10  ;;  %v1227_v17 = vld [vmem:[%s1427_s11 + $0x44] ss:$8 sps:$4 sm:$0xff]   ;;  %v1231_v19 = vld [vmem:[%s1427_s11 + $0x40] ss:$8 sps:$4 sm:$0xff]   ;;  %v1233_v21 = vld [vmem:[%s1427_s11 + $0x34] ss:$8 sps:$4 sm:$0xff]  }
  0x28   : > { %v1229_v18 = vld [vmem:[%s1427_s11 + $0x144] ss:$8 sps:$4 sm:$0xff]   ;;  %v1232_v20 = vld [vmem:[%s1427_s11 + $0x140] ss:$8 sps:$4 sm:$0xff]   ;;  %v1235_v22 = vld [vmem:[%s1427_s11 + $0x134] ss:$8 sps:$4 sm:$0xff]  }
  0x29   : > { %788 = vmatpush1.bf16.msra.mxu0 %v1219_v11  ;;  %v1237_v23 = vld [vmem:[%s1427_s11 + $0x30] ss:$8 sps:$4 sm:$0xff]   ;;  %v1239_v25 = vld [vmem:[%s1427_s11 + $0x24] ss:$8 sps:$4 sm:$0xff]   ;;  %v1243_v27 = vld [vmem:[%s1427_s11 + $0x20] ss:$8 sps:$4 sm:$0xff]  }
  0x2a   : > { %831 = vmatpush1.bf16.msra.mxu1 %v1220_v12  ;;  %789 = vmatprep.subr.bf16.mxu0 %v1221_v13  ;;  %v1238_v24 = vld [vmem:[%s1427_s11 + $0x130] ss:$8 sps:$4 sm:$0xff]   ;;  %v1241_v26 = vld [vmem:[%s1427_s11 + $0x124] ss:$8 sps:$4 sm:$0xff]   ;;  %v1244_v28 = vld [vmem:[%s1427_s11 + $0x120] ss:$8 sps:$4 sm:$0xff]  }
  0x2b   : > { %832 = vmatprep.subr.bf16.mxu1 %v1223_v14  ;;  %v1245_v29 = vld [vmem:[%s1427_s11 + $0x14] ss:$8 sps:$4 sm:$0xff]   ;;  %v1249_v31 = vld [vmem:[%s1427_s11 + $0x10] ss:$8 sps:$4 sm:$0xff]   ;;  %v1251_v33 = vld [vmem:[%s1427_s11 + $0x4] ss:$8 sps:$4 sm:$0xff]  }
  0x2c   : > { %v1247_v30 = vld [vmem:[%s1427_s11 + $0x114] ss:$8 sps:$4 sm:$0xff]   ;;  %v1250_v32 = vld [vmem:[%s1427_s11 + $0x110] ss:$8 sps:$4 sm:$0xff]   ;;  %v1253_v34 = vld [vmem:[%s1427_s11 + $0x104] ss:$8 sps:$4 sm:$0xff]  }
  0x2d   : > { %790 = vmatpush1.bf16.msra.mxu0 %v1225_v15  ;;  %v1255_v35 = vld [vmem:[%s1427_s11] ss:$8 sps:$4 sm:$0xff]   ;;  %v1257_v37 = vld [vmem:[%s1427_s11 + $0xf4] ss:$8 sps:$4 sm:$0xff]   ;;  %v1261_v39 = vld [vmem:[%s1427_s11 + $0xf0] ss:$8 sps:$4 sm:$0xff]  }
  0x2e   : > { %833 = vmatpush1.bf16.msra.mxu1 %v1226_v16  ;;  %791 = vmatprep.subr.bf16.mxu0 %v1227_v17  ;;  %v1256_v36 = vld [vmem:[%s1427_s11 + $0x100] ss:$8 sps:$4 sm:$0xff]   ;;  %v1259_v38 = vld [vmem:[%s1427_s11 + $0x1f4] ss:$8 sps:$4 sm:$0xff]   ;;  %v1262_v40 = vld [vmem:[%s1427_s11 + $0x1f0] ss:$8 sps:$4 sm:$0xff]  }
  0x2f   : > { %834 = vmatprep.subr.bf16.mxu1 %v1229_v18  ;;  %v1263_v41 = vld [vmem:[%s1427_s11 + $0xe4] ss:$8 sps:$4 sm:$0xff]   ;;  %v1267_v43 = vld [vmem:[%s1427_s11 + $0xe0] ss:$8 sps:$4 sm:$0xff]   ;;  %v1269_v45 = vld [vmem:[%s1427_s11 + $0xd4] ss:$8 sps:$4 sm:$0xff]  }
  0x30   : > { %v1265_v42 = vld [vmem:[%s1427_s11 + $0x1e4] ss:$8 sps:$4 sm:$0xff]   ;;  %v1268_v44 = vld [vmem:[%s1427_s11 + $0x1e0] ss:$8 sps:$4 sm:$0xff]   ;;  %v1271_v46 = vld [vmem:[%s1427_s11 + $0x1d4] ss:$8 sps:$4 sm:$0xff]  }
  0x31   : > { %792 = vmatpush1.bf16.msra.mxu0 %v1231_v19  ;;  %v1273_v47 = vld [vmem:[%s1427_s11 + $0xd0] ss:$8 sps:$4 sm:$0xff]   ;;  %v1275_v49 = vld [vmem:[%s1427_s11 + $0xc4] ss:$8 sps:$4 sm:$0xff]   ;;  %v1279_v51 = vld [vmem:[%s1427_s11 + $0xc0] ss:$8 sps:$4 sm:$0xff]  }
  0x32   : > { %835 = vmatpush1.bf16.msra.mxu1 %v1232_v20  ;;  %793 = vmatprep.subr.bf16.mxu0 %v1233_v21  ;;  %v1274_v48 = vld [vmem:[%s1427_s11 + $0x1d0] ss:$8 sps:$4 sm:$0xff]   ;;  %v1277_v50 = vld [vmem:[%s1427_s11 + $0x1c4] ss:$8 sps:$4 sm:$0xff]   ;;  %v1280_v53 = vld [vmem:[%s1427_s11 + $0x1c0] ss:$8 sps:$4 sm:$0xff]  }
  0x33   : > { %836 = vmatprep.subr.bf16.mxu1 %v1235_v22  ;;  %v1307_v52 = vld [vmem:[%s1429_s12 + $0x4] ss:$16 sps:$4 sm:$0xff]   ;;  %v1310_v56 = vld [vmem:[%s1429_s12 + $0xc] ss:$16 sps:$4 sm:$0xff]   ;;  %v1285_v57 = vld [vmem:[%s1427_s11 + $0xb0] ss:$8 sps:$4 sm:$0xff]  }
  0x34   : > { %v1281_v54 = vld [vmem:[%s1427_s11 + $0xb4] ss:$8 sps:$4 sm:$0xff]   ;;  %817 = vmatprep.mubr.bf16.mxu0 %v1307_v52  ;;  %860 = vmatprep.mubr.bf16.mxu1 %v1310_v56  ;;  %v1286_v58 = vld [vmem:[%s1427_s11 + $0x1b0] ss:$8 sps:$4 sm:$0xff]   ;;  %v1287_v59 = vld [vmem:[%s1427_s11 + $0xa4] ss:$8 sps:$4 sm:$0xff]  }
  0x35   : > { %794 = vmatpush1.bf16.msra.mxu0 %v1237_v23  ;;  %v1283_v55 = vld [vmem:[%s1427_s11 + $0x1b4] ss:$8 sps:$4 sm:$0xff]   ;;  %v1289_v60 = vld [vmem:[%s1427_s11 + $0x1a4] ss:$8 sps:$4 sm:$0xff]   ;;  %v1291_v61 = vld [vmem:[%s1427_s11 + $0xa0] ss:$8 sps:$4 sm:$0xff]  }
  0x36   : > { %837 = vmatpush1.bf16.msra.mxu1 %v1238_v24  ;;  %795 = vmatprep.subr.bf16.mxu0 %v1239_v25  ;;  %v1292_v62 = vld [vmem:[%s1427_s11 + $0x1a0] ss:$8 sps:$4 sm:$0xff]   ;;  %v1293_v63 = vld [vmem:[%s1427_s11 + $0x94] ss:$8 sps:$4 sm:$0xff]   ;;  %v1297_v1 = vld [vmem:[%s1427_s11 + $0x90] ss:$8 sps:$4 sm:$0xff]  }
  0x37   : > { %838 = vmatprep.subr.bf16.mxu1 %v1241_v26  ;;  %v1295_v0 = vld [vmem:[%s1427_s11 + $0x194] ss:$8 sps:$4 sm:$0xff]   ;;  %v1298_v2 = vld [vmem:[%s1427_s11 + $0x190] ss:$8 sps:$4 sm:$0xff]   ;;  %v1299_v3 = vld [vmem:[%s1427_s11 + $0x84] ss:$8 sps:$4 sm:$0xff]  }
  0x38   : > { %v1301_v4 = vld [vmem:[%s1427_s11 + $0x184] ss:$8 sps:$4 sm:$0xff]   ;;  %v1303_v5 = vld [vmem:[%s1427_s11 + $0x80] ss:$8 sps:$4 sm:$0xff]   ;;  %v373_v10 = vld [vmem:[#allocation2 + $0x10] sm:$0xff]  ;;  %p1157_p11 = scmp.ne.s32.totalorder %s1341_s17, 4 }
  0x39   : > { %796 = vmatpush1.bf16.msra.mxu0 %v1243_v27  ;;  %v1304_v6 = vld [vmem:[%s1427_s11 + $0x180] ss:$8 sps:$4 sm:$0xff]   ;;  %v375_v19 = vld [vmem:[#allocation2 + $0x18] sm:$0xff] }
  0x3a   : > { %839 = vmatpush1.bf16.msra.mxu1 %v1244_v28  ;;  %797 = vmatprep.subr.bf16.mxu0 %v1245_v29  ;;  %v1305_v7 = vld [vmem:[%s1429_s12] ss:$16 sps:$4 sm:$0xff]   ;;  %v1308_v8 = vld [vmem:[%s1429_s12 + $0x8] ss:$16 sps:$4 sm:$0xff]  }
  0x3b   : > { %840 = vmatprep.subr.bf16.mxu1 %v1247_v30  ;;  %v374_v14 = vld [vmem:[#allocation2] sm:$0xff]  ;;  %v376_v24 = vld [vmem:[#allocation2 + $0x8] sm:$0xff] }
  0x3d   : > { %798 = vmatpush1.bf16.msra.mxu0 %v1249_v31 }
  0x3e   : > { %841 = vmatpush1.bf16.msra.mxu1 %v1250_v32  ;;  %799 = vmatprep.subr.bf16.mxu0 %v1251_v33 }
  0x3f   : > { %842 = vmatprep.subr.bf16.mxu1 %v1253_v34 }
  0x41   : > { %800 = vmatpush1.bf16.msra.mxu0 %v1255_v35 }
  0x42   : > { %843 = vmatpush1.bf16.msra.mxu1 %v1256_v36  ;;  %801 = vmatprep.subr.bf16.mxu0 %v1257_v37 }
  0x43   : > { %844 = vmatprep.subr.bf16.mxu1 %v1259_v38 }
  0x45   : > { %802 = vmatpush2.bf16.msra.mxu0 %v1261_v39 }
  0x46   : > { %845 = vmatpush2.bf16.msra.mxu1 %v1262_v40  ;;  %803 = vmatprep.subr.bf16.mxu0 %v1263_v41 }
  0x47   : > { %846 = vmatprep.subr.bf16.mxu1 %v1265_v42 }
  0x49   : > { %804 = vmatpush2.bf16.msra.mxu0 %v1267_v43 }
  0x4a   : > { %847 = vmatpush2.bf16.msra.mxu1 %v1268_v44  ;;  %805 = vmatprep.subr.bf16.mxu0 %v1269_v45 }
  0x4b   : > { %848 = vmatprep.subr.bf16.mxu1 %v1271_v46 }
  0x4d   : > { %806 = vmatpush2.bf16.msra.mxu0 %v1273_v47 }
  0x4e   : > { %849 = vmatpush2.bf16.msra.mxu1 %v1274_v48  ;;  %807 = vmatprep.subr.bf16.mxu0 %v1275_v49 }
  0x4f   : > { %850 = vmatprep.subr.bf16.mxu1 %v1277_v50 }
  0x51   : > { %808 = vmatpush2.bf16.msra.mxu0 %v1279_v51 }
  0x52   : > { %851 = vmatpush2.bf16.msra.mxu1 %v1280_v53  ;;  %809 = vmatprep.subr.bf16.mxu0 %v1281_v54 }
  0x53   : > { %852 = vmatprep.subr.bf16.mxu1 %v1283_v55 }
  0x55   : > { %810 = vmatpush2.bf16.msra.mxu0 %v1285_v57 }
  0x56   : > { %853 = vmatpush2.bf16.msra.mxu1 %v1286_v58  ;;  %811 = vmatprep.subr.bf16.mxu0 %v1287_v59 }
  0x57   : > { %854 = vmatprep.subr.bf16.mxu1 %v1289_v60 }
  0x59   : > { %812 = vmatpush2.bf16.msra.mxu0 %v1291_v61 }
  0x5a   : > { %855 = vmatpush2.bf16.msra.mxu1 %v1292_v62  ;;  %813 = vmatprep.subr.bf16.mxu0 %v1293_v63 }
  0x5b   : > { %856 = vmatprep.subr.bf16.mxu1 %v1295_v0 }
  0x5d   : > { %814 = vmatpush2.bf16.msra.mxu0 %v1297_v1 }
  0x5e   : > { %857 = vmatpush2.bf16.msra.mxu1 %v1298_v2  ;;  %815 = vmatprep.subr.bf16.mxu0 %v1299_v3 }
  0x5f   : > { %858 = vmatprep.subr.bf16.mxu1 %v1301_v4 }
  0x61   : > { %816 = vmatpush2.bf16.msra.mxu0 %v1303_v5 }
  0x62   : > { %859 = vmatpush2.bf16.msra.mxu1 %v1304_v6 }
  0x64   : > { %818 = vmatmul.mubr.bf16.vlgmr.msra.gmra.mxu0 %v1305_v7 }
  0x65   : > { %861 = vmatmul.mubr.bf16.vlgmr.msra.gmra.mxu1 %v1308_v8 }
 0x124   : > { %v819_v9 = vpop.f32.mrf.mxu0 }
 0x125   : > { %v862_v11 = vpop.f32.mrf.mxu1 }
 0x126   : > { %v863_v12 = vadd.f32 %v862_v11, %v819_v9  ;;  %v821_v13 = vpop.f32.mrf.mxu0 }
 0x127   : > { %v864_v15 = vpop.f32.mrf.mxu1 }
 0x128   : > { %v871_v16 = vadd.f32 %v863_v12, %v373_v10  ;;  %v865_v17 = vadd.f32 %v864_v15, %v821_v13  ;;  %v823_v18 = vpop.f32.mrf.mxu0 }
 0x129   : > { %v866_v20 = vpop.f32.mrf.mxu1 }
 0x12a   : > { %875 = vst [vmem:[#allocation2 + $0x10] sm:$0xff] %v871_v16  ;;  %v872_v21 = vadd.f32 %v865_v17, %v374_v14  ;;  %v867_v22 = vadd.f32 %v866_v20, %v823_v18  ;;  %v825_v23 = vpop.f32.mrf.mxu0 }
 0x12b   : > { %v868_v25 = vpop.f32.mrf.mxu1 }
 0x12c   : > { %876 = vst [vmem:[#allocation2] sm:$0xff] %v872_v21  ;;  %v873_v26 = vadd.f32 %v867_v22, %v375_v19  ;;  %v869_v27 = vadd.f32 %v868_v25, %v825_v23  ;;  %882 = sbr.rel (%p1157_p11) target bundleno = 322 (0x142), region = 67 }
 0x12e   : > { %877 = vst [vmem:[#allocation2 + $0x18] sm:$0xff] %v873_v26  ;;  %v874_v28 = vadd.f32 %v869_v27, %v376_v24 }
 0x130   : > { %878 = vst [vmem:[#allocation2 + $0x8] sm:$0xff] %v874_v28 }
 0x131   : > { %v889_v29 = vlaneseq  ;;  %v903_v31 = vld [vmem:[%s1534_s3] sm:$0xff]  ;;  %v904_v33 = vld [vmem:[%s1534_s3 + $0x8] sm:$0xff]  ;;  %v883_v34 = vld [vmem:[#allocation2 + $0x10] sm:$0xff] }
 0x132   : > { %v887_v32 = vld [vmem:[%s1533_s2] sm:$0x3]  ;;  %v905_v38 = vunpack.c.l.bf16 %v903_v31  ;;  %v906_v39 = vunpack.c.h.bf16 %v903_v31  ;;  %v907_v44 = vunpack.c.l.bf16 %v904_v33  ;;  %v908_v45 = vunpack.c.h.bf16 %v904_v33 }
 0x133   : > { %v890_v30 = vshrl.u32 %v889_v29, 7  ;;  %v884_v37 = vld [vmem:[#allocation2] sm:$0xff] }
 0x135   : > { %v891_v35 = vsub.s32 0, %v890_v30  ;;  %v895_v36 = vsub.s32 1, %v890_v30  ;;  %v885_v40 = vld [vmem:[#allocation2 + $0x18] sm:$0xff] }
 0x137   : > { %v886_v41 = vld [vmem:[#allocation2 + $0x8] sm:$0xff]  ;;  %v892_v42 = vrot.slane %v887_v32, %v891_v35  ;;  %v896_v43 = vrot.slane %v887_v32, %v895_v36 }
 0x139   : > { %v899_v46 = vadd.f32 %v892_v42, %v883_v34  ;;  %v900_v47 = vadd.f32 %v896_v43, %v884_v37  ;;  %v901_v48 = vadd.f32 %v892_v42, %v885_v40  ;;  %v902_v49 = vadd.f32 %v896_v43, %v886_v41 }
 0x13b   : > { %v909_v50 = vadd.f32 %v905_v38, %v899_v46  ;;  %v910_v51 = vadd.f32 %v906_v39, %v900_v47  ;;  %v911_v52 = vadd.f32 %v907_v44, %v901_v48  ;;  %v912_v53 = vadd.f32 %v908_v45, %v902_v49 }
 0x13d   : > { %v913_v54 = vmax.f32 %v909_v50, 0.0  ;;  %v914_v55 = vmax.f32 %v910_v51, 0.0  ;;  %v915_v56 = vmax.f32 %v911_v52, 0.0  ;;  %v916_v57 = vmax.f32 %v912_v53, 0.0 }
 0x13f   : > { %v1166_v58 = vpack.c.bf16 %v914_v55, %v913_v54  ;;  %v1167_v59 = vpack.c.bf16 %v916_v57, %v915_v56 }
 0x141   : > { %929 = vst [vmem:[%s1535_s4] sm:$0xff] %v1166_v58  ;;  %930 = vst [vmem:[%s1535_s4 + $0x8] sm:$0xff] %v1167_v59 }
 0x142 PF: > { %s14_s19 = sadd.s32 1, %s1349_s19   ;;  %s1536_s15 = smov %s1337_s16 }
 0x143   : > { %p11_p12 = scmp.ge.s32.totalorder %s14_s19, 7   ;;  %s1537_s16 = smov %s1412_s23 }
 0x144   : > { %s1538_s17 = smov %s1345_s18  ;;  %s1539_s18 = smov %s1541_s20 }
 0x145   :  { %13 = sbr.rel (!%p11_p12) target bundleno = 3 (0x3), region = 111 }

// kernel: vqa_forward.34
= control target key start
LH: loop header
LB: loop body
LE: loop exit
PB: predicated region body
PF: predicated region fallthrough
CT: control target
= control target key end

     0   :  { %s1272_s12 = smov 0   ;;  %s1274_s13 = smov 0   ;;  %s1420_s0 = inlined_call_operand.vmem [shape: bf16[16,2560], index: 0, kind: input, shape index: {}]   ;;  %s1421_s1 = inlined_call_operand.vmem [shape: bf16[2560,256], index: 1, kind: input, shape index: {}]   ;;  %s1422_s2 = inlined_call_operand.vmem [shape: f32[1,256], index: 2, kind: input, shape index: {}]   ;;  %s1423_s3 = inlined_call_operand.vmem [shape: bf16[16,256], index: 3, kind: output, shape index: {}]  }
   0x1   :  { %s1276_s14 = smov 0   ;;  %s1278_s15 = smov 0  }
   0x2   :  { %s1280_s16 = smov 0  }
   0x3 LB: > { %s25_s17 = sadd.s32 1, %s1245_s15  ;;  %p48_p1 = scmp.ne.s32.totalorder %s1237_s13, %s1233_s12  ;;  %s1249_s16 = sphi %s1280_s16, %s13_s16   ;;  %s1245_s15 = sphi %s1278_s15, %s1427_s15   ;;  %s1241_s14 = sphi %s1276_s14, %s1426_s14   ;;  %s1237_s13 = sphi %s1274_s13, %s1425_s13   ;;  %s1233_s12 = sphi %s1272_s12, %s1424_s12  }
   0x4   : > { %p26_p0 = scmp.ge.s32.totalorder %s25_s17, 5  ;;  %p49_p2 = scmp.eq.s32.totalorder %s1249_s16, 0 }
   0x5   : > { %s41_s19 = sadd.s32 1, %s1237_s13  ;;  %p979_p5 = scmp.ge.s32.totalorder %s1249_s16, 5 }
   0x6   : > { %s1429_s17 = smov (%p26_p0, %s25_s17), 0  ;;  %p50_p3 = por %p49_p2, %p48_p1 }
   0x7   : > { %s37_s18 = ssub.s32 %s1245_s15, %s1429_s17  ;;  %164 = sbr.rel (%p979_p5) target bundleno = 18 (0x12), region = 20 }
   0x8   : > { %p39_p4 = scmp.eq.s32.totalorder %s37_s18, 0 }
   0xa   : > { %s1307_s20 = scalar_select %p39_p4, %s1237_s13, %s41_s19  }
   0xc   : > { %167 = sbr.rel (!%p50_p3) target bundleno = 18 (0x12), region = 24  ;;  %s169_s21 = sand.u32 (%p50_p3), 1, %s1237_s13  }
   0xd   : > { %s1064_s22 = sshll.u32 (%p50_p3), %s1245_s15, 4  ;;  %s980_s23 = sshll.u32 (%p50_p3), %s169_s21, 5 }
   0xe   : > { %s177_s26 = scalar_lea.vmem (%p50_p3), %s1420_s0, %s1064_s22  ;;  %s171_s27 = scalar_lea.vmem (%p50_p3), [#allocation3], %s980_s23 }
   0xf   : > { %v190_v0 = vld [vmem:[%s177_s26] sm:$0xff] (%p50_p3)  ;;  %v192_v1 = vld [vmem:[%s177_s26 + $0x8] sm:$0xff] (%p50_p3)  ;;  %v194_v2 = vld [vmem:[%s177_s26 + $0x50] sm:$0xff] (%p50_p3) }
  0x10   : > { %191 = vst [vmem:[%s171_s27] sm:$0xff] (%p50_p3), %v190_v0  ;;  %193 = vst [vmem:[%s171_s27 + $0x8] sm:$0xff] (%p50_p3), %v192_v1  ;;  %v196_v3 = vld [vmem:[%s177_s26 + $0x58] sm:$0xff] (%p50_p3) }
  0x11   : > { %195 = vst [vmem:[%s171_s27 + $0x10] sm:$0xff] %v194_v2  ;;  %197 = vst [vmem:[%s171_s27 + $0x18] sm:$0xff] %v196_v3 }
  0x12 PF: > { %p983_p6 = scmp.ge.s32.totalorder %s1249_s16, 1  ;;  %p217_p7 = scmp.lt.s32.totalorder %s1249_s16, 6 }
  0x14   : > { %p218_p8 = pnand %p983_p6, %p217_p7 }
  0x15   : > { %s224_s28 = sand.u32 (!%p218_p8), 1, %s1233_s12   ;;  %s985_s29 = sshll.u32 (!%p218_p8), %s1241_s14, 6 }
  0x16   : > { %221 = sbr.rel (%p218_p8) target bundleno = 320 (0x140), region = 51  ;;  %s984_s30 = sshll.u32 (!%p218_p8), %s224_s28, 5 }
  0x17   : > { %p270_p9 = scmp.lt.s32.totalorder (!%p218_p8), %s985_s29, 319  ;;  %s1324_s8 = scalar_lea.vmem (!%p218_p8), [#allocation3], %s984_s30 }
  0x18   : > { %p988_p10 = scmp.ne.s32.totalorder (!%p218_p8), %s1241_s14, 0 }
  0x1b   : > { %s1431_s29 = smov (!%p270_p9, %s985_s29), 319  ;;  %300 = sbr.rel (%p988_p10) target bundleno = 35 (0x23), region = 59 }
  0x1c   : > { %s1065_s4 = sshll.u32 %s1431_s29, 3 }
  0x1d   : > { %s1322_s7 = scalar_lea.vmem %s1421_s1, %s1065_s4 }
  0x20   : > { %v1251_v4 = vmov 0.0  }
  0x21   : > { %301 = vst [vmem:[#allocation2 + $0x10] sm:$0xff] %v1251_v4  ;;  %302 = vst [vmem:[#allocation2] sm:$0xff] %v1251_v4 }
  0x22   : > { %303 = vst [vmem:[#allocation2 + $0x18] sm:$0xff] %v1251_v4  ;;  %304 = vst [vmem:[#allocation2 + $0x8] sm:$0xff] %v1251_v4 }
  0x23 PF: > { %v1109_v5 = vld [vmem:[%s1322_s7 + $0x74] ss:$8 sps:$4 sm:$0xff]   ;;  %v1113_v7 = vld [vmem:[%s1322_s7 + $0x70] ss:$8 sps:$4 sm:$0xff]   ;;  %v1115_v9 = vld [vmem:[%s1322_s7 + $0x64] ss:$8 sps:$4 sm:$0xff]  }
  0x24   : > { %v1111_v6 = vld [vmem:[%s1322_s7 + $0x174] ss:$8 sps:$4 sm:$0xff]   ;;  %717 = vmatprep.subr.bf16.mxu0 %v1109_v5  ;;  %v1114_v8 = vld [vmem:[%s1322_s7 + $0x170] ss:$8 sps:$4 sm:$0xff]   ;;  %v1117_v10 = vld [vmem:[%s1322_s7 + $0x164] ss:$8 sps:$4 sm:$0xff]  }
  0x25   : > { %760 = vmatprep.subr.bf16.mxu1 %v1111_v6  ;;  %718 = vmatpush1.bf16.msra.mxu0 %v1113_v7  ;;  %v1119_v11 = vld [vmem:[%s1322_s7 + $0x60] ss:$8 sps:$4 sm:$0xff]   ;;  %v1121_v13 = vld [vmem:[%s1322_s7 + $0x54] ss:$8 sps:$4 sm:$0xff]   ;;  %v1125_v15 = vld [vmem:[%s1322_s7 + $0x50] ss:$8 sps:$4 sm:$0xff]  }
  0x26   : > { %761 = vmatpush1.bf16.msra.mxu1 %v1114_v8  ;;  %719 = vmatprep.subr.bf16.mxu0 %v1115_v9  ;;  %v1120_v12 = vld [vmem:[%s1322_s7 + $0x160] ss:$8 sps:$4 sm:$0xff]   ;;  %v1123_v14 = vld [vmem:[%s1322_s7 + $0x154] ss:$8 sps:$4 sm:$0xff]   ;;  %v1126_v16 = vld [vmem:[%s1322_s7 + $0x150] ss:$8 sps:$4 sm:$0xff]  }
  0x27   : > { %762 = vmatprep.subr.bf16.mxu1 %v1117_v10  ;;  %v1127_v17 = vld [vmem:[%s1322_s7 + $0x44] ss:$8 sps:$4 sm:$0xff]   ;;  %v1131_v19 = vld [vmem:[%s1322_s7 + $0x40] ss:$8 sps:$4 sm:$0xff]   ;;  %v1133_v21 = vld [vmem:[%s1322_s7 + $0x34] ss:$8 sps:$4 sm:$0xff]  }
  0x28   : > { %v1129_v18 = vld [vmem:[%s1322_s7 + $0x144] ss:$8 sps:$4 sm:$0xff]   ;;  %v1132_v20 = vld [vmem:[%s1322_s7 + $0x140] ss:$8 sps:$4 sm:$0xff]   ;;  %v1135_v22 = vld [vmem:[%s1322_s7 + $0x134] ss:$8 sps:$4 sm:$0xff]  }
  0x29   : > { %720 = vmatpush1.bf16.msra.mxu0 %v1119_v11  ;;  %v1137_v23 = vld [vmem:[%s1322_s7 + $0x30] ss:$8 sps:$4 sm:$0xff]   ;;  %v1139_v25 = vld [vmem:[%s1322_s7 + $0x24] ss:$8 sps:$4 sm:$0xff]   ;;  %v1143_v27 = vld [vmem:[%s1322_s7 + $0x20] ss:$8 sps:$4 sm:$0xff]  }
  0x2a   : > { %763 = vmatpush1.bf16.msra.mxu1 %v1120_v12  ;;  %721 = vmatprep.subr.bf16.mxu0 %v1121_v13  ;;  %v1138_v24 = vld [vmem:[%s1322_s7 + $0x130] ss:$8 sps:$4 sm:$0xff]   ;;  %v1141_v26 = vld [vmem:[%s1322_s7 + $0x124] ss:$8 sps:$4 sm:$0xff]   ;;  %v1144_v28 = vld [vmem:[%s1322_s7 + $0x120] ss:$8 sps:$4 sm:$0xff]  }
  0x2b   : > { %764 = vmatprep.subr.bf16.mxu1 %v1123_v14  ;;  %v1145_v29 = vld [vmem:[%s1322_s7 + $0x14] ss:$8 sps:$4 sm:$0xff]   ;;  %v1149_v31 = vld [vmem:[%s1322_s7 + $0x10] ss:$8 sps:$4 sm:$0xff]   ;;  %v1151_v33 = vld [vmem:[%s1322_s7 + $0x4] ss:$8 sps:$4 sm:$0xff]  }
  0x2c   : > { %v1147_v30 = vld [vmem:[%s1322_s7 + $0x114] ss:$8 sps:$4 sm:$0xff]   ;;  %v1150_v32 = vld [vmem:[%s1322_s7 + $0x110] ss:$8 sps:$4 sm:$0xff]   ;;  %v1153_v34 = vld [vmem:[%s1322_s7 + $0x104] ss:$8 sps:$4 sm:$0xff]  }
  0x2d   : > { %722 = vmatpush1.bf16.msra.mxu0 %v1125_v15  ;;  %v1155_v35 = vld [vmem:[%s1322_s7] ss:$8 sps:$4 sm:$0xff]   ;;  %v1157_v37 = vld [vmem:[%s1322_s7 + $0xf4] ss:$8 sps:$4 sm:$0xff]   ;;  %v1161_v39 = vld [vmem:[%s1322_s7 + $0xf0] ss:$8 sps:$4 sm:$0xff]  }
  0x2e   : > { %765 = vmatpush1.bf16.msra.mxu1 %v1126_v16  ;;  %723 = vmatprep.subr.bf16.mxu0 %v1127_v17  ;;  %v1156_v36 = vld [vmem:[%s1322_s7 + $0x100] ss:$8 sps:$4 sm:$0xff]   ;;  %v1159_v38 = vld [vmem:[%s1322_s7 + $0x1f4] ss:$8 sps:$4 sm:$0xff]   ;;  %v1162_v40 = vld [vmem:[%s1322_s7 + $0x1f0] ss:$8 sps:$4 sm:$0xff]  }
  0x2f   : > { %766 = vmatprep.subr.bf16.mxu1 %v1129_v18  ;;  %v1163_v41 = vld [vmem:[%s1322_s7 + $0xe4] ss:$8 sps:$4 sm:$0xff]   ;;  %v1167_v43 = vld [vmem:[%s1322_s7 + $0xe0] ss:$8 sps:$4 sm:$0xff]   ;;  %v1169_v45 = vld [vmem:[%s1322_s7 + $0xd4] ss:$8 sps:$4 sm:$0xff]  }
  0x30   : > { %v1165_v42 = vld [vmem:[%s1322_s7 + $0x1e4] ss:$8 sps:$4 sm:$0xff]   ;;  %v1168_v44 = vld [vmem:[%s1322_s7 + $0x1e0] ss:$8 sps:$4 sm:$0xff]   ;;  %v1171_v46 = vld [vmem:[%s1322_s7 + $0x1d4] ss:$8 sps:$4 sm:$0xff]  }
  0x31   : > { %724 = vmatpush1.bf16.msra.mxu0 %v1131_v19  ;;  %v1173_v47 = vld [vmem:[%s1322_s7 + $0xd0] ss:$8 sps:$4 sm:$0xff]   ;;  %v1175_v49 = vld [vmem:[%s1322_s7 + $0xc4] ss:$8 sps:$4 sm:$0xff]   ;;  %v1179_v51 = vld [vmem:[%s1322_s7 + $0xc0] ss:$8 sps:$4 sm:$0xff]  }
  0x32   : > { %767 = vmatpush1.bf16.msra.mxu1 %v1132_v20  ;;  %725 = vmatprep.subr.bf16.mxu0 %v1133_v21  ;;  %v1174_v48 = vld [vmem:[%s1322_s7 + $0x1d0] ss:$8 sps:$4 sm:$0xff]   ;;  %v1177_v50 = vld [vmem:[%s1322_s7 + $0x1c4] ss:$8 sps:$4 sm:$0xff]   ;;  %v1180_v53 = vld [vmem:[%s1322_s7 + $0x1c0] ss:$8 sps:$4 sm:$0xff]  }
  0x33   : > { %768 = vmatprep.subr.bf16.mxu1 %v1135_v22  ;;  %v1207_v52 = vld [vmem:[%s1324_s8 + $0x4] ss:$16 sps:$4 sm:$0xff]   ;;  %v1210_v56 = vld [vmem:[%s1324_s8 + $0xc] ss:$16 sps:$4 sm:$0xff]   ;;  %v1185_v57 = vld [vmem:[%s1322_s7 + $0xb0] ss:$8 sps:$4 sm:$0xff]  }
  0x34   : > { %v1181_v54 = vld [vmem:[%s1322_s7 + $0xb4] ss:$8 sps:$4 sm:$0xff]   ;;  %749 = vmatprep.mubr.bf16.mxu0 %v1207_v52  ;;  %792 = vmatprep.mubr.bf16.mxu1 %v1210_v56  ;;  %v1186_v58 = vld [vmem:[%s1322_s7 + $0x1b0] ss:$8 sps:$4 sm:$0xff]   ;;  %v1187_v59 = vld [vmem:[%s1322_s7 + $0xa4] ss:$8 sps:$4 sm:$0xff]  }
  0x35   : > { %726 = vmatpush1.bf16.msra.mxu0 %v1137_v23  ;;  %v1183_v55 = vld [vmem:[%s1322_s7 + $0x1b4] ss:$8 sps:$4 sm:$0xff]   ;;  %v1189_v60 = vld [vmem:[%s1322_s7 + $0x1a4] ss:$8 sps:$4 sm:$0xff]   ;;  %v1191_v61 = vld [vmem:[%s1322_s7 + $0xa0] ss:$8 sps:$4 sm:$0xff]  }
  0x36   : > { %769 = vmatpush1.bf16.msra.mxu1 %v1138_v24  ;;  %727 = vmatprep.subr.bf16.mxu0 %v1139_v25  ;;  %v1192_v62 = vld [vmem:[%s1322_s7 + $0x1a0] ss:$8 sps:$4 sm:$0xff]   ;;  %v1193_v63 = vld [vmem:[%s1322_s7 + $0x94] ss:$8 sps:$4 sm:$0xff]   ;;  %v1197_v1 = vld [vmem:[%s1322_s7 + $0x90] ss:$8 sps:$4 sm:$0xff]  }
  0x37   : > { %770 = vmatprep.subr.bf16.mxu1 %v1141_v26  ;;  %v1195_v0 = vld [vmem:[%s1322_s7 + $0x194] ss:$8 sps:$4 sm:$0xff]   ;;  %v1198_v2 = vld [vmem:[%s1322_s7 + $0x190] ss:$8 sps:$4 sm:$0xff]   ;;  %v1199_v3 = vld [vmem:[%s1322_s7 + $0x84] ss:$8 sps:$4 sm:$0xff]  }
  0x38   : > { %v1201_v4 = vld [vmem:[%s1322_s7 + $0x184] ss:$8 sps:$4 sm:$0xff]   ;;  %v1203_v5 = vld [vmem:[%s1322_s7 + $0x80] ss:$8 sps:$4 sm:$0xff]   ;;  %v305_v10 = vld [vmem:[#allocation2 + $0x10] sm:$0xff]  ;;  %p1057_p11 = scmp.ne.s32.totalorder %s1241_s14, 4 }
  0x39   : > { %728 = vmatpush1.bf16.msra.mxu0 %v1143_v27  ;;  %v1204_v6 = vld [vmem:[%s1322_s7 + $0x180] ss:$8 sps:$4 sm:$0xff]   ;;  %v307_v19 = vld [vmem:[#allocation2 + $0x18] sm:$0xff] }
  0x3a   : > { %771 = vmatpush1.bf16.msra.mxu1 %v1144_v28  ;;  %729 = vmatprep.subr.bf16.mxu0 %v1145_v29  ;;  %v1205_v7 = vld [vmem:[%s1324_s8] ss:$16 sps:$4 sm:$0xff]   ;;  %v1208_v8 = vld [vmem:[%s1324_s8 + $0x8] ss:$16 sps:$4 sm:$0xff]  }
  0x3b   : > { %772 = vmatprep.subr.bf16.mxu1 %v1147_v30  ;;  %v306_v14 = vld [vmem:[#allocation2] sm:$0xff]  ;;  %v308_v24 = vld [vmem:[#allocation2 + $0x8] sm:$0xff] }
  0x3d   : > { %730 = vmatpush1.bf16.msra.mxu0 %v1149_v31 }
  0x3e   : > { %773 = vmatpush1.bf16.msra.mxu1 %v1150_v32  ;;  %731 = vmatprep.subr.bf16.mxu0 %v1151_v33 }
  0x3f   : > { %774 = vmatprep.subr.bf16.mxu1 %v1153_v34 }
  0x41   : > { %732 = vmatpush1.bf16.msra.mxu0 %v1155_v35 }
  0x42   : > { %775 = vmatpush1.bf16.msra.mxu1 %v1156_v36  ;;  %733 = vmatprep.subr.bf16.mxu0 %v1157_v37 }
  0x43   : > { %776 = vmatprep.subr.bf16.mxu1 %v1159_v38 }
  0x45   : > { %734 = vmatpush2.bf16.msra.mxu0 %v1161_v39 }
  0x46   : > { %777 = vmatpush2.bf16.msra.mxu1 %v1162_v40  ;;  %735 = vmatprep.subr.bf16.mxu0 %v1163_v41 }
  0x47   : > { %778 = vmatprep.subr.bf16.mxu1 %v1165_v42 }
  0x49   : > { %736 = vmatpush2.bf16.msra.mxu0 %v1167_v43 }
  0x4a   : > { %779 = vmatpush2.bf16.msra.mxu1 %v1168_v44  ;;  %737 = vmatprep.subr.bf16.mxu0 %v1169_v45 }
  0x4b   : > { %780 = vmatprep.subr.bf16.mxu1 %v1171_v46 }
  0x4d   : > { %738 = vmatpush2.bf16.msra.mxu0 %v1173_v47 }
  0x4e   : > { %781 = vmatpush2.bf16.msra.mxu1 %v1174_v48  ;;  %739 = vmatprep.subr.bf16.mxu0 %v1175_v49 }
  0x4f   : > { %782 = vmatprep.subr.bf16.mxu1 %v1177_v50 }
  0x51   : > { %740 = vmatpush2.bf16.msra.mxu0 %v1179_v51 }
  0x52   : > { %783 = vmatpush2.bf16.msra.mxu1 %v1180_v53  ;;  %741 = vmatprep.subr.bf16.mxu0 %v1181_v54 }
  0x53   : > { %784 = vmatprep.subr.bf16.mxu1 %v1183_v55 }
  0x55   : > { %742 = vmatpush2.bf16.msra.mxu0 %v1185_v57 }
  0x56   : > { %785 = vmatpush2.bf16.msra.mxu1 %v1186_v58  ;;  %743 = vmatprep.subr.bf16.mxu0 %v1187_v59 }
  0x57   : > { %786 = vmatprep.subr.bf16.mxu1 %v1189_v60 }
  0x59   : > { %744 = vmatpush2.bf16.msra.mxu0 %v1191_v61 }
  0x5a   : > { %787 = vmatpush2.bf16.msra.mxu1 %v1192_v62  ;;  %745 = vmatprep.subr.bf16.mxu0 %v1193_v63 }
  0x5b   : > { %788 = vmatprep.subr.bf16.mxu1 %v1195_v0 }
  0x5d   : > { %746 = vmatpush2.bf16.msra.mxu0 %v1197_v1 }
  0x5e   : > { %789 = vmatpush2.bf16.msra.mxu1 %v1198_v2  ;;  %747 = vmatprep.subr.bf16.mxu0 %v1199_v3 }
  0x5f   : > { %790 = vmatprep.subr.bf16.mxu1 %v1201_v4 }
  0x61   : > { %748 = vmatpush2.bf16.msra.mxu0 %v1203_v5 }
  0x62   : > { %791 = vmatpush2.bf16.msra.mxu1 %v1204_v6 }
  0x64   : > { %750 = vmatmul.mubr.bf16.vlgmr.msra.gmra.mxu0 %v1205_v7 }
  0x65   : > { %793 = vmatmul.mubr.bf16.vlgmr.msra.gmra.mxu1 %v1208_v8 }
 0x124   : > { %v751_v9 = vpop.f32.mrf.mxu0 }
 0x125   : > { %v794_v11 = vpop.f32.mrf.mxu1 }
 0x126   : > { %v795_v12 = vadd.f32 %v794_v11, %v751_v9  ;;  %v753_v13 = vpop.f32.mrf.mxu0 }
 0x127   : > { %v796_v15 = vpop.f32.mrf.mxu1 }
 0x128   : > { %v803_v16 = vadd.f32 %v795_v12, %v305_v10  ;;  %v797_v17 = vadd.f32 %v796_v15, %v753_v13  ;;  %v755_v18 = vpop.f32.mrf.mxu0 }
 0x129   : > { %v798_v20 = vpop.f32.mrf.mxu1 }
 0x12a   : > { %807 = vst [vmem:[#allocation2 + $0x10] sm:$0xff] %v803_v16  ;;  %v804_v21 = vadd.f32 %v797_v17, %v306_v14  ;;  %v799_v22 = vadd.f32 %v798_v20, %v755_v18  ;;  %v757_v23 = vpop.f32.mrf.mxu0 }
 0x12b   : > { %v800_v25 = vpop.f32.mrf.mxu1 }
 0x12c   : > { %808 = vst [vmem:[#allocation2] sm:$0xff] %v804_v21  ;;  %v805_v26 = vadd.f32 %v799_v22, %v307_v19  ;;  %v801_v27 = vadd.f32 %v800_v25, %v757_v23  ;;  %814 = sbr.rel (%p1057_p11) target bundleno = 320 (0x140), region = 63 }
 0x12e   : > { %809 = vst [vmem:[#allocation2 + $0x18] sm:$0xff] %v805_v26  ;;  %v806_v28 = vadd.f32 %v801_v27, %v308_v24 }
 0x130   : > { %810 = vst [vmem:[#allocation2 + $0x8] sm:$0xff] %v806_v28 }
 0x131   : > { %v821_v29 = vlaneseq  ;;  %v819_v31 = vld [vmem:[%s1422_s2] sm:$0x3]  ;;  %v815_v32 = vld [vmem:[#allocation2 + $0x10] sm:$0xff] }
 0x133   : > { %v822_v30 = vshrl.u32 %v821_v29, 7  ;;  %v816_v35 = vld [vmem:[#allocation2] sm:$0xff] }
 0x135   : > { %v823_v33 = vsub.s32 0, %v822_v30  ;;  %v827_v34 = vsub.s32 1, %v822_v30  ;;  %v817_v36 = vld [vmem:[#allocation2 + $0x18] sm:$0xff] }
 0x137   : > { %v818_v37 = vld [vmem:[#allocation2 + $0x8] sm:$0xff]  ;;  %v824_v38 = vrot.slane %v819_v31, %v823_v33  ;;  %v828_v39 = vrot.slane %v819_v31, %v827_v34 }
 0x139   : > { %v831_v40 = vadd.f32 %v824_v38, %v815_v32  ;;  %v832_v41 = vadd.f32 %v828_v39, %v816_v35  ;;  %v833_v42 = vadd.f32 %v824_v38, %v817_v36  ;;  %v834_v43 = vadd.f32 %v828_v39, %v818_v37 }
 0x13b   : > { %v835_v44 = vmax.f32 %v831_v40, 0.0  ;;  %v836_v45 = vmax.f32 %v832_v41, 0.0  ;;  %v837_v46 = vmax.f32 %v833_v42, 0.0  ;;  %v838_v47 = vmax.f32 %v834_v43, 0.0 }
 0x13d   : > { %v1066_v48 = vpack.c.bf16 %v836_v45, %v835_v44  ;;  %v1067_v49 = vpack.c.bf16 %v838_v47, %v837_v46 }
 0x13f   : > { %851 = vst [vmem:[%s1423_s3] sm:$0xff] %v1066_v48  ;;  %852 = vst [vmem:[%s1423_s3 + $0x8] sm:$0xff] %v1067_v49 }
 0x140 PF: > { %s13_s16 = sadd.s32 1, %s1249_s16   ;;  %s1424_s12 = smov %s1237_s13 }
 0x141   : > { %p10_p12 = scmp.ge.s32.totalorder %s13_s16, 7   ;;  %s1425_s13 = smov %s1307_s20 }
 0x142   : > { %s1426_s14 = smov %s1245_s15  ;;  %s1427_s15 = smov %s1429_s17 }
 0x143   :  { %12 = sbr.rel (!%p10_p12) target bundleno = 3 (0x3), region = 104 }

// kernel: vqa_forward.36
= control target key start
LH: loop header
LB: loop body
LE: loop exit
PB: predicated region body
PF: predicated region fallthrough
CT: control target
= control target key end

     0   :  { %s1958_s12 = smov 0   ;;  %s1960_s13 = smov 0   ;;  %s2184_s0 = inlined_call_operand.vmem [shape: bf16[16,2560], index: 0, kind: input, shape index: {}]   ;;  %s2185_s1 = inlined_call_operand.vmem [shape: bf16[2560,512], index: 1, kind: input, shape index: {}]   ;;  %s2186_s2 = inlined_call_operand.vmem [shape: f32[1,512], index: 2, kind: input, shape index: {}]   ;;  %s2187_s3 = inlined_call_operand.vmem [shape: bf16[16,512], index: 3, kind: output, shape index: {}]  }
   0x1   :  { %s1962_s14 = smov 0   ;;  %s1964_s15 = smov 0  }
   0x2   :  { %s1966_s16 = smov 0  }
   0x3 LB: > { %s25_s17 = sadd.s32 1, %s1931_s15  ;;  %p48_p1 = scmp.ne.s32.totalorder %s1923_s13, %s1919_s12  ;;  %s1935_s16 = sphi %s1966_s16, %s13_s16   ;;  %s1931_s15 = sphi %s1964_s15, %s2191_s15   ;;  %s1927_s14 = sphi %s1962_s14, %s2190_s14   ;;  %s1923_s13 = sphi %s1960_s13, %s2189_s13   ;;  %s1919_s12 = sphi %s1958_s12, %s2188_s12  }
   0x4   : > { %p26_p0 = scmp.ge.s32.totalorder %s25_s17, 5  ;;  %p49_p2 = scmp.eq.s32.totalorder %s1935_s16, 0 }
   0x5   : > { %s41_s19 = sadd.s32 1, %s1923_s13  ;;  %p1501_p5 = scmp.ge.s32.totalorder %s1935_s16, 5 }
   0x6   : > { %s2193_s17 = smov (%p26_p0, %s25_s17), 0  ;;  %p50_p3 = por %p49_p2, %p48_p1 }
   0x7   : > { %s37_s18 = ssub.s32 %s1931_s15, %s2193_s17  ;;  %164 = sbr.rel (%p1501_p5) target bundleno = 18 (0x12), region = 20 }
   0x8   : > { %p39_p4 = scmp.eq.s32.totalorder %s37_s18, 0 }
   0xa   : > { %s1993_s20 = scalar_select %p39_p4, %s1923_s13, %s41_s19  }
   0xc   : > { %167 = sbr.rel (!%p50_p3) target bundleno = 18 (0x12), region = 24  ;;  %s169_s21 = sand.u32 (%p50_p3), 1, %s1923_s13  }
   0xd   : > { %s1652_s22 = sshll.u32 (%p50_p3), %s1931_s15, 4  ;;  %s1502_s23 = sshll.u32 (%p50_p3), %s169_s21, 5 }
   0xe   : > { %s177_s26 = scalar_lea.vmem (%p50_p3), %s2184_s0, %s1652_s22  ;;  %s171_s27 = scalar_lea.vmem (%p50_p3), [#allocation3], %s1502_s23 }
   0xf   : > { %v190_v0 = vld [vmem:[%s177_s26] sm:$0xff] (%p50_p3)  ;;  %v192_v1 = vld [vmem:[%s177_s26 + $0x8] sm:$0xff] (%p50_p3)  ;;  %v194_v2 = vld [vmem:[%s177_s26 + $0x50] sm:$0xff] (%p50_p3) }
  0x10   : > { %191 = vst [vmem:[%s171_s27] sm:$0xff] (%p50_p3), %v190_v0  ;;  %193 = vst [vmem:[%s171_s27 + $0x8] sm:$0xff] (%p50_p3), %v192_v1  ;;  %v196_v3 = vld [vmem:[%s177_s26 + $0x58] sm:$0xff] (%p50_p3) }
  0x11   : > { %195 = vst [vmem:[%s171_s27 + $0x10] sm:$0xff] %v194_v2  ;;  %197 = vst [vmem:[%s171_s27 + $0x18] sm:$0xff] %v196_v3 }
  0x12 PF: > { %p1505_p6 = scmp.ge.s32.totalorder %s1935_s16, 1  ;;  %p217_p7 = scmp.lt.s32.totalorder %s1935_s16, 6 }
  0x14   : > { %p218_p8 = pnand %p1505_p6, %p217_p7 }
  0x15   : > { %s224_s28 = sand.u32 (!%p218_p8), 1, %s1919_s12   ;;  %s1507_s29 = sshll.u32 (!%p218_p8), %s1927_s14, 6 }
  0x16   : > { %221 = sbr.rel (%p218_p8) target bundleno = 387 (0x183), region = 51  ;;  %s1506_s30 = sshll.u32 (!%p218_p8), %s224_s28, 5 }
  0x17   : > { %p270_p9 = scmp.lt.s32.totalorder (!%p218_p8), %s1507_s29, 319  ;;  %s2010_s8 = scalar_lea.vmem (!%p218_p8), [#allocation3], %s1506_s30 }
  0x18   : > { %p1510_p10 = scmp.ne.s32.totalorder (!%p218_p8), %s1927_s14, 0 }
  0x1b   : > { %s2195_s29 = smov (!%p270_p9, %s1507_s29), 319  ;;  %300 = sbr.rel (%p1510_p10) target bundleno = 37 (0x25), region = 59 }
  0x1c   : > { %s1653_s4 = sshll.u32 %s2195_s29, 4 }
  0x1d   : > { %s2008_s7 = scalar_lea.vmem %s2185_s1, %s1653_s4 }
  0x20   : > { %v1937_v4 = vmov 0.0  }
  0x21   : > { %301 = vst [vmem:[#allocation2 + $0x30] sm:$0xff] %v1937_v4  ;;  %302 = vst [vmem:[#allocation2] sm:$0xff] %v1937_v4 }
  0x22   : > { %303 = vst [vmem:[#allocation2 + $0x18] sm:$0xff] %v1937_v4  ;;  %304 = vst [vmem:[#allocation2 + $0x10] sm:$0xff] %v1937_v4 }
  0x23   : > { %305 = vst [vmem:[#allocation2 + $0x8] sm:$0xff] %v1937_v4  ;;  %306 = vst [vmem:[#allocation2 + $0x20] sm:$0xff] %v1937_v4 }
  0x24   : > { %307 = vst [vmem:[#allocation2 + $0x28] sm:$0xff] %v1937_v4  ;;  %308 = vst [vmem:[#allocation2 + $0x38] sm:$0xff] %v1937_v4 }
  0x25 PF: > { %v1699_v5 = vld [vmem:[%s2008_s7 + $0xe4] ss:$16 sps:$4 sm:$0xff]   ;;  %v1703_v7 = vld [vmem:[%s2008_s7 + $0xe0] ss:$16 sps:$4 sm:$0xff]   ;;  %v1800_v56 = vld [vmem:[%s2010_s8 + $0xc] ss:$16 sps:$4 sm:$0xff]  }
  0x26   : > { %v1701_v6 = vld [vmem:[%s2008_s7 + $0x2e4] ss:$16 sps:$4 sm:$0xff]   ;;  %1109 = vmatprep.subr.bf16.mxu0 %v1699_v5  ;;  %v1704_v8 = vld [vmem:[%s2008_s7 + $0x2e0] ss:$16 sps:$4 sm:$0xff]   ;;  %1184 = vmatprep.mubr.bf16.mxu1 %v1800_v56  ;;  %p1643_p11 = scmp.ne.s32.totalorder %s1927_s14, 4 }
  0x27   : > { %1152 = vmatprep.subr.bf16.mxu1 %v1701_v6  ;;  %v1705_v9 = vld [vmem:[%s2008_s7 + $0xc4] ss:$16 sps:$4 sm:$0xff]   ;;  %1110 = vmatpush1.bf16.msra.mxu0 %v1703_v7  ;;  %v1709_v11 = vld [vmem:[%s2008_s7 + $0xc0] ss:$16 sps:$4 sm:$0xff]   ;;  %v1803_v7 = vld [vmem:[%s2008_s7 + $0xec] ss:$16 sps:$4 sm:$0xff]  }
  0x28   : > { %1153 = vmatpush1.bf16.msra.mxu1 %v1704_v8  ;;  %v1707_v10 = vld [vmem:[%s2008_s7 + $0x2c4] ss:$16 sps:$4 sm:$0xff]   ;;  %1111 = vmatprep.subr.bf16.mxu0 %v1705_v9  ;;  %v1710_v12 = vld [vmem:[%s2008_s7 + $0x2c0] ss:$16 sps:$4 sm:$0xff]   ;;  %v1806_v8 = vld [vmem:[%s2008_s7 + $0x2ec] ss:$16 sps:$4 sm:$0xff]  }
  0x29   : > { %1154 = vmatprep.subr.bf16.mxu1 %v1707_v10  ;;  %v1711_v13 = vld [vmem:[%s2008_s7 + $0xa4] ss:$16 sps:$4 sm:$0xff]   ;;  %v1715_v15 = vld [vmem:[%s2008_s7 + $0xa0] ss:$16 sps:$4 sm:$0xff]   ;;  %v2085_v10 = vld [vmem:[%s2010_s8 + $0x8] ss:$16 sps:$4 sm:$0xff]  }
  0x2a   : > { %v1713_v14 = vld [vmem:[%s2008_s7 + $0x2a4] ss:$16 sps:$4 sm:$0xff]   ;;  %v1716_v16 = vld [vmem:[%s2008_s7 + $0x2a0] ss:$16 sps:$4 sm:$0xff]  }
  0x2b   : > { %1112 = vmatpush1.bf16.msra.mxu0 %v1709_v11  ;;  %v1717_v17 = vld [vmem:[%s2008_s7 + $0x84] ss:$16 sps:$4 sm:$0xff]   ;;  %v1721_v19 = vld [vmem:[%s2008_s7 + $0x80] ss:$16 sps:$4 sm:$0xff]   ;;  %v1801_v11 = vld [vmem:[%s2008_s7 + $0xe8] ss:$16 sps:$4 sm:$0xff]  }
  0x2c   : > { %1155 = vmatpush1.bf16.msra.mxu1 %v1710_v12  ;;  %1113 = vmatprep.subr.bf16.mxu0 %v1711_v13  ;;  %v1719_v18 = vld [vmem:[%s2008_s7 + $0x284] ss:$16 sps:$4 sm:$0xff]   ;;  %v1722_v20 = vld [vmem:[%s2008_s7 + $0x280] ss:$16 sps:$4 sm:$0xff]   ;;  %v1804_v12 = vld [vmem:[%s2008_s7 + $0x2e8] ss:$16 sps:$4 sm:$0xff]  }
  0x2d   : > { %1156 = vmatprep.subr.bf16.mxu1 %v1713_v14  ;;  %v1723_v21 = vld [vmem:[%s2008_s7 + $0x64] ss:$16 sps:$4 sm:$0xff]   ;;  %v1727_v23 = vld [vmem:[%s2008_s7 + $0x60] ss:$16 sps:$4 sm:$0xff]   ;;  %v1809_v13 = vld [vmem:[%s2008_s7 + $0xcc] ss:$16 sps:$4 sm:$0xff]  }
  0x2e   : > { %v1725_v22 = vld [vmem:[%s2008_s7 + $0x264] ss:$16 sps:$4 sm:$0xff]   ;;  %v1728_v24 = vld [vmem:[%s2008_s7 + $0x260] ss:$16 sps:$4 sm:$0xff]   ;;  %v1812_v14 = vld [vmem:[%s2008_s7 + $0x2cc] ss:$16 sps:$4 sm:$0xff]  }
  0x2f   : > { %1114 = vmatpush1.bf16.msra.mxu0 %v1715_v15  ;;  %v1729_v25 = vld [vmem:[%s2008_s7 + $0x44] ss:$16 sps:$4 sm:$0xff]   ;;  %v1733_v27 = vld [vmem:[%s2008_s7 + $0x40] ss:$16 sps:$4 sm:$0xff]   ;;  %v1807_v15 = vld [vmem:[%s2008_s7 + $0xc8] ss:$16 sps:$4 sm:$0xff]  }
  0x30   : > { %1157 = vmatpush1.bf16.msra.mxu1 %v1716_v16  ;;  %1115 = vmatprep.subr.bf16.mxu0 %v1717_v17  ;;  %v1731_v26 = vld [vmem:[%s2008_s7 + $0x244] ss:$16 sps:$4 sm:$0xff]   ;;  %v1734_v28 = vld [vmem:[%s2008_s7 + $0x240] ss:$16 sps:$4 sm:$0xff]   ;;  %v1810_v16 = vld [vmem:[%s2008_s7 + $0x2c8] ss:$16 sps:$4 sm:$0xff]  }
  0x31   : > { %1158 = vmatprep.subr.bf16.mxu1 %v1719_v18  ;;  %v1735_v29 = vld [vmem:[%s2008_s7 + $0x24] ss:$16 sps:$4 sm:$0xff]   ;;  %v1739_v31 = vld [vmem:[%s2008_s7 + $0x20] ss:$16 sps:$4 sm:$0xff]   ;;  %v1815_v17 = vld [vmem:[%s2008_s7 + $0xac] ss:$16 sps:$4 sm:$0xff]  }
  0x32   : > { %v1737_v30 = vld [vmem:[%s2008_s7 + $0x224] ss:$16 sps:$4 sm:$0xff]   ;;  %v1740_v32 = vld [vmem:[%s2008_s7 + $0x220] ss:$16 sps:$4 sm:$0xff]   ;;  %v1818_v18 = vld [vmem:[%s2008_s7 + $0x2ac] ss:$16 sps:$4 sm:$0xff]  }
  0x33   : > { %1116 = vmatpush1.bf16.msra.mxu0 %v1721_v19  ;;  %v1741_v33 = vld [vmem:[%s2008_s7 + $0x4] ss:$16 sps:$4 sm:$0xff]   ;;  %v1745_v35 = vld [vmem:[%s2008_s7] ss:$16 sps:$4 sm:$0xff]   ;;  %v1813_v19 = vld [vmem:[%s2008_s7 + $0xa8] ss:$16 sps:$4 sm:$0xff]  }
  0x34   : > { %1159 = vmatpush1.bf16.msra.mxu1 %v1722_v20  ;;  %1117 = vmatprep.subr.bf16.mxu0 %v1723_v21  ;;  %v1743_v34 = vld [vmem:[%s2008_s7 + $0x204] ss:$16 sps:$4 sm:$0xff]   ;;  %v1746_v36 = vld [vmem:[%s2008_s7 + $0x200] ss:$16 sps:$4 sm:$0xff]   ;;  %v1816_v20 = vld [vmem:[%s2008_s7 + $0x2a8] ss:$16 sps:$4 sm:$0xff]  }
  0x35   : > { %1160 = vmatprep.subr.bf16.mxu1 %v1725_v22  ;;  %v1747_v37 = vld [vmem:[%s2008_s7 + $0x1e4] ss:$16 sps:$4 sm:$0xff]   ;;  %v1751_v39 = vld [vmem:[%s2008_s7 + $0x1e0] ss:$16 sps:$4 sm:$0xff]   ;;  %v1821_v21 = vld [vmem:[%s2008_s7 + $0x8c] ss:$16 sps:$4 sm:$0xff]  }
  0x36   : > { %v1749_v38 = vld [vmem:[%s2008_s7 + $0x3e4] ss:$16 sps:$4 sm:$0xff]   ;;  %v1752_v40 = vld [vmem:[%s2008_s7 + $0x3e0] ss:$16 sps:$4 sm:$0xff]   ;;  %v1824_v22 = vld [vmem:[%s2008_s7 + $0x28c] ss:$16 sps:$4 sm:$0xff]  }
  0x37   : > { %1118 = vmatpush1.bf16.msra.mxu0 %v1727_v23  ;;  %v1753_v41 = vld [vmem:[%s2008_s7 + $0x1c4] ss:$16 sps:$4 sm:$0xff]   ;;  %v1757_v43 = vld [vmem:[%s2008_s7 + $0x1c0] ss:$16 sps:$4 sm:$0xff]   ;;  %v1819_v23 = vld [vmem:[%s2008_s7 + $0x88] ss:$16 sps:$4 sm:$0xff]  }
  0x38   : > { %1161 = vmatpush1.bf16.msra.mxu1 %v1728_v24  ;;  %1119 = vmatprep.subr.bf16.mxu0 %v1729_v25  ;;  %v1755_v42 = vld [vmem:[%s2008_s7 + $0x3c4] ss:$16 sps:$4 sm:$0xff]   ;;  %v1758_v44 = vld [vmem:[%s2008_s7 + $0x3c0] ss:$16 sps:$4 sm:$0xff]   ;;  %v1822_v24 = vld [vmem:[%s2008_s7 + $0x288] ss:$16 sps:$4 sm:$0xff]  }
  0x39   : > { %1162 = vmatprep.subr.bf16.mxu1 %v1731_v26  ;;  %v1759_v45 = vld [vmem:[%s2008_s7 + $0x1a4] ss:$16 sps:$4 sm:$0xff]   ;;  %v1763_v47 = vld [vmem:[%s2008_s7 + $0x1a0] ss:$16 sps:$4 sm:$0xff]   ;;  %v1827_v25 = vld [vmem:[%s2008_s7 + $0x6c] ss:$16 sps:$4 sm:$0xff]  }
  0x3a   : > { %v1761_v46 = vld [vmem:[%s2008_s7 + $0x3a4] ss:$16 sps:$4 sm:$0xff]   ;;  %v1764_v48 = vld [vmem:[%s2008_s7 + $0x3a0] ss:$16 sps:$4 sm:$0xff]   ;;  %v1830_v26 = vld [vmem:[%s2008_s7 + $0x26c] ss:$16 sps:$4 sm:$0xff]  }
  0x3b   : > { %1120 = vmatpush1.bf16.msra.mxu0 %v1733_v27  ;;  %v1765_v49 = vld [vmem:[%s2008_s7 + $0x184] ss:$16 sps:$4 sm:$0xff]   ;;  %v1769_v51 = vld [vmem:[%s2008_s7 + $0x180] ss:$16 sps:$4 sm:$0xff]   ;;  %v1825_v27 = vld [vmem:[%s2008_s7 + $0x68] ss:$16 sps:$4 sm:$0xff]  }
  0x3c   : > { %1163 = vmatpush1.bf16.msra.mxu1 %v1734_v28  ;;  %1121 = vmatprep.subr.bf16.mxu0 %v1735_v29  ;;  %v1767_v50 = vld [vmem:[%s2008_s7 + $0x384] ss:$16 sps:$4 sm:$0xff]   ;;  %v1770_v52 = vld [vmem:[%s2008_s7 + $0x380] ss:$16 sps:$4 sm:$0xff]   ;;  %v1828_v28 = vld [vmem:[%s2008_s7 + $0x268] ss:$16 sps:$4 sm:$0xff]  }
  0x3d   : > { %1164 = vmatprep.subr.bf16.mxu1 %v1737_v30  ;;  %v1771_v53 = vld [vmem:[%s2008_s7 + $0x164] ss:$16 sps:$4 sm:$0xff]   ;;  %v1775_v57 = vld [vmem:[%s2008_s7 + $0x160] ss:$16 sps:$4 sm:$0xff]   ;;  %v1833_v29 = vld [vmem:[%s2008_s7 + $0x4c] ss:$16 sps:$4 sm:$0xff]  }
  0x3e   : > { %v1797_v54 = vld [vmem:[%s2010_s8 + $0x4] ss:$16 sps:$4 sm:$0xff]   ;;  %v1776_v58 = vld [vmem:[%s2008_s7 + $0x360] ss:$16 sps:$4 sm:$0xff]   ;;  %v1836_v30 = vld [vmem:[%s2008_s7 + $0x24c] ss:$16 sps:$4 sm:$0xff]  }
  0x3f   : > { %1122 = vmatpush1.bf16.msra.mxu0 %v1739_v31  ;;  %v1773_v55 = vld [vmem:[%s2008_s7 + $0x364] ss:$16 sps:$4 sm:$0xff]   ;;  %1141 = vmatprep.mubr.bf16.mxu0 %v1797_v54  ;;  %v1781_v61 = vld [vmem:[%s2008_s7 + $0x140] ss:$16 sps:$4 sm:$0xff]   ;;  %v1831_v31 = vld [vmem:[%s2008_s7 + $0x48] ss:$16 sps:$4 sm:$0xff]  }
  0x40   : > { %1165 = vmatpush1.bf16.msra.mxu1 %v1740_v32  ;;  %1123 = vmatprep.subr.bf16.mxu0 %v1741_v33  ;;  %v1777_v59 = vld [vmem:[%s2008_s7 + $0x144] ss:$16 sps:$4 sm:$0xff]   ;;  %v1782_v62 = vld [vmem:[%s2008_s7 + $0x340] ss:$16 sps:$4 sm:$0xff]   ;;  %v1834_v32 = vld [vmem:[%s2008_s7 + $0x248] ss:$16 sps:$4 sm:$0xff]  }
  0x41   : > { %1166 = vmatprep.subr.bf16.mxu1 %v1743_v34  ;;  %v1779_v60 = vld [vmem:[%s2008_s7 + $0x344] ss:$16 sps:$4 sm:$0xff]   ;;  %v1787_v1 = vld [vmem:[%s2008_s7 + $0x120] ss:$16 sps:$4 sm:$0xff]   ;;  %v1839_v33 = vld [vmem:[%s2008_s7 + $0x2c] ss:$16 sps:$4 sm:$0xff]  }
  0x42   : > { %v1783_v63 = vld [vmem:[%s2008_s7 + $0x124] ss:$16 sps:$4 sm:$0xff]   ;;  %v1788_v2 = vld [vmem:[%s2008_s7 + $0x320] ss:$16 sps:$4 sm:$0xff]   ;;  %v1842_v34 = vld [vmem:[%s2008_s7 + $0x22c] ss:$16 sps:$4 sm:$0xff]  }
  0x43   : > { %1124 = vmatpush1.bf16.msra.mxu0 %v1745_v35  ;;  %v1785_v0 = vld [vmem:[%s2008_s7 + $0x324] ss:$16 sps:$4 sm:$0xff]   ;;  %v1793_v5 = vld [vmem:[%s2008_s7 + $0x100] ss:$16 sps:$4 sm:$0xff]   ;;  %v1837_v35 = vld [vmem:[%s2008_s7 + $0x28] ss:$16 sps:$4 sm:$0xff]  }
  0x44   : > { %1167 = vmatpush1.bf16.msra.mxu1 %v1746_v36  ;;  %1125 = vmatprep.subr.bf16.mxu0 %v1747_v37  ;;  %v1789_v3 = vld [vmem:[%s2008_s7 + $0x104] ss:$16 sps:$4 sm:$0xff]   ;;  %v1794_v6 = vld [vmem:[%s2008_s7 + $0x300] ss:$16 sps:$4 sm:$0xff]   ;;  %v1840_v36 = vld [vmem:[%s2008_s7 + $0x228] ss:$16 sps:$4 sm:$0xff]  }
  0x45   : > { %1168 = vmatprep.subr.bf16.mxu1 %v1749_v38  ;;  %v1791_v4 = vld [vmem:[%s2008_s7 + $0x304] ss:$16 sps:$4 sm:$0xff]   ;;  %v2082_v9 = vld [vmem:[%s2010_s8] ss:$16 sps:$4 sm:$0xff]   ;;  %v1845_v37 = vld [vmem:[%s2008_s7 + $0xc] ss:$16 sps:$4 sm:$0xff]  }
  0x46   : > { %v1848_v38 = vld [vmem:[%s2008_s7 + $0x20c] ss:$16 sps:$4 sm:$0xff]  }
  0x47   : > { %1126 = vmatpush2.bf16.msra.mxu0 %v1751_v39  ;;  %v1843_v39 = vld [vmem:[%s2008_s7 + $0x8] ss:$16 sps:$4 sm:$0xff]  }
  0x48   : > { %1169 = vmatpush2.bf16.msra.mxu1 %v1752_v40  ;;  %1127 = vmatprep.subr.bf16.mxu0 %v1753_v41  ;;  %v1846_v40 = vld [vmem:[%s2008_s7 + $0x208] ss:$16 sps:$4 sm:$0xff]   ;;  %v1851_v41 = vld [vmem:[%s2008_s7 + $0x1ec] ss:$16 sps:$4 sm:$0xff]  }
  0x49   : > { %1170 = vmatprep.subr.bf16.mxu1 %v1755_v42  ;;  %v1854_v42 = vld [vmem:[%s2008_s7 + $0x3ec] ss:$16 sps:$4 sm:$0xff]  }
  0x4b   : > { %1128 = vmatpush2.bf16.msra.mxu0 %v1757_v43  ;;  %v1849_v43 = vld [vmem:[%s2008_s7 + $0x1e8] ss:$16 sps:$4 sm:$0xff]  }
  0x4c   : > { %1171 = vmatpush2.bf16.msra.mxu1 %v1758_v44  ;;  %1129 = vmatprep.subr.bf16.mxu0 %v1759_v45  ;;  %v1852_v44 = vld [vmem:[%s2008_s7 + $0x3e8] ss:$16 sps:$4 sm:$0xff]   ;;  %v1857_v45 = vld [vmem:[%s2008_s7 + $0x1cc] ss:$16 sps:$4 sm:$0xff]  }
  0x4d   : > { %1172 = vmatprep.subr.bf16.mxu1 %v1761_v46  ;;  %v1860_v46 = vld [vmem:[%s2008_s7 + $0x3cc] ss:$16 sps:$4 sm:$0xff]  }
  0x4f   : > { %1130 = vmatpush2.bf16.msra.mxu0 %v1763_v47  ;;  %v1855_v47 = vld [vmem:[%s2008_s7 + $0x1c8] ss:$16 sps:$4 sm:$0xff]  }
  0x50   : > { %1173 = vmatpush2.bf16.msra.mxu1 %v1764_v48  ;;  %1131 = vmatprep.subr.bf16.mxu0 %v1765_v49  ;;  %v1858_v48 = vld [vmem:[%s2008_s7 + $0x3c8] ss:$16 sps:$4 sm:$0xff]   ;;  %v1863_v49 = vld [vmem:[%s2008_s7 + $0x1ac] ss:$16 sps:$4 sm:$0xff]  }
  0x51   : > { %1174 = vmatprep.subr.bf16.mxu1 %v1767_v50  ;;  %v1866_v50 = vld [vmem:[%s2008_s7 + $0x3ac] ss:$16 sps:$4 sm:$0xff]  }
  0x53   : > { %1132 = vmatpush2.bf16.msra.mxu0 %v1769_v51  ;;  %v1861_v51 = vld [vmem:[%s2008_s7 + $0x1a8] ss:$16 sps:$4 sm:$0xff]  }
  0x54   : > { %1175 = vmatpush2.bf16.msra.mxu1 %v1770_v52  ;;  %1133 = vmatprep.subr.bf16.mxu0 %v1771_v53  ;;  %v1864_v52 = vld [vmem:[%s2008_s7 + $0x3a8] ss:$16 sps:$4 sm:$0xff]   ;;  %v1869_v53 = vld [vmem:[%s2008_s7 + $0x18c] ss:$16 sps:$4 sm:$0xff]  }
  0x55   : > { %1176 = vmatprep.subr.bf16.mxu1 %v1773_v55  ;;  %v1867_v55 = vld [vmem:[%s2008_s7 + $0x188] ss:$16 sps:$4 sm:$0xff]  }
  0x57   : > { %1134 = vmatpush2.bf16.msra.mxu0 %v1775_v57  ;;  %v1875_v57 = vld [vmem:[%s2008_s7 + $0x16c] ss:$16 sps:$4 sm:$0xff]  }
  0x58   : > { %1177 = vmatpush2.bf16.msra.mxu1 %v1776_v58  ;;  %1135 = vmatprep.subr.bf16.mxu0 %v1777_v59  ;;  %v1878_v58 = vld [vmem:[%s2008_s7 + $0x36c] ss:$16 sps:$4 sm:$0xff]   ;;  %v1873_v59 = vld [vmem:[%s2008_s7 + $0x168] ss:$16 sps:$4 sm:$0xff]  }
  0x59   : > { %1178 = vmatprep.subr.bf16.mxu1 %v1779_v60  ;;  %v1876_v60 = vld [vmem:[%s2008_s7 + $0x368] ss:$16 sps:$4 sm:$0xff]  }
  0x5b   : > { %1136 = vmatpush2.bf16.msra.mxu0 %v1781_v61  ;;  %v1881_v61 = vld [vmem:[%s2008_s7 + $0x14c] ss:$16 sps:$4 sm:$0xff]  }
  0x5c   : > { %1179 = vmatpush2.bf16.msra.mxu1 %v1782_v62  ;;  %1137 = vmatprep.subr.bf16.mxu0 %v1783_v63  ;;  %v1884_v62 = vld [vmem:[%s2008_s7 + $0x34c] ss:$16 sps:$4 sm:$0xff]   ;;  %v1879_v63 = vld [vmem:[%s2008_s7 + $0x148] ss:$16 sps:$4 sm:$0xff]  }
  0x5d   : > { %1180 = vmatprep.subr.bf16.mxu1 %v1785_v0  ;;  %v1882_v0 = vld [vmem:[%s2008_s7 + $0x348] ss:$16 sps:$4 sm:$0xff]  }
  0x5f   : > { %1138 = vmatpush2.bf16.msra.mxu0 %v1787_v1  ;;  %v1887_v1 = vld [vmem:[%s2008_s7 + $0x12c] ss:$16 sps:$4 sm:$0xff]  }
  0x60   : > { %1181 = vmatpush2.bf16.msra.mxu1 %v1788_v2  ;;  %1139 = vmatprep.subr.bf16.mxu0 %v1789_v3  ;;  %v1890_v2 = vld [vmem:[%s2008_s7 + $0x32c] ss:$16 sps:$4 sm:$0xff]   ;;  %v1885_v3 = vld [vmem:[%s2008_s7 + $0x128] ss:$16 sps:$4 sm:$0xff]  }
  0x61   : > { %1182 = vmatprep.subr.bf16.mxu1 %v1791_v4  ;;  %v1888_v4 = vld [vmem:[%s2008_s7 + $0x328] ss:$16 sps:$4 sm:$0xff]  }
  0x63   : > { %1140 = vmatpush2.bf16.msra.mxu0 %v1793_v5  ;;  %v1893_v5 = vld [vmem:[%s2008_s7 + $0x10c] ss:$16 sps:$4 sm:$0xff]  }
  0x64   : > { %1183 = vmatpush2.bf16.msra.mxu1 %v1794_v6  ;;  %1195 = vmatprep.subr.bf16.mxu0 %v1803_v7  ;;  %v1896_v6 = vld [vmem:[%s2008_s7 + $0x30c] ss:$16 sps:$4 sm:$0xff]   ;;  %v1891_v7 = vld [vmem:[%s2008_s7 + $0x108] ss:$16 sps:$4 sm:$0xff]  }
  0x65   : > { %1238 = vmatprep.subr.bf16.mxu1 %v1806_v8  ;;  %v1894_v8 = vld [vmem:[%s2008_s7 + $0x308] ss:$16 sps:$4 sm:$0xff]  }
  0x66   : > { %1142 = vmatmul.mubr.bf16.vlgmr.msra.gmra.mxu0 %v2082_v9 }
  0x67   : > { %1185 = vmatmul.mubr.bf16.vlgmr.msra.gmra.mxu1 %v2085_v10  ;;  %1196 = vmatpush1.bf16.msra.mxu0 %v1801_v11 }
  0x68   : > { %1239 = vmatpush1.bf16.msra.mxu1 %v1804_v12  ;;  %1197 = vmatprep.subr.bf16.mxu0 %v1809_v13  ;;  %v309_v12 = vld [vmem:[#allocation2 + $0x30] sm:$0xff] }
  0x69   : > { %1240 = vmatprep.subr.bf16.mxu1 %v1812_v14  ;;  %1227 = vmatprep.mubr.bf16.mxu0 %v1797_v54  ;;  %v1872_v54 = vld [vmem:[%s2008_s7 + $0x38c] ss:$16 sps:$4 sm:$0xff]  }
  0x6a   : > { %1270 = vmatprep.mubr.bf16.mxu1 %v1800_v56  ;;  %v1870_v56 = vld [vmem:[%s2008_s7 + $0x388] ss:$16 sps:$4 sm:$0xff]  }
  0x6b   : > { %1198 = vmatpush1.bf16.msra.mxu0 %v1807_v15 }
  0x6c   : > { %1241 = vmatpush1.bf16.msra.mxu1 %v1810_v16  ;;  %1199 = vmatprep.subr.bf16.mxu0 %v1815_v17  ;;  %v310_v16 = vld [vmem:[#allocation2] sm:$0xff] }
  0x6d   : > { %1242 = vmatprep.subr.bf16.mxu1 %v1818_v18 }
  0x6f   : > { %1200 = vmatpush1.bf16.msra.mxu0 %v1813_v19 }
  0x70   : > { %1243 = vmatpush1.bf16.msra.mxu1 %v1816_v20  ;;  %1201 = vmatprep.subr.bf16.mxu0 %v1821_v21  ;;  %v313_v21 = vld [vmem:[#allocation2 + $0x8] sm:$0xff] }
  0x71   : > { %1244 = vmatprep.subr.bf16.mxu1 %v1824_v22 }
  0x73   : > { %1202 = vmatpush1.bf16.msra.mxu0 %v1819_v23 }
  0x74   : > { %1245 = vmatpush1.bf16.msra.mxu1 %v1822_v24  ;;  %1203 = vmatprep.subr.bf16.mxu0 %v1827_v25 }
  0x75   : > { %1246 = vmatprep.subr.bf16.mxu1 %v1830_v26  ;;  %v314_v26 = vld [vmem:[#allocation2 + $0x20] sm:$0xff] }
  0x77   : > { %1204 = vmatpush1.bf16.msra.mxu0 %v1825_v27 }
  0x78   : > { %1247 = vmatpush1.bf16.msra.mxu1 %v1828_v28  ;;  %1205 = vmatprep.subr.bf16.mxu0 %v1833_v29 }
  0x79   : > { %1248 = vmatprep.subr.bf16.mxu1 %v1836_v30  ;;  %v311_v30 = vld [vmem:[#allocation2 + $0x18] sm:$0xff] }
  0x7b   : > { %1206 = vmatpush1.bf16.msra.mxu0 %v1831_v31 }
  0x7c   : > { %1249 = vmatpush1.bf16.msra.mxu1 %v1834_v32  ;;  %1207 = vmatprep.subr.bf16.mxu0 %v1839_v33 }
  0x7d   : > { %1250 = vmatprep.subr.bf16.mxu1 %v1842_v34  ;;  %v312_v34 = vld [vmem:[#allocation2 + $0x10] sm:$0xff] }
  0x7f   : > { %1208 = vmatpush1.bf16.msra.mxu0 %v1837_v35 }
  0x80   : > { %1251 = vmatpush1.bf16.msra.mxu1 %v1840_v36  ;;  %1209 = vmatprep.subr.bf16.mxu0 %v1845_v37 }
  0x81   : > { %1252 = vmatprep.subr.bf16.mxu1 %v1848_v38 }
  0x83   : > { %1210 = vmatpush1.bf16.msra.mxu0 %v1843_v39  ;;  %v315_v39 = vld [vmem:[#allocation2 + $0x28] sm:$0xff] }
  0x84   : > { %1253 = vmatpush1.bf16.msra.mxu1 %v1846_v40  ;;  %1211 = vmatprep.subr.bf16.mxu0 %v1851_v41 }
  0x85   : > { %1254 = vmatprep.subr.bf16.mxu1 %v1854_v42 }
  0x87   : > { %1212 = vmatpush2.bf16.msra.mxu0 %v1849_v43 }
  0x88   : > { %1255 = vmatpush2.bf16.msra.mxu1 %v1852_v44  ;;  %1213 = vmatprep.subr.bf16.mxu0 %v1857_v45  ;;  %v316_v44 = vld [vmem:[#allocation2 + $0x38] sm:$0xff] }
  0x89   : > { %1256 = vmatprep.subr.bf16.mxu1 %v1860_v46 }
  0x8b   : > { %1214 = vmatpush2.bf16.msra.mxu0 %v1855_v47 }
  0x8c   : > { %1257 = vmatpush2.bf16.msra.mxu1 %v1858_v48  ;;  %1215 = vmatprep.subr.bf16.mxu0 %v1863_v49 }
  0x8d   : > { %1258 = vmatprep.subr.bf16.mxu1 %v1866_v50 }
  0x8f   : > { %1216 = vmatpush2.bf16.msra.mxu0 %v1861_v51 }
  0x90   : > { %1259 = vmatpush2.bf16.msra.mxu1 %v1864_v52  ;;  %1217 = vmatprep.subr.bf16.mxu0 %v1869_v53 }
  0x91   : > { %1260 = vmatprep.subr.bf16.mxu1 %v1872_v54 }
  0x93   : > { %1218 = vmatpush2.bf16.msra.mxu0 %v1867_v55 }
  0x94   : > { %1261 = vmatpush2.bf16.msra.mxu1 %v1870_v56  ;;  %1219 = vmatprep.subr.bf16.mxu0 %v1875_v57 }
  0x95   : > { %1262 = vmatprep.subr.bf16.mxu1 %v1878_v58 }
  0x97   : > { %1220 = vmatpush2.bf16.msra.mxu0 %v1873_v59 }
  0x98   : > { %1263 = vmatpush2.bf16.msra.mxu1 %v1876_v60  ;;  %1221 = vmatprep.subr.bf16.mxu0 %v1881_v61 }
  0x99   : > { %1264 = vmatprep.subr.bf16.mxu1 %v1884_v62 }
  0x9b   : > { %1222 = vmatpush2.bf16.msra.mxu0 %v1879_v63 }
  0x9c   : > { %1265 = vmatpush2.bf16.msra.mxu1 %v1882_v0  ;;  %1223 = vmatprep.subr.bf16.mxu0 %v1887_v1 }
  0x9d   : > { %1266 = vmatprep.subr.bf16.mxu1 %v1890_v2 }
  0x9f   : > { %1224 = vmatpush2.bf16.msra.mxu0 %v1885_v3 }
  0xa0   : > { %1267 = vmatpush2.bf16.msra.mxu1 %v1888_v4  ;;  %1225 = vmatprep.subr.bf16.mxu0 %v1893_v5 }
  0xa1   : > { %1268 = vmatprep.subr.bf16.mxu1 %v1896_v6 }
  0xa3   : > { %1226 = vmatpush2.bf16.msra.mxu0 %v1891_v7 }
  0xa4   : > { %1269 = vmatpush2.bf16.msra.mxu1 %v1894_v8 }
  0xa6   : > { %1228 = vmatmul.mubr.bf16.vlgmr.msra.gmra.mxu0 %v2082_v9 }
  0xa7   : > { %1271 = vmatmul.mubr.bf16.vlgmr.msra.gmra.mxu1 %v2085_v10 }
 0x126   : > { %v1143_v11 = vpop.f32.mrf.mxu0 }
 0x127   : > { %v1186_v13 = vpop.f32.mrf.mxu1 }
 0x128   : > { %v1187_v14 = vadd.f32 %v1186_v13, %v1143_v11  ;;  %v1145_v15 = vpop.f32.mrf.mxu0 }
 0x129   : > { %v1188_v17 = vpop.f32.mrf.mxu1 }
 0x12a   : > { %v1281_v18 = vadd.f32 %v1187_v14, %v309_v12  ;;  %v1189_v19 = vadd.f32 %v1188_v17, %v1145_v15  ;;  %v1147_v20 = vpop.f32.mrf.mxu0 }
 0x12b   : > { %v1190_v22 = vpop.f32.mrf.mxu1 }
 0x12c   : > { %1289 = vst [vmem:[#allocation2 + $0x30] sm:$0xff] %v1281_v18  ;;  %v1282_v23 = vadd.f32 %v1189_v19, %v310_v16  ;;  %v1191_v24 = vadd.f32 %v1190_v22, %v1147_v20  ;;  %v1149_v25 = vpop.f32.mrf.mxu0 }
 0x12d   : > { %v1192_v9 = vpop.f32.mrf.mxu1 }
 0x12e   : > { %1290 = vst [vmem:[#allocation2] sm:$0xff] %v1282_v23  ;;  %v1285_v10 = vadd.f32 %v1191_v24, %v313_v21  ;;  %v1193_v27 = vadd.f32 %v1192_v9, %v1149_v25 }
 0x130   : > { %1293 = vst [vmem:[#allocation2 + $0x8] sm:$0xff] %v1285_v10  ;;  %v1286_v28 = vadd.f32 %v1193_v27, %v314_v26 }
 0x132   : > { %1294 = vst [vmem:[#allocation2 + $0x20] sm:$0xff] %v1286_v28 }
 0x166   : > { %v1229_v29 = vpop.f32.mrf.mxu0 }
 0x167   : > { %v1272_v31 = vpop.f32.mrf.mxu1 }
 0x168   : > { %v1273_v32 = vadd.f32 %v1272_v31, %v1229_v29  ;;  %v1231_v33 = vpop.f32.mrf.mxu0 }
 0x169   : > { %v1274_v35 = vpop.f32.mrf.mxu1 }
 0x16a   : > { %v1283_v36 = vadd.f32 %v1273_v32, %v311_v30  ;;  %v1275_v37 = vadd.f32 %v1274_v35, %v1231_v33  ;;  %v1233_v38 = vpop.f32.mrf.mxu0 }
 0x16b   : > { %v1276_v40 = vpop.f32.mrf.mxu1 }
 0x16c   : > { %1291 = vst [vmem:[#allocation2 + $0x18] sm:$0xff] %v1283_v36  ;;  %v1284_v41 = vadd.f32 %v1275_v37, %v312_v34  ;;  %v1277_v42 = vadd.f32 %v1276_v40, %v1233_v38  ;;  %v1235_v43 = vpop.f32.mrf.mxu0 }
 0x16d   : > { %v1278_v45 = vpop.f32.mrf.mxu1 }
 0x16e   : > { %1292 = vst [vmem:[#allocation2 + $0x10] sm:$0xff] %v1284_v41  ;;  %v1287_v46 = vadd.f32 %v1277_v42, %v315_v39  ;;  %v1279_v47 = vadd.f32 %v1278_v45, %v1235_v43  ;;  %1300 = sbr.rel (%p1643_p11) target bundleno = 387 (0x183), region = 63 }
 0x170   : > { %1295 = vst [vmem:[#allocation2 + $0x28] sm:$0xff] %v1287_v46  ;;  %v1288_v48 = vadd.f32 %v1279_v47, %v316_v44 }
 0x172   : > { %1296 = vst [vmem:[#allocation2 + $0x38] sm:$0xff] %v1288_v48 }
 0x173   : > { %v1311_v49 = vlaneseq  ;;  %v1309_v51 = vld [vmem:[%s2186_s2] sm:$0xf]  ;;  %v1301_v52 = vld [vmem:[#allocation2 + $0x30] sm:$0xff]  ;;  %v1303_v58 = vld [vmem:[#allocation2 + $0x18] sm:$0xff] }
 0x174   : > { %v1302_v53 = vld [vmem:[#allocation2] sm:$0xff]  ;;  %v1305_v60 = vld [vmem:[#allocation2 + $0x8] sm:$0xff] }
 0x175   : > { %v1312_v50 = vshrl.u32 %v1311_v49, 7  ;;  %v1304_v59 = vld [vmem:[#allocation2 + $0x10] sm:$0xff]  ;;  %v1306_v1 = vld [vmem:[#allocation2 + $0x20] sm:$0xff] }
 0x177   : > { %v1313_v54 = vsub.s32 0, %v1312_v50  ;;  %v1317_v55 = vsub.s32 1, %v1312_v50  ;;  %v1321_v56 = vsub.s32 2, %v1312_v50  ;;  %v1325_v57 = vsub.s32 3, %v1312_v50  ;;  %v1307_v2 = vld [vmem:[#allocation2 + $0x28] sm:$0xff] }
 0x179   : > { %v1314_v61 = vrot.slane %v1309_v51, %v1313_v54  ;;  %v1318_v62 = vrot.slane %v1309_v51, %v1317_v55  ;;  %v1322_v63 = vrot.slane %v1309_v51, %v1321_v56  ;;  %v1326_v0 = vrot.slane %v1309_v51, %v1325_v57  ;;  %v1308_v3 = vld [vmem:[#allocation2 + $0x38] sm:$0xff] }
 0x17b   : > { %v1331_v4 = vadd.f32 %v1314_v61, %v1301_v52  ;;  %v1332_v5 = vadd.f32 %v1318_v62, %v1302_v53  ;;  %v1333_v6 = vadd.f32 %v1322_v63, %v1303_v58  ;;  %v1334_v7 = vadd.f32 %v1326_v0, %v1304_v59 }
 0x17c   : > { %v1335_v8 = vadd.f32 %v1314_v61, %v1305_v60  ;;  %v1336_v11 = vadd.f32 %v1318_v62, %v1306_v1  ;;  %v1337_v12 = vadd.f32 %v1322_v63, %v1307_v2  ;;  %v1338_v13 = vadd.f32 %v1326_v0, %v1308_v3 }
 0x17d   : > { %v1339_v14 = vmax.f32 %v1331_v4, 0.0  ;;  %v1340_v15 = vmax.f32 %v1332_v5, 0.0  ;;  %v1341_v16 = vmax.f32 %v1333_v6, 0.0  ;;  %v1342_v17 = vmax.f32 %v1334_v7, 0.0 }
 0x17e   : > { %v1343_v18 = vmax.f32 %v1335_v8, 0.0  ;;  %v1344_v19 = vmax.f32 %v1336_v11, 0.0  ;;  %v1345_v20 = vmax.f32 %v1337_v12, 0.0  ;;  %v1346_v21 = vmax.f32 %v1338_v13, 0.0 }
 0x17f   : > { %v1654_v22 = vpack.c.bf16 %v1340_v15, %v1339_v14  ;;  %v1655_v23 = vpack.c.bf16 %v1342_v17, %v1341_v16 }
 0x180   : > { %v1656_v24 = vpack.c.bf16 %v1344_v19, %v1343_v18  ;;  %v1657_v25 = vpack.c.bf16 %v1346_v21, %v1345_v20 }
 0x181   : > { %1371 = vst [vmem:[%s2187_s3] sm:$0xff] %v1654_v22  ;;  %1372 = vst [vmem:[%s2187_s3 + $0x8] sm:$0xff] %v1655_v23 }
 0x182   : > { %1373 = vst [vmem:[%s2187_s3 + $0x10] sm:$0xff] %v1656_v24  ;;  %1374 = vst [vmem:[%s2187_s3 + $0x18] sm:$0xff] %v1657_v25 }
 0x183 PF: > { %s13_s16 = sadd.s32 1, %s1935_s16   ;;  %s2188_s12 = smov %s1923_s13 }
 0x184   : > { %p10_p12 = scmp.ge.s32.totalorder %s13_s16, 7   ;;  %s2189_s13 = smov %s1993_s20 }
 0x185   : > { %s2190_s14 = smov %s1931_s15  ;;  %s2191_s15 = smov %s2193_s17 }
 0x186   :  { %12 = sbr.rel (!%p10_p12) target bundleno = 3 (0x3), region = 104 }

// kernel: vqa_forward.37
= control target key start
LH: loop header
LB: loop body
LE: loop exit
PB: predicated region body
PF: predicated region fallthrough
CT: control target
= control target key end

     0   :  { %s1011_s1 = inlined_call_operand.vmem [shape: bf16[256,512], index: 1, kind: input, shape index: {}]   ;;  %s1012_s0 = inlined_call_operand.vmem [shape: bf16[16,256], index: 0, kind: input, shape index: {}]   ;;  %s1013_s2 = inlined_call_operand.vmem [shape: f32[1,512], index: 2, kind: input, shape index: {}]   ;;  %s1014_s3 = inlined_call_operand.vmem [shape: bf16[16,512], index: 3, kind: output, shape index: {}]  }
   0x1   :  { %v679_v0 = vld [vmem:[%s1011_s1 + $0xe4] ss:$16 sps:$4 sm:$0xff]   ;;  %v681_v1 = vld [vmem:[%s1011_s1 + $0xec] ss:$16 sps:$4 sm:$0xff]   ;;  %v683_v2 = vld [vmem:[%s1011_s1 + $0xe0] ss:$16 sps:$4 sm:$0xff]  }
   0x2   :  { %430 = vmatprep.subr.bf16.mxu0 %v679_v0  ;;  %v684_v3 = vld [vmem:[%s1011_s1 + $0xe8] ss:$16 sps:$4 sm:$0xff]   ;;  %473 = vmatprep.subr.bf16.mxu1 %v681_v1  ;;  %v685_v4 = vld [vmem:[%s1011_s1 + $0xc4] ss:$16 sps:$4 sm:$0xff]   ;;  %v687_v5 = vld [vmem:[%s1011_s1 + $0xcc] ss:$16 sps:$4 sm:$0xff]  }
   0x3   :  { %431 = vmatpush1.bf16.msra.mxu0 %v683_v2  ;;  %474 = vmatpush1.bf16.msra.mxu1 %v684_v3  ;;  %v689_v6 = vld [vmem:[%s1011_s1 + $0xc0] ss:$16 sps:$4 sm:$0xff]   ;;  %v690_v7 = vld [vmem:[%s1011_s1 + $0xc8] ss:$16 sps:$4 sm:$0xff]   ;;  %v691_v8 = vld [vmem:[%s1011_s1 + $0xa4] ss:$16 sps:$4 sm:$0xff]   ;;  %v545_v2 = vlaneseq }
   0x4   :  { %432 = vmatprep.subr.bf16.mxu0 %v685_v4  ;;  %475 = vmatprep.subr.bf16.mxu1 %v687_v5  ;;  %v693_v9 = vld [vmem:[%s1011_s1 + $0xac] ss:$16 sps:$4 sm:$0xff]   ;;  %v695_v10 = vld [vmem:[%s1011_s1 + $0xa0] ss:$16 sps:$4 sm:$0xff]   ;;  %v696_v11 = vld [vmem:[%s1011_s1 + $0xa8] ss:$16 sps:$4 sm:$0xff]  }
   0x5   :  { %v697_v12 = vld [vmem:[%s1011_s1 + $0x84] ss:$16 sps:$4 sm:$0xff]   ;;  %v699_v13 = vld [vmem:[%s1011_s1 + $0x8c] ss:$16 sps:$4 sm:$0xff]   ;;  %v701_v14 = vld [vmem:[%s1011_s1 + $0x80] ss:$16 sps:$4 sm:$0xff]  }
   0x6   :  { %v702_v15 = vld [vmem:[%s1011_s1 + $0x88] ss:$16 sps:$4 sm:$0xff]   ;;  %v703_v16 = vld [vmem:[%s1011_s1 + $0x64] ss:$16 sps:$4 sm:$0xff]   ;;  %v705_v17 = vld [vmem:[%s1011_s1 + $0x6c] ss:$16 sps:$4 sm:$0xff]  }
   0x7   :  { %433 = vmatpush1.bf16.msra.mxu0 %v689_v6  ;;  %476 = vmatpush1.bf16.msra.mxu1 %v690_v7  ;;  %v707_v18 = vld [vmem:[%s1011_s1 + $0x60] ss:$16 sps:$4 sm:$0xff]   ;;  %v708_v19 = vld [vmem:[%s1011_s1 + $0x68] ss:$16 sps:$4 sm:$0xff]   ;;  %v709_v20 = vld [vmem:[%s1011_s1 + $0x44] ss:$16 sps:$4 sm:$0xff]  }
   0x8   :  { %434 = vmatprep.subr.bf16.mxu0 %v691_v8  ;;  %477 = vmatprep.subr.bf16.mxu1 %v693_v9  ;;  %v711_v21 = vld [vmem:[%s1011_s1 + $0x4c] ss:$16 sps:$4 sm:$0xff]   ;;  %v713_v22 = vld [vmem:[%s1011_s1 + $0x40] ss:$16 sps:$4 sm:$0xff]   ;;  %v714_v23 = vld [vmem:[%s1011_s1 + $0x48] ss:$16 sps:$4 sm:$0xff]  }
   0x9   :  { %v715_v24 = vld [vmem:[%s1011_s1 + $0x24] ss:$16 sps:$4 sm:$0xff]   ;;  %v717_v25 = vld [vmem:[%s1011_s1 + $0x2c] ss:$16 sps:$4 sm:$0xff]   ;;  %v719_v26 = vld [vmem:[%s1011_s1 + $0x20] ss:$16 sps:$4 sm:$0xff]  }
   0xa   :  { %v720_v27 = vld [vmem:[%s1011_s1 + $0x28] ss:$16 sps:$4 sm:$0xff]   ;;  %v721_v28 = vld [vmem:[%s1011_s1 + $0x4] ss:$16 sps:$4 sm:$0xff]   ;;  %v723_v29 = vld [vmem:[%s1011_s1 + $0xc] ss:$16 sps:$4 sm:$0xff]  }
   0xb   :  { %435 = vmatpush1.bf16.msra.mxu0 %v695_v10  ;;  %478 = vmatpush1.bf16.msra.mxu1 %v696_v11  ;;  %v725_v30 = vld [vmem:[%s1011_s1] ss:$16 sps:$4 sm:$0xff]   ;;  %v726_v31 = vld [vmem:[%s1011_s1 + $0x8] ss:$16 sps:$4 sm:$0xff]   ;;  %v727_v32 = vld [vmem:[%s1011_s1 + $0x1e4] ss:$16 sps:$4 sm:$0xff]  }
   0xc   :  { %436 = vmatprep.subr.bf16.mxu0 %v697_v12  ;;  %479 = vmatprep.subr.bf16.mxu1 %v699_v13  ;;  %v729_v33 = vld [vmem:[%s1011_s1 + $0x1ec] ss:$16 sps:$4 sm:$0xff]   ;;  %v731_v34 = vld [vmem:[%s1011_s1 + $0x1e0] ss:$16 sps:$4 sm:$0xff]   ;;  %v732_v35 = vld [vmem:[%s1011_s1 + $0x1e8] ss:$16 sps:$4 sm:$0xff]  }
   0xd   :  { %v733_v36 = vld [vmem:[%s1011_s1 + $0x1c4] ss:$16 sps:$4 sm:$0xff]   ;;  %v735_v37 = vld [vmem:[%s1011_s1 + $0x1cc] ss:$16 sps:$4 sm:$0xff]   ;;  %v737_v38 = vld [vmem:[%s1011_s1 + $0x1c0] ss:$16 sps:$4 sm:$0xff]  }
   0xe   :  { %v738_v39 = vld [vmem:[%s1011_s1 + $0x1c8] ss:$16 sps:$4 sm:$0xff]   ;;  %v739_v40 = vld [vmem:[%s1011_s1 + $0x1a4] ss:$16 sps:$4 sm:$0xff]   ;;  %v741_v41 = vld [vmem:[%s1011_s1 + $0x1ac] ss:$16 sps:$4 sm:$0xff]  }
   0xf   :  { %437 = vmatpush1.bf16.msra.mxu0 %v701_v14  ;;  %480 = vmatpush1.bf16.msra.mxu1 %v702_v15  ;;  %v743_v42 = vld [vmem:[%s1011_s1 + $0x1a0] ss:$16 sps:$4 sm:$0xff]   ;;  %v744_v43 = vld [vmem:[%s1011_s1 + $0x1a8] ss:$16 sps:$4 sm:$0xff]   ;;  %v745_v44 = vld [vmem:[%s1011_s1 + $0x184] ss:$16 sps:$4 sm:$0xff]  }
  0x10   :  { %438 = vmatprep.subr.bf16.mxu0 %v703_v16  ;;  %481 = vmatprep.subr.bf16.mxu1 %v705_v17  ;;  %v747_v45 = vld [vmem:[%s1011_s1 + $0x18c] ss:$16 sps:$4 sm:$0xff]   ;;  %v749_v47 = vld [vmem:[%s1011_s1 + $0x180] ss:$16 sps:$4 sm:$0xff]   ;;  %v750_v48 = vld [vmem:[%s1011_s1 + $0x188] ss:$16 sps:$4 sm:$0xff]  }
  0x11   :  { %v777_v46 = vld [vmem:[%s1012_s0 + $0x4] ss:$8 sps:$4 sm:$0xff]   ;;  %v755_v51 = vld [vmem:[%s1011_s1 + $0x160] ss:$16 sps:$4 sm:$0xff]   ;;  %v756_v52 = vld [vmem:[%s1011_s1 + $0x168] ss:$16 sps:$4 sm:$0xff]  }
  0x12   :  { %v751_v49 = vld [vmem:[%s1011_s1 + $0x164] ss:$16 sps:$4 sm:$0xff]   ;;  %v753_v50 = vld [vmem:[%s1011_s1 + $0x16c] ss:$16 sps:$4 sm:$0xff]   ;;  %462 = vmatprep.mubr.bf16.mxu0 %v777_v46  ;;  %505 = vmatprep.mubr.bf16.mxu1 %v777_v46  ;;  %v761_v55 = vld [vmem:[%s1011_s1 + $0x140] ss:$16 sps:$4 sm:$0xff]  }
  0x13   :  { %439 = vmatpush1.bf16.msra.mxu0 %v707_v18  ;;  %482 = vmatpush1.bf16.msra.mxu1 %v708_v19  ;;  %v757_v53 = vld [vmem:[%s1011_s1 + $0x144] ss:$16 sps:$4 sm:$0xff]   ;;  %v759_v54 = vld [vmem:[%s1011_s1 + $0x14c] ss:$16 sps:$4 sm:$0xff]   ;;  %v762_v56 = vld [vmem:[%s1011_s1 + $0x148] ss:$16 sps:$4 sm:$0xff]  }
  0x14   :  { %440 = vmatprep.subr.bf16.mxu0 %v709_v20  ;;  %483 = vmatprep.subr.bf16.mxu1 %v711_v21  ;;  %v763_v57 = vld [vmem:[%s1011_s1 + $0x124] ss:$16 sps:$4 sm:$0xff]   ;;  %v765_v58 = vld [vmem:[%s1011_s1 + $0x12c] ss:$16 sps:$4 sm:$0xff]   ;;  %v767_v59 = vld [vmem:[%s1011_s1 + $0x120] ss:$16 sps:$4 sm:$0xff]  }
  0x15   :  { %v768_v60 = vld [vmem:[%s1011_s1 + $0x128] ss:$16 sps:$4 sm:$0xff]   ;;  %v769_v61 = vld [vmem:[%s1011_s1 + $0x104] ss:$16 sps:$4 sm:$0xff]   ;;  %v771_v62 = vld [vmem:[%s1011_s1 + $0x10c] ss:$16 sps:$4 sm:$0xff]  }
  0x16   :  { %v773_v63 = vld [vmem:[%s1011_s1 + $0x100] ss:$16 sps:$4 sm:$0xff]   ;;  %v774_v0 = vld [vmem:[%s1011_s1 + $0x108] ss:$16 sps:$4 sm:$0xff]   ;;  %v546_v3 = vshrl.u32 %v545_v2, 7 }
  0x17   :  { %441 = vmatpush1.bf16.msra.mxu0 %v713_v22  ;;  %484 = vmatpush1.bf16.msra.mxu1 %v714_v23  ;;  %v775_v1 = vld [vmem:[%s1012_s0] ss:$8 sps:$4 sm:$0xff]  }
  0x18   :  { %442 = vmatprep.subr.bf16.mxu0 %v715_v24  ;;  %485 = vmatprep.subr.bf16.mxu1 %v717_v25  ;;  %v547_v4 = vsub.s32 0, %v546_v3  ;;  %v555_v5 = vsub.s32 2, %v546_v3  ;;  %v551_v6 = vsub.s32 1, %v546_v3  ;;  %v559_v7 = vsub.s32 3, %v546_v3  ;;  %v543_v8 = vld [vmem:[%s1013_s2] sm:$0xf] }
  0x1a   :  { %v548_v9 = vrot.slane %v543_v8, %v547_v4  ;;  %v556_v10 = vrot.slane %v543_v8, %v555_v5  ;;  %v552_v11 = vrot.slane %v543_v8, %v551_v6  ;;  %v560_v12 = vrot.slane %v543_v8, %v559_v7 }
  0x1b   :  { %443 = vmatpush1.bf16.msra.mxu0 %v719_v26  ;;  %486 = vmatpush1.bf16.msra.mxu1 %v720_v27 }
  0x1c   :  { %444 = vmatprep.subr.bf16.mxu0 %v721_v28  ;;  %487 = vmatprep.subr.bf16.mxu1 %v723_v29 }
  0x1f   :  { %445 = vmatpush1.bf16.msra.mxu0 %v725_v30  ;;  %488 = vmatpush1.bf16.msra.mxu1 %v726_v31 }
  0x20   :  { %446 = vmatprep.subr.bf16.mxu0 %v727_v32  ;;  %489 = vmatprep.subr.bf16.mxu1 %v729_v33 }
  0x23   :  { %447 = vmatpush2.bf16.msra.mxu0 %v731_v34  ;;  %490 = vmatpush2.bf16.msra.mxu1 %v732_v35 }
  0x24   :  { %448 = vmatprep.subr.bf16.mxu0 %v733_v36  ;;  %491 = vmatprep.subr.bf16.mxu1 %v735_v37 }
  0x27   :  { %449 = vmatpush2.bf16.msra.mxu0 %v737_v38  ;;  %492 = vmatpush2.bf16.msra.mxu1 %v738_v39 }
  0x28   :  { %450 = vmatprep.subr.bf16.mxu0 %v739_v40  ;;  %493 = vmatprep.subr.bf16.mxu1 %v741_v41 }
  0x2b   :  { %451 = vmatpush2.bf16.msra.mxu0 %v743_v42  ;;  %494 = vmatpush2.bf16.msra.mxu1 %v744_v43 }
  0x2c   :  { %452 = vmatprep.subr.bf16.mxu0 %v745_v44  ;;  %495 = vmatprep.subr.bf16.mxu1 %v747_v45 }
  0x2f   :  { %453 = vmatpush2.bf16.msra.mxu0 %v749_v47  ;;  %496 = vmatpush2.bf16.msra.mxu1 %v750_v48 }
  0x30   :  { %454 = vmatprep.subr.bf16.mxu0 %v751_v49  ;;  %497 = vmatprep.subr.bf16.mxu1 %v753_v50 }
  0x33   :  { %455 = vmatpush2.bf16.msra.mxu0 %v755_v51  ;;  %498 = vmatpush2.bf16.msra.mxu1 %v756_v52 }
  0x34   :  { %456 = vmatprep.subr.bf16.mxu0 %v757_v53  ;;  %499 = vmatprep.subr.bf16.mxu1 %v759_v54 }
  0x37   :  { %457 = vmatpush2.bf16.msra.mxu0 %v761_v55  ;;  %500 = vmatpush2.bf16.msra.mxu1 %v762_v56 }
  0x38   :  { %458 = vmatprep.subr.bf16.mxu0 %v763_v57  ;;  %501 = vmatprep.subr.bf16.mxu1 %v765_v58 }
  0x3b   :  { %459 = vmatpush2.bf16.msra.mxu0 %v767_v59  ;;  %502 = vmatpush2.bf16.msra.mxu1 %v768_v60 }
  0x3c   :  { %460 = vmatprep.subr.bf16.mxu0 %v769_v61  ;;  %503 = vmatprep.subr.bf16.mxu1 %v771_v62 }
  0x3f   :  { %461 = vmatpush2.bf16.msra.mxu0 %v773_v63  ;;  %504 = vmatpush2.bf16.msra.mxu1 %v774_v0 }
  0x42   :  { %463 = vmatmul.mubr.bf16.vlgmr.msra.gmra.mxu0 %v775_v1  ;;  %506 = vmatmul.mubr.bf16.vlgmr.msra.gmra.mxu1 %v775_v1 }
 0x102   :  { %v464_v13 = vpop.f32.mrf.mxu0  ;;  %v507_v14 = vpop.f32.mrf.mxu1 }
 0x103   :  { %v565_v17 = vadd.f32 %v548_v9, %v464_v13  ;;  %v567_v18 = vadd.f32 %v556_v10, %v507_v14 }
 0x104   :  { %v466_v15 = vpop.f32.mrf.mxu0  ;;  %v509_v16 = vpop.f32.mrf.mxu1 }
 0x105   :  { %v566_v19 = vadd.f32 %v552_v11, %v466_v15  ;;  %v568_v20 = vadd.f32 %v560_v12, %v509_v16 }
 0x106   :  { %v468_v21 = vpop.f32.mrf.mxu0  ;;  %v511_v22 = vpop.f32.mrf.mxu1 }
 0x107   :  { %v675_v23 = vpack.c.bf16 %v566_v19, %v565_v17  ;;  %v676_v24 = vpack.c.bf16 %v568_v20, %v567_v18  ;;  %v569_v27 = vadd.f32 %v548_v9, %v468_v21  ;;  %v571_v28 = vadd.f32 %v556_v10, %v511_v22 }
 0x108   :  { %v470_v25 = vpop.f32.mrf.mxu0  ;;  %v513_v26 = vpop.f32.mrf.mxu1 }
 0x109   :  { %597 = vst [vmem:[%s1014_s3] sm:$0xff] %v675_v23  ;;  %598 = vst [vmem:[%s1014_s3 + $0x8] sm:$0xff] %v676_v24  ;;  %v570_v29 = vadd.f32 %v552_v11, %v470_v25  ;;  %v572_v30 = vadd.f32 %v560_v12, %v513_v26 }
 0x10b   :  { %v677_v31 = vpack.c.bf16 %v570_v29, %v569_v27  ;;  %v678_v32 = vpack.c.bf16 %v572_v30, %v571_v28 }
 0x10d   :  { %599 = vst [vmem:[%s1014_s3 + $0x10] sm:$0xff] %v677_v31  ;;  %600 = vst [vmem:[%s1014_s3 + $0x18] sm:$0xff] %v678_v32 }

// kernel: vqa_forward.38
= control target key start
LH: loop header
LB: loop body
LE: loop exit
PB: predicated region body
PF: predicated region fallthrough
CT: control target
= control target key end

     0   :  { %s2073_s15 = smov 0   ;;  %s2075_s16 = smov 0   ;;  %s2311_s0 = inlined_call_operand.vmem [shape: bf16[16,4608], index: 0, kind: input, shape index: {}]   ;;  %s2312_s1 = inlined_call_operand.vmem [shape: bf16[4608,512], index: 1, kind: input, shape index: {}]   ;;  %s2313_s2 = inlined_call_operand.vmem [shape: f32[1,512], index: 2, kind: input, shape index: {}]   ;;  %s2314_s3 = inlined_call_operand.vmem [shape: bf16[16,512], index: 3, kind: input, shape index: {}]   ;;  %s2315_s4 = inlined_call_operand.vmem [shape: bf16[16,512], index: 4, kind: output, shape index: {}]  }
   0x1   :  { %s2077_s17 = smov 0   ;;  %s2079_s18 = smov 0  }
   0x2   :  { %s2081_s19 = smov 0  }
   0x3 LB: > { %s26_s20 = sadd.s32 1, %s2041_s18  ;;  %p49_p1 = scmp.ne.s32.totalorder %s2033_s16, %s2029_s15  ;;  %s2045_s19 = sphi %s2081_s19, %s14_s19   ;;  %s2041_s18 = sphi %s2079_s18, %s2319_s18   ;;  %s2037_s17 = sphi %s2077_s17, %s2318_s17   ;;  %s2033_s16 = sphi %s2075_s16, %s2317_s16   ;;  %s2029_s15 = sphi %s2073_s15, %s2316_s15  }
   0x4   : > { %p27_p0 = scmp.ge.s32.totalorder %s26_s20, 9  ;;  %p50_p2 = scmp.eq.s32.totalorder %s2045_s19, 0 }
   0x5   : > { %s42_s22 = sadd.s32 1, %s2033_s16  ;;  %p1611_p5 = scmp.ge.s32.totalorder %s2045_s19, 9 }
   0x6   : > { %s2321_s20 = smov (%p27_p0, %s26_s20), 0  ;;  %p51_p3 = por %p50_p2, %p49_p1 }
   0x7   : > { %s38_s21 = ssub.s32 %s2041_s18, %s2321_s20  ;;  %208 = sbr.rel (%p1611_p5) target bundleno = 18 (0x12), region = 24 }
   0x8   : > { %p40_p4 = scmp.eq.s32.totalorder %s38_s21, 0 }
   0xa   : > { %s2108_s23 = scalar_select %p40_p4, %s2033_s16, %s42_s22  }
   0xc   : > { %211 = sbr.rel (!%p51_p3) target bundleno = 18 (0x12), region = 28  ;;  %s213_s24 = sand.u32 (%p51_p3), 1, %s2033_s16  }
   0xd   : > { %s1762_s25 = sshll.u32 (%p51_p3), %s2041_s18, 4  ;;  %s1612_s26 = sshll.u32 (%p51_p3), %s213_s24, 5 }
   0xe   : > { %s221_s29 = scalar_lea.vmem (%p51_p3), %s2311_s0, %s1762_s25  ;;  %s215_s30 = scalar_lea.vmem (%p51_p3), [#allocation3], %s1612_s26 }
   0xf   : > { %v234_v0 = vld [vmem:[%s221_s29] sm:$0xff] (%p51_p3)  ;;  %v236_v1 = vld [vmem:[%s221_s29 + $0x8] sm:$0xff] (%p51_p3)  ;;  %v238_v2 = vld [vmem:[%s221_s29 + $0x90] sm:$0xff] (%p51_p3) }
  0x10   : > { %235 = vst [vmem:[%s215_s30] sm:$0xff] (%p51_p3), %v234_v0  ;;  %237 = vst [vmem:[%s215_s30 + $0x8] sm:$0xff] (%p51_p3), %v236_v1  ;;  %v240_v3 = vld [vmem:[%s221_s29 + $0x98] sm:$0xff] (%p51_p3) }
  0x11   : > { %239 = vst [vmem:[%s215_s30 + $0x10] sm:$0xff] %v238_v2  ;;  %241 = vst [vmem:[%s215_s30 + $0x18] sm:$0xff] %v240_v3 }
  0x12 PF: > { %p1615_p6 = scmp.ge.s32.totalorder %s2045_s19, 1  ;;  %p261_p7 = scmp.lt.s32.totalorder %s2045_s19, 10 }
  0x14   : > { %p262_p8 = pnand %p1615_p6, %p261_p7 }
  0x15   : > { %s268_s5 = sand.u32 (!%p262_p8), 1, %s2029_s15   ;;  %s1617_s6 = sshll.u32 (!%p262_p8), %s2037_s17, 6 }
  0x16   : > { %265 = sbr.rel (%p262_p8) target bundleno = 389 (0x185), region = 55  ;;  %s1616_s7 = sshll.u32 (!%p262_p8), %s268_s5, 5 }
  0x17   : > { %p326_p9 = scmp.lt.s32.totalorder (!%p262_p8), %s1617_s6, 575  ;;  %s2125_s12 = scalar_lea.vmem (!%p262_p8), [#allocation3], %s1616_s7 }
  0x18   : > { %p1620_p10 = scmp.ne.s32.totalorder (!%p262_p8), %s2037_s17, 0 }
  0x1b   : > { %s2323_s6 = smov (!%p326_p9, %s1617_s6), 575  ;;  %368 = sbr.rel (%p1620_p10) target bundleno = 37 (0x25), region = 63 }
  0x1c   : > { %s1763_s8 = sshll.u32 %s2323_s6, 4 }
  0x1d   : > { %s2123_s11 = scalar_lea.vmem %s2312_s1, %s1763_s8 }
  0x20   : > { %v2047_v4 = vmov 0.0  }
  0x21   : > { %369 = vst [vmem:[#allocation2 + $0x30] sm:$0xff] %v2047_v4  ;;  %370 = vst [vmem:[#allocation2] sm:$0xff] %v2047_v4 }
  0x22   : > { %371 = vst [vmem:[#allocation2 + $0x18] sm:$0xff] %v2047_v4  ;;  %372 = vst [vmem:[#allocation2 + $0x10] sm:$0xff] %v2047_v4 }
  0x23   : > { %373 = vst [vmem:[#allocation2 + $0x8] sm:$0xff] %v2047_v4  ;;  %374 = vst [vmem:[#allocation2 + $0x20] sm:$0xff] %v2047_v4 }
  0x24   : > { %375 = vst [vmem:[#allocation2 + $0x28] sm:$0xff] %v2047_v4  ;;  %376 = vst [vmem:[#allocation2 + $0x38] sm:$0xff] %v2047_v4 }
  0x25 PF: > { %v1809_v5 = vld [vmem:[%s2123_s11 + $0xe4] ss:$16 sps:$4 sm:$0xff]   ;;  %v1813_v7 = vld [vmem:[%s2123_s11 + $0xe0] ss:$16 sps:$4 sm:$0xff]   ;;  %v1910_v56 = vld [vmem:[%s2125_s12 + $0xc] ss:$16 sps:$4 sm:$0xff]  }
  0x26   : > { %v1811_v6 = vld [vmem:[%s2123_s11 + $0x2e4] ss:$16 sps:$4 sm:$0xff]   ;;  %1177 = vmatprep.subr.bf16.mxu0 %v1809_v5  ;;  %v1814_v8 = vld [vmem:[%s2123_s11 + $0x2e0] ss:$16 sps:$4 sm:$0xff]   ;;  %1252 = vmatprep.mubr.bf16.mxu1 %v1910_v56  ;;  %p1753_p11 = scmp.ne.s32.totalorder %s2037_s17, 8 }
  0x27   : > { %1220 = vmatprep.subr.bf16.mxu1 %v1811_v6  ;;  %v1815_v9 = vld [vmem:[%s2123_s11 + $0xc4] ss:$16 sps:$4 sm:$0xff]   ;;  %1178 = vmatpush1.bf16.msra.mxu0 %v1813_v7  ;;  %v1819_v11 = vld [vmem:[%s2123_s11 + $0xc0] ss:$16 sps:$4 sm:$0xff]   ;;  %v1913_v7 = vld [vmem:[%s2123_s11 + $0xec] ss:$16 sps:$4 sm:$0xff]  }
  0x28   : > { %1221 = vmatpush1.bf16.msra.mxu1 %v1814_v8  ;;  %v1817_v10 = vld [vmem:[%s2123_s11 + $0x2c4] ss:$16 sps:$4 sm:$0xff]   ;;  %1179 = vmatprep.subr.bf16.mxu0 %v1815_v9  ;;  %v1820_v12 = vld [vmem:[%s2123_s11 + $0x2c0] ss:$16 sps:$4 sm:$0xff]   ;;  %v1916_v8 = vld [vmem:[%s2123_s11 + $0x2ec] ss:$16 sps:$4 sm:$0xff]  }
  0x29   : > { %1222 = vmatprep.subr.bf16.mxu1 %v1817_v10  ;;  %v1821_v13 = vld [vmem:[%s2123_s11 + $0xa4] ss:$16 sps:$4 sm:$0xff]   ;;  %v1825_v15 = vld [vmem:[%s2123_s11 + $0xa0] ss:$16 sps:$4 sm:$0xff]   ;;  %v2200_v10 = vld [vmem:[%s2125_s12 + $0x8] ss:$16 sps:$4 sm:$0xff]  }
  0x2a   : > { %v1823_v14 = vld [vmem:[%s2123_s11 + $0x2a4] ss:$16 sps:$4 sm:$0xff]   ;;  %v1826_v16 = vld [vmem:[%s2123_s11 + $0x2a0] ss:$16 sps:$4 sm:$0xff]  }
  0x2b   : > { %1180 = vmatpush1.bf16.msra.mxu0 %v1819_v11  ;;  %v1827_v17 = vld [vmem:[%s2123_s11 + $0x84] ss:$16 sps:$4 sm:$0xff]   ;;  %v1831_v19 = vld [vmem:[%s2123_s11 + $0x80] ss:$16 sps:$4 sm:$0xff]   ;;  %v1911_v11 = vld [vmem:[%s2123_s11 + $0xe8] ss:$16 sps:$4 sm:$0xff]  }
  0x2c   : > { %1223 = vmatpush1.bf16.msra.mxu1 %v1820_v12  ;;  %1181 = vmatprep.subr.bf16.mxu0 %v1821_v13  ;;  %v1829_v18 = vld [vmem:[%s2123_s11 + $0x284] ss:$16 sps:$4 sm:$0xff]   ;;  %v1832_v20 = vld [vmem:[%s2123_s11 + $0x280] ss:$16 sps:$4 sm:$0xff]   ;;  %v1914_v12 = vld [vmem:[%s2123_s11 + $0x2e8] ss:$16 sps:$4 sm:$0xff]  }
  0x2d   : > { %1224 = vmatprep.subr.bf16.mxu1 %v1823_v14  ;;  %v1833_v21 = vld [vmem:[%s2123_s11 + $0x64] ss:$16 sps:$4 sm:$0xff]   ;;  %v1837_v23 = vld [vmem:[%s2123_s11 + $0x60] ss:$16 sps:$4 sm:$0xff]   ;;  %v1919_v13 = vld [vmem:[%s2123_s11 + $0xcc] ss:$16 sps:$4 sm:$0xff]  }
  0x2e   : > { %v1835_v22 = vld [vmem:[%s2123_s11 + $0x264] ss:$16 sps:$4 sm:$0xff]   ;;  %v1838_v24 = vld [vmem:[%s2123_s11 + $0x260] ss:$16 sps:$4 sm:$0xff]   ;;  %v1922_v14 = vld [vmem:[%s2123_s11 + $0x2cc] ss:$16 sps:$4 sm:$0xff]  }
  0x2f   : > { %1182 = vmatpush1.bf16.msra.mxu0 %v1825_v15  ;;  %v1839_v25 = vld [vmem:[%s2123_s11 + $0x44] ss:$16 sps:$4 sm:$0xff]   ;;  %v1843_v27 = vld [vmem:[%s2123_s11 + $0x40] ss:$16 sps:$4 sm:$0xff]   ;;  %v1917_v15 = vld [vmem:[%s2123_s11 + $0xc8] ss:$16 sps:$4 sm:$0xff]  }
  0x30   : > { %1225 = vmatpush1.bf16.msra.mxu1 %v1826_v16  ;;  %1183 = vmatprep.subr.bf16.mxu0 %v1827_v17  ;;  %v1841_v26 = vld [vmem:[%s2123_s11 + $0x244] ss:$16 sps:$4 sm:$0xff]   ;;  %v1844_v28 = vld [vmem:[%s2123_s11 + $0x240] ss:$16 sps:$4 sm:$0xff]   ;;  %v1920_v16 = vld [vmem:[%s2123_s11 + $0x2c8] ss:$16 sps:$4 sm:$0xff]  }
  0x31   : > { %1226 = vmatprep.subr.bf16.mxu1 %v1829_v18  ;;  %v1845_v29 = vld [vmem:[%s2123_s11 + $0x24] ss:$16 sps:$4 sm:$0xff]   ;;  %v1849_v31 = vld [vmem:[%s2123_s11 + $0x20] ss:$16 sps:$4 sm:$0xff]   ;;  %v1925_v17 = vld [vmem:[%s2123_s11 + $0xac] ss:$16 sps:$4 sm:$0xff]  }
  0x32   : > { %v1847_v30 = vld [vmem:[%s2123_s11 + $0x224] ss:$16 sps:$4 sm:$0xff]   ;;  %v1850_v32 = vld [vmem:[%s2123_s11 + $0x220] ss:$16 sps:$4 sm:$0xff]   ;;  %v1928_v18 = vld [vmem:[%s2123_s11 + $0x2ac] ss:$16 sps:$4 sm:$0xff]  }
  0x33   : > { %1184 = vmatpush1.bf16.msra.mxu0 %v1831_v19  ;;  %v1851_v33 = vld [vmem:[%s2123_s11 + $0x4] ss:$16 sps:$4 sm:$0xff]   ;;  %v1855_v35 = vld [vmem:[%s2123_s11] ss:$16 sps:$4 sm:$0xff]   ;;  %v1923_v19 = vld [vmem:[%s2123_s11 + $0xa8] ss:$16 sps:$4 sm:$0xff]  }
  0x34   : > { %1227 = vmatpush1.bf16.msra.mxu1 %v1832_v20  ;;  %1185 = vmatprep.subr.bf16.mxu0 %v1833_v21  ;;  %v1853_v34 = vld [vmem:[%s2123_s11 + $0x204] ss:$16 sps:$4 sm:$0xff]   ;;  %v1856_v36 = vld [vmem:[%s2123_s11 + $0x200] ss:$16 sps:$4 sm:$0xff]   ;;  %v1926_v20 = vld [vmem:[%s2123_s11 + $0x2a8] ss:$16 sps:$4 sm:$0xff]  }
  0x35   : > { %1228 = vmatprep.subr.bf16.mxu1 %v1835_v22  ;;  %v1857_v37 = vld [vmem:[%s2123_s11 + $0x1e4] ss:$16 sps:$4 sm:$0xff]   ;;  %v1861_v39 = vld [vmem:[%s2123_s11 + $0x1e0] ss:$16 sps:$4 sm:$0xff]   ;;  %v1931_v21 = vld [vmem:[%s2123_s11 + $0x8c] ss:$16 sps:$4 sm:$0xff]  }
  0x36   : > { %v1859_v38 = vld [vmem:[%s2123_s11 + $0x3e4] ss:$16 sps:$4 sm:$0xff]   ;;  %v1862_v40 = vld [vmem:[%s2123_s11 + $0x3e0] ss:$16 sps:$4 sm:$0xff]   ;;  %v1934_v22 = vld [vmem:[%s2123_s11 + $0x28c] ss:$16 sps:$4 sm:$0xff]  }
  0x37   : > { %1186 = vmatpush1.bf16.msra.mxu0 %v1837_v23  ;;  %v1863_v41 = vld [vmem:[%s2123_s11 + $0x1c4] ss:$16 sps:$4 sm:$0xff]   ;;  %v1867_v43 = vld [vmem:[%s2123_s11 + $0x1c0] ss:$16 sps:$4 sm:$0xff]   ;;  %v1929_v23 = vld [vmem:[%s2123_s11 + $0x88] ss:$16 sps:$4 sm:$0xff]  }
  0x38   : > { %1229 = vmatpush1.bf16.msra.mxu1 %v1838_v24  ;;  %1187 = vmatprep.subr.bf16.mxu0 %v1839_v25  ;;  %v1865_v42 = vld [vmem:[%s2123_s11 + $0x3c4] ss:$16 sps:$4 sm:$0xff]   ;;  %v1868_v44 = vld [vmem:[%s2123_s11 + $0x3c0] ss:$16 sps:$4 sm:$0xff]   ;;  %v1932_v24 = vld [vmem:[%s2123_s11 + $0x288] ss:$16 sps:$4 sm:$0xff]  }
  0x39   : > { %1230 = vmatprep.subr.bf16.mxu1 %v1841_v26  ;;  %v1869_v45 = vld [vmem:[%s2123_s11 + $0x1a4] ss:$16 sps:$4 sm:$0xff]   ;;  %v1873_v47 = vld [vmem:[%s2123_s11 + $0x1a0] ss:$16 sps:$4 sm:$0xff]   ;;  %v1937_v25 = vld [vmem:[%s2123_s11 + $0x6c] ss:$16 sps:$4 sm:$0xff]  }
  0x3a   : > { %v1871_v46 = vld [vmem:[%s2123_s11 + $0x3a4] ss:$16 sps:$4 sm:$0xff]   ;;  %v1874_v48 = vld [vmem:[%s2123_s11 + $0x3a0] ss:$16 sps:$4 sm:$0xff]   ;;  %v1940_v26 = vld [vmem:[%s2123_s11 + $0x26c] ss:$16 sps:$4 sm:$0xff]  }
  0x3b   : > { %1188 = vmatpush1.bf16.msra.mxu0 %v1843_v27  ;;  %v1875_v49 = vld [vmem:[%s2123_s11 + $0x184] ss:$16 sps:$4 sm:$0xff]   ;;  %v1879_v51 = vld [vmem:[%s2123_s11 + $0x180] ss:$16 sps:$4 sm:$0xff]   ;;  %v1935_v27 = vld [vmem:[%s2123_s11 + $0x68] ss:$16 sps:$4 sm:$0xff]  }
  0x3c   : > { %1231 = vmatpush1.bf16.msra.mxu1 %v1844_v28  ;;  %1189 = vmatprep.subr.bf16.mxu0 %v1845_v29  ;;  %v1877_v50 = vld [vmem:[%s2123_s11 + $0x384] ss:$16 sps:$4 sm:$0xff]   ;;  %v1880_v52 = vld [vmem:[%s2123_s11 + $0x380] ss:$16 sps:$4 sm:$0xff]   ;;  %v1938_v28 = vld [vmem:[%s2123_s11 + $0x268] ss:$16 sps:$4 sm:$0xff]  }
  0x3d   : > { %1232 = vmatprep.subr.bf16.mxu1 %v1847_v30  ;;  %v1881_v53 = vld [vmem:[%s2123_s11 + $0x164] ss:$16 sps:$4 sm:$0xff]   ;;  %v1885_v57 = vld [vmem:[%s2123_s11 + $0x160] ss:$16 sps:$4 sm:$0xff]   ;;  %v1943_v29 = vld [vmem:[%s2123_s11 + $0x4c] ss:$16 sps:$4 sm:$0xff]  }
  0x3e   : > { %v1907_v54 = vld [vmem:[%s2125_s12 + $0x4] ss:$16 sps:$4 sm:$0xff]   ;;  %v1886_v58 = vld [vmem:[%s2123_s11 + $0x360] ss:$16 sps:$4 sm:$0xff]   ;;  %v1946_v30 = vld [vmem:[%s2123_s11 + $0x24c] ss:$16 sps:$4 sm:$0xff]  }
  0x3f   : > { %1190 = vmatpush1.bf16.msra.mxu0 %v1849_v31  ;;  %v1883_v55 = vld [vmem:[%s2123_s11 + $0x364] ss:$16 sps:$4 sm:$0xff]   ;;  %1209 = vmatprep.mubr.bf16.mxu0 %v1907_v54  ;;  %v1891_v61 = vld [vmem:[%s2123_s11 + $0x140] ss:$16 sps:$4 sm:$0xff]   ;;  %v1941_v31 = vld [vmem:[%s2123_s11 + $0x48] ss:$16 sps:$4 sm:$0xff]  }
  0x40   : > { %1233 = vmatpush1.bf16.msra.mxu1 %v1850_v32  ;;  %1191 = vmatprep.subr.bf16.mxu0 %v1851_v33  ;;  %v1887_v59 = vld [vmem:[%s2123_s11 + $0x144] ss:$16 sps:$4 sm:$0xff]   ;;  %v1892_v62 = vld [vmem:[%s2123_s11 + $0x340] ss:$16 sps:$4 sm:$0xff]   ;;  %v1944_v32 = vld [vmem:[%s2123_s11 + $0x248] ss:$16 sps:$4 sm:$0xff]  }
  0x41   : > { %1234 = vmatprep.subr.bf16.mxu1 %v1853_v34  ;;  %v1889_v60 = vld [vmem:[%s2123_s11 + $0x344] ss:$16 sps:$4 sm:$0xff]   ;;  %v1897_v1 = vld [vmem:[%s2123_s11 + $0x120] ss:$16 sps:$4 sm:$0xff]   ;;  %v1949_v33 = vld [vmem:[%s2123_s11 + $0x2c] ss:$16 sps:$4 sm:$0xff]  }
  0x42   : > { %v1893_v63 = vld [vmem:[%s2123_s11 + $0x124] ss:$16 sps:$4 sm:$0xff]   ;;  %v1898_v2 = vld [vmem:[%s2123_s11 + $0x320] ss:$16 sps:$4 sm:$0xff]   ;;  %v1952_v34 = vld [vmem:[%s2123_s11 + $0x22c] ss:$16 sps:$4 sm:$0xff]  }
  0x43   : > { %1192 = vmatpush1.bf16.msra.mxu0 %v1855_v35  ;;  %v1895_v0 = vld [vmem:[%s2123_s11 + $0x324] ss:$16 sps:$4 sm:$0xff]   ;;  %v1903_v5 = vld [vmem:[%s2123_s11 + $0x100] ss:$16 sps:$4 sm:$0xff]   ;;  %v1947_v35 = vld [vmem:[%s2123_s11 + $0x28] ss:$16 sps:$4 sm:$0xff]  }
  0x44   : > { %1235 = vmatpush1.bf16.msra.mxu1 %v1856_v36  ;;  %1193 = vmatprep.subr.bf16.mxu0 %v1857_v37  ;;  %v1899_v3 = vld [vmem:[%s2123_s11 + $0x104] ss:$16 sps:$4 sm:$0xff]   ;;  %v1904_v6 = vld [vmem:[%s2123_s11 + $0x300] ss:$16 sps:$4 sm:$0xff]   ;;  %v1950_v36 = vld [vmem:[%s2123_s11 + $0x228] ss:$16 sps:$4 sm:$0xff]  }
  0x45   : > { %1236 = vmatprep.subr.bf16.mxu1 %v1859_v38  ;;  %v1901_v4 = vld [vmem:[%s2123_s11 + $0x304] ss:$16 sps:$4 sm:$0xff]   ;;  %v2197_v9 = vld [vmem:[%s2125_s12] ss:$16 sps:$4 sm:$0xff]   ;;  %v1955_v37 = vld [vmem:[%s2123_s11 + $0xc] ss:$16 sps:$4 sm:$0xff]  }
  0x46   : > { %v1958_v38 = vld [vmem:[%s2123_s11 + $0x20c] ss:$16 sps:$4 sm:$0xff]  }
  0x47   : > { %1194 = vmatpush2.bf16.msra.mxu0 %v1861_v39  ;;  %v1953_v39 = vld [vmem:[%s2123_s11 + $0x8] ss:$16 sps:$4 sm:$0xff]  }
  0x48   : > { %1237 = vmatpush2.bf16.msra.mxu1 %v1862_v40  ;;  %1195 = vmatprep.subr.bf16.mxu0 %v1863_v41  ;;  %v1956_v40 = vld [vmem:[%s2123_s11 + $0x208] ss:$16 sps:$4 sm:$0xff]   ;;  %v1961_v41 = vld [vmem:[%s2123_s11 + $0x1ec] ss:$16 sps:$4 sm:$0xff]  }
  0x49   : > { %1238 = vmatprep.subr.bf16.mxu1 %v1865_v42  ;;  %v1964_v42 = vld [vmem:[%s2123_s11 + $0x3ec] ss:$16 sps:$4 sm:$0xff]  }
  0x4b   : > { %1196 = vmatpush2.bf16.msra.mxu0 %v1867_v43  ;;  %v1959_v43 = vld [vmem:[%s2123_s11 + $0x1e8] ss:$16 sps:$4 sm:$0xff]  }
  0x4c   : > { %1239 = vmatpush2.bf16.msra.mxu1 %v1868_v44  ;;  %1197 = vmatprep.subr.bf16.mxu0 %v1869_v45  ;;  %v1962_v44 = vld [vmem:[%s2123_s11 + $0x3e8] ss:$16 sps:$4 sm:$0xff]   ;;  %v1967_v45 = vld [vmem:[%s2123_s11 + $0x1cc] ss:$16 sps:$4 sm:$0xff]  }
  0x4d   : > { %1240 = vmatprep.subr.bf16.mxu1 %v1871_v46  ;;  %v1970_v46 = vld [vmem:[%s2123_s11 + $0x3cc] ss:$16 sps:$4 sm:$0xff]  }
  0x4f   : > { %1198 = vmatpush2.bf16.msra.mxu0 %v1873_v47  ;;  %v1965_v47 = vld [vmem:[%s2123_s11 + $0x1c8] ss:$16 sps:$4 sm:$0xff]  }
  0x50   : > { %1241 = vmatpush2.bf16.msra.mxu1 %v1874_v48  ;;  %1199 = vmatprep.subr.bf16.mxu0 %v1875_v49  ;;  %v1968_v48 = vld [vmem:[%s2123_s11 + $0x3c8] ss:$16 sps:$4 sm:$0xff]   ;;  %v1973_v49 = vld [vmem:[%s2123_s11 + $0x1ac] ss:$16 sps:$4 sm:$0xff]  }
  0x51   : > { %1242 = vmatprep.subr.bf16.mxu1 %v1877_v50  ;;  %v1976_v50 = vld [vmem:[%s2123_s11 + $0x3ac] ss:$16 sps:$4 sm:$0xff]  }
  0x53   : > { %1200 = vmatpush2.bf16.msra.mxu0 %v1879_v51  ;;  %v1971_v51 = vld [vmem:[%s2123_s11 + $0x1a8] ss:$16 sps:$4 sm:$0xff]  }
  0x54   : > { %1243 = vmatpush2.bf16.msra.mxu1 %v1880_v52  ;;  %1201 = vmatprep.subr.bf16.mxu0 %v1881_v53  ;;  %v1974_v52 = vld [vmem:[%s2123_s11 + $0x3a8] ss:$16 sps:$4 sm:$0xff]   ;;  %v1979_v53 = vld [vmem:[%s2123_s11 + $0x18c] ss:$16 sps:$4 sm:$0xff]  }
  0x55   : > { %1244 = vmatprep.subr.bf16.mxu1 %v1883_v55  ;;  %v1977_v55 = vld [vmem:[%s2123_s11 + $0x188] ss:$16 sps:$4 sm:$0xff]  }
  0x57   : > { %1202 = vmatpush2.bf16.msra.mxu0 %v1885_v57  ;;  %v1985_v57 = vld [vmem:[%s2123_s11 + $0x16c] ss:$16 sps:$4 sm:$0xff]  }
  0x58   : > { %1245 = vmatpush2.bf16.msra.mxu1 %v1886_v58  ;;  %1203 = vmatprep.subr.bf16.mxu0 %v1887_v59  ;;  %v1988_v58 = vld [vmem:[%s2123_s11 + $0x36c] ss:$16 sps:$4 sm:$0xff]   ;;  %v1983_v59 = vld [vmem:[%s2123_s11 + $0x168] ss:$16 sps:$4 sm:$0xff]  }
  0x59   : > { %1246 = vmatprep.subr.bf16.mxu1 %v1889_v60  ;;  %v1986_v60 = vld [vmem:[%s2123_s11 + $0x368] ss:$16 sps:$4 sm:$0xff]  }
  0x5b   : > { %1204 = vmatpush2.bf16.msra.mxu0 %v1891_v61  ;;  %v1991_v61 = vld [vmem:[%s2123_s11 + $0x14c] ss:$16 sps:$4 sm:$0xff]  }
  0x5c   : > { %1247 = vmatpush2.bf16.msra.mxu1 %v1892_v62  ;;  %1205 = vmatprep.subr.bf16.mxu0 %v1893_v63  ;;  %v1994_v62 = vld [vmem:[%s2123_s11 + $0x34c] ss:$16 sps:$4 sm:$0xff]   ;;  %v1989_v63 = vld [vmem:[%s2123_s11 + $0x148] ss:$16 sps:$4 sm:$0xff]  }
  0x5d   : > { %1248 = vmatprep.subr.bf16.mxu1 %v1895_v0  ;;  %v1992_v0 = vld [vmem:[%s2123_s11 + $0x348] ss:$16 sps:$4 sm:$0xff]  }
  0x5f   : > { %1206 = vmatpush2.bf16.msra.mxu0 %v1897_v1  ;;  %v1997_v1 = vld [vmem:[%s2123_s11 + $0x12c] ss:$16 sps:$4 sm:$0xff]  }
  0x60   : > { %1249 = vmatpush2.bf16.msra.mxu1 %v1898_v2  ;;  %1207 = vmatprep.subr.bf16.mxu0 %v1899_v3  ;;  %v2000_v2 = vld [vmem:[%s2123_s11 + $0x32c] ss:$16 sps:$4 sm:$0xff]   ;;  %v1995_v3 = vld [vmem:[%s2123_s11 + $0x128] ss:$16 sps:$4 sm:$0xff]  }
  0x61   : > { %1250 = vmatprep.subr.bf16.mxu1 %v1901_v4  ;;  %v1998_v4 = vld [vmem:[%s2123_s11 + $0x328] ss:$16 sps:$4 sm:$0xff]  }
  0x63   : > { %1208 = vmatpush2.bf16.msra.mxu0 %v1903_v5  ;;  %v2003_v5 = vld [vmem:[%s2123_s11 + $0x10c] ss:$16 sps:$4 sm:$0xff]  }
  0x64   : > { %1251 = vmatpush2.bf16.msra.mxu1 %v1904_v6  ;;  %1263 = vmatprep.subr.bf16.mxu0 %v1913_v7  ;;  %v2006_v6 = vld [vmem:[%s2123_s11 + $0x30c] ss:$16 sps:$4 sm:$0xff]   ;;  %v2001_v7 = vld [vmem:[%s2123_s11 + $0x108] ss:$16 sps:$4 sm:$0xff]  }
  0x65   : > { %1306 = vmatprep.subr.bf16.mxu1 %v1916_v8  ;;  %v2004_v8 = vld [vmem:[%s2123_s11 + $0x308] ss:$16 sps:$4 sm:$0xff]  }
  0x66   : > { %1210 = vmatmul.mubr.bf16.vlgmr.msra.gmra.mxu0 %v2197_v9 }
  0x67   : > { %1253 = vmatmul.mubr.bf16.vlgmr.msra.gmra.mxu1 %v2200_v10  ;;  %1264 = vmatpush1.bf16.msra.mxu0 %v1911_v11 }
  0x68   : > { %1307 = vmatpush1.bf16.msra.mxu1 %v1914_v12  ;;  %1265 = vmatprep.subr.bf16.mxu0 %v1919_v13  ;;  %v377_v12 = vld [vmem:[#allocation2 + $0x30] sm:$0xff] }
  0x69   : > { %1308 = vmatprep.subr.bf16.mxu1 %v1922_v14  ;;  %1295 = vmatprep.mubr.bf16.mxu0 %v1907_v54  ;;  %v1982_v54 = vld [vmem:[%s2123_s11 + $0x38c] ss:$16 sps:$4 sm:$0xff]  }
  0x6a   : > { %1338 = vmatprep.mubr.bf16.mxu1 %v1910_v56  ;;  %v1980_v56 = vld [vmem:[%s2123_s11 + $0x388] ss:$16 sps:$4 sm:$0xff]  }
  0x6b   : > { %1266 = vmatpush1.bf16.msra.mxu0 %v1917_v15 }
  0x6c   : > { %1309 = vmatpush1.bf16.msra.mxu1 %v1920_v16  ;;  %1267 = vmatprep.subr.bf16.mxu0 %v1925_v17  ;;  %v378_v16 = vld [vmem:[#allocation2] sm:$0xff] }
  0x6d   : > { %1310 = vmatprep.subr.bf16.mxu1 %v1928_v18 }
  0x6f   : > { %1268 = vmatpush1.bf16.msra.mxu0 %v1923_v19 }
  0x70   : > { %1311 = vmatpush1.bf16.msra.mxu1 %v1926_v20  ;;  %1269 = vmatprep.subr.bf16.mxu0 %v1931_v21  ;;  %v381_v21 = vld [vmem:[#allocation2 + $0x8] sm:$0xff] }
  0x71   : > { %1312 = vmatprep.subr.bf16.mxu1 %v1934_v22 }
  0x73   : > { %1270 = vmatpush1.bf16.msra.mxu0 %v1929_v23 }
  0x74   : > { %1313 = vmatpush1.bf16.msra.mxu1 %v1932_v24  ;;  %1271 = vmatprep.subr.bf16.mxu0 %v1937_v25 }
  0x75   : > { %1314 = vmatprep.subr.bf16.mxu1 %v1940_v26  ;;  %v382_v26 = vld [vmem:[#allocation2 + $0x20] sm:$0xff] }
  0x77   : > { %1272 = vmatpush1.bf16.msra.mxu0 %v1935_v27 }
  0x78   : > { %1315 = vmatpush1.bf16.msra.mxu1 %v1938_v28  ;;  %1273 = vmatprep.subr.bf16.mxu0 %v1943_v29 }
  0x79   : > { %1316 = vmatprep.subr.bf16.mxu1 %v1946_v30  ;;  %v379_v30 = vld [vmem:[#allocation2 + $0x18] sm:$0xff] }
  0x7b   : > { %1274 = vmatpush1.bf16.msra.mxu0 %v1941_v31 }
  0x7c   : > { %1317 = vmatpush1.bf16.msra.mxu1 %v1944_v32  ;;  %1275 = vmatprep.subr.bf16.mxu0 %v1949_v33 }
  0x7d   : > { %1318 = vmatprep.subr.bf16.mxu1 %v1952_v34  ;;  %v380_v34 = vld [vmem:[#allocation2 + $0x10] sm:$0xff] }
  0x7f   : > { %1276 = vmatpush1.bf16.msra.mxu0 %v1947_v35 }
  0x80   : > { %1319 = vmatpush1.bf16.msra.mxu1 %v1950_v36  ;;  %1277 = vmatprep.subr.bf16.mxu0 %v1955_v37 }
  0x81   : > { %1320 = vmatprep.subr.bf16.mxu1 %v1958_v38 }
  0x83   : > { %1278 = vmatpush1.bf16.msra.mxu0 %v1953_v39  ;;  %v383_v39 = vld [vmem:[#allocation2 + $0x28] sm:$0xff] }
  0x84   : > { %1321 = vmatpush1.bf16.msra.mxu1 %v1956_v40  ;;  %1279 = vmatprep.subr.bf16.mxu0 %v1961_v41 }
  0x85   : > { %1322 = vmatprep.subr.bf16.mxu1 %v1964_v42 }
  0x87   : > { %1280 = vmatpush2.bf16.msra.mxu0 %v1959_v43 }
  0x88   : > { %1323 = vmatpush2.bf16.msra.mxu1 %v1962_v44  ;;  %1281 = vmatprep.subr.bf16.mxu0 %v1967_v45  ;;  %v384_v44 = vld [vmem:[#allocation2 + $0x38] sm:$0xff] }
  0x89   : > { %1324 = vmatprep.subr.bf16.mxu1 %v1970_v46 }
  0x8b   : > { %1282 = vmatpush2.bf16.msra.mxu0 %v1965_v47 }
  0x8c   : > { %1325 = vmatpush2.bf16.msra.mxu1 %v1968_v48  ;;  %1283 = vmatprep.subr.bf16.mxu0 %v1973_v49 }
  0x8d   : > { %1326 = vmatprep.subr.bf16.mxu1 %v1976_v50 }
  0x8f   : > { %1284 = vmatpush2.bf16.msra.mxu0 %v1971_v51 }
  0x90   : > { %1327 = vmatpush2.bf16.msra.mxu1 %v1974_v52  ;;  %1285 = vmatprep.subr.bf16.mxu0 %v1979_v53 }
  0x91   : > { %1328 = vmatprep.subr.bf16.mxu1 %v1982_v54 }
  0x93   : > { %1286 = vmatpush2.bf16.msra.mxu0 %v1977_v55 }
  0x94   : > { %1329 = vmatpush2.bf16.msra.mxu1 %v1980_v56  ;;  %1287 = vmatprep.subr.bf16.mxu0 %v1985_v57 }
  0x95   : > { %1330 = vmatprep.subr.bf16.mxu1 %v1988_v58 }
  0x97   : > { %1288 = vmatpush2.bf16.msra.mxu0 %v1983_v59 }
  0x98   : > { %1331 = vmatpush2.bf16.msra.mxu1 %v1986_v60  ;;  %1289 = vmatprep.subr.bf16.mxu0 %v1991_v61 }
  0x99   : > { %1332 = vmatprep.subr.bf16.mxu1 %v1994_v62 }
  0x9b   : > { %1290 = vmatpush2.bf16.msra.mxu0 %v1989_v63 }
  0x9c   : > { %1333 = vmatpush2.bf16.msra.mxu1 %v1992_v0  ;;  %1291 = vmatprep.subr.bf16.mxu0 %v1997_v1 }
  0x9d   : > { %1334 = vmatprep.subr.bf16.mxu1 %v2000_v2 }
  0x9f   : > { %1292 = vmatpush2.bf16.msra.mxu0 %v1995_v3 }
  0xa0   : > { %1335 = vmatpush2.bf16.msra.mxu1 %v1998_v4  ;;  %1293 = vmatprep.subr.bf16.mxu0 %v2003_v5 }
  0xa1   : > { %1336 = vmatprep.subr.bf16.mxu1 %v2006_v6 }
  0xa3   : > { %1294 = vmatpush2.bf16.msra.mxu0 %v2001_v7 }
  0xa4   : > { %1337 = vmatpush2.bf16.msra.mxu1 %v2004_v8 }
  0xa6   : > { %1296 = vmatmul.mubr.bf16.vlgmr.msra.gmra.mxu0 %v2197_v9 }
  0xa7   : > { %1339 = vmatmul.mubr.bf16.vlgmr.msra.gmra.mxu1 %v2200_v10 }
 0x126   : > { %v1211_v11 = vpop.f32.mrf.mxu0 }
 0x127   : > { %v1254_v13 = vpop.f32.mrf.mxu1 }
 0x128   : > { %v1255_v14 = vadd.f32 %v1254_v13, %v1211_v11  ;;  %v1213_v15 = vpop.f32.mrf.mxu0 }
 0x129   : > { %v1256_v17 = vpop.f32.mrf.mxu1 }
 0x12a   : > { %v1349_v18 = vadd.f32 %v1255_v14, %v377_v12  ;;  %v1257_v19 = vadd.f32 %v1256_v17, %v1213_v15  ;;  %v1215_v20 = vpop.f32.mrf.mxu0 }
 0x12b   : > { %v1258_v22 = vpop.f32.mrf.mxu1 }
 0x12c   : > { %1357 = vst [vmem:[#allocation2 + $0x30] sm:$0xff] %v1349_v18  ;;  %v1350_v23 = vadd.f32 %v1257_v19, %v378_v16  ;;  %v1259_v24 = vadd.f32 %v1258_v22, %v1215_v20  ;;  %v1217_v25 = vpop.f32.mrf.mxu0 }
 0x12d   : > { %v1260_v9 = vpop.f32.mrf.mxu1 }
 0x12e   : > { %1358 = vst [vmem:[#allocation2] sm:$0xff] %v1350_v23  ;;  %v1353_v10 = vadd.f32 %v1259_v24, %v381_v21  ;;  %v1261_v27 = vadd.f32 %v1260_v9, %v1217_v25 }
 0x130   : > { %1361 = vst [vmem:[#allocation2 + $0x8] sm:$0xff] %v1353_v10  ;;  %v1354_v28 = vadd.f32 %v1261_v27, %v382_v26 }
 0x132   : > { %1362 = vst [vmem:[#allocation2 + $0x20] sm:$0xff] %v1354_v28 }
 0x166   : > { %v1297_v29 = vpop.f32.mrf.mxu0 }
 0x167   : > { %v1340_v31 = vpop.f32.mrf.mxu1 }
 0x168   : > { %v1341_v32 = vadd.f32 %v1340_v31, %v1297_v29  ;;  %v1299_v33 = vpop.f32.mrf.mxu0 }
 0x169   : > { %v1342_v35 = vpop.f32.mrf.mxu1 }
 0x16a   : > { %v1351_v36 = vadd.f32 %v1341_v32, %v379_v30  ;;  %v1343_v37 = vadd.f32 %v1342_v35, %v1299_v33  ;;  %v1301_v38 = vpop.f32.mrf.mxu0 }
 0x16b   : > { %v1344_v40 = vpop.f32.mrf.mxu1 }
 0x16c   : > { %1359 = vst [vmem:[#allocation2 + $0x18] sm:$0xff] %v1351_v36  ;;  %v1352_v41 = vadd.f32 %v1343_v37, %v380_v34  ;;  %v1345_v42 = vadd.f32 %v1344_v40, %v1301_v38  ;;  %v1303_v43 = vpop.f32.mrf.mxu0 }
 0x16d   : > { %v1346_v45 = vpop.f32.mrf.mxu1 }
 0x16e   : > { %1360 = vst [vmem:[#allocation2 + $0x10] sm:$0xff] %v1352_v41  ;;  %v1355_v46 = vadd.f32 %v1345_v42, %v383_v39  ;;  %v1347_v47 = vadd.f32 %v1346_v45, %v1303_v43  ;;  %1368 = sbr.rel (%p1753_p11) target bundleno = 389 (0x185), region = 67 }
 0x170   : > { %1363 = vst [vmem:[#allocation2 + $0x28] sm:$0xff] %v1355_v46  ;;  %v1356_v48 = vadd.f32 %v1347_v47, %v384_v44 }
 0x172   : > { %1364 = vst [vmem:[#allocation2 + $0x38] sm:$0xff] %v1356_v48 }
 0x173   : > { %v1379_v49 = vlaneseq  ;;  %v1407_v51 = vld [vmem:[%s2314_s3] sm:$0xff]  ;;  %v1408_v52 = vld [vmem:[%s2314_s3 + $0x8] sm:$0xff]  ;;  %v1369_v53 = vld [vmem:[#allocation2 + $0x30] sm:$0xff] }
 0x174   : > { %v1370_v54 = vld [vmem:[#allocation2] sm:$0xff]  ;;  %v1409_v60 = vld [vmem:[%s2314_s3 + $0x10] sm:$0xff]  ;;  %v1410_v61 = vld [vmem:[%s2314_s3 + $0x18] sm:$0xff]  ;;  %v1411_v62 = vunpack.c.l.bf16 %v1407_v51  ;;  %v1412_v63 = vunpack.c.h.bf16 %v1407_v51  ;;  %v1413_v2 = vunpack.c.l.bf16 %v1408_v52  ;;  %v1414_v3 = vunpack.c.h.bf16 %v1408_v52 }
 0x175   : > { %v1380_v50 = vshrl.u32 %v1379_v49, 7  ;;  %v1377_v55 = vld [vmem:[%s2313_s2] sm:$0xf]  ;;  %v1371_v0 = vld [vmem:[#allocation2 + $0x18] sm:$0xff]  ;;  %v1372_v1 = vld [vmem:[#allocation2 + $0x10] sm:$0xff]  ;;  %v1415_v14 = vunpack.c.l.bf16 %v1409_v60  ;;  %v1416_v15 = vunpack.c.h.bf16 %v1409_v60  ;;  %v1417_v16 = vunpack.c.l.bf16 %v1410_v61 }
 0x176   : > { %v1373_v4 = vld [vmem:[#allocation2 + $0x8] sm:$0xff]  ;;  %v1374_v11 = vld [vmem:[#allocation2 + $0x20] sm:$0xff]  ;;  %v1418_v17 = vunpack.c.h.bf16 %v1410_v61 }
 0x177   : > { %v1381_v56 = vsub.s32 0, %v1380_v50  ;;  %v1385_v57 = vsub.s32 1, %v1380_v50  ;;  %v1389_v58 = vsub.s32 2, %v1380_v50  ;;  %v1393_v59 = vsub.s32 3, %v1380_v50  ;;  %v1375_v12 = vld [vmem:[#allocation2 + $0x28] sm:$0xff] }
 0x179   : > { %v1382_v5 = vrot.slane %v1377_v55, %v1381_v56  ;;  %v1386_v6 = vrot.slane %v1377_v55, %v1385_v57  ;;  %v1390_v7 = vrot.slane %v1377_v55, %v1389_v58  ;;  %v1394_v8 = vrot.slane %v1377_v55, %v1393_v59  ;;  %v1376_v13 = vld [vmem:[#allocation2 + $0x38] sm:$0xff] }
 0x17b   : > { %v1399_v18 = vadd.f32 %v1382_v5, %v1369_v53  ;;  %v1400_v19 = vadd.f32 %v1386_v6, %v1370_v54  ;;  %v1401_v20 = vadd.f32 %v1390_v7, %v1371_v0  ;;  %v1402_v21 = vadd.f32 %v1394_v8, %v1372_v1 }
 0x17c   : > { %v1403_v22 = vadd.f32 %v1382_v5, %v1373_v4  ;;  %v1404_v23 = vadd.f32 %v1386_v6, %v1374_v11  ;;  %v1405_v24 = vadd.f32 %v1390_v7, %v1375_v12  ;;  %v1406_v25 = vadd.f32 %v1394_v8, %v1376_v13 }
 0x17d   : > { %v1419_v26 = vadd.f32 %v1411_v62, %v1399_v18  ;;  %v1420_v9 = vadd.f32 %v1412_v63, %v1400_v19  ;;  %v1421_v10 = vadd.f32 %v1413_v2, %v1401_v20  ;;  %v1422_v27 = vadd.f32 %v1414_v3, %v1402_v21 }
 0x17e   : > { %v1423_v28 = vadd.f32 %v1415_v14, %v1403_v22  ;;  %v1424_v29 = vadd.f32 %v1416_v15, %v1404_v23  ;;  %v1425_v30 = vadd.f32 %v1417_v16, %v1405_v24  ;;  %v1426_v31 = vadd.f32 %v1418_v17, %v1406_v25 }
 0x17f   : > { %v1427_v32 = vmax.f32 %v1419_v26, 0.0  ;;  %v1428_v33 = vmax.f32 %v1420_v9, 0.0  ;;  %v1429_v34 = vmax.f32 %v1421_v10, 0.0  ;;  %v1430_v35 = vmax.f32 %v1422_v27, 0.0 }
 0x180   : > { %v1431_v36 = vmax.f32 %v1423_v28, 0.0  ;;  %v1432_v37 = vmax.f32 %v1424_v29, 0.0  ;;  %v1433_v38 = vmax.f32 %v1425_v30, 0.0  ;;  %v1434_v39 = vmax.f32 %v1426_v31, 0.0 }
 0x181   : > { %v1764_v40 = vpack.c.bf16 %v1428_v33, %v1427_v32  ;;  %v1765_v41 = vpack.c.bf16 %v1430_v35, %v1429_v34 }
 0x182   : > { %v1766_v42 = vpack.c.bf16 %v1432_v37, %v1431_v36  ;;  %v1767_v43 = vpack.c.bf16 %v1434_v39, %v1433_v38 }
 0x183   : > { %1459 = vst [vmem:[%s2315_s4] sm:$0xff] %v1764_v40  ;;  %1460 = vst [vmem:[%s2315_s4 + $0x8] sm:$0xff] %v1765_v41 }
 0x184   : > { %1461 = vst [vmem:[%s2315_s4 + $0x10] sm:$0xff] %v1766_v42  ;;  %1462 = vst [vmem:[%s2315_s4 + $0x18] sm:$0xff] %v1767_v43 }
 0x185 PF: > { %s14_s19 = sadd.s32 1, %s2045_s19   ;;  %s2316_s15 = smov %s2033_s16 }
 0x186   : > { %p11_p12 = scmp.ge.s32.totalorder %s14_s19, 11   ;;  %s2317_s16 = smov %s2108_s23 }
 0x187   : > { %s2318_s17 = smov %s2041_s18  ;;  %s2319_s18 = smov %s2321_s20 }
 0x188   :  { %13 = sbr.rel (!%p11_p12) target bundleno = 3 (0x3), region = 111 }

// kernel: vqa_forward.39
= control target key start
LH: loop header
LB: loop body
LE: loop exit
PB: predicated region body
PF: predicated region fallthrough
CT: control target
= control target key end

     0   :  { %s1958_s12 = smov 0   ;;  %s1960_s13 = smov 0   ;;  %s2184_s0 = inlined_call_operand.vmem [shape: bf16[16,4608], index: 0, kind: input, shape index: {}]   ;;  %s2185_s1 = inlined_call_operand.vmem [shape: bf16[4608,512], index: 1, kind: input, shape index: {}]   ;;  %s2186_s2 = inlined_call_operand.vmem [shape: f32[1,512], index: 2, kind: input, shape index: {}]   ;;  %s2187_s3 = inlined_call_operand.vmem [shape: bf16[16,512], index: 3, kind: output, shape index: {}]  }
   0x1   :  { %s1962_s14 = smov 0   ;;  %s1964_s15 = smov 0  }
   0x2   :  { %s1966_s16 = smov 0  }
   0x3 LB: > { %s25_s17 = sadd.s32 1, %s1931_s15  ;;  %p48_p1 = scmp.ne.s32.totalorder %s1923_s13, %s1919_s12  ;;  %s1935_s16 = sphi %s1966_s16, %s13_s16   ;;  %s1931_s15 = sphi %s1964_s15, %s2191_s15   ;;  %s1927_s14 = sphi %s1962_s14, %s2190_s14   ;;  %s1923_s13 = sphi %s1960_s13, %s2189_s13   ;;  %s1919_s12 = sphi %s1958_s12, %s2188_s12  }
   0x4   : > { %p26_p0 = scmp.ge.s32.totalorder %s25_s17, 9  ;;  %p49_p2 = scmp.eq.s32.totalorder %s1935_s16, 0 }
   0x5   : > { %s41_s19 = sadd.s32 1, %s1923_s13  ;;  %p1501_p5 = scmp.ge.s32.totalorder %s1935_s16, 9 }
   0x6   : > { %s2193_s17 = smov (%p26_p0, %s25_s17), 0  ;;  %p50_p3 = por %p49_p2, %p48_p1 }
   0x7   : > { %s37_s18 = ssub.s32 %s1931_s15, %s2193_s17  ;;  %164 = sbr.rel (%p1501_p5) target bundleno = 18 (0x12), region = 20 }
   0x8   : > { %p39_p4 = scmp.eq.s32.totalorder %s37_s18, 0 }
   0xa   : > { %s1993_s20 = scalar_select %p39_p4, %s1923_s13, %s41_s19  }
   0xc   : > { %167 = sbr.rel (!%p50_p3) target bundleno = 18 (0x12), region = 24  ;;  %s169_s21 = sand.u32 (%p50_p3), 1, %s1923_s13  }
   0xd   : > { %s1652_s22 = sshll.u32 (%p50_p3), %s1931_s15, 4  ;;  %s1502_s23 = sshll.u32 (%p50_p3), %s169_s21, 5 }
   0xe   : > { %s177_s26 = scalar_lea.vmem (%p50_p3), %s2184_s0, %s1652_s22  ;;  %s171_s27 = scalar_lea.vmem (%p50_p3), [#allocation3], %s1502_s23 }
   0xf   : > { %v190_v0 = vld [vmem:[%s177_s26] sm:$0xff] (%p50_p3)  ;;  %v192_v1 = vld [vmem:[%s177_s26 + $0x8] sm:$0xff] (%p50_p3)  ;;  %v194_v2 = vld [vmem:[%s177_s26 + $0x90] sm:$0xff] (%p50_p3) }
  0x10   : > { %191 = vst [vmem:[%s171_s27] sm:$0xff] (%p50_p3), %v190_v0  ;;  %193 = vst [vmem:[%s171_s27 + $0x8] sm:$0xff] (%p50_p3), %v192_v1  ;;  %v196_v3 = vld [vmem:[%s177_s26 + $0x98] sm:$0xff] (%p50_p3) }
  0x11   : > { %195 = vst [vmem:[%s171_s27 + $0x10] sm:$0xff] %v194_v2  ;;  %197 = vst [vmem:[%s171_s27 + $0x18] sm:$0xff] %v196_v3 }
  0x12 PF: > { %p1505_p6 = scmp.ge.s32.totalorder %s1935_s16, 1  ;;  %p217_p7 = scmp.lt.s32.totalorder %s1935_s16, 10 }
  0x14   : > { %p218_p8 = pnand %p1505_p6, %p217_p7 }
  0x15   : > { %s224_s28 = sand.u32 (!%p218_p8), 1, %s1919_s12   ;;  %s1507_s29 = sshll.u32 (!%p218_p8), %s1927_s14, 6 }
  0x16   : > { %221 = sbr.rel (%p218_p8) target bundleno = 387 (0x183), region = 51  ;;  %s1506_s30 = sshll.u32 (!%p218_p8), %s224_s28, 5 }
  0x17   : > { %p270_p9 = scmp.lt.s32.totalorder (!%p218_p8), %s1507_s29, 575  ;;  %s2010_s8 = scalar_lea.vmem (!%p218_p8), [#allocation3], %s1506_s30 }
  0x18   : > { %p1510_p10 = scmp.ne.s32.totalorder (!%p218_p8), %s1927_s14, 0 }
  0x1b   : > { %s2195_s29 = smov (!%p270_p9, %s1507_s29), 575  ;;  %300 = sbr.rel (%p1510_p10) target bundleno = 37 (0x25), region = 59 }
  0x1c   : > { %s1653_s4 = sshll.u32 %s2195_s29, 4 }
  0x1d   : > { %s2008_s7 = scalar_lea.vmem %s2185_s1, %s1653_s4 }
  0x20   : > { %v1937_v4 = vmov 0.0  }
  0x21   : > { %301 = vst [vmem:[#allocation2 + $0x30] sm:$0xff] %v1937_v4  ;;  %302 = vst [vmem:[#allocation2] sm:$0xff] %v1937_v4 }
  0x22   : > { %303 = vst [vmem:[#allocation2 + $0x18] sm:$0xff] %v1937_v4  ;;  %304 = vst [vmem:[#allocation2 + $0x10] sm:$0xff] %v1937_v4 }
  0x23   : > { %305 = vst [vmem:[#allocation2 + $0x8] sm:$0xff] %v1937_v4  ;;  %306 = vst [vmem:[#allocation2 + $0x20] sm:$0xff] %v1937_v4 }
  0x24   : > { %307 = vst [vmem:[#allocation2 + $0x28] sm:$0xff] %v1937_v4  ;;  %308 = vst [vmem:[#allocation2 + $0x38] sm:$0xff] %v1937_v4 }
  0x25 PF: > { %v1699_v5 = vld [vmem:[%s2008_s7 + $0xe4] ss:$16 sps:$4 sm:$0xff]   ;;  %v1703_v7 = vld [vmem:[%s2008_s7 + $0xe0] ss:$16 sps:$4 sm:$0xff]   ;;  %v1800_v56 = vld [vmem:[%s2010_s8 + $0xc] ss:$16 sps:$4 sm:$0xff]  }
  0x26   : > { %v1701_v6 = vld [vmem:[%s2008_s7 + $0x2e4] ss:$16 sps:$4 sm:$0xff]   ;;  %1109 = vmatprep.subr.bf16.mxu0 %v1699_v5  ;;  %v1704_v8 = vld [vmem:[%s2008_s7 + $0x2e0] ss:$16 sps:$4 sm:$0xff]   ;;  %1184 = vmatprep.mubr.bf16.mxu1 %v1800_v56  ;;  %p1643_p11 = scmp.ne.s32.totalorder %s1927_s14, 8 }
  0x27   : > { %1152 = vmatprep.subr.bf16.mxu1 %v1701_v6  ;;  %v1705_v9 = vld [vmem:[%s2008_s7 + $0xc4] ss:$16 sps:$4 sm:$0xff]   ;;  %1110 = vmatpush1.bf16.msra.mxu0 %v1703_v7  ;;  %v1709_v11 = vld [vmem:[%s2008_s7 + $0xc0] ss:$16 sps:$4 sm:$0xff]   ;;  %v1803_v7 = vld [vmem:[%s2008_s7 + $0xec] ss:$16 sps:$4 sm:$0xff]  }
  0x28   : > { %1153 = vmatpush1.bf16.msra.mxu1 %v1704_v8  ;;  %v1707_v10 = vld [vmem:[%s2008_s7 + $0x2c4] ss:$16 sps:$4 sm:$0xff]   ;;  %1111 = vmatprep.subr.bf16.mxu0 %v1705_v9  ;;  %v1710_v12 = vld [vmem:[%s2008_s7 + $0x2c0] ss:$16 sps:$4 sm:$0xff]   ;;  %v1806_v8 = vld [vmem:[%s2008_s7 + $0x2ec] ss:$16 sps:$4 sm:$0xff]  }
  0x29   : > { %1154 = vmatprep.subr.bf16.mxu1 %v1707_v10  ;;  %v1711_v13 = vld [vmem:[%s2008_s7 + $0xa4] ss:$16 sps:$4 sm:$0xff]   ;;  %v1715_v15 = vld [vmem:[%s2008_s7 + $0xa0] ss:$16 sps:$4 sm:$0xff]   ;;  %v2085_v10 = vld [vmem:[%s2010_s8 + $0x8] ss:$16 sps:$4 sm:$0xff]  }
  0x2a   : > { %v1713_v14 = vld [vmem:[%s2008_s7 + $0x2a4] ss:$16 sps:$4 sm:$0xff]   ;;  %v1716_v16 = vld [vmem:[%s2008_s7 + $0x2a0] ss:$16 sps:$4 sm:$0xff]  }
  0x2b   : > { %1112 = vmatpush1.bf16.msra.mxu0 %v1709_v11  ;;  %v1717_v17 = vld [vmem:[%s2008_s7 + $0x84] ss:$16 sps:$4 sm:$0xff]   ;;  %v1721_v19 = vld [vmem:[%s2008_s7 + $0x80] ss:$16 sps:$4 sm:$0xff]   ;;  %v1801_v11 = vld [vmem:[%s2008_s7 + $0xe8] ss:$16 sps:$4 sm:$0xff]  }
  0x2c   : > { %1155 = vmatpush1.bf16.msra.mxu1 %v1710_v12  ;;  %1113 = vmatprep.subr.bf16.mxu0 %v1711_v13  ;;  %v1719_v18 = vld [vmem:[%s2008_s7 + $0x284] ss:$16 sps:$4 sm:$0xff]   ;;  %v1722_v20 = vld [vmem:[%s2008_s7 + $0x280] ss:$16 sps:$4 sm:$0xff]   ;;  %v1804_v12 = vld [vmem:[%s2008_s7 + $0x2e8] ss:$16 sps:$4 sm:$0xff]  }
  0x2d   : > { %1156 = vmatprep.subr.bf16.mxu1 %v1713_v14  ;;  %v1723_v21 = vld [vmem:[%s2008_s7 + $0x64] ss:$16 sps:$4 sm:$0xff]   ;;  %v1727_v23 = vld [vmem:[%s2008_s7 + $0x60] ss:$16 sps:$4 sm:$0xff]   ;;  %v1809_v13 = vld [vmem:[%s2008_s7 + $0xcc] ss:$16 sps:$4 sm:$0xff]  }
  0x2e   : > { %v1725_v22 = vld [vmem:[%s2008_s7 + $0x264] ss:$16 sps:$4 sm:$0xff]   ;;  %v1728_v24 = vld [vmem:[%s2008_s7 + $0x260] ss:$16 sps:$4 sm:$0xff]   ;;  %v1812_v14 = vld [vmem:[%s2008_s7 + $0x2cc] ss:$16 sps:$4 sm:$0xff]  }
  0x2f   : > { %1114 = vmatpush1.bf16.msra.mxu0 %v1715_v15  ;;  %v1729_v25 = vld [vmem:[%s2008_s7 + $0x44] ss:$16 sps:$4 sm:$0xff]   ;;  %v1733_v27 = vld [vmem:[%s2008_s7 + $0x40] ss:$16 sps:$4 sm:$0xff]   ;;  %v1807_v15 = vld [vmem:[%s2008_s7 + $0xc8] ss:$16 sps:$4 sm:$0xff]  }
  0x30   : > { %1157 = vmatpush1.bf16.msra.mxu1 %v1716_v16  ;;  %1115 = vmatprep.subr.bf16.mxu0 %v1717_v17  ;;  %v1731_v26 = vld [vmem:[%s2008_s7 + $0x244] ss:$16 sps:$4 sm:$0xff]   ;;  %v1734_v28 = vld [vmem:[%s2008_s7 + $0x240] ss:$16 sps:$4 sm:$0xff]   ;;  %v1810_v16 = vld [vmem:[%s2008_s7 + $0x2c8] ss:$16 sps:$4 sm:$0xff]  }
  0x31   : > { %1158 = vmatprep.subr.bf16.mxu1 %v1719_v18  ;;  %v1735_v29 = vld [vmem:[%s2008_s7 + $0x24] ss:$16 sps:$4 sm:$0xff]   ;;  %v1739_v31 = vld [vmem:[%s2008_s7 + $0x20] ss:$16 sps:$4 sm:$0xff]   ;;  %v1815_v17 = vld [vmem:[%s2008_s7 + $0xac] ss:$16 sps:$4 sm:$0xff]  }
  0x32   : > { %v1737_v30 = vld [vmem:[%s2008_s7 + $0x224] ss:$16 sps:$4 sm:$0xff]   ;;  %v1740_v32 = vld [vmem:[%s2008_s7 + $0x220] ss:$16 sps:$4 sm:$0xff]   ;;  %v1818_v18 = vld [vmem:[%s2008_s7 + $0x2ac] ss:$16 sps:$4 sm:$0xff]  }
  0x33   : > { %1116 = vmatpush1.bf16.msra.mxu0 %v1721_v19  ;;  %v1741_v33 = vld [vmem:[%s2008_s7 + $0x4] ss:$16 sps:$4 sm:$0xff]   ;;  %v1745_v35 = vld [vmem:[%s2008_s7] ss:$16 sps:$4 sm:$0xff]   ;;  %v1813_v19 = vld [vmem:[%s2008_s7 + $0xa8] ss:$16 sps:$4 sm:$0xff]  }
  0x34   : > { %1159 = vmatpush1.bf16.msra.mxu1 %v1722_v20  ;;  %1117 = vmatprep.subr.bf16.mxu0 %v1723_v21  ;;  %v1743_v34 = vld [vmem:[%s2008_s7 + $0x204] ss:$16 sps:$4 sm:$0xff]   ;;  %v1746_v36 = vld [vmem:[%s2008_s7 + $0x200] ss:$16 sps:$4 sm:$0xff]   ;;  %v1816_v20 = vld [vmem:[%s2008_s7 + $0x2a8] ss:$16 sps:$4 sm:$0xff]  }
  0x35   : > { %1160 = vmatprep.subr.bf16.mxu1 %v1725_v22  ;;  %v1747_v37 = vld [vmem:[%s2008_s7 + $0x1e4] ss:$16 sps:$4 sm:$0xff]   ;;  %v1751_v39 = vld [vmem:[%s2008_s7 + $0x1e0] ss:$16 sps:$4 sm:$0xff]   ;;  %v1821_v21 = vld [vmem:[%s2008_s7 + $0x8c] ss:$16 sps:$4 sm:$0xff]  }
  0x36   : > { %v1749_v38 = vld [vmem:[%s2008_s7 + $0x3e4] ss:$16 sps:$4 sm:$0xff]   ;;  %v1752_v40 = vld [vmem:[%s2008_s7 + $0x3e0] ss:$16 sps:$4 sm:$0xff]   ;;  %v1824_v22 = vld [vmem:[%s2008_s7 + $0x28c] ss:$16 sps:$4 sm:$0xff]  }
  0x37   : > { %1118 = vmatpush1.bf16.msra.mxu0 %v1727_v23  ;;  %v1753_v41 = vld [vmem:[%s2008_s7 + $0x1c4] ss:$16 sps:$4 sm:$0xff]   ;;  %v1757_v43 = vld [vmem:[%s2008_s7 + $0x1c0] ss:$16 sps:$4 sm:$0xff]   ;;  %v1819_v23 = vld [vmem:[%s2008_s7 + $0x88] ss:$16 sps:$4 sm:$0xff]  }
  0x38   : > { %1161 = vmatpush1.bf16.msra.mxu1 %v1728_v24  ;;  %1119 = vmatprep.subr.bf16.mxu0 %v1729_v25  ;;  %v1755_v42 = vld [vmem:[%s2008_s7 + $0x3c4] ss:$16 sps:$4 sm:$0xff]   ;;  %v1758_v44 = vld [vmem:[%s2008_s7 + $0x3c0] ss:$16 sps:$4 sm:$0xff]   ;;  %v1822_v24 = vld [vmem:[%s2008_s7 + $0x288] ss:$16 sps:$4 sm:$0xff]  }
  0x39   : > { %1162 = vmatprep.subr.bf16.mxu1 %v1731_v26  ;;  %v1759_v45 = vld [vmem:[%s2008_s7 + $0x1a4] ss:$16 sps:$4 sm:$0xff]   ;;  %v1763_v47 = vld [vmem:[%s2008_s7 + $0x1a0] ss:$16 sps:$4 sm:$0xff]   ;;  %v1827_v25 = vld [vmem:[%s2008_s7 + $0x6c] ss:$16 sps:$4 sm:$0xff]  }
  0x3a   : > { %v1761_v46 = vld [vmem:[%s2008_s7 + $0x3a4] ss:$16 sps:$4 sm:$0xff]   ;;  %v1764_v48 = vld [vmem:[%s2008_s7 + $0x3a0] ss:$16 sps:$4 sm:$0xff]   ;;  %v1830_v26 = vld [vmem:[%s2008_s7 + $0x26c] ss:$16 sps:$4 sm:$0xff]  }
  0x3b   : > { %1120 = vmatpush1.bf16.msra.mxu0 %v1733_v27  ;;  %v1765_v49 = vld [vmem:[%s2008_s7 + $0x184] ss:$16 sps:$4 sm:$0xff]   ;;  %v1769_v51 = vld [vmem:[%s2008_s7 + $0x180] ss:$16 sps:$4 sm:$0xff]   ;;  %v1825_v27 = vld [vmem:[%s2008_s7 + $0x68] ss:$16 sps:$4 sm:$0xff]  }
  0x3c   : > { %1163 = vmatpush1.bf16.msra.mxu1 %v1734_v28  ;;  %1121 = vmatprep.subr.bf16.mxu0 %v1735_v29  ;;  %v1767_v50 = vld [vmem:[%s2008_s7 + $0x384] ss:$16 sps:$4 sm:$0xff]   ;;  %v1770_v52 = vld [vmem:[%s2008_s7 + $0x380] ss:$16 sps:$4 sm:$0xff]   ;;  %v1828_v28 = vld [vmem:[%s2008_s7 + $0x268] ss:$16 sps:$4 sm:$0xff]  }
  0x3d   : > { %1164 = vmatprep.subr.bf16.mxu1 %v1737_v30  ;;  %v1771_v53 = vld [vmem:[%s2008_s7 + $0x164] ss:$16 sps:$4 sm:$0xff]   ;;  %v1775_v57 = vld [vmem:[%s2008_s7 + $0x160] ss:$16 sps:$4 sm:$0xff]   ;;  %v1833_v29 = vld [vmem:[%s2008_s7 + $0x4c] ss:$16 sps:$4 sm:$0xff]  }
  0x3e   : > { %v1797_v54 = vld [vmem:[%s2010_s8 + $0x4] ss:$16 sps:$4 sm:$0xff]   ;;  %v1776_v58 = vld [vmem:[%s2008_s7 + $0x360] ss:$16 sps:$4 sm:$0xff]   ;;  %v1836_v30 = vld [vmem:[%s2008_s7 + $0x24c] ss:$16 sps:$4 sm:$0xff]  }
  0x3f   : > { %1122 = vmatpush1.bf16.msra.mxu0 %v1739_v31  ;;  %v1773_v55 = vld [vmem:[%s2008_s7 + $0x364] ss:$16 sps:$4 sm:$0xff]   ;;  %1141 = vmatprep.mubr.bf16.mxu0 %v1797_v54  ;;  %v1781_v61 = vld [vmem:[%s2008_s7 + $0x140] ss:$16 sps:$4 sm:$0xff]   ;;  %v1831_v31 = vld [vmem:[%s2008_s7 + $0x48] ss:$16 sps:$4 sm:$0xff]  }
  0x40   : > { %1165 = vmatpush1.bf16.msra.mxu1 %v1740_v32  ;;  %1123 = vmatprep.subr.bf16.mxu0 %v1741_v33  ;;  %v1777_v59 = vld [vmem:[%s2008_s7 + $0x144] ss:$16 sps:$4 sm:$0xff]   ;;  %v1782_v62 = vld [vmem:[%s2008_s7 + $0x340] ss:$16 sps:$4 sm:$0xff]   ;;  %v1834_v32 = vld [vmem:[%s2008_s7 + $0x248] ss:$16 sps:$4 sm:$0xff]  }
  0x41   : > { %1166 = vmatprep.subr.bf16.mxu1 %v1743_v34  ;;  %v1779_v60 = vld [vmem:[%s2008_s7 + $0x344] ss:$16 sps:$4 sm:$0xff]   ;;  %v1787_v1 = vld [vmem:[%s2008_s7 + $0x120] ss:$16 sps:$4 sm:$0xff]   ;;  %v1839_v33 = vld [vmem:[%s2008_s7 + $0x2c] ss:$16 sps:$4 sm:$0xff]  }
  0x42   : > { %v1783_v63 = vld [vmem:[%s2008_s7 + $0x124] ss:$16 sps:$4 sm:$0xff]   ;;  %v1788_v2 = vld [vmem:[%s2008_s7 + $0x320] ss:$16 sps:$4 sm:$0xff]   ;;  %v1842_v34 = vld [vmem:[%s2008_s7 + $0x22c] ss:$16 sps:$4 sm:$0xff]  }
  0x43   : > { %1124 = vmatpush1.bf16.msra.mxu0 %v1745_v35  ;;  %v1785_v0 = vld [vmem:[%s2008_s7 + $0x324] ss:$16 sps:$4 sm:$0xff]   ;;  %v1793_v5 = vld [vmem:[%s2008_s7 + $0x100] ss:$16 sps:$4 sm:$0xff]   ;;  %v1837_v35 = vld [vmem:[%s2008_s7 + $0x28] ss:$16 sps:$4 sm:$0xff]  }
  0x44   : > { %1167 = vmatpush1.bf16.msra.mxu1 %v1746_v36  ;;  %1125 = vmatprep.subr.bf16.mxu0 %v1747_v37  ;;  %v1789_v3 = vld [vmem:[%s2008_s7 + $0x104] ss:$16 sps:$4 sm:$0xff]   ;;  %v1794_v6 = vld [vmem:[%s2008_s7 + $0x300] ss:$16 sps:$4 sm:$0xff]   ;;  %v1840_v36 = vld [vmem:[%s2008_s7 + $0x228] ss:$16 sps:$4 sm:$0xff]  }
  0x45   : > { %1168 = vmatprep.subr.bf16.mxu1 %v1749_v38  ;;  %v1791_v4 = vld [vmem:[%s2008_s7 + $0x304] ss:$16 sps:$4 sm:$0xff]   ;;  %v2082_v9 = vld [vmem:[%s2010_s8] ss:$16 sps:$4 sm:$0xff]   ;;  %v1845_v37 = vld [vmem:[%s2008_s7 + $0xc] ss:$16 sps:$4 sm:$0xff]  }
  0x46   : > { %v1848_v38 = vld [vmem:[%s2008_s7 + $0x20c] ss:$16 sps:$4 sm:$0xff]  }
  0x47   : > { %1126 = vmatpush2.bf16.msra.mxu0 %v1751_v39  ;;  %v1843_v39 = vld [vmem:[%s2008_s7 + $0x8] ss:$16 sps:$4 sm:$0xff]  }
  0x48   : > { %1169 = vmatpush2.bf16.msra.mxu1 %v1752_v40  ;;  %1127 = vmatprep.subr.bf16.mxu0 %v1753_v41  ;;  %v1846_v40 = vld [vmem:[%s2008_s7 + $0x208] ss:$16 sps:$4 sm:$0xff]   ;;  %v1851_v41 = vld [vmem:[%s2008_s7 + $0x1ec] ss:$16 sps:$4 sm:$0xff]  }
  0x49   : > { %1170 = vmatprep.subr.bf16.mxu1 %v1755_v42  ;;  %v1854_v42 = vld [vmem:[%s2008_s7 + $0x3ec] ss:$16 sps:$4 sm:$0xff]  }
  0x4b   : > { %1128 = vmatpush2.bf16.msra.mxu0 %v1757_v43  ;;  %v1849_v43 = vld [vmem:[%s2008_s7 + $0x1e8] ss:$16 sps:$4 sm:$0xff]  }
  0x4c   : > { %1171 = vmatpush2.bf16.msra.mxu1 %v1758_v44  ;;  %1129 = vmatprep.subr.bf16.mxu0 %v1759_v45  ;;  %v1852_v44 = vld [vmem:[%s2008_s7 + $0x3e8] ss:$16 sps:$4 sm:$0xff]   ;;  %v1857_v45 = vld [vmem:[%s2008_s7 + $0x1cc] ss:$16 sps:$4 sm:$0xff]  }
  0x4d   : > { %1172 = vmatprep.subr.bf16.mxu1 %v1761_v46  ;;  %v1860_v46 = vld [vmem:[%s2008_s7 + $0x3cc] ss:$16 sps:$4 sm:$0xff]  }
  0x4f   : > { %1130 = vmatpush2.bf16.msra.mxu0 %v1763_v47  ;;  %v1855_v47 = vld [vmem:[%s2008_s7 + $0x1c8] ss:$16 sps:$4 sm:$0xff]  }
  0x50   : > { %1173 = vmatpush2.bf16.msra.mxu1 %v1764_v48  ;;  %1131 = vmatprep.subr.bf16.mxu0 %v1765_v49  ;;  %v1858_v48 = vld [vmem:[%s2008_s7 + $0x3c8] ss:$16 sps:$4 sm:$0xff]   ;;  %v1863_v49 = vld [vmem:[%s2008_s7 + $0x1ac] ss:$16 sps:$4 sm:$0xff]  }
  0x51   : > { %1174 = vmatprep.subr.bf16.mxu1 %v1767_v50  ;;  %v1866_v50 = vld [vmem:[%s2008_s7 + $0x3ac] ss:$16 sps:$4 sm:$0xff]  }
  0x53   : > { %1132 = vmatpush2.bf16.msra.mxu0 %v1769_v51  ;;  %v1861_v51 = vld [vmem:[%s2008_s7 + $0x1a8] ss:$16 sps:$4 sm:$0xff]  }
  0x54   : > { %1175 = vmatpush2.bf16.msra.mxu1 %v1770_v52  ;;  %1133 = vmatprep.subr.bf16.mxu0 %v1771_v53  ;;  %v1864_v52 = vld [vmem:[%s2008_s7 + $0x3a8] ss:$16 sps:$4 sm:$0xff]   ;;  %v1869_v53 = vld [vmem:[%s2008_s7 + $0x18c] ss:$16 sps:$4 sm:$0xff]  }
  0x55   : > { %1176 = vmatprep.subr.bf16.mxu1 %v1773_v55  ;;  %v1867_v55 = vld [vmem:[%s2008_s7 + $0x188] ss:$16 sps:$4 sm:$0xff]  }
  0x57   : > { %1134 = vmatpush2.bf16.msra.mxu0 %v1775_v57  ;;  %v1875_v57 = vld [vmem:[%s2008_s7 + $0x16c] ss:$16 sps:$4 sm:$0xff]  }
  0x58   : > { %1177 = vmatpush2.bf16.msra.mxu1 %v1776_v58  ;;  %1135 = vmatprep.subr.bf16.mxu0 %v1777_v59  ;;  %v1878_v58 = vld [vmem:[%s2008_s7 + $0x36c] ss:$16 sps:$4 sm:$0xff]   ;;  %v1873_v59 = vld [vmem:[%s2008_s7 + $0x168] ss:$16 sps:$4 sm:$0xff]  }
  0x59   : > { %1178 = vmatprep.subr.bf16.mxu1 %v1779_v60  ;;  %v1876_v60 = vld [vmem:[%s2008_s7 + $0x368] ss:$16 sps:$4 sm:$0xff]  }
  0x5b   : > { %1136 = vmatpush2.bf16.msra.mxu0 %v1781_v61  ;;  %v1881_v61 = vld [vmem:[%s2008_s7 + $0x14c] ss:$16 sps:$4 sm:$0xff]  }
  0x5c   : > { %1179 = vmatpush2.bf16.msra.mxu1 %v1782_v62  ;;  %1137 = vmatprep.subr.bf16.mxu0 %v1783_v63  ;;  %v1884_v62 = vld [vmem:[%s2008_s7 + $0x34c] ss:$16 sps:$4 sm:$0xff]   ;;  %v1879_v63 = vld [vmem:[%s2008_s7 + $0x148] ss:$16 sps:$4 sm:$0xff]  }
  0x5d   : > { %1180 = vmatprep.subr.bf16.mxu1 %v1785_v0  ;;  %v1882_v0 = vld [vmem:[%s2008_s7 + $0x348] ss:$16 sps:$4 sm:$0xff]  }
  0x5f   : > { %1138 = vmatpush2.bf16.msra.mxu0 %v1787_v1  ;;  %v1887_v1 = vld [vmem:[%s2008_s7 + $0x12c] ss:$16 sps:$4 sm:$0xff]  }
  0x60   : > { %1181 = vmatpush2.bf16.msra.mxu1 %v1788_v2  ;;  %1139 = vmatprep.subr.bf16.mxu0 %v1789_v3  ;;  %v1890_v2 = vld [vmem:[%s2008_s7 + $0x32c] ss:$16 sps:$4 sm:$0xff]   ;;  %v1885_v3 = vld [vmem:[%s2008_s7 + $0x128] ss:$16 sps:$4 sm:$0xff]  }
  0x61   : > { %1182 = vmatprep.subr.bf16.mxu1 %v1791_v4  ;;  %v1888_v4 = vld [vmem:[%s2008_s7 + $0x328] ss:$16 sps:$4 sm:$0xff]  }
  0x63   : > { %1140 = vmatpush2.bf16.msra.mxu0 %v1793_v5  ;;  %v1893_v5 = vld [vmem:[%s2008_s7 + $0x10c] ss:$16 sps:$4 sm:$0xff]  }
  0x64   : > { %1183 = vmatpush2.bf16.msra.mxu1 %v1794_v6  ;;  %1195 = vmatprep.subr.bf16.mxu0 %v1803_v7  ;;  %v1896_v6 = vld [vmem:[%s2008_s7 + $0x30c] ss:$16 sps:$4 sm:$0xff]   ;;  %v1891_v7 = vld [vmem:[%s2008_s7 + $0x108] ss:$16 sps:$4 sm:$0xff]  }
  0x65   : > { %1238 = vmatprep.subr.bf16.mxu1 %v1806_v8  ;;  %v1894_v8 = vld [vmem:[%s2008_s7 + $0x308] ss:$16 sps:$4 sm:$0xff]  }
  0x66   : > { %1142 = vmatmul.mubr.bf16.vlgmr.msra.gmra.mxu0 %v2082_v9 }
  0x67   : > { %1185 = vmatmul.mubr.bf16.vlgmr.msra.gmra.mxu1 %v2085_v10  ;;  %1196 = vmatpush1.bf16.msra.mxu0 %v1801_v11 }
  0x68   : > { %1239 = vmatpush1.bf16.msra.mxu1 %v1804_v12  ;;  %1197 = vmatprep.subr.bf16.mxu0 %v1809_v13  ;;  %v309_v12 = vld [vmem:[#allocation2 + $0x30] sm:$0xff] }
  0x69   : > { %1240 = vmatprep.subr.bf16.mxu1 %v1812_v14  ;;  %1227 = vmatprep.mubr.bf16.mxu0 %v1797_v54  ;;  %v1872_v54 = vld [vmem:[%s2008_s7 + $0x38c] ss:$16 sps:$4 sm:$0xff]  }
  0x6a   : > { %1270 = vmatprep.mubr.bf16.mxu1 %v1800_v56  ;;  %v1870_v56 = vld [vmem:[%s2008_s7 + $0x388] ss:$16 sps:$4 sm:$0xff]  }
  0x6b   : > { %1198 = vmatpush1.bf16.msra.mxu0 %v1807_v15 }
  0x6c   : > { %1241 = vmatpush1.bf16.msra.mxu1 %v1810_v16  ;;  %1199 = vmatprep.subr.bf16.mxu0 %v1815_v17  ;;  %v310_v16 = vld [vmem:[#allocation2] sm:$0xff] }
  0x6d   : > { %1242 = vmatprep.subr.bf16.mxu1 %v1818_v18 }
  0x6f   : > { %1200 = vmatpush1.bf16.msra.mxu0 %v1813_v19 }
  0x70   : > { %1243 = vmatpush1.bf16.msra.mxu1 %v1816_v20  ;;  %1201 = vmatprep.subr.bf16.mxu0 %v1821_v21  ;;  %v313_v21 = vld [vmem:[#allocation2 + $0x8] sm:$0xff] }
  0x71   : > { %1244 = vmatprep.subr.bf16.mxu1 %v1824_v22 }
  0x73   : > { %1202 = vmatpush1.bf16.msra.mxu0 %v1819_v23 }
  0x74   : > { %1245 = vmatpush1.bf16.msra.mxu1 %v1822_v24  ;;  %1203 = vmatprep.subr.bf16.mxu0 %v1827_v25 }
  0x75   : > { %1246 = vmatprep.subr.bf16.mxu1 %v1830_v26  ;;  %v314_v26 = vld [vmem:[#allocation2 + $0x20] sm:$0xff] }
  0x77   : > { %1204 = vmatpush1.bf16.msra.mxu0 %v1825_v27 }
  0x78   : > { %1247 = vmatpush1.bf16.msra.mxu1 %v1828_v28  ;;  %1205 = vmatprep.subr.bf16.mxu0 %v1833_v29 }
  0x79   : > { %1248 = vmatprep.subr.bf16.mxu1 %v1836_v30  ;;  %v311_v30 = vld [vmem:[#allocation2 + $0x18] sm:$0xff] }
  0x7b   : > { %1206 = vmatpush1.bf16.msra.mxu0 %v1831_v31 }
  0x7c   : > { %1249 = vmatpush1.bf16.msra.mxu1 %v1834_v32  ;;  %1207 = vmatprep.subr.bf16.mxu0 %v1839_v33 }
  0x7d   : > { %1250 = vmatprep.subr.bf16.mxu1 %v1842_v34  ;;  %v312_v34 = vld [vmem:[#allocation2 + $0x10] sm:$0xff] }
  0x7f   : > { %1208 = vmatpush1.bf16.msra.mxu0 %v1837_v35 }
  0x80   : > { %1251 = vmatpush1.bf16.msra.mxu1 %v1840_v36  ;;  %1209 = vmatprep.subr.bf16.mxu0 %v1845_v37 }
  0x81   : > { %1252 = vmatprep.subr.bf16.mxu1 %v1848_v38 }
  0x83   : > { %1210 = vmatpush1.bf16.msra.mxu0 %v1843_v39  ;;  %v315_v39 = vld [vmem:[#allocation2 + $0x28] sm:$0xff] }
  0x84   : > { %1253 = vmatpush1.bf16.msra.mxu1 %v1846_v40  ;;  %1211 = vmatprep.subr.bf16.mxu0 %v1851_v41 }
  0x85   : > { %1254 = vmatprep.subr.bf16.mxu1 %v1854_v42 }
  0x87   : > { %1212 = vmatpush2.bf16.msra.mxu0 %v1849_v43 }
  0x88   : > { %1255 = vmatpush2.bf16.msra.mxu1 %v1852_v44  ;;  %1213 = vmatprep.subr.bf16.mxu0 %v1857_v45  ;;  %v316_v44 = vld [vmem:[#allocation2 + $0x38] sm:$0xff] }
  0x89   : > { %1256 = vmatprep.subr.bf16.mxu1 %v1860_v46 }
  0x8b   : > { %1214 = vmatpush2.bf16.msra.mxu0 %v1855_v47 }
  0x8c   : > { %1257 = vmatpush2.bf16.msra.mxu1 %v1858_v48  ;;  %1215 = vmatprep.subr.bf16.mxu0 %v1863_v49 }
  0x8d   : > { %1258 = vmatprep.subr.bf16.mxu1 %v1866_v50 }
  0x8f   : > { %1216 = vmatpush2.bf16.msra.mxu0 %v1861_v51 }
  0x90   : > { %1259 = vmatpush2.bf16.msra.mxu1 %v1864_v52  ;;  %1217 = vmatprep.subr.bf16.mxu0 %v1869_v53 }
  0x91   : > { %1260 = vmatprep.subr.bf16.mxu1 %v1872_v54 }
  0x93   : > { %1218 = vmatpush2.bf16.msra.mxu0 %v1867_v55 }
  0x94   : > { %1261 = vmatpush2.bf16.msra.mxu1 %v1870_v56  ;;  %1219 = vmatprep.subr.bf16.mxu0 %v1875_v57 }
  0x95   : > { %1262 = vmatprep.subr.bf16.mxu1 %v1878_v58 }
  0x97   : > { %1220 = vmatpush2.bf16.msra.mxu0 %v1873_v59 }
  0x98   : > { %1263 = vmatpush2.bf16.msra.mxu1 %v1876_v60  ;;  %1221 = vmatprep.subr.bf16.mxu0 %v1881_v61 }
  0x99   : > { %1264 = vmatprep.subr.bf16.mxu1 %v1884_v62 }
  0x9b   : > { %1222 = vmatpush2.bf16.msra.mxu0 %v1879_v63 }
  0x9c   : > { %1265 = vmatpush2.bf16.msra.mxu1 %v1882_v0  ;;  %1223 = vmatprep.subr.bf16.mxu0 %v1887_v1 }
  0x9d   : > { %1266 = vmatprep.subr.bf16.mxu1 %v1890_v2 }
  0x9f   : > { %1224 = vmatpush2.bf16.msra.mxu0 %v1885_v3 }
  0xa0   : > { %1267 = vmatpush2.bf16.msra.mxu1 %v1888_v4  ;;  %1225 = vmatprep.subr.bf16.mxu0 %v1893_v5 }
  0xa1   : > { %1268 = vmatprep.subr.bf16.mxu1 %v1896_v6 }
  0xa3   : > { %1226 = vmatpush2.bf16.msra.mxu0 %v1891_v7 }
  0xa4   : > { %1269 = vmatpush2.bf16.msra.mxu1 %v1894_v8 }
  0xa6   : > { %1228 = vmatmul.mubr.bf16.vlgmr.msra.gmra.mxu0 %v2082_v9 }
  0xa7   : > { %1271 = vmatmul.mubr.bf16.vlgmr.msra.gmra.mxu1 %v2085_v10 }
 0x126   : > { %v1143_v11 = vpop.f32.mrf.mxu0 }
 0x127   : > { %v1186_v13 = vpop.f32.mrf.mxu1 }
 0x128   : > { %v1187_v14 = vadd.f32 %v1186_v13, %v1143_v11  ;;  %v1145_v15 = vpop.f32.mrf.mxu0 }
 0x129   : > { %v1188_v17 = vpop.f32.mrf.mxu1 }
 0x12a   : > { %v1281_v18 = vadd.f32 %v1187_v14, %v309_v12  ;;  %v1189_v19 = vadd.f32 %v1188_v17, %v1145_v15  ;;  %v1147_v20 = vpop.f32.mrf.mxu0 }
 0x12b   : > { %v1190_v22 = vpop.f32.mrf.mxu1 }
 0x12c   : > { %1289 = vst [vmem:[#allocation2 + $0x30] sm:$0xff] %v1281_v18  ;;  %v1282_v23 = vadd.f32 %v1189_v19, %v310_v16  ;;  %v1191_v24 = vadd.f32 %v1190_v22, %v1147_v20  ;;  %v1149_v25 = vpop.f32.mrf.mxu0 }
 0x12d   : > { %v1192_v9 = vpop.f32.mrf.mxu1 }
 0x12e   : > { %1290 = vst [vmem:[#allocation2] sm:$0xff] %v1282_v23  ;;  %v1285_v10 = vadd.f32 %v1191_v24, %v313_v21  ;;  %v1193_v27 = vadd.f32 %v1192_v9, %v1149_v25 }
 0x130   : > { %1293 = vst [vmem:[#allocation2 + $0x8] sm:$0xff] %v1285_v10  ;;  %v1286_v28 = vadd.f32 %v1193_v27, %v314_v26 }
 0x132   : > { %1294 = vst [vmem:[#allocation2 + $0x20] sm:$0xff] %v1286_v28 }
 0x166   : > { %v1229_v29 = vpop.f32.mrf.mxu0 }
 0x167   : > { %v1272_v31 = vpop.f32.mrf.mxu1 }
 0x168   : > { %v1273_v32 = vadd.f32 %v1272_v31, %v1229_v29  ;;  %v1231_v33 = vpop.f32.mrf.mxu0 }
 0x169   : > { %v1274_v35 = vpop.f32.mrf.mxu1 }
 0x16a   : > { %v1283_v36 = vadd.f32 %v1273_v32, %v311_v30  ;;  %v1275_v37 = vadd.f32 %v1274_v35, %v1231_v33  ;;  %v1233_v38 = vpop.f32.mrf.mxu0 }
 0x16b   : > { %v1276_v40 = vpop.f32.mrf.mxu1 }
 0x16c   : > { %1291 = vst [vmem:[#allocation2 + $0x18] sm:$0xff] %v1283_v36  ;;  %v1284_v41 = vadd.f32 %v1275_v37, %v312_v34  ;;  %v1277_v42 = vadd.f32 %v1276_v40, %v1233_v38  ;;  %v1235_v43 = vpop.f32.mrf.mxu0 }
 0x16d   : > { %v1278_v45 = vpop.f32.mrf.mxu1 }
 0x16e   : > { %1292 = vst [vmem:[#allocation2 + $0x10] sm:$0xff] %v1284_v41  ;;  %v1287_v46 = vadd.f32 %v1277_v42, %v315_v39  ;;  %v1279_v47 = vadd.f32 %v1278_v45, %v1235_v43  ;;  %1300 = sbr.rel (%p1643_p11) target bundleno = 387 (0x183), region = 63 }
 0x170   : > { %1295 = vst [vmem:[#allocation2 + $0x28] sm:$0xff] %v1287_v46  ;;  %v1288_v48 = vadd.f32 %v1279_v47, %v316_v44 }
 0x172   : > { %1296 = vst [vmem:[#allocation2 + $0x38] sm:$0xff] %v1288_v48 }
 0x173   : > { %v1311_v49 = vlaneseq  ;;  %v1309_v51 = vld [vmem:[%s2186_s2] sm:$0xf]  ;;  %v1301_v52 = vld [vmem:[#allocation2 + $0x30] sm:$0xff]  ;;  %v1303_v58 = vld [vmem:[#allocation2 + $0x18] sm:$0xff] }
 0x174   : > { %v1302_v53 = vld [vmem:[#allocation2] sm:$0xff]  ;;  %v1305_v60 = vld [vmem:[#allocation2 + $0x8] sm:$0xff] }
 0x175   : > { %v1312_v50 = vshrl.u32 %v1311_v49, 7  ;;  %v1304_v59 = vld [vmem:[#allocation2 + $0x10] sm:$0xff]  ;;  %v1306_v1 = vld [vmem:[#allocation2 + $0x20] sm:$0xff] }
 0x177   : > { %v1313_v54 = vsub.s32 0, %v1312_v50  ;;  %v1317_v55 = vsub.s32 1, %v1312_v50  ;;  %v1321_v56 = vsub.s32 2, %v1312_v50  ;;  %v1325_v57 = vsub.s32 3, %v1312_v50  ;;  %v1307_v2 = vld [vmem:[#allocation2 + $0x28] sm:$0xff] }
 0x179   : > { %v1314_v61 = vrot.slane %v1309_v51, %v1313_v54  ;;  %v1318_v62 = vrot.slane %v1309_v51, %v1317_v55  ;;  %v1322_v63 = vrot.slane %v1309_v51, %v1321_v56  ;;  %v1326_v0 = vrot.slane %v1309_v51, %v1325_v57  ;;  %v1308_v3 = vld [vmem:[#allocation2 + $0x38] sm:$0xff] }
 0x17b   : > { %v1331_v4 = vadd.f32 %v1314_v61, %v1301_v52  ;;  %v1332_v5 = vadd.f32 %v1318_v62, %v1302_v53  ;;  %v1333_v6 = vadd.f32 %v1322_v63, %v1303_v58  ;;  %v1334_v7 = vadd.f32 %v1326_v0, %v1304_v59 }
 0x17c   : > { %v1335_v8 = vadd.f32 %v1314_v61, %v1305_v60  ;;  %v1336_v11 = vadd.f32 %v1318_v62, %v1306_v1  ;;  %v1337_v12 = vadd.f32 %v1322_v63, %v1307_v2  ;;  %v1338_v13 = vadd.f32 %v1326_v0, %v1308_v3 }
 0x17d   : > { %v1339_v14 = vmax.f32 %v1331_v4, 0.0  ;;  %v1340_v15 = vmax.f32 %v1332_v5, 0.0  ;;  %v1341_v16 = vmax.f32 %v1333_v6, 0.0  ;;  %v1342_v17 = vmax.f32 %v1334_v7, 0.0 }
 0x17e   : > { %v1343_v18 = vmax.f32 %v1335_v8, 0.0  ;;  %v1344_v19 = vmax.f32 %v1336_v11, 0.0  ;;  %v1345_v20 = vmax.f32 %v1337_v12, 0.0  ;;  %v1346_v21 = vmax.f32 %v1338_v13, 0.0 }
 0x17f   : > { %v1654_v22 = vpack.c.bf16 %v1340_v15, %v1339_v14  ;;  %v1655_v23 = vpack.c.bf16 %v1342_v17, %v1341_v16 }
 0x180   : > { %v1656_v24 = vpack.c.bf16 %v1344_v19, %v1343_v18  ;;  %v1657_v25 = vpack.c.bf16 %v1346_v21, %v1345_v20 }
 0x181   : > { %1371 = vst [vmem:[%s2187_s3] sm:$0xff] %v1654_v22  ;;  %1372 = vst [vmem:[%s2187_s3 + $0x8] sm:$0xff] %v1655_v23 }
 0x182   : > { %1373 = vst [vmem:[%s2187_s3 + $0x10] sm:$0xff] %v1656_v24  ;;  %1374 = vst [vmem:[%s2187_s3 + $0x18] sm:$0xff] %v1657_v25 }
 0x183 PF: > { %s13_s16 = sadd.s32 1, %s1935_s16   ;;  %s2188_s12 = smov %s1923_s13 }
 0x184   : > { %p10_p12 = scmp.ge.s32.totalorder %s13_s16, 11   ;;  %s2189_s13 = smov %s1993_s20 }
 0x185   : > { %s2190_s14 = smov %s1931_s15  ;;  %s2191_s15 = smov %s2193_s17 }
 0x186   :  { %12 = sbr.rel (!%p10_p12) target bundleno = 3 (0x3), region = 104 }

// kernel: vqa_forward.41
= control target key start
LH: loop header
LB: loop body
LE: loop exit
PB: predicated region body
PF: predicated region fallthrough
CT: control target
= control target key end

     0   :  { %v4764_v2 = vmov 0   ;;  %s6276_s0 = inlined_call_operand.vmem [shape: bf16[2,512], index: 0, kind: input, shape index: {}]   ;;  %s6277_s1 = inlined_call_operand.vmem [shape: bf16[2,128], index: 1, kind: input, shape index: {}]   ;;  %s6278_s2 = inlined_call_operand.vmem [shape: bf16[128,512], index: 2, kind: input, shape index: {}]   ;;  %s6279_s3 = inlined_call_operand.vmem [shape: f32[1,512], index: 3, kind: input, shape index: {}]   ;;  %s6280_s4 = inlined_call_operand.vmem [shape: bf16[512,512], index: 4, kind: input, shape index: {}]   ;;  %s6281_s5 = inlined_call_operand.vmem [shape: f32[1,512], index: 5, kind: input, shape index: {}]   ;;  %s6282_s6 = inlined_call_operand.vmem [shape: bf16[512,512], index: 6, kind: input, shape index: {}]   ;;  %s6283_s7 = inlined_call_operand.vmem [shape: bf16[512,512], index: 7, kind: input, shape index: {}]   ;;  %s6284_s8 = inlined_call_operand.vmem [shape: f32[1,512], index: 8, kind: input, shape index: {}]   ;;  %s6285_s9 = inlined_call_operand.vmem [shape: bf16[512,128], index: 9, kind: input, shape index: {}]   ;;  %s6286_s10 = inlined_call_operand.vmem [shape: f32[1,128], index: 10, kind: input, shape index: {}]   ;;  %s6287_s11 = inlined_call_operand.hbm [shape: f32[2,128], index: 11, kind: output, shape index: {}]  }
   0x1   :  { %v4086_v0 = vld [vmem:[%s6278_s2 + $0xe4] ss:$16 sps:$4 sm:$0xff]   ;;  %v4088_v1 = vld [vmem:[%s6278_s2 + $0xec] ss:$16 sps:$4 sm:$0xff]   ;;  %287 = vmatprep.mubr.bf16.mxu0 %v4764_v2  ;;  %328 = vmatprep.mubr.bf16.mxu1 %v4764_v2  ;;  %v4090_v3 = vld [vmem:[%s6278_s2 + $0xe0] ss:$16 sps:$4 sm:$0xff]  }
   0x2   :  { %255 = vmatprep.subr.bf16.mxu0 %v4086_v0  ;;  %v4091_v4 = vld [vmem:[%s6278_s2 + $0xe8] ss:$16 sps:$4 sm:$0xff]   ;;  %296 = vmatprep.subr.bf16.mxu1 %v4088_v1  ;;  %v4092_v5 = vld [vmem:[%s6278_s2 + $0xc4] ss:$16 sps:$4 sm:$0xff]   ;;  %v4094_v6 = vld [vmem:[%s6278_s2 + $0xcc] ss:$16 sps:$4 sm:$0xff]  }
   0x3   :  { %256 = vmatpush1.bf16.msra.mxu0 %v4090_v3  ;;  %297 = vmatpush1.bf16.msra.mxu1 %v4091_v4  ;;  %v4096_v7 = vld [vmem:[%s6278_s2 + $0xc0] ss:$16 sps:$4 sm:$0xff]   ;;  %v4097_v8 = vld [vmem:[%s6278_s2 + $0xc8] ss:$16 sps:$4 sm:$0xff]   ;;  %v4098_v9 = vld [vmem:[%s6278_s2 + $0xa4] ss:$16 sps:$4 sm:$0xff]  }
   0x4   :  { %257 = vmatprep.subr.bf16.mxu0 %v4092_v5  ;;  %298 = vmatprep.subr.bf16.mxu1 %v4094_v6  ;;  %v4100_v10 = vld [vmem:[%s6278_s2 + $0xac] ss:$16 sps:$4 sm:$0xff]   ;;  %v4102_v11 = vld [vmem:[%s6278_s2 + $0xa0] ss:$16 sps:$4 sm:$0xff]   ;;  %v4103_v12 = vld [vmem:[%s6278_s2 + $0xa8] ss:$16 sps:$4 sm:$0xff]  }
   0x5   :  { %v4104_v13 = vld [vmem:[%s6278_s2 + $0x84] ss:$16 sps:$4 sm:$0xff]   ;;  %v4106_v14 = vld [vmem:[%s6278_s2 + $0x8c] ss:$16 sps:$4 sm:$0xff]   ;;  %v4108_v15 = vld [vmem:[%s6278_s2 + $0x80] ss:$16 sps:$4 sm:$0xff]  }
   0x6   :  { %v4109_v16 = vld [vmem:[%s6278_s2 + $0x88] ss:$16 sps:$4 sm:$0xff]   ;;  %v4110_v17 = vld [vmem:[%s6278_s2 + $0x64] ss:$16 sps:$4 sm:$0xff]   ;;  %v4112_v18 = vld [vmem:[%s6278_s2 + $0x6c] ss:$16 sps:$4 sm:$0xff]  }
   0x7   :  { %258 = vmatpush1.bf16.msra.mxu0 %v4096_v7  ;;  %299 = vmatpush1.bf16.msra.mxu1 %v4097_v8  ;;  %v4114_v19 = vld [vmem:[%s6278_s2 + $0x60] ss:$16 sps:$4 sm:$0xff]   ;;  %v4115_v20 = vld [vmem:[%s6278_s2 + $0x68] ss:$16 sps:$4 sm:$0xff]   ;;  %v4116_v21 = vld [vmem:[%s6278_s2 + $0x44] ss:$16 sps:$4 sm:$0xff]  }
   0x8   :  { %259 = vmatprep.subr.bf16.mxu0 %v4098_v9  ;;  %300 = vmatprep.subr.bf16.mxu1 %v4100_v10  ;;  %v4118_v22 = vld [vmem:[%s6278_s2 + $0x4c] ss:$16 sps:$4 sm:$0xff]   ;;  %v4120_v23 = vld [vmem:[%s6278_s2 + $0x40] ss:$16 sps:$4 sm:$0xff]   ;;  %v4121_v24 = vld [vmem:[%s6278_s2 + $0x48] ss:$16 sps:$4 sm:$0xff]  }
   0x9   :  { %v4122_v25 = vld [vmem:[%s6278_s2 + $0x24] ss:$16 sps:$4 sm:$0xff]   ;;  %v4124_v26 = vld [vmem:[%s6278_s2 + $0x2c] ss:$16 sps:$4 sm:$0xff]   ;;  %v4126_v27 = vld [vmem:[%s6278_s2 + $0x20] ss:$16 sps:$4 sm:$0xff]  }
   0xa   :  { %v4127_v28 = vld [vmem:[%s6278_s2 + $0x28] ss:$16 sps:$4 sm:$0xff]   ;;  %v4128_v29 = vld [vmem:[%s6278_s2 + $0x4] ss:$16 sps:$4 sm:$0xff]   ;;  %v4130_v30 = vld [vmem:[%s6278_s2 + $0xc] ss:$16 sps:$4 sm:$0xff]  }
   0xb   :  { %260 = vmatpush1.bf16.msra.mxu0 %v4102_v11  ;;  %301 = vmatpush1.bf16.msra.mxu1 %v4103_v12  ;;  %v4132_v31 = vld [vmem:[%s6278_s2] ss:$16 sps:$4 sm:$0xff]   ;;  %v4133_v32 = vld [vmem:[%s6278_s2 + $0x8] ss:$16 sps:$4 sm:$0xff]   ;;  %v4136_v33 = vld [vmem:[%s6280_s4 + $0xe4] ss:$16 sps:$4 sm:$0xff]  }
   0xc   :  { %261 = vmatprep.subr.bf16.mxu0 %v4104_v13  ;;  %302 = vmatprep.subr.bf16.mxu1 %v4106_v14  ;;  %v4139_v34 = vld [vmem:[%s6280_s4 + $0x2e4] ss:$16 sps:$4 sm:$0xff]   ;;  %v40_v35 = vld [vmem:[%s6277_s1] sm:$0x1] }
   0xd   :  { %v4134_v36 = vld [vmem:[%s6280_s4 + $0xe0] ss:$16 sps:$4 sm:$0xff]   ;;  %v4142_v38 = vld [vmem:[%s6280_s4 + $0xc4] ss:$16 sps:$4 sm:$0xff]  }
   0xe   :  { %v4137_v37 = vld [vmem:[%s6280_s4 + $0x2e0] ss:$16 sps:$4 sm:$0xff]   ;;  %v4145_v39 = vld [vmem:[%s6280_s4 + $0x2c4] ss:$16 sps:$4 sm:$0xff]  }
   0xf   :  { %262 = vmatpush1.bf16.msra.mxu0 %v4108_v15  ;;  %303 = vmatpush1.bf16.msra.mxu1 %v4109_v16  ;;  %v4140_v40 = vld [vmem:[%s6280_s4 + $0xc0] ss:$16 sps:$4 sm:$0xff]   ;;  %v4148_v42 = vld [vmem:[%s6280_s4 + $0xa4] ss:$16 sps:$4 sm:$0xff]  }
  0x10   :  { %263 = vmatprep.subr.bf16.mxu0 %v4110_v17  ;;  %304 = vmatprep.subr.bf16.mxu1 %v4112_v18  ;;  %v4143_v41 = vld [vmem:[%s6280_s4 + $0x2c0] ss:$16 sps:$4 sm:$0xff]   ;;  %v4151_v43 = vld [vmem:[%s6280_s4 + $0x2a4] ss:$16 sps:$4 sm:$0xff]  }
  0x11   :  { %v4146_v44 = vld [vmem:[%s6280_s4 + $0xa0] ss:$16 sps:$4 sm:$0xff]   ;;  %v4154_v46 = vld [vmem:[%s6280_s4 + $0x84] ss:$16 sps:$4 sm:$0xff]  }
  0x12   :  { %v4149_v45 = vld [vmem:[%s6280_s4 + $0x2a0] ss:$16 sps:$4 sm:$0xff]   ;;  %v4157_v47 = vld [vmem:[%s6280_s4 + $0x284] ss:$16 sps:$4 sm:$0xff]  }
  0x13   :  { %264 = vmatpush1.bf16.msra.mxu0 %v4114_v19  ;;  %305 = vmatpush1.bf16.msra.mxu1 %v4115_v20  ;;  %v4152_v48 = vld [vmem:[%s6280_s4 + $0x80] ss:$16 sps:$4 sm:$0xff]   ;;  %v4160_v50 = vld [vmem:[%s6280_s4 + $0x64] ss:$16 sps:$4 sm:$0xff]  }
  0x14   :  { %265 = vmatprep.subr.bf16.mxu0 %v4116_v21  ;;  %306 = vmatprep.subr.bf16.mxu1 %v4118_v22  ;;  %v4155_v49 = vld [vmem:[%s6280_s4 + $0x280] ss:$16 sps:$4 sm:$0xff]   ;;  %v4163_v51 = vld [vmem:[%s6280_s4 + $0x264] ss:$16 sps:$4 sm:$0xff]  }
  0x15   :  { %v4158_v52 = vld [vmem:[%s6280_s4 + $0x60] ss:$16 sps:$4 sm:$0xff]   ;;  %v4166_v54 = vld [vmem:[%s6280_s4 + $0x44] ss:$16 sps:$4 sm:$0xff]  }
  0x16   :  { %v4161_v53 = vld [vmem:[%s6280_s4 + $0x260] ss:$16 sps:$4 sm:$0xff]   ;;  %v4169_v55 = vld [vmem:[%s6280_s4 + $0x244] ss:$16 sps:$4 sm:$0xff]  }
  0x17   :  { %266 = vmatpush1.bf16.msra.mxu0 %v4120_v23  ;;  %307 = vmatpush1.bf16.msra.mxu1 %v4121_v24  ;;  %v4164_v56 = vld [vmem:[%s6280_s4 + $0x40] ss:$16 sps:$4 sm:$0xff]   ;;  %v4172_v58 = vld [vmem:[%s6280_s4 + $0x24] ss:$16 sps:$4 sm:$0xff]  }
  0x18   :  { %267 = vmatprep.subr.bf16.mxu0 %v4122_v25  ;;  %308 = vmatprep.subr.bf16.mxu1 %v4124_v26  ;;  %v4167_v57 = vld [vmem:[%s6280_s4 + $0x240] ss:$16 sps:$4 sm:$0xff]   ;;  %v4175_v59 = vld [vmem:[%s6280_s4 + $0x224] ss:$16 sps:$4 sm:$0xff]  }
  0x19   :  { %v4170_v60 = vld [vmem:[%s6280_s4 + $0x20] ss:$16 sps:$4 sm:$0xff]   ;;  %v4178_v62 = vld [vmem:[%s6280_s4 + $0x4] ss:$16 sps:$4 sm:$0xff]  }
  0x1a   :  { %v4173_v61 = vld [vmem:[%s6280_s4 + $0x220] ss:$16 sps:$4 sm:$0xff]   ;;  %v4181_v63 = vld [vmem:[%s6280_s4 + $0x204] ss:$16 sps:$4 sm:$0xff]  }
  0x1b   :  { %268 = vmatpush1.bf16.msra.mxu0 %v4126_v27  ;;  %309 = vmatpush1.bf16.msra.mxu1 %v4127_v28  ;;  %v4176_v0 = vld [vmem:[%s6280_s4] ss:$16 sps:$4 sm:$0xff]   ;;  %v4184_v2 = vld [vmem:[%s6280_s4 + $0x1e4] ss:$16 sps:$4 sm:$0xff]  }
  0x1c   :  { %269 = vmatprep.subr.bf16.mxu0 %v4128_v29  ;;  %310 = vmatprep.subr.bf16.mxu1 %v4130_v30  ;;  %v4179_v1 = vld [vmem:[%s6280_s4 + $0x200] ss:$16 sps:$4 sm:$0xff]   ;;  %v4187_v3 = vld [vmem:[%s6280_s4 + $0x3e4] ss:$16 sps:$4 sm:$0xff]  }
  0x1d   :  { %v4182_v4 = vld [vmem:[%s6280_s4 + $0x1e0] ss:$16 sps:$4 sm:$0xff]   ;;  %v4190_v6 = vld [vmem:[%s6280_s4 + $0x1c4] ss:$16 sps:$4 sm:$0xff]  }
  0x1e   :  { %v4185_v5 = vld [vmem:[%s6280_s4 + $0x3e0] ss:$16 sps:$4 sm:$0xff]   ;;  %v4193_v7 = vld [vmem:[%s6280_s4 + $0x3c4] ss:$16 sps:$4 sm:$0xff]  }
  0x1f   :  { %270 = vmatpush1.bf16.msra.mxu0 %v4132_v31  ;;  %311 = vmatpush1.bf16.msra.mxu1 %v4133_v32  ;;  %v4188_v8 = vld [vmem:[%s6280_s4 + $0x1c0] ss:$16 sps:$4 sm:$0xff]   ;;  %v4196_v10 = vld [vmem:[%s6280_s4 + $0x1a4] ss:$16 sps:$4 sm:$0xff]  }
  0x20   :  { %1135 = vmatprep.subr.bf16.mxu0 %v4136_v33  ;;  %1176 = vmatprep.subr.bf16.mxu1 %v4139_v34  ;;  %v4191_v9 = vld [vmem:[%s6280_s4 + $0x3c0] ss:$16 sps:$4 sm:$0xff]   ;;  %v4199_v11 = vld [vmem:[%s6280_s4 + $0x3a4] ss:$16 sps:$4 sm:$0xff]   ;;  %v4232_v34 = vld [vmem:[%s6280_s4 + $0xec] ss:$16 sps:$4 sm:$0xff]  }
  0x21   :  { %v4194_v12 = vld [vmem:[%s6280_s4 + $0x1a0] ss:$16 sps:$4 sm:$0xff]   ;;  %v4202_v14 = vld [vmem:[%s6280_s4 + $0x184] ss:$16 sps:$4 sm:$0xff]  }
  0x22   :  { %288 = vmatmul.mubr.bf16.vlgmr.msra.gmra.mxu0 %v40_v35  ;;  %329 = vmatmul.mubr.bf16.vlgmr.msra.gmra.mxu1 %v40_v35  ;;  %v4197_v13 = vld [vmem:[%s6280_s4 + $0x3a0] ss:$16 sps:$4 sm:$0xff]   ;;  %v4205_v15 = vld [vmem:[%s6280_s4 + $0x384] ss:$16 sps:$4 sm:$0xff]   ;;  %v4235_v35 = vld [vmem:[%s6280_s4 + $0x2ec] ss:$16 sps:$4 sm:$0xff]  }
  0x23   :  { %1136 = vmatpush1.bf16.msra.mxu0 %v4134_v36  ;;  %1177 = vmatpush1.bf16.msra.mxu1 %v4137_v37  ;;  %v4200_v16 = vld [vmem:[%s6280_s4 + $0x180] ss:$16 sps:$4 sm:$0xff]   ;;  %v4208_v18 = vld [vmem:[%s6280_s4 + $0x164] ss:$16 sps:$4 sm:$0xff]   ;;  %v75_v36 = vlaneseq }
  0x24   :  { %1137 = vmatprep.subr.bf16.mxu0 %v4142_v38  ;;  %1178 = vmatprep.subr.bf16.mxu1 %v4145_v39  ;;  %v4203_v17 = vld [vmem:[%s6280_s4 + $0x380] ss:$16 sps:$4 sm:$0xff]   ;;  %v4211_v19 = vld [vmem:[%s6280_s4 + $0x364] ss:$16 sps:$4 sm:$0xff]  }
  0x25   :  { %v4206_v20 = vld [vmem:[%s6280_s4 + $0x160] ss:$16 sps:$4 sm:$0xff]   ;;  %v4214_v22 = vld [vmem:[%s6280_s4 + $0x144] ss:$16 sps:$4 sm:$0xff]   ;;  %v5124_v37 = vshrl.u32 %v75_v36, 7 }
  0x26   :  { %v4209_v21 = vld [vmem:[%s6280_s4 + $0x360] ss:$16 sps:$4 sm:$0xff]   ;;  %v4217_v23 = vld [vmem:[%s6280_s4 + $0x344] ss:$16 sps:$4 sm:$0xff]  }
  0x27   :  { %1138 = vmatpush1.bf16.msra.mxu0 %v4140_v40  ;;  %1179 = vmatpush1.bf16.msra.mxu1 %v4143_v41  ;;  %v4212_v24 = vld [vmem:[%s6280_s4 + $0x140] ss:$16 sps:$4 sm:$0xff]   ;;  %v4220_v26 = vld [vmem:[%s6280_s4 + $0x124] ss:$16 sps:$4 sm:$0xff]   ;;  %v5127_v38 = vsub.s32 0, %v5124_v37  ;;  %v5130_v39 = vsub.s32 2, %v5124_v37 }
  0x28   :  { %1139 = vmatprep.subr.bf16.mxu0 %v4148_v42  ;;  %1180 = vmatprep.subr.bf16.mxu1 %v4151_v43  ;;  %v4215_v25 = vld [vmem:[%s6280_s4 + $0x340] ss:$16 sps:$4 sm:$0xff]   ;;  %v4223_v27 = vld [vmem:[%s6280_s4 + $0x324] ss:$16 sps:$4 sm:$0xff]   ;;  %v5136_v41 = vsub.s32 1, %v5124_v37  ;;  %v5139_v42 = vsub.s32 3, %v5124_v37 }
  0x29   :  { %v4218_v28 = vld [vmem:[%s6280_s4 + $0x120] ss:$16 sps:$4 sm:$0xff]   ;;  %v4226_v30 = vld [vmem:[%s6280_s4 + $0x104] ss:$16 sps:$4 sm:$0xff]  }
  0x2a   :  { %v4221_v29 = vld [vmem:[%s6280_s4 + $0x320] ss:$16 sps:$4 sm:$0xff]   ;;  %v4229_v31 = vld [vmem:[%s6280_s4 + $0x304] ss:$16 sps:$4 sm:$0xff]  }
  0x2b   :  { %1140 = vmatpush1.bf16.msra.mxu0 %v4146_v44  ;;  %1181 = vmatpush1.bf16.msra.mxu1 %v4149_v45  ;;  %v4224_v32 = vld [vmem:[%s6280_s4 + $0x100] ss:$16 sps:$4 sm:$0xff]  }
  0x2c   :  { %1141 = vmatprep.subr.bf16.mxu0 %v4154_v46  ;;  %1182 = vmatprep.subr.bf16.mxu1 %v4157_v47  ;;  %v4227_v33 = vld [vmem:[%s6280_s4 + $0x300] ss:$16 sps:$4 sm:$0xff]  }
  0x2d   :  { %v73_v40 = vld [vmem:[%s6279_s3] sm:$0xf] }
  0x2f   :  { %1142 = vmatpush1.bf16.msra.mxu0 %v4152_v48  ;;  %1183 = vmatpush1.bf16.msra.mxu1 %v4155_v49 }
  0x30   :  { %1143 = vmatprep.subr.bf16.mxu0 %v4160_v50  ;;  %1184 = vmatprep.subr.bf16.mxu1 %v4163_v51 }
  0x33   :  { %1144 = vmatpush1.bf16.msra.mxu0 %v4158_v52  ;;  %1185 = vmatpush1.bf16.msra.mxu1 %v4161_v53 }
  0x34   :  { %1145 = vmatprep.subr.bf16.mxu0 %v4166_v54  ;;  %1186 = vmatprep.subr.bf16.mxu1 %v4169_v55 }
  0x37   :  { %1146 = vmatpush1.bf16.msra.mxu0 %v4164_v56  ;;  %1187 = vmatpush1.bf16.msra.mxu1 %v4167_v57 }
  0x38   :  { %1147 = vmatprep.subr.bf16.mxu0 %v4172_v58  ;;  %1188 = vmatprep.subr.bf16.mxu1 %v4175_v59 }
  0x3b   :  { %1148 = vmatpush1.bf16.msra.mxu0 %v4170_v60  ;;  %1189 = vmatpush1.bf16.msra.mxu1 %v4173_v61 }
  0x3c   :  { %1149 = vmatprep.subr.bf16.mxu0 %v4178_v62  ;;  %1190 = vmatprep.subr.bf16.mxu1 %v4181_v63 }
  0x3f   :  { %1150 = vmatpush1.bf16.msra.mxu0 %v4176_v0  ;;  %1191 = vmatpush1.bf16.msra.mxu1 %v4179_v1 }
  0x40   :  { %1151 = vmatprep.subr.bf16.mxu0 %v4184_v2  ;;  %1192 = vmatprep.subr.bf16.mxu1 %v4187_v3 }
  0x43   :  { %1152 = vmatpush2.bf16.msra.mxu0 %v4182_v4  ;;  %1193 = vmatpush2.bf16.msra.mxu1 %v4185_v5 }
  0x44   :  { %1153 = vmatprep.subr.bf16.mxu0 %v4190_v6  ;;  %1194 = vmatprep.subr.bf16.mxu1 %v4193_v7 }
  0x47   :  { %1154 = vmatpush2.bf16.msra.mxu0 %v4188_v8  ;;  %1195 = vmatpush2.bf16.msra.mxu1 %v4191_v9 }
  0x48   :  { %1155 = vmatprep.subr.bf16.mxu0 %v4196_v10  ;;  %1196 = vmatprep.subr.bf16.mxu1 %v4199_v11 }
  0x4b   :  { %1156 = vmatpush2.bf16.msra.mxu0 %v4194_v12  ;;  %1197 = vmatpush2.bf16.msra.mxu1 %v4197_v13 }
  0x4c   :  { %1157 = vmatprep.subr.bf16.mxu0 %v4202_v14  ;;  %1198 = vmatprep.subr.bf16.mxu1 %v4205_v15 }
  0x4f   :  { %1158 = vmatpush2.bf16.msra.mxu0 %v4200_v16  ;;  %1199 = vmatpush2.bf16.msra.mxu1 %v4203_v17 }
  0x50   :  { %1159 = vmatprep.subr.bf16.mxu0 %v4208_v18  ;;  %1200 = vmatprep.subr.bf16.mxu1 %v4211_v19 }
  0x53   :  { %1160 = vmatpush2.bf16.msra.mxu0 %v4206_v20  ;;  %1201 = vmatpush2.bf16.msra.mxu1 %v4209_v21 }
  0x54   :  { %1161 = vmatprep.subr.bf16.mxu0 %v4214_v22  ;;  %1202 = vmatprep.subr.bf16.mxu1 %v4217_v23 }
  0x57   :  { %1162 = vmatpush2.bf16.msra.mxu0 %v4212_v24  ;;  %1203 = vmatpush2.bf16.msra.mxu1 %v4215_v25 }
  0x58   :  { %1163 = vmatprep.subr.bf16.mxu0 %v4220_v26  ;;  %1204 = vmatprep.subr.bf16.mxu1 %v4223_v27 }
  0x5b   :  { %1164 = vmatpush2.bf16.msra.mxu0 %v4218_v28  ;;  %1205 = vmatpush2.bf16.msra.mxu1 %v4221_v29 }
  0x5c   :  { %1165 = vmatprep.subr.bf16.mxu0 %v4226_v30  ;;  %1206 = vmatprep.subr.bf16.mxu1 %v4229_v31 }
  0x5f   :  { %1166 = vmatpush2.bf16.msra.mxu0 %v4224_v32  ;;  %1207 = vmatpush2.bf16.msra.mxu1 %v4227_v33 }
  0x60   :  { %1217 = vmatprep.subr.bf16.mxu0 %v4232_v34  ;;  %1258 = vmatprep.subr.bf16.mxu1 %v4235_v35 }
  0x61   :  { %16 = vsyncpa [#allocation3], 0  ;;  %v78_v43 = vrot.slane %v73_v40, %v5127_v38  ;;  %v86_v44 = vrot.slane %v73_v40, %v5130_v39  ;;  %v82_v45 = vrot.slane %v73_v40, %v5136_v41  ;;  %v90_v46 = vrot.slane %v73_v40, %v5139_v42  ;;  %v4230_v2 = vld [vmem:[%s6280_s4 + $0xe8] ss:$16 sps:$4 sm:$0xff]   ;;  %v4238_v5 = vld [vmem:[%s6280_s4 + $0xcc] ss:$16 sps:$4 sm:$0xff]  }
  0x62   :  { %v4233_v3 = vld [vmem:[%s6280_s4 + $0x2e8] ss:$16 sps:$4 sm:$0xff]   ;;  %v4241_v6 = vld [vmem:[%s6280_s4 + $0x2cc] ss:$16 sps:$4 sm:$0xff]   ;;  %s4766_s13 = smov [#allocation2]  }
  0x63   :  { %v4236_v7 = vld [vmem:[%s6280_s4 + $0xc8] ss:$16 sps:$4 sm:$0xff]   ;;  %v4244_v9 = vld [vmem:[%s6280_s4 + $0xac] ss:$16 sps:$4 sm:$0xff]   ;;  %s3581_s3 = sshll.u32 %s4766_s13, 4  ;;  %s3582_s3 = int_to_ptr.vmem [resolvable:$true] %s3581_s3 }
  0x64   :  { %v4239_v8 = vld [vmem:[%s6280_s4 + $0x2c8] ss:$16 sps:$4 sm:$0xff]   ;;  %v4247_v10 = vld [vmem:[%s6280_s4 + $0x2ac] ss:$16 sps:$4 sm:$0xff]   ;;  %s4742_s14 = scalar_lea.vmem %s3582_s3, 32  ;;  %p4747_p1 = scmp.lt.s32.totalorder %s3582_s3, %s3582_s3 }
  0x65   :  { %v4242_v11 = vld [vmem:[%s6280_s4 + $0xa8] ss:$16 sps:$4 sm:$0xff]   ;;  %v4250_v13 = vld [vmem:[%s6280_s4 + $0x8c] ss:$16 sps:$4 sm:$0xff]   ;;  %p4743_p0 = scmp.ne.s32.totalorder %s3582_s3, %s4742_s14  ;;  %p4748_p2 = scmp.lt.s32.totalorder %s4742_s14, %s4742_s14 }
  0x66   :  { %v4245_v12 = vld [vmem:[%s6280_s4 + $0x2a8] ss:$16 sps:$4 sm:$0xff]   ;;  %v4253_v14 = vld [vmem:[%s6280_s4 + $0x28c] ss:$16 sps:$4 sm:$0xff]  }
  0x67   :  { %v4248_v15 = vld [vmem:[%s6280_s4 + $0x88] ss:$16 sps:$4 sm:$0xff]   ;;  %v4256_v17 = vld [vmem:[%s6280_s4 + $0x6c] ss:$16 sps:$4 sm:$0xff]   ;;  %p4749_p3 = por %p4748_p2, %p4747_p1 }
  0x68   :  { %v4251_v16 = vld [vmem:[%s6280_s4 + $0x288] ss:$16 sps:$4 sm:$0xff]   ;;  %v4259_v18 = vld [vmem:[%s6280_s4 + $0x26c] ss:$16 sps:$4 sm:$0xff]  }
  0x69   :  { %v4254_v19 = vld [vmem:[%s6280_s4 + $0x68] ss:$16 sps:$4 sm:$0xff]   ;;  %v4262_v21 = vld [vmem:[%s6280_s4 + $0x4c] ss:$16 sps:$4 sm:$0xff]   ;;  %p4750_p4 = pnand %p4749_p3, %p4743_p0 }
  0x6a   :  { %v4257_v20 = vld [vmem:[%s6280_s4 + $0x268] ss:$16 sps:$4 sm:$0xff]   ;;  %v4265_v22 = vld [vmem:[%s6280_s4 + $0x24c] ss:$16 sps:$4 sm:$0xff]  }
  0x6b   :  { %v4260_v23 = vld [vmem:[%s6280_s4 + $0x48] ss:$16 sps:$4 sm:$0xff]   ;;  %v4268_v25 = vld [vmem:[%s6280_s4 + $0x2c] ss:$16 sps:$4 sm:$0xff]  }
  0x6c   :  { %v4263_v24 = vld [vmem:[%s6280_s4 + $0x248] ss:$16 sps:$4 sm:$0xff]   ;;  %v4271_v26 = vld [vmem:[%s6280_s4 + $0x22c] ss:$16 sps:$4 sm:$0xff]  }
  0x6d   :  { %v4266_v27 = vld [vmem:[%s6280_s4 + $0x28] ss:$16 sps:$4 sm:$0xff]   ;;  %v4274_v29 = vld [vmem:[%s6280_s4 + $0xc] ss:$16 sps:$4 sm:$0xff]  }
  0x6e   :  { %v4269_v28 = vld [vmem:[%s6280_s4 + $0x228] ss:$16 sps:$4 sm:$0xff]   ;;  %v4277_v30 = vld [vmem:[%s6280_s4 + $0x20c] ss:$16 sps:$4 sm:$0xff]  }
  0x6f   :  { %v4272_v31 = vld [vmem:[%s6280_s4 + $0x8] ss:$16 sps:$4 sm:$0xff]   ;;  %v4280_v33 = vld [vmem:[%s6280_s4 + $0x1ec] ss:$16 sps:$4 sm:$0xff]  }
  0x70   :  { %v4275_v32 = vld [vmem:[%s6280_s4 + $0x208] ss:$16 sps:$4 sm:$0xff]   ;;  %v4283_v34 = vld [vmem:[%s6280_s4 + $0x3ec] ss:$16 sps:$4 sm:$0xff]  }
  0x71   :  { %v4278_v35 = vld [vmem:[%s6280_s4 + $0x1e8] ss:$16 sps:$4 sm:$0xff]   ;;  %v4286_v40 = vld [vmem:[%s6280_s4 + $0x1cc] ss:$16 sps:$4 sm:$0xff]  }
  0x72   :  { %v4281_v36 = vld [vmem:[%s6280_s4 + $0x3e8] ss:$16 sps:$4 sm:$0xff]  }
  0xe2   :  { %v289_v47 = vpop.f32.mrf.mxu0  ;;  %v330_v48 = vpop.f32.mrf.mxu1 }
  0xe3   :  { %v290_v49 = vadd.f32 %v289_v47, %v78_v43  ;;  %v331_v50 = vadd.f32 %v330_v48, %v86_v44  ;;  %v4289_v43 = vld [vmem:[%s6280_s4 + $0x3cc] ss:$16 sps:$4 sm:$0xff]   ;;  %v4284_v44 = vld [vmem:[%s6280_s4 + $0x1c8] ss:$16 sps:$4 sm:$0xff]  }
  0xe4   :  { %v291_v51 = vpop.f32.mrf.mxu0  ;;  %v332_v52 = vpop.f32.mrf.mxu1  ;;  %v4295_v47 = vld [vmem:[%s6280_s4 + $0x3ac] ss:$16 sps:$4 sm:$0xff]   ;;  %v4290_v48 = vld [vmem:[%s6280_s4 + $0x1a8] ss:$16 sps:$4 sm:$0xff]  }
  0xe5   :  { %v339_v53 = vmax.f32 %v331_v50, 0.0  ;;  %v292_v54 = vadd.f32 %v291_v51, %v82_v45  ;;  %v333_v55 = vadd.f32 %v332_v52, %v90_v46  ;;  %v337_v56 = vmax.f32 %v290_v49, 0.0  ;;  %v4287_v45 = vld [vmem:[%s6280_s4 + $0x3c8] ss:$16 sps:$4 sm:$0xff]   ;;  %v4292_v46 = vld [vmem:[%s6280_s4 + $0x1ac] ss:$16 sps:$4 sm:$0xff]  }
  0xe6   :  { %v293_v57 = vpop.f32.mrf.mxu0  ;;  %v334_v58 = vpop.f32.mrf.mxu1  ;;  %v4293_v49 = vld [vmem:[%s6280_s4 + $0x3a8] ss:$16 sps:$4 sm:$0xff]   ;;  %v4298_v50 = vld [vmem:[%s6280_s4 + $0x18c] ss:$16 sps:$4 sm:$0xff]  }
  0xe7   :  { %v338_v59 = vmax.f32 %v292_v54, 0.0  ;;  %v340_v60 = vmax.f32 %v333_v55, 0.0  ;;  %v5145_v61 = vpack.c.bf16 %v339_v53, %v339_v53  ;;  %v5153_v4 = vpack.c.bf16 %v337_v56, %v337_v56  ;;  %v4301_v51 = vld [vmem:[%s6280_s4 + $0x38c] ss:$16 sps:$4 sm:$0xff]   ;;  %v4296_v52 = vld [vmem:[%s6280_s4 + $0x188] ss:$16 sps:$4 sm:$0xff]  }
  0xe8   :  { %v294_v62 = vpop.f32.mrf.mxu0  ;;  %v335_v63 = vpop.f32.mrf.mxu1  ;;  %v4299_v53 = vld [vmem:[%s6280_s4 + $0x388] ss:$16 sps:$4 sm:$0xff]   ;;  %v4304_v54 = vld [vmem:[%s6280_s4 + $0x16c] ss:$16 sps:$4 sm:$0xff]  }
  0xe9   :  { %v342_v0 = vpack.c.bf16 %v338_v59, %v338_v59  ;;  %v344_v1 = vpack.c.bf16 %v340_v60, %v340_v60  ;;  %v4307_v55 = vld [vmem:[%s6280_s4 + $0x36c] ss:$16 sps:$4 sm:$0xff]   ;;  %v4302_v56 = vld [vmem:[%s6280_s4 + $0x168] ss:$16 sps:$4 sm:$0xff]  }
  0xea   :  { %v4305_v57 = vld [vmem:[%s6280_s4 + $0x368] ss:$16 sps:$4 sm:$0xff]   ;;  %v4310_v58 = vld [vmem:[%s6280_s4 + $0x14c] ss:$16 sps:$4 sm:$0xff]  }
  0xeb   :  { %1167 = vmatprep.mubr.bf16.mxu0 %v342_v0  ;;  %1208 = vmatprep.mubr.bf16.mxu1 %v344_v1  ;;  %v4313_v59 = vld [vmem:[%s6280_s4 + $0x34c] ss:$16 sps:$4 sm:$0xff]   ;;  %v4308_v60 = vld [vmem:[%s6280_s4 + $0x148] ss:$16 sps:$4 sm:$0xff]  }
  0xec   :  { %1168 = vmatmul.mubr.bf16.vlgmr.msra.gmra.mxu0 %v5153_v4  ;;  %1209 = vmatmul.mubr.bf16.vlgmr.msra.gmra.mxu1 %v5145_v61  ;;  %v4311_v62 = vld [vmem:[%s6280_s4 + $0x348] ss:$16 sps:$4 sm:$0xff]   ;;  %v4316_v63 = vld [vmem:[%s6280_s4 + $0x12c] ss:$16 sps:$4 sm:$0xff]  }
  0xed   :  { %1218 = vmatpush1.bf16.msra.mxu0 %v4230_v2  ;;  %1259 = vmatpush1.bf16.msra.mxu1 %v4233_v3  ;;  %v4317_v2 = vld [vmem:[%s6280_s4 + $0x328] ss:$16 sps:$4 sm:$0xff]   ;;  %v4322_v3 = vld [vmem:[%s6280_s4 + $0x10c] ss:$16 sps:$4 sm:$0xff]  }
  0xee   :  { %1249 = vmatprep.mubr.bf16.mxu0 %v342_v0  ;;  %1290 = vmatprep.mubr.bf16.mxu1 %v344_v1  ;;  %v4319_v0 = vld [vmem:[%s6280_s4 + $0x32c] ss:$16 sps:$4 sm:$0xff]   ;;  %v4314_v1 = vld [vmem:[%s6280_s4 + $0x128] ss:$16 sps:$4 sm:$0xff]  }
  0xef   :  { %1219 = vmatprep.subr.bf16.mxu0 %v4238_v5  ;;  %1260 = vmatprep.subr.bf16.mxu1 %v4241_v6  ;;  %v4325_v5 = vld [vmem:[%s6280_s4 + $0x30c] ss:$16 sps:$4 sm:$0xff]   ;;  %v4320_v6 = vld [vmem:[%s6280_s4 + $0x108] ss:$16 sps:$4 sm:$0xff]  }
  0xf1   :  { %1220 = vmatpush1.bf16.msra.mxu0 %v4236_v7  ;;  %1261 = vmatpush1.bf16.msra.mxu1 %v4239_v8  ;;  %v4323_v7 = vld [vmem:[%s6280_s4 + $0x308] ss:$16 sps:$4 sm:$0xff]   ;;  %v4328_v8 = vld [vmem:[%s6283_s7 + $0xe4] ss:$16 sps:$4 sm:$0xff]  }
  0xf2   :  { %1221 = vmatprep.subr.bf16.mxu0 %v4244_v9  ;;  %1262 = vmatprep.subr.bf16.mxu1 %v4247_v10  ;;  %v4326_v9 = vld [vmem:[%s6283_s7 + $0xe0] ss:$16 sps:$4 sm:$0xff]   ;;  %v4331_v10 = vld [vmem:[%s6283_s7 + $0xc4] ss:$16 sps:$4 sm:$0xff]  }
  0xf5   :  { %1222 = vmatpush1.bf16.msra.mxu0 %v4242_v11  ;;  %1263 = vmatpush1.bf16.msra.mxu1 %v4245_v12  ;;  %v4329_v11 = vld [vmem:[%s6283_s7 + $0xc0] ss:$16 sps:$4 sm:$0xff]   ;;  %v4334_v12 = vld [vmem:[%s6283_s7 + $0xa4] ss:$16 sps:$4 sm:$0xff]  }
  0xf6   :  { %1223 = vmatprep.subr.bf16.mxu0 %v4250_v13  ;;  %1264 = vmatprep.subr.bf16.mxu1 %v4253_v14  ;;  %v4332_v13 = vld [vmem:[%s6283_s7 + $0xa0] ss:$16 sps:$4 sm:$0xff]   ;;  %v4376_v14 = vld [vmem:[%s6283_s7 + $0x2e4] ss:$16 sps:$4 sm:$0xff]  }
  0xf9   :  { %1224 = vmatpush1.bf16.msra.mxu0 %v4248_v15  ;;  %1265 = vmatpush1.bf16.msra.mxu1 %v4251_v16  ;;  %v4335_v15 = vld [vmem:[%s6283_s7 + $0x80] ss:$16 sps:$4 sm:$0xff]   ;;  %v4340_v16 = vld [vmem:[%s6283_s7 + $0x64] ss:$16 sps:$4 sm:$0xff]  }
  0xfa   :  { %1225 = vmatprep.subr.bf16.mxu0 %v4256_v17  ;;  %1266 = vmatprep.subr.bf16.mxu1 %v4259_v18  ;;  %v4380_v17 = vld [vmem:[%s6283_s7 + $0x2c0] ss:$16 sps:$4 sm:$0xff]   ;;  %v4382_v18 = vld [vmem:[%s6283_s7 + $0x2c4] ss:$16 sps:$4 sm:$0xff]  }
  0xfd   :  { %1226 = vmatpush1.bf16.msra.mxu0 %v4254_v19  ;;  %1267 = vmatpush1.bf16.msra.mxu1 %v4257_v20  ;;  %v4338_v19 = vld [vmem:[%s6283_s7 + $0x60] ss:$16 sps:$4 sm:$0xff]   ;;  %v4343_v20 = vld [vmem:[%s6283_s7 + $0x44] ss:$16 sps:$4 sm:$0xff]  }
  0xfe   :  { %1227 = vmatprep.subr.bf16.mxu0 %v4262_v21  ;;  %1268 = vmatprep.subr.bf16.mxu1 %v4265_v22  ;;  %v4386_v21 = vld [vmem:[%s6283_s7 + $0x2a0] ss:$16 sps:$4 sm:$0xff]   ;;  %v4388_v22 = vld [vmem:[%s6283_s7 + $0x2a4] ss:$16 sps:$4 sm:$0xff]  }
 0x101   :  { %1228 = vmatpush1.bf16.msra.mxu0 %v4260_v23  ;;  %1269 = vmatpush1.bf16.msra.mxu1 %v4263_v24  ;;  %v4341_v23 = vld [vmem:[%s6283_s7 + $0x40] ss:$16 sps:$4 sm:$0xff]   ;;  %v4346_v24 = vld [vmem:[%s6283_s7 + $0x24] ss:$16 sps:$4 sm:$0xff]  }
 0x102   :  { %1229 = vmatprep.subr.bf16.mxu0 %v4268_v25  ;;  %1270 = vmatprep.subr.bf16.mxu1 %v4271_v26  ;;  %v4392_v25 = vld [vmem:[%s6283_s7 + $0x280] ss:$16 sps:$4 sm:$0xff]   ;;  %v4394_v26 = vld [vmem:[%s6283_s7 + $0x284] ss:$16 sps:$4 sm:$0xff]  }
 0x105   :  { %1230 = vmatpush1.bf16.msra.mxu0 %v4266_v27  ;;  %1271 = vmatpush1.bf16.msra.mxu1 %v4269_v28  ;;  %v4344_v27 = vld [vmem:[%s6283_s7 + $0x20] ss:$16 sps:$4 sm:$0xff]   ;;  %v4349_v28 = vld [vmem:[%s6283_s7 + $0x4] ss:$16 sps:$4 sm:$0xff]  }
 0x106   :  { %1231 = vmatprep.subr.bf16.mxu0 %v4274_v29  ;;  %1272 = vmatprep.subr.bf16.mxu1 %v4277_v30  ;;  %v4398_v29 = vld [vmem:[%s6283_s7 + $0x260] ss:$16 sps:$4 sm:$0xff]   ;;  %v4400_v30 = vld [vmem:[%s6283_s7 + $0x264] ss:$16 sps:$4 sm:$0xff]  }
 0x109   :  { %1232 = vmatpush1.bf16.msra.mxu0 %v4272_v31  ;;  %1273 = vmatpush1.bf16.msra.mxu1 %v4275_v32  ;;  %v4347_v31 = vld [vmem:[%s6283_s7] ss:$16 sps:$4 sm:$0xff]   ;;  %v4352_v32 = vld [vmem:[%s6283_s7 + $0x1e4] ss:$16 sps:$4 sm:$0xff]  }
 0x10a   :  { %1233 = vmatprep.subr.bf16.mxu0 %v4280_v33  ;;  %1274 = vmatprep.subr.bf16.mxu1 %v4283_v34  ;;  %v4404_v33 = vld [vmem:[%s6283_s7 + $0x240] ss:$16 sps:$4 sm:$0xff]   ;;  %v4406_v34 = vld [vmem:[%s6283_s7 + $0x244] ss:$16 sps:$4 sm:$0xff]  }
 0x10d   :  { %1234 = vmatpush2.bf16.msra.mxu0 %v4278_v35  ;;  %1275 = vmatpush2.bf16.msra.mxu1 %v4281_v36  ;;  %v4350_v35 = vld [vmem:[%s6283_s7 + $0x1e0] ss:$16 sps:$4 sm:$0xff]   ;;  %v4355_v36 = vld [vmem:[%s6283_s7 + $0x1c4] ss:$16 sps:$4 sm:$0xff]  }
 0x10e   :  { %1235 = vmatprep.subr.bf16.mxu0 %v4286_v40  ;;  %1276 = vmatprep.subr.bf16.mxu1 %v4289_v43  ;;  %v4410_v40 = vld [vmem:[%s6283_s7 + $0x220] ss:$16 sps:$4 sm:$0xff]   ;;  %v4412_v43 = vld [vmem:[%s6283_s7 + $0x224] ss:$16 sps:$4 sm:$0xff]  }
 0x111   :  { %1236 = vmatpush2.bf16.msra.mxu0 %v4284_v44  ;;  %1277 = vmatpush2.bf16.msra.mxu1 %v4287_v45  ;;  %v4353_v44 = vld [vmem:[%s6283_s7 + $0x1c0] ss:$16 sps:$4 sm:$0xff]   ;;  %v4358_v45 = vld [vmem:[%s6283_s7 + $0x1a4] ss:$16 sps:$4 sm:$0xff]  }
 0x112   :  { %1237 = vmatprep.subr.bf16.mxu0 %v4292_v46  ;;  %1278 = vmatprep.subr.bf16.mxu1 %v4295_v47  ;;  %v4416_v46 = vld [vmem:[%s6283_s7 + $0x200] ss:$16 sps:$4 sm:$0xff]   ;;  %v4418_v47 = vld [vmem:[%s6283_s7 + $0x204] ss:$16 sps:$4 sm:$0xff]  }
 0x115   :  { %1238 = vmatpush2.bf16.msra.mxu0 %v4290_v48  ;;  %1279 = vmatpush2.bf16.msra.mxu1 %v4293_v49  ;;  %v4356_v48 = vld [vmem:[%s6283_s7 + $0x1a0] ss:$16 sps:$4 sm:$0xff]   ;;  %v4361_v49 = vld [vmem:[%s6283_s7 + $0x184] ss:$16 sps:$4 sm:$0xff]  }
 0x116   :  { %1239 = vmatprep.subr.bf16.mxu0 %v4298_v50  ;;  %1280 = vmatprep.subr.bf16.mxu1 %v4301_v51  ;;  %v4422_v50 = vld [vmem:[%s6283_s7 + $0x3e0] ss:$16 sps:$4 sm:$0xff]   ;;  %v4424_v51 = vld [vmem:[%s6283_s7 + $0x3e4] ss:$16 sps:$4 sm:$0xff]  }
 0x119   :  { %1240 = vmatpush2.bf16.msra.mxu0 %v4296_v52  ;;  %1281 = vmatpush2.bf16.msra.mxu1 %v4299_v53  ;;  %v4359_v52 = vld [vmem:[%s6283_s7 + $0x180] ss:$16 sps:$4 sm:$0xff]   ;;  %v4364_v53 = vld [vmem:[%s6283_s7 + $0x164] ss:$16 sps:$4 sm:$0xff]  }
 0x11a   :  { %1241 = vmatprep.subr.bf16.mxu0 %v4304_v54  ;;  %1282 = vmatprep.subr.bf16.mxu1 %v4307_v55  ;;  %v4428_v54 = vld [vmem:[%s6283_s7 + $0x3c0] ss:$16 sps:$4 sm:$0xff]   ;;  %v4430_v55 = vld [vmem:[%s6283_s7 + $0x3c4] ss:$16 sps:$4 sm:$0xff]  }
 0x11d   :  { %1242 = vmatpush2.bf16.msra.mxu0 %v4302_v56  ;;  %1283 = vmatpush2.bf16.msra.mxu1 %v4305_v57  ;;  %v4362_v56 = vld [vmem:[%s6283_s7 + $0x160] ss:$16 sps:$4 sm:$0xff]   ;;  %v4367_v57 = vld [vmem:[%s6283_s7 + $0x144] ss:$16 sps:$4 sm:$0xff]  }
 0x11e   :  { %1243 = vmatprep.subr.bf16.mxu0 %v4310_v58  ;;  %1284 = vmatprep.subr.bf16.mxu1 %v4313_v59  ;;  %v4434_v58 = vld [vmem:[%s6283_s7 + $0x3a0] ss:$16 sps:$4 sm:$0xff]   ;;  %v4436_v59 = vld [vmem:[%s6283_s7 + $0x3a4] ss:$16 sps:$4 sm:$0xff]  }
 0x121   :  { %1244 = vmatpush2.bf16.msra.mxu0 %v4308_v60  ;;  %1285 = vmatpush2.bf16.msra.mxu1 %v4311_v62  ;;  %v4365_v60 = vld [vmem:[%s6283_s7 + $0x140] ss:$16 sps:$4 sm:$0xff]   ;;  %v4370_v62 = vld [vmem:[%s6283_s7 + $0x124] ss:$16 sps:$4 sm:$0xff]  }
 0x122   :  { %1245 = vmatprep.subr.bf16.mxu0 %v4316_v63  ;;  %1286 = vmatprep.subr.bf16.mxu1 %v4319_v0  ;;  %v4440_v63 = vld [vmem:[%s6283_s7 + $0x380] ss:$16 sps:$4 sm:$0xff]   ;;  %v4442_v0 = vld [vmem:[%s6283_s7 + $0x384] ss:$16 sps:$4 sm:$0xff]  }
 0x125   :  { %1246 = vmatpush2.bf16.msra.mxu0 %v4314_v1  ;;  %1287 = vmatpush2.bf16.msra.mxu1 %v4317_v2  ;;  %v4368_v1 = vld [vmem:[%s6283_s7 + $0x120] ss:$16 sps:$4 sm:$0xff]   ;;  %v4373_v2 = vld [vmem:[%s6283_s7 + $0x104] ss:$16 sps:$4 sm:$0xff]  }
 0x126   :  { %1247 = vmatprep.subr.bf16.mxu0 %v4322_v3  ;;  %1288 = vmatprep.subr.bf16.mxu1 %v4325_v5  ;;  %v4446_v3 = vld [vmem:[%s6283_s7 + $0x360] ss:$16 sps:$4 sm:$0xff]   ;;  %v4448_v5 = vld [vmem:[%s6283_s7 + $0x364] ss:$16 sps:$4 sm:$0xff]  }
 0x129   :  { %1248 = vmatpush2.bf16.msra.mxu0 %v4320_v6  ;;  %1289 = vmatpush2.bf16.msra.mxu1 %v4323_v7  ;;  %v4371_v6 = vld [vmem:[%s6283_s7 + $0x100] ss:$16 sps:$4 sm:$0xff]   ;;  %v4379_v7 = vld [vmem:[%s6283_s7 + $0xec] ss:$16 sps:$4 sm:$0xff]  }
 0x12a   :  { %2200 = vmatprep.subr.bf16.mxu0 %v4328_v8  ;;  %2241 = vmatprep.subr.bf16.mxu1 %v4376_v14  ;;  %v4452_v8 = vld [vmem:[%s6283_s7 + $0x340] ss:$16 sps:$4 sm:$0xff]  }
 0x12c   :  { %1250 = vmatmul.mubr.bf16.vlgmr.msra.gmra.mxu0 %v5153_v4  ;;  %1291 = vmatmul.mubr.bf16.vlgmr.msra.gmra.mxu1 %v5145_v61  ;;  %v4337_v61 = vld [vmem:[%s6283_s7 + $0x84] ss:$16 sps:$4 sm:$0xff]   ;;  %v4374_v4 = vld [vmem:[%s6283_s7 + $0x2e0] ss:$16 sps:$4 sm:$0xff]  }
 0x12d   :  { %2201 = vmatpush1.bf16.msra.mxu0 %v4326_v9  ;;  %2242 = vmatpush1.bf16.msra.mxu1 %v4374_v4  ;;  %v4454_v9 = vld [vmem:[%s6283_s7 + $0x344] ss:$16 sps:$4 sm:$0xff]   ;;  %v5540_v4 = vld [vmem:[%s6281_s5] sm:$0xf] }
 0x12e   :  { %2202 = vmatprep.subr.bf16.mxu0 %v4331_v10  ;;  %2243 = vmatprep.subr.bf16.mxu1 %v4382_v18  ;;  %v4460_v10 = vld [vmem:[%s6283_s7 + $0x324] ss:$16 sps:$4 sm:$0xff]   ;;  %v478_v14 = vrot.slane %v5540_v4, %v5127_v38 }
 0x131   :  { %2203 = vmatpush1.bf16.msra.mxu0 %v4329_v11  ;;  %2244 = vmatpush1.bf16.msra.mxu1 %v4380_v17  ;;  %v4458_v11 = vld [vmem:[%s6283_s7 + $0x320] ss:$16 sps:$4 sm:$0xff]  }
 0x132   :  { %2204 = vmatprep.subr.bf16.mxu0 %v4334_v12  ;;  %2245 = vmatprep.subr.bf16.mxu1 %v4388_v22  ;;  %v4466_v12 = vld [vmem:[%s6283_s7 + $0x304] ss:$16 sps:$4 sm:$0xff]  }
 0x135   :  { %2205 = vmatpush1.bf16.msra.mxu0 %v4332_v13  ;;  %2246 = vmatpush1.bf16.msra.mxu1 %v4386_v21  ;;  %v4464_v13 = vld [vmem:[%s6283_s7 + $0x300] ss:$16 sps:$4 sm:$0xff]  }
 0x136   :  { %2206 = vmatprep.subr.bf16.mxu0 %v4337_v61  ;;  %2247 = vmatprep.subr.bf16.mxu1 %v4394_v26  ;;  %v4472_v61 = vld [vmem:[%s6283_s7 + $0x2ec] ss:$16 sps:$4 sm:$0xff]  }
 0x139   :  { %2207 = vmatpush1.bf16.msra.mxu0 %v4335_v15  ;;  %2248 = vmatpush1.bf16.msra.mxu1 %v4392_v25  ;;  %v482_v15 = vrot.slane %v5540_v4, %v5136_v41 }
 0x13a   :  { %2208 = vmatprep.subr.bf16.mxu0 %v4340_v16  ;;  %2249 = vmatprep.subr.bf16.mxu1 %v4400_v30 }
 0x13d   :  { %2209 = vmatpush1.bf16.msra.mxu0 %v4338_v19  ;;  %2250 = vmatpush1.bf16.msra.mxu1 %v4398_v29  ;;  %v4377_v29 = vld [vmem:[%s6283_s7 + $0xe8] ss:$16 sps:$4 sm:$0xff]  }
 0x13e   :  { %2210 = vmatprep.subr.bf16.mxu0 %v4343_v20  ;;  %2251 = vmatprep.subr.bf16.mxu1 %v4406_v34  ;;  %v4389_v34 = vld [vmem:[%s6283_s7 + $0xa8] ss:$16 sps:$4 sm:$0xff]  }
 0x141   :  { %2211 = vmatpush1.bf16.msra.mxu0 %v4341_v23  ;;  %2252 = vmatpush1.bf16.msra.mxu1 %v4404_v33  ;;  %v4391_v33 = vld [vmem:[%s6283_s7 + $0xac] ss:$16 sps:$4 sm:$0xff]  }
 0x142   :  { %2212 = vmatprep.subr.bf16.mxu0 %v4346_v24  ;;  %2253 = vmatprep.subr.bf16.mxu1 %v4412_v43  ;;  %v4401_v43 = vld [vmem:[%s6283_s7 + $0x68] ss:$16 sps:$4 sm:$0xff]  }
 0x145   :  { %2213 = vmatpush1.bf16.msra.mxu0 %v4344_v27  ;;  %2254 = vmatpush1.bf16.msra.mxu1 %v4410_v40  ;;  %v4403_v40 = vld [vmem:[%s6283_s7 + $0x6c] ss:$16 sps:$4 sm:$0xff]  }
 0x146   :  { %2214 = vmatprep.subr.bf16.mxu0 %v4349_v28  ;;  %2255 = vmatprep.subr.bf16.mxu1 %v4418_v47  ;;  %v4413_v47 = vld [vmem:[%s6283_s7 + $0x28] ss:$16 sps:$4 sm:$0xff]  }
 0x149   :  { %2215 = vmatpush1.bf16.msra.mxu0 %v4347_v31  ;;  %2256 = vmatpush1.bf16.msra.mxu1 %v4416_v46  ;;  %v4385_v31 = vld [vmem:[%s6283_s7 + $0xcc] ss:$16 sps:$4 sm:$0xff]  }
 0x14a   :  { %2216 = vmatprep.subr.bf16.mxu0 %v4352_v32  ;;  %2257 = vmatprep.subr.bf16.mxu1 %v4424_v51  ;;  %v4383_v32 = vld [vmem:[%s6283_s7 + $0xc8] ss:$16 sps:$4 sm:$0xff]   ;;  %v4415_v46 = vld [vmem:[%s6283_s7 + $0x2c] ss:$16 sps:$4 sm:$0xff]  }
 0x14b   :  { %v4425_v51 = vld [vmem:[%s6283_s7 + $0x1e8] ss:$16 sps:$4 sm:$0xff]  }
 0x14d   :  { %2217 = vmatpush2.bf16.msra.mxu0 %v4350_v35  ;;  %2258 = vmatpush2.bf16.msra.mxu1 %v4422_v50  ;;  %v4397_v35 = vld [vmem:[%s6283_s7 + $0x8c] ss:$16 sps:$4 sm:$0xff]  }
 0x14e   :  { %2218 = vmatprep.subr.bf16.mxu0 %v4355_v36  ;;  %2259 = vmatprep.subr.bf16.mxu1 %v4430_v55  ;;  %v4395_v36 = vld [vmem:[%s6283_s7 + $0x88] ss:$16 sps:$4 sm:$0xff]   ;;  %v4427_v50 = vld [vmem:[%s6283_s7 + $0x1ec] ss:$16 sps:$4 sm:$0xff]  }
 0x14f   :  { %v4437_v55 = vld [vmem:[%s6283_s7 + $0x1a8] ss:$16 sps:$4 sm:$0xff]  }
 0x151   :  { %2219 = vmatpush2.bf16.msra.mxu0 %v4353_v44  ;;  %2260 = vmatpush2.bf16.msra.mxu1 %v4428_v54  ;;  %v4409_v44 = vld [vmem:[%s6283_s7 + $0x4c] ss:$16 sps:$4 sm:$0xff]  }
 0x152   :  { %2220 = vmatprep.subr.bf16.mxu0 %v4358_v45  ;;  %2261 = vmatprep.subr.bf16.mxu1 %v4436_v59  ;;  %v4407_v45 = vld [vmem:[%s6283_s7 + $0x48] ss:$16 sps:$4 sm:$0xff]   ;;  %v4439_v54 = vld [vmem:[%s6283_s7 + $0x1ac] ss:$16 sps:$4 sm:$0xff]  }
 0x153   :  { %v4449_v59 = vld [vmem:[%s6283_s7 + $0x168] ss:$16 sps:$4 sm:$0xff]  }
 0x155   :  { %2221 = vmatpush2.bf16.msra.mxu0 %v4356_v48  ;;  %2262 = vmatpush2.bf16.msra.mxu1 %v4434_v58  ;;  %v4421_v48 = vld [vmem:[%s6283_s7 + $0xc] ss:$16 sps:$4 sm:$0xff]  }
 0x156   :  { %2222 = vmatprep.subr.bf16.mxu0 %v4361_v49  ;;  %2263 = vmatprep.subr.bf16.mxu1 %v4442_v0  ;;  %v4419_v49 = vld [vmem:[%s6283_s7 + $0x8] ss:$16 sps:$4 sm:$0xff]   ;;  %v4451_v58 = vld [vmem:[%s6283_s7 + $0x16c] ss:$16 sps:$4 sm:$0xff]   ;;  %v486_v0 = vrot.slane %v5540_v4, %v5130_v39 }
 0x159   :  { %2223 = vmatpush2.bf16.msra.mxu0 %v4359_v52  ;;  %2264 = vmatpush2.bf16.msra.mxu1 %v4440_v63  ;;  %v4433_v52 = vld [vmem:[%s6283_s7 + $0x1cc] ss:$16 sps:$4 sm:$0xff]  }
 0x15a   :  { %2224 = vmatprep.subr.bf16.mxu0 %v4364_v53  ;;  %2265 = vmatprep.subr.bf16.mxu1 %v4448_v5  ;;  %v4431_v53 = vld [vmem:[%s6283_s7 + $0x1c8] ss:$16 sps:$4 sm:$0xff]   ;;  %v4463_v63 = vld [vmem:[%s6283_s7 + $0x12c] ss:$16 sps:$4 sm:$0xff]  }
 0x15b   :  { %v4461_v5 = vld [vmem:[%s6283_s7 + $0x128] ss:$16 sps:$4 sm:$0xff]  }
 0x15d   :  { %2225 = vmatpush2.bf16.msra.mxu0 %v4362_v56  ;;  %2266 = vmatpush2.bf16.msra.mxu1 %v4446_v3  ;;  %v4445_v56 = vld [vmem:[%s6283_s7 + $0x18c] ss:$16 sps:$4 sm:$0xff]   ;;  %v490_v3 = vrot.slane %v5540_v4, %v5139_v42  ;;  %v4467_v4 = vld [vmem:[%s6283_s7 + $0x108] ss:$16 sps:$4 sm:$0xff]  }
 0x15e   :  { %2226 = vmatprep.subr.bf16.mxu0 %v4367_v57  ;;  %2267 = vmatprep.subr.bf16.mxu1 %v4454_v9  ;;  %v4443_v57 = vld [vmem:[%s6283_s7 + $0x188] ss:$16 sps:$4 sm:$0xff]  }
 0x161   :  { %2227 = vmatpush2.bf16.msra.mxu0 %v4365_v60  ;;  %2268 = vmatpush2.bf16.msra.mxu1 %v4452_v8  ;;  %v4457_v60 = vld [vmem:[%s6283_s7 + $0x14c] ss:$16 sps:$4 sm:$0xff]  }
 0x162   :  { %2228 = vmatprep.subr.bf16.mxu0 %v4370_v62  ;;  %2269 = vmatprep.subr.bf16.mxu1 %v4460_v10  ;;  %v4455_v62 = vld [vmem:[%s6283_s7 + $0x148] ss:$16 sps:$4 sm:$0xff]   ;;  %v4469_v8 = vld [vmem:[%s6283_s7 + $0x10c] ss:$16 sps:$4 sm:$0xff]  }
 0x165   :  { %2229 = vmatpush2.bf16.msra.mxu0 %v4368_v1  ;;  %2270 = vmatpush2.bf16.msra.mxu1 %v4458_v11  ;;  %v4765_v1 = vmov 1966171168  }
 0x166   :  { %2230 = vmatprep.subr.bf16.mxu0 %v4373_v2  ;;  %2271 = vmatprep.subr.bf16.mxu1 %v4466_v12  ;;  %v2374_v2 = vunpack.c.l.s4 %v4765_v1  ;;  %v4526_v1 = vld [vmem:[%s6283_s7 + $0x3cc] ss:$16 sps:$4 sm:$0xff]  }
 0x168   :  { %v2375_v10 = vunpack.c.0.s8 %v2374_v2  ;;  %v4529_v2 = vld [vmem:[%s6282_s6 + $0x1c4] ss:$16 sps:$4 sm:$0xff]  }
 0x169   :  { %2231 = vmatpush2.bf16.msra.mxu0 %v4371_v6  ;;  %2272 = vmatpush2.bf16.msra.mxu1 %v4464_v13  ;;  %v5646_v13 = vld.sshfl [vmem:[%s6276_s0] sm:$0x33 pattern:$0x75316420] }
 0x16a   :  { %2282 = vmatprep.subr.bf16.mxu0 %v4379_v7  ;;  %2323 = vmatprep.subr.bf16.mxu1 %v4472_v61 }
 0x1ac   :  { %v1169_v16 = vpop.f32.mrf.mxu0  ;;  %v1210_v17 = vpop.f32.mrf.mxu1 }
 0x1ad   :  { %v1170_v18 = vadd.f32 %v1169_v16, %v478_v14 }
 0x1ae   :  { %v1171_v19 = vpop.f32.mrf.mxu0  ;;  %v1212_v20 = vpop.f32.mrf.mxu1 }
 0x1af   :  { %v1172_v21 = vadd.f32 %v1171_v19, %v482_v15  ;;  %v1211_v22 = vadd.f32 %v1210_v17, %v1170_v18  ;;  %v4475_v17 = vld [vmem:[%s6282_s6 + $0xe4] ss:$16 sps:$4 sm:$0xff]   ;;  %v2372_v19 = vcombine.high %v5646_v13, %v5646_v13 }
 0x1b0   :  { %v1173_v23 = vpop.f32.mrf.mxu0  ;;  %v1214_v24 = vpop.f32.mrf.mxu1 }
 0x1b1   :  { %v1213_v25 = vadd.f32 %v1212_v20, %v1172_v21  ;;  %v5549_v30 = vpack.c.bf16 %v1211_v22, %v1211_v22  ;;  %v5657_v20 = vsub.s32 %v2375_v10, %v5124_v37  ;;  %v4470_v24 = vld [vmem:[%s6283_s7 + $0x2e8] ss:$16 sps:$4 sm:$0xff]   ;;  %v4478_v37 = vld [vmem:[%s6283_s7 + $0x2cc] ss:$16 sps:$4 sm:$0xff]  }
 0x1b2   :  { %v1174_v26 = vpop.f32.mrf.mxu0  ;;  %v1215_v27 = vpop.f32.mrf.mxu1  ;;  %v4538_v10 = vld [vmem:[%s6283_s7 + $0x38c] ss:$16 sps:$4 sm:$0xff]  }
 0x1b3   :  { %v1429_v28 = vpack.c.bf16 %v1213_v25, %v1213_v25  ;;  %v4473_v26 = vld [vmem:[%s6282_s6 + $0xe0] ss:$16 sps:$4 sm:$0xff]   ;;  %v4481_v27 = vld [vmem:[%s6282_s6 + $0xc4] ss:$16 sps:$4 sm:$0xff]  }
 0x1b5   :  { %2232 = vmatprep.mubr.bf16.mxu0 %v1429_v28 }
 0x1b6   :  { %2233 = vmatmul.mubr.bf16.vlgmr.msra.gmra.mxu0 %v5549_v30 }
 0x1b7   :  { %2283 = vmatpush1.bf16.msra.mxu0 %v4377_v29  ;;  %2314 = vmatprep.mubr.bf16.mxu0 %v1429_v28  ;;  %v5674_v28 = vrot.slane %v2372_v19, %v5657_v20  ;;  %v4476_v29 = vld [vmem:[%s6283_s7 + $0x2c8] ss:$16 sps:$4 sm:$0xff]  }
 0x1b8   :  { %2284 = vmatprep.subr.bf16.mxu0 %v4385_v31  ;;  %v4479_v31 = vld [vmem:[%s6282_s6 + $0xc0] ss:$16 sps:$4 sm:$0xff]   ;;  %v4548_v19 = vld [vmem:[%s6283_s7 + $0x348] ss:$16 sps:$4 sm:$0xff]  }
 0x1bb   :  { %2285 = vmatpush1.bf16.msra.mxu0 %v4383_v32  ;;  %v4484_v32 = vld [vmem:[%s6283_s7 + $0x2ac] ss:$16 sps:$4 sm:$0xff]  }
 0x1bc   :  { %2286 = vmatprep.subr.bf16.mxu0 %v4391_v33  ;;  %v4482_v33 = vld [vmem:[%s6283_s7 + $0x2a8] ss:$16 sps:$4 sm:$0xff]  }
 0x1bf   :  { %2287 = vmatpush1.bf16.msra.mxu0 %v4389_v34  ;;  %v4485_v34 = vld [vmem:[%s6282_s6 + $0xa0] ss:$16 sps:$4 sm:$0xff]  }
 0x1c0   :  { %2288 = vmatprep.subr.bf16.mxu0 %v4397_v35  ;;  %v4490_v35 = vld [vmem:[%s6283_s7 + $0x28c] ss:$16 sps:$4 sm:$0xff]  }
 0x1c3   :  { %2289 = vmatpush1.bf16.msra.mxu0 %v4395_v36  ;;  %v4493_v36 = vld [vmem:[%s6282_s6 + $0x84] ss:$16 sps:$4 sm:$0xff]  }
 0x1c4   :  { %2290 = vmatprep.subr.bf16.mxu0 %v4403_v40  ;;  %v4488_v40 = vld [vmem:[%s6283_s7 + $0x288] ss:$16 sps:$4 sm:$0xff]  }
 0x1c7   :  { %2291 = vmatpush1.bf16.msra.mxu0 %v4401_v43  ;;  %v4491_v43 = vld [vmem:[%s6282_s6 + $0x80] ss:$16 sps:$4 sm:$0xff]  }
 0x1c8   :  { %2292 = vmatprep.subr.bf16.mxu0 %v4409_v44  ;;  %v4496_v44 = vld [vmem:[%s6283_s7 + $0x26c] ss:$16 sps:$4 sm:$0xff]  }
 0x1cb   :  { %2293 = vmatpush1.bf16.msra.mxu0 %v4407_v45  ;;  %v4499_v45 = vld [vmem:[%s6282_s6 + $0x64] ss:$16 sps:$4 sm:$0xff]  }
 0x1cc   :  { %2294 = vmatprep.subr.bf16.mxu0 %v4415_v46  ;;  %v4494_v46 = vld [vmem:[%s6283_s7 + $0x268] ss:$16 sps:$4 sm:$0xff]  }
 0x1cf   :  { %2295 = vmatpush1.bf16.msra.mxu0 %v4413_v47  ;;  %v4497_v47 = vld [vmem:[%s6282_s6 + $0x60] ss:$16 sps:$4 sm:$0xff]  }
 0x1d0   :  { %2296 = vmatprep.subr.bf16.mxu0 %v4421_v48  ;;  %v4502_v48 = vld [vmem:[%s6283_s7 + $0x24c] ss:$16 sps:$4 sm:$0xff]  }
 0x1d3   :  { %2297 = vmatpush1.bf16.msra.mxu0 %v4419_v49  ;;  %v4505_v49 = vld [vmem:[%s6282_s6 + $0x44] ss:$16 sps:$4 sm:$0xff]  }
 0x1d4   :  { %2298 = vmatprep.subr.bf16.mxu0 %v4427_v50  ;;  %v4500_v50 = vld [vmem:[%s6283_s7 + $0x248] ss:$16 sps:$4 sm:$0xff]  }
 0x1d7   :  { %2299 = vmatpush2.bf16.msra.mxu0 %v4425_v51  ;;  %v4503_v51 = vld [vmem:[%s6282_s6 + $0x40] ss:$16 sps:$4 sm:$0xff]  }
 0x1d8   :  { %2300 = vmatprep.subr.bf16.mxu0 %v4433_v52  ;;  %v4508_v52 = vld [vmem:[%s6283_s7 + $0x22c] ss:$16 sps:$4 sm:$0xff]  }
 0x1db   :  { %2301 = vmatpush2.bf16.msra.mxu0 %v4431_v53  ;;  %v4511_v53 = vld [vmem:[%s6282_s6 + $0x24] ss:$16 sps:$4 sm:$0xff]  }
 0x1dc   :  { %2302 = vmatprep.subr.bf16.mxu0 %v4439_v54  ;;  %v4506_v54 = vld [vmem:[%s6283_s7 + $0x228] ss:$16 sps:$4 sm:$0xff]  }
 0x1df   :  { %2303 = vmatpush2.bf16.msra.mxu0 %v4437_v55  ;;  %v4509_v55 = vld [vmem:[%s6282_s6 + $0x20] ss:$16 sps:$4 sm:$0xff]  }
 0x1e0   :  { %2304 = vmatprep.subr.bf16.mxu0 %v4445_v56  ;;  %v4514_v56 = vld [vmem:[%s6283_s7 + $0x20c] ss:$16 sps:$4 sm:$0xff]  }
 0x1e3   :  { %2305 = vmatpush2.bf16.msra.mxu0 %v4443_v57  ;;  %v4517_v57 = vld [vmem:[%s6282_s6 + $0x4] ss:$16 sps:$4 sm:$0xff]  }
 0x1e4   :  { %2306 = vmatprep.subr.bf16.mxu0 %v4451_v58  ;;  %v4512_v58 = vld [vmem:[%s6283_s7 + $0x208] ss:$16 sps:$4 sm:$0xff]  }
 0x1e7   :  { %2307 = vmatpush2.bf16.msra.mxu0 %v4449_v59  ;;  %v4515_v59 = vld [vmem:[%s6282_s6] ss:$16 sps:$4 sm:$0xff]  }
 0x1e8   :  { %2308 = vmatprep.subr.bf16.mxu0 %v4457_v60  ;;  %v4520_v60 = vld [vmem:[%s6283_s7 + $0x3ec] ss:$16 sps:$4 sm:$0xff]  }
 0x1eb   :  { %2309 = vmatpush2.bf16.msra.mxu0 %v4455_v62  ;;  %v4523_v62 = vld [vmem:[%s6282_s6 + $0x1e4] ss:$16 sps:$4 sm:$0xff]  }
 0x1ec   :  { %v1251_v6 = vpop.f32.mrf.mxu0  ;;  %v1292_v7 = vpop.f32.mrf.mxu1  ;;  %2310 = vmatprep.subr.bf16.mxu0 %v4463_v63  ;;  %v4518_v63 = vld [vmem:[%s6283_s7 + $0x3e8] ss:$16 sps:$4 sm:$0xff]  }
 0x1ed   :  { %v1252_v9 = vadd.f32 %v1251_v6, %v486_v0  ;;  %v4521_v0 = vld [vmem:[%s6282_s6 + $0x1e0] ss:$16 sps:$4 sm:$0xff]   ;;  %v4532_v6 = vld [vmem:[%s6283_s7 + $0x3ac] ss:$16 sps:$4 sm:$0xff]  }
 0x1ee   :  { %v1253_v11 = vpop.f32.mrf.mxu0  ;;  %v1294_v12 = vpop.f32.mrf.mxu1 }
 0x1ef   :  { %v1254_v61 = vadd.f32 %v1253_v11, %v490_v3  ;;  %2311 = vmatpush2.bf16.msra.mxu0 %v4461_v5  ;;  %v1293_v14 = vadd.f32 %v1292_v7, %v1252_v9  ;;  %v4524_v3 = vld [vmem:[%s6283_s7 + $0x3c8] ss:$16 sps:$4 sm:$0xff]   ;;  %v4527_v5 = vld [vmem:[%s6282_s6 + $0x1c0] ss:$16 sps:$4 sm:$0xff]   ;;  %v4535_v7 = vld [vmem:[%s6282_s6 + $0x1a4] ss:$16 sps:$4 sm:$0xff]  }
 0x1f0   :  { %v1255_v15 = vpop.f32.mrf.mxu0  ;;  %v1296_v16 = vpop.f32.mrf.mxu1  ;;  %2312 = vmatprep.subr.bf16.mxu0 %v4469_v8  ;;  %v4530_v8 = vld [vmem:[%s6283_s7 + $0x3a8] ss:$16 sps:$4 sm:$0xff]   ;;  %v4533_v9 = vld [vmem:[%s6282_s6 + $0x1a0] ss:$16 sps:$4 sm:$0xff]   ;;  %v4541_v11 = vld [vmem:[%s6282_s6 + $0x184] ss:$16 sps:$4 sm:$0xff]  }
 0x1f1   :  { %v1295_v18 = vadd.f32 %v1294_v12, %v1254_v61  ;;  %v5662_v25 = vpack.c.bf16 %v1293_v14, %v1293_v14  ;;  %v4536_v12 = vld [vmem:[%s6283_s7 + $0x388] ss:$16 sps:$4 sm:$0xff]   ;;  %v4539_v61 = vld [vmem:[%s6282_s6 + $0x180] ss:$16 sps:$4 sm:$0xff]   ;;  %v4547_v14 = vld [vmem:[%s6282_s6 + $0x164] ss:$16 sps:$4 sm:$0xff]  }
 0x1f2   :  { %v1256_v21 = vpop.f32.mrf.mxu0  ;;  %v1297_v22 = vpop.f32.mrf.mxu1  ;;  %v4542_v15 = vld [vmem:[%s6283_s7 + $0x368] ss:$16 sps:$4 sm:$0xff]   ;;  %v4545_v16 = vld [vmem:[%s6282_s6 + $0x160] ss:$16 sps:$4 sm:$0xff]  }
 0x1f3   :  { %v1431_v23 = vpack.c.bf16 %v1295_v18, %v1295_v18  ;;  %2313 = vmatpush2.bf16.msra.mxu0 %v4467_v4  ;;  %v4544_v4 = vld [vmem:[%s6283_s7 + $0x36c] ss:$16 sps:$4 sm:$0xff]   ;;  %v4553_v18 = vld [vmem:[%s6282_s6 + $0x144] ss:$16 sps:$4 sm:$0xff]   ;;  %v4551_v21 = vld [vmem:[%s6282_s6 + $0x140] ss:$16 sps:$4 sm:$0xff]  }
 0x1f4   :  { %3033 = vmatprep.subr.bf16.mxu0 %v4475_v17  ;;  %v4550_v17 = vld [vmem:[%s6283_s7 + $0x34c] ss:$16 sps:$4 sm:$0xff]  }
 0x1f5   :  { %2273 = vmatprep.mubr.bf16.mxu1 %v1431_v23  ;;  %v4556_v22 = vld [vmem:[%s6283_s7 + $0x32c] ss:$16 sps:$4 sm:$0xff]  }
 0x1f6   :  { %2274 = vmatmul.mubr.bf16.vlgmr.msra.gmra.mxu1 %v5662_v25  ;;  %2315 = vmatmul.mubr.bf16.vlgmr.msra.gmra.mxu0 %v5549_v30  ;;  %v4487_v30 = vld [vmem:[%s6282_s6 + $0xa4] ss:$16 sps:$4 sm:$0xff]  }
 0x1f7   :  { %2324 = vmatpush1.bf16.msra.mxu1 %v4470_v24  ;;  %2355 = vmatprep.mubr.bf16.mxu1 %v1431_v23  ;;  %v4559_v23 = vld [vmem:[%s6282_s6 + $0x124] ss:$16 sps:$4 sm:$0xff]   ;;  %v4554_v24 = vld [vmem:[%s6283_s7 + $0x328] ss:$16 sps:$4 sm:$0xff]  }
 0x1f8   :  { %3034 = vmatpush1.bf16.msra.mxu0 %v4473_v26  ;;  %2325 = vmatprep.subr.bf16.mxu1 %v4478_v37  ;;  %v4557_v26 = vld [vmem:[%s6282_s6 + $0x120] ss:$16 sps:$4 sm:$0xff]   ;;  %v4562_v37 = vld [vmem:[%s6283_s7 + $0x30c] ss:$16 sps:$4 sm:$0xff]  }
 0x1f9   :  { %3035 = vmatprep.subr.bf16.mxu0 %v4481_v27  ;;  %3065 = vmatprep.mubr.bf16.mxu0 %v5674_v28  ;;  %v4565_v27 = vld [vmem:[%s6282_s6 + $0x104] ss:$16 sps:$4 sm:$0xff]  }
 0x1fb   :  { %2326 = vmatpush1.bf16.msra.mxu1 %v4476_v29  ;;  %v4560_v29 = vld [vmem:[%s6283_s7 + $0x308] ss:$16 sps:$4 sm:$0xff]  }
 0x1fc   :  { %3036 = vmatpush1.bf16.msra.mxu0 %v4479_v31  ;;  %2327 = vmatprep.subr.bf16.mxu1 %v4484_v32  ;;  %v4563_v31 = vld [vmem:[%s6282_s6 + $0x100] ss:$16 sps:$4 sm:$0xff]   ;;  %v4568_v32 = vld [vmem:[%s6282_s6 + $0x2e4] ss:$16 sps:$4 sm:$0xff]  }
 0x1fd   :  { %3037 = vmatprep.subr.bf16.mxu0 %v4487_v30  ;;  %v4571_v30 = vld [vmem:[%s6282_s6 + $0xec] ss:$16 sps:$4 sm:$0xff]  }
 0x1ff   :  { %2328 = vmatpush1.bf16.msra.mxu1 %v4482_v33  ;;  %v4566_v33 = vld [vmem:[%s6282_s6 + $0x2e0] ss:$16 sps:$4 sm:$0xff]  }
 0x200   :  { %3038 = vmatpush1.bf16.msra.mxu0 %v4485_v34  ;;  %2329 = vmatprep.subr.bf16.mxu1 %v4490_v35  ;;  %v5864_v34 = vrot.slane %v5646_v13, %v5657_v20  ;;  %v4569_v35 = vld [vmem:[%s6282_s6 + $0xe8] ss:$16 sps:$4 sm:$0xff]   ;;  %v4572_v13 = vld [vmem:[%s6282_s6 + $0x2c0] ss:$16 sps:$4 sm:$0xff]  }
 0x201   :  { %3039 = vmatprep.subr.bf16.mxu0 %v4493_v36  ;;  %v4574_v36 = vld [vmem:[%s6282_s6 + $0x2c4] ss:$16 sps:$4 sm:$0xff]   ;;  %v4575_v20 = vld [vmem:[%s6282_s6 + $0xc8] ss:$16 sps:$4 sm:$0xff]  }
 0x203   :  { %2330 = vmatpush1.bf16.msra.mxu1 %v4488_v40  ;;  %v4577_v40 = vld [vmem:[%s6282_s6 + $0xcc] ss:$16 sps:$4 sm:$0xff]  }
 0x204   :  { %3040 = vmatpush1.bf16.msra.mxu0 %v4491_v43  ;;  %2331 = vmatprep.subr.bf16.mxu1 %v4496_v44  ;;  %v5877_v43 = vcombine.high %v5674_v28, %v5674_v28  ;;  %v4580_v44 = vld [vmem:[%s6282_s6 + $0x2a4] ss:$16 sps:$4 sm:$0xff]  }
 0x205   :  { %3041 = vmatprep.subr.bf16.mxu0 %v4499_v45  ;;  %v4578_v45 = vld [vmem:[%s6282_s6 + $0x2a0] ss:$16 sps:$4 sm:$0xff]  }
 0x207   :  { %2332 = vmatpush1.bf16.msra.mxu1 %v4494_v46  ;;  %v4581_v46 = vld [vmem:[%s6282_s6 + $0xa8] ss:$16 sps:$4 sm:$0xff]  }
 0x208   :  { %3042 = vmatpush1.bf16.msra.mxu0 %v4497_v47  ;;  %2333 = vmatprep.subr.bf16.mxu1 %v4502_v48  ;;  %v4586_v47 = vld [vmem:[%s6282_s6 + $0x284] ss:$16 sps:$4 sm:$0xff]   ;;  %v4584_v48 = vld [vmem:[%s6282_s6 + $0x280] ss:$16 sps:$4 sm:$0xff]  }
 0x209   :  { %3043 = vmatprep.subr.bf16.mxu0 %v4505_v49  ;;  %v4587_v49 = vld [vmem:[%s6282_s6 + $0x88] ss:$16 sps:$4 sm:$0xff]  }
 0x20b   :  { %2334 = vmatpush1.bf16.msra.mxu1 %v4500_v50  ;;  %v4592_v50 = vld [vmem:[%s6282_s6 + $0x264] ss:$16 sps:$4 sm:$0xff]  }
 0x20c   :  { %3044 = vmatpush1.bf16.msra.mxu0 %v4503_v51  ;;  %2335 = vmatprep.subr.bf16.mxu1 %v4508_v52  ;;  %v4595_v51 = vld [vmem:[%s6282_s6 + $0x6c] ss:$16 sps:$4 sm:$0xff]   ;;  %v4590_v52 = vld [vmem:[%s6282_s6 + $0x260] ss:$16 sps:$4 sm:$0xff]  }
 0x20d   :  { %3045 = vmatprep.subr.bf16.mxu0 %v4511_v53  ;;  %v4593_v53 = vld [vmem:[%s6282_s6 + $0x68] ss:$16 sps:$4 sm:$0xff]  }
 0x20f   :  { %2336 = vmatpush1.bf16.msra.mxu1 %v4506_v54  ;;  %v4598_v54 = vld [vmem:[%s6282_s6 + $0x244] ss:$16 sps:$4 sm:$0xff]  }
 0x210   :  { %3046 = vmatpush1.bf16.msra.mxu0 %v4509_v55  ;;  %2337 = vmatprep.subr.bf16.mxu1 %v4514_v56  ;;  %v4601_v55 = vld [vmem:[%s6282_s6 + $0x4c] ss:$16 sps:$4 sm:$0xff]   ;;  %v4596_v56 = vld [vmem:[%s6282_s6 + $0x240] ss:$16 sps:$4 sm:$0xff]  }
 0x211   :  { %3047 = vmatprep.subr.bf16.mxu0 %v4517_v57  ;;  %v4599_v57 = vld [vmem:[%s6282_s6 + $0x48] ss:$16 sps:$4 sm:$0xff]  }
 0x213   :  { %2338 = vmatpush1.bf16.msra.mxu1 %v4512_v58  ;;  %v4604_v58 = vld [vmem:[%s6282_s6 + $0x224] ss:$16 sps:$4 sm:$0xff]  }
 0x214   :  { %3048 = vmatpush1.bf16.msra.mxu0 %v4515_v59  ;;  %2339 = vmatprep.subr.bf16.mxu1 %v4520_v60  ;;  %v4607_v59 = vld [vmem:[%s6282_s6 + $0x2c] ss:$16 sps:$4 sm:$0xff]   ;;  %v4602_v60 = vld [vmem:[%s6282_s6 + $0x220] ss:$16 sps:$4 sm:$0xff]  }
 0x215   :  { %3049 = vmatprep.subr.bf16.mxu0 %v4523_v62  ;;  %v4605_v62 = vld [vmem:[%s6282_s6 + $0x28] ss:$16 sps:$4 sm:$0xff]  }
 0x217   :  { %2340 = vmatpush2.bf16.msra.mxu1 %v4518_v63  ;;  %v4610_v63 = vld [vmem:[%s6282_s6 + $0x204] ss:$16 sps:$4 sm:$0xff]  }
 0x218   :  { %3050 = vmatpush2.bf16.msra.mxu0 %v4521_v0  ;;  %2341 = vmatprep.subr.bf16.mxu1 %v4526_v1  ;;  %v4613_v0 = vld [vmem:[%s6282_s6 + $0xc] ss:$16 sps:$4 sm:$0xff]   ;;  %v4608_v1 = vld [vmem:[%s6282_s6 + $0x200] ss:$16 sps:$4 sm:$0xff]  }
 0x219   :  { %3051 = vmatprep.subr.bf16.mxu0 %v4529_v2  ;;  %v4611_v2 = vld [vmem:[%s6282_s6 + $0x8] ss:$16 sps:$4 sm:$0xff]  }
 0x21b   :  { %2342 = vmatpush2.bf16.msra.mxu1 %v4524_v3  ;;  %v4616_v3 = vld [vmem:[%s6282_s6 + $0x3e4] ss:$16 sps:$4 sm:$0xff]  }
 0x21c   :  { %3052 = vmatpush2.bf16.msra.mxu0 %v4527_v5  ;;  %2343 = vmatprep.subr.bf16.mxu1 %v4532_v6  ;;  %v4619_v5 = vld [vmem:[%s6282_s6 + $0x1ec] ss:$16 sps:$4 sm:$0xff]   ;;  %v4614_v6 = vld [vmem:[%s6282_s6 + $0x3e0] ss:$16 sps:$4 sm:$0xff]  }
 0x21d   :  { %3053 = vmatprep.subr.bf16.mxu0 %v4535_v7  ;;  %v4617_v7 = vld [vmem:[%s6282_s6 + $0x1e8] ss:$16 sps:$4 sm:$0xff]  }
 0x21f   :  { %2344 = vmatpush2.bf16.msra.mxu1 %v4530_v8  ;;  %v4622_v8 = vld [vmem:[%s6282_s6 + $0x3c4] ss:$16 sps:$4 sm:$0xff]  }
 0x220   :  { %3054 = vmatpush2.bf16.msra.mxu0 %v4533_v9  ;;  %2345 = vmatprep.subr.bf16.mxu1 %v4538_v10  ;;  %v4625_v9 = vld [vmem:[%s6282_s6 + $0x1cc] ss:$16 sps:$4 sm:$0xff]   ;;  %v4620_v10 = vld [vmem:[%s6282_s6 + $0x3c0] ss:$16 sps:$4 sm:$0xff]  }
 0x221   :  { %3055 = vmatprep.subr.bf16.mxu0 %v4541_v11  ;;  %v4623_v11 = vld [vmem:[%s6282_s6 + $0x1c8] ss:$16 sps:$4 sm:$0xff]  }
 0x223   :  { %2346 = vmatpush2.bf16.msra.mxu1 %v4536_v12  ;;  %v4628_v12 = vld [vmem:[%s6282_s6 + $0x3a4] ss:$16 sps:$4 sm:$0xff]  }
 0x224   :  { %3056 = vmatpush2.bf16.msra.mxu0 %v4539_v61  ;;  %2347 = vmatprep.subr.bf16.mxu1 %v4544_v4  ;;  %v4631_v61 = vld [vmem:[%s6282_s6 + $0x1ac] ss:$16 sps:$4 sm:$0xff]   ;;  %v4626_v4 = vld [vmem:[%s6282_s6 + $0x3a0] ss:$16 sps:$4 sm:$0xff]  }
 0x225   :  { %3057 = vmatprep.subr.bf16.mxu0 %v4547_v14  ;;  %v4629_v14 = vld [vmem:[%s6282_s6 + $0x1a8] ss:$16 sps:$4 sm:$0xff]  }
 0x227   :  { %2348 = vmatpush2.bf16.msra.mxu1 %v4542_v15  ;;  %v4634_v15 = vld [vmem:[%s6282_s6 + $0x384] ss:$16 sps:$4 sm:$0xff]  }
 0x228   :  { %3058 = vmatpush2.bf16.msra.mxu0 %v4545_v16  ;;  %2349 = vmatprep.subr.bf16.mxu1 %v4550_v17  ;;  %v4637_v16 = vld [vmem:[%s6282_s6 + $0x18c] ss:$16 sps:$4 sm:$0xff]   ;;  %v4632_v17 = vld [vmem:[%s6282_s6 + $0x380] ss:$16 sps:$4 sm:$0xff]  }
 0x229   :  { %3059 = vmatprep.subr.bf16.mxu0 %v4553_v18  ;;  %v4635_v18 = vld [vmem:[%s6282_s6 + $0x188] ss:$16 sps:$4 sm:$0xff]  }
 0x22b   :  { %2350 = vmatpush2.bf16.msra.mxu1 %v4548_v19  ;;  %v4640_v19 = vld [vmem:[%s6282_s6 + $0x364] ss:$16 sps:$4 sm:$0xff]  }
 0x22c   :  { %3060 = vmatpush2.bf16.msra.mxu0 %v4551_v21  ;;  %2351 = vmatprep.subr.bf16.mxu1 %v4556_v22  ;;  %v4643_v21 = vld [vmem:[%s6282_s6 + $0x16c] ss:$16 sps:$4 sm:$0xff]   ;;  %v4638_v22 = vld [vmem:[%s6282_s6 + $0x360] ss:$16 sps:$4 sm:$0xff]  }
 0x22d   :  { %3061 = vmatprep.subr.bf16.mxu0 %v4559_v23  ;;  %v4641_v23 = vld [vmem:[%s6282_s6 + $0x168] ss:$16 sps:$4 sm:$0xff]  }
 0x22f   :  { %2352 = vmatpush2.bf16.msra.mxu1 %v4554_v24  ;;  %v4646_v24 = vld [vmem:[%s6282_s6 + $0x344] ss:$16 sps:$4 sm:$0xff]  }
 0x230   :  { %3062 = vmatpush2.bf16.msra.mxu0 %v4557_v26  ;;  %2353 = vmatprep.subr.bf16.mxu1 %v4562_v37  ;;  %v4649_v26 = vld [vmem:[%s6282_s6 + $0x14c] ss:$16 sps:$4 sm:$0xff]   ;;  %v4644_v37 = vld [vmem:[%s6282_s6 + $0x340] ss:$16 sps:$4 sm:$0xff]  }
 0x231   :  { %3063 = vmatprep.subr.bf16.mxu0 %v4565_v27  ;;  %v4647_v27 = vld [vmem:[%s6282_s6 + $0x148] ss:$16 sps:$4 sm:$0xff]  }
 0x233   :  { %2354 = vmatpush2.bf16.msra.mxu1 %v4560_v29  ;;  %v4652_v29 = vld [vmem:[%s6282_s6 + $0x324] ss:$16 sps:$4 sm:$0xff]  }
 0x234   :  { %3064 = vmatpush2.bf16.msra.mxu0 %v4563_v31  ;;  %3074 = vmatprep.subr.bf16.mxu1 %v4568_v32  ;;  %v4655_v31 = vld [vmem:[%s6282_s6 + $0x12c] ss:$16 sps:$4 sm:$0xff]   ;;  %v4650_v32 = vld [vmem:[%s6282_s6 + $0x320] ss:$16 sps:$4 sm:$0xff]  }
 0x235   :  { %3115 = vmatprep.subr.bf16.mxu0 %v4571_v30  ;;  %v4653_v30 = vld [vmem:[%s6282_s6 + $0x128] ss:$16 sps:$4 sm:$0xff]  }
 0x236   :  { %2356 = vmatmul.mubr.bf16.vlgmr.msra.gmra.mxu1 %v5662_v25  ;;  %v4583_v25 = vld [vmem:[%s6282_s6 + $0xac] ss:$16 sps:$4 sm:$0xff]  }
 0x237   :  { %3066 = vmatmul.mubr.bf16.vlgmr.msra.gmra.mxu0 %v5864_v34  ;;  %3075 = vmatpush1.bf16.msra.mxu1 %v4566_v33  ;;  %v4658_v33 = vld [vmem:[%s6282_s6 + $0x304] ss:$16 sps:$4 sm:$0xff]  }
 0x238   :  { %3116 = vmatpush1.bf16.msra.mxu0 %v4569_v35  ;;  %3076 = vmatprep.subr.bf16.mxu1 %v4574_v36  ;;  %v4661_v35 = vld [vmem:[%s6282_s6 + $0x10c] ss:$16 sps:$4 sm:$0xff]   ;;  %v4656_v36 = vld [vmem:[%s6282_s6 + $0x300] ss:$16 sps:$4 sm:$0xff]  }
 0x239   :  { %3117 = vmatprep.subr.bf16.mxu0 %v4577_v40  ;;  %3106 = vmatprep.mubr.bf16.mxu1 %v5877_v43  ;;  %v4659_v40 = vld [vmem:[%s6282_s6 + $0x108] ss:$16 sps:$4 sm:$0xff]  }
 0x23a   :  { %3147 = vmatprep.mubr.bf16.mxu0 %v5674_v28  ;;  %v4589_v28 = vld [vmem:[%s6282_s6 + $0x8c] ss:$16 sps:$4 sm:$0xff]  }
 0x23b   :  { %3077 = vmatpush1.bf16.msra.mxu1 %v4572_v13  ;;  %v4664_v13 = vld [vmem:[%s6282_s6 + $0x2ec] ss:$16 sps:$4 sm:$0xff]  }
 0x23c   :  { %3118 = vmatpush1.bf16.msra.mxu0 %v4575_v20  ;;  %3078 = vmatprep.subr.bf16.mxu1 %v4580_v44  ;;  %v6062_v20 = vcombine.high %v5864_v34, %v5864_v34  ;;  %v4662_v44 = vld [vmem:[%s6282_s6 + $0x2e8] ss:$16 sps:$4 sm:$0xff]  }
 0x23d   :  { %3119 = vmatprep.subr.bf16.mxu0 %v4583_v25  ;;  %v4667_v25 = vld [vmem:[%s6282_s6 + $0x2cc] ss:$16 sps:$4 sm:$0xff]  }
 0x23f   :  { %3079 = vmatpush1.bf16.msra.mxu1 %v4578_v45 }
 0x240   :  { %3120 = vmatpush1.bf16.msra.mxu0 %v4581_v46  ;;  %3080 = vmatprep.subr.bf16.mxu1 %v4586_v47  ;;  %v4665_v46 = vld [vmem:[%s6282_s6 + $0x2c8] ss:$16 sps:$4 sm:$0xff]  }
 0x241   :  { %3121 = vmatprep.subr.bf16.mxu0 %v4589_v28  ;;  %v4670_v28 = vld [vmem:[%s6282_s6 + $0x2ac] ss:$16 sps:$4 sm:$0xff]  }
 0x243   :  { %3081 = vmatpush1.bf16.msra.mxu1 %v4584_v48 }
 0x244   :  { %3122 = vmatpush1.bf16.msra.mxu0 %v4587_v49  ;;  %3082 = vmatprep.subr.bf16.mxu1 %v4592_v50  ;;  %v4673_v49 = vld [vmem:[%s6282_s6 + $0x28c] ss:$16 sps:$4 sm:$0xff]  }
 0x245   :  { %3123 = vmatprep.subr.bf16.mxu0 %v4595_v51  ;;  %v4710_v51 = vld [vmem:[%s6285_s9 + $0x78] sm:$0xff]  }
 0x247   :  { %3083 = vmatpush1.bf16.msra.mxu1 %v4590_v52  ;;  %v4712_v52 = vld [vmem:[%s6285_s9 + $0x70] sm:$0xff]  }
 0x248   :  { %3124 = vmatpush1.bf16.msra.mxu0 %v4593_v53  ;;  %3084 = vmatprep.subr.bf16.mxu1 %v4598_v54  ;;  %v4671_v53 = vld [vmem:[%s6282_s6 + $0x288] ss:$16 sps:$4 sm:$0xff]   ;;  %v4713_v54 = vld [vmem:[%s6285_s9 + $0x30] sm:$0xff]  }
 0x249   :  { %3125 = vmatprep.subr.bf16.mxu0 %v4601_v55  ;;  %v4676_v55 = vld [vmem:[%s6282_s6 + $0x26c] ss:$16 sps:$4 sm:$0xff]  }
 0x24b   :  { %3085 = vmatpush1.bf16.msra.mxu1 %v4596_v56  ;;  %v4714_v56 = vld [vmem:[%s6285_s9 + $0x68] sm:$0xff]  }
 0x24c   :  { %3126 = vmatpush1.bf16.msra.mxu0 %v4599_v57  ;;  %3086 = vmatprep.subr.bf16.mxu1 %v4604_v58  ;;  %v4674_v57 = vld [vmem:[%s6282_s6 + $0x268] ss:$16 sps:$4 sm:$0xff]  }
 0x24d   :  { %3127 = vmatprep.subr.bf16.mxu0 %v4607_v59  ;;  %v4715_v58 = vld [vmem:[%s6285_s9 + $0x28] sm:$0xff]  }
 0x24e   :  { %v4679_v59 = vld [vmem:[%s6282_s6 + $0x24c] ss:$16 sps:$4 sm:$0xff]  }
 0x24f   :  { %3087 = vmatpush1.bf16.msra.mxu1 %v4602_v60  ;;  %v4716_v60 = vld [vmem:[%s6285_s9 + $0x60] sm:$0xff]  }
 0x250   :  { %3128 = vmatpush1.bf16.msra.mxu0 %v4605_v62  ;;  %3088 = vmatprep.subr.bf16.mxu1 %v4610_v63  ;;  %v4677_v62 = vld [vmem:[%s6282_s6 + $0x248] ss:$16 sps:$4 sm:$0xff]   ;;  %v4717_v63 = vld [vmem:[%s6285_s9 + $0x20] sm:$0xff]  }
 0x251   :  { %3129 = vmatprep.subr.bf16.mxu0 %v4613_v0  ;;  %v4682_v0 = vld [vmem:[%s6282_s6 + $0x22c] ss:$16 sps:$4 sm:$0xff]  }
 0x253   :  { %3089 = vmatpush1.bf16.msra.mxu1 %v4608_v1  ;;  %v4718_v1 = vld [vmem:[%s6285_s9 + $0x58] sm:$0xff]  }
 0x254   :  { %3130 = vmatpush1.bf16.msra.mxu0 %v4611_v2  ;;  %3090 = vmatprep.subr.bf16.mxu1 %v4616_v3  ;;  %v4680_v2 = vld [vmem:[%s6282_s6 + $0x228] ss:$16 sps:$4 sm:$0xff]  }
 0x255   :  { %3131 = vmatprep.subr.bf16.mxu0 %v4619_v5  ;;  %v4719_v3 = vld [vmem:[%s6285_s9 + $0x18] sm:$0xff]  }
 0x256   :  { %v4685_v5 = vld [vmem:[%s6282_s6 + $0x20c] ss:$16 sps:$4 sm:$0xff]  }
 0x257   :  { %3091 = vmatpush2.bf16.msra.mxu1 %v4614_v6  ;;  %v4683_v6 = vld [vmem:[%s6282_s6 + $0x208] ss:$16 sps:$4 sm:$0xff]  }
 0x258   :  { %3132 = vmatpush2.bf16.msra.mxu0 %v4617_v7  ;;  %3092 = vmatprep.subr.bf16.mxu1 %v4622_v8  ;;  %v4688_v7 = vld [vmem:[%s6282_s6 + $0x3ec] ss:$16 sps:$4 sm:$0xff]   ;;  %v4686_v8 = vld [vmem:[%s6282_s6 + $0x3e8] ss:$16 sps:$4 sm:$0xff]  }
 0x259   :  { %3133 = vmatprep.subr.bf16.mxu0 %v4625_v9  ;;  %v4691_v9 = vld [vmem:[%s6282_s6 + $0x3cc] ss:$16 sps:$4 sm:$0xff]  }
 0x25b   :  { %3093 = vmatpush2.bf16.msra.mxu1 %v4620_v10  ;;  %v4689_v10 = vld [vmem:[%s6282_s6 + $0x3c8] ss:$16 sps:$4 sm:$0xff]  }
 0x25c   :  { %3134 = vmatpush2.bf16.msra.mxu0 %v4623_v11  ;;  %3094 = vmatprep.subr.bf16.mxu1 %v4628_v12  ;;  %v4694_v11 = vld [vmem:[%s6282_s6 + $0x3ac] ss:$16 sps:$4 sm:$0xff]   ;;  %v4692_v12 = vld [vmem:[%s6282_s6 + $0x3a8] ss:$16 sps:$4 sm:$0xff]  }
 0x25d   :  { %3135 = vmatprep.subr.bf16.mxu0 %v4631_v61  ;;  %v4697_v61 = vld [vmem:[%s6282_s6 + $0x38c] ss:$16 sps:$4 sm:$0xff]  }
 0x25f   :  { %3095 = vmatpush2.bf16.msra.mxu1 %v4626_v4  ;;  %v4695_v4 = vld [vmem:[%s6282_s6 + $0x388] ss:$16 sps:$4 sm:$0xff]  }
 0x260   :  { %3136 = vmatpush2.bf16.msra.mxu0 %v4629_v14  ;;  %3096 = vmatprep.subr.bf16.mxu1 %v4634_v15  ;;  %v4700_v14 = vld [vmem:[%s6282_s6 + $0x36c] ss:$16 sps:$4 sm:$0xff]   ;;  %v4698_v15 = vld [vmem:[%s6282_s6 + $0x368] ss:$16 sps:$4 sm:$0xff]  }
 0x261   :  { %3137 = vmatprep.subr.bf16.mxu0 %v4637_v16  ;;  %v4703_v16 = vld [vmem:[%s6282_s6 + $0x34c] ss:$16 sps:$4 sm:$0xff]  }
 0x263   :  { %3097 = vmatpush2.bf16.msra.mxu1 %v4632_v17  ;;  %v4701_v17 = vld [vmem:[%s6282_s6 + $0x348] ss:$16 sps:$4 sm:$0xff]  }
 0x264   :  { %3138 = vmatpush2.bf16.msra.mxu0 %v4635_v18  ;;  %3098 = vmatprep.subr.bf16.mxu1 %v4640_v19  ;;  %v4706_v18 = vld [vmem:[%s6282_s6 + $0x32c] ss:$16 sps:$4 sm:$0xff]   ;;  %v4704_v19 = vld [vmem:[%s6282_s6 + $0x328] ss:$16 sps:$4 sm:$0xff]  }
 0x265   :  { %3139 = vmatprep.subr.bf16.mxu0 %v4643_v21  ;;  %v4709_v21 = vld [vmem:[%s6282_s6 + $0x30c] ss:$16 sps:$4 sm:$0xff]  }
 0x267   :  { %3099 = vmatpush2.bf16.msra.mxu1 %v4638_v22  ;;  %v4707_v22 = vld [vmem:[%s6282_s6 + $0x308] ss:$16 sps:$4 sm:$0xff]  }
 0x268   :  { %3140 = vmatpush2.bf16.msra.mxu0 %v4641_v23  ;;  %3100 = vmatprep.subr.bf16.mxu1 %v4646_v24  ;;  %v4720_v23 = vld [vmem:[%s6285_s9 + $0x50] sm:$0xff]  }
 0x269   :  { %3141 = vmatprep.subr.bf16.mxu0 %v4649_v26  ;;  %v4721_v24 = vld [vmem:[%s6285_s9 + $0x10] sm:$0xff]  }
 0x26b   :  { %3101 = vmatpush2.bf16.msra.mxu1 %v4644_v37 }
 0x26c   :  { %3142 = vmatpush2.bf16.msra.mxu0 %v4647_v27  ;;  %3102 = vmatprep.subr.bf16.mxu1 %v4652_v29 }
 0x26d   :  { %3143 = vmatprep.subr.bf16.mxu0 %v4655_v31 }
 0x26f   :  { %3103 = vmatpush2.bf16.msra.mxu1 %v4650_v32  ;;  %v4722_v32 = vld [vmem:[%s6285_s9 + $0x48] sm:$0xff]  }
 0x270   :  { %3144 = vmatpush2.bf16.msra.mxu0 %v4653_v30  ;;  %3104 = vmatprep.subr.bf16.mxu1 %v4658_v33  ;;  %v4723_v33 = vld [vmem:[%s6285_s9 + $0x8] sm:$0xff]  }
 0x271   :  { %3145 = vmatprep.subr.bf16.mxu0 %v4661_v35 }
 0x273   :  { %3105 = vmatpush2.bf16.msra.mxu1 %v4656_v36 }
 0x274   :  { %3146 = vmatpush2.bf16.msra.mxu0 %v4659_v40  ;;  %3156 = vmatprep.subr.bf16.mxu1 %v4664_v13 }
 0x275   :  { %4039 = vmatprep.subr.bf16.mxu0 %v4710_v51  ;;  %v4735_v51 = vld [vmem:[%s6285_s9 + $0x98] sm:$0xff]  }
 0x276   :  { %3107 = vmatmul.mubr.bf16.vlgmr.msra.gmra.mxu1 %v6062_v20  ;;  %v6071_v45 = vpop.f32.mrf.mxu0 }
 0x277   :  { %3148 = vmatmul.mubr.bf16.vlgmr.msra.gmra.mxu0 %v5864_v34  ;;  %3157 = vmatpush1.bf16.msra.mxu1 %v4662_v44  ;;  %v4668_v34 = vld [vmem:[%s6282_s6 + $0x2a8] ss:$16 sps:$4 sm:$0xff]   ;;  %v4725_v44 = vld [vmem:[%s6285_s9] sm:$0xff]  }
 0x278   :  { %v6077_v47 = vpop.f32.mrf.mxu0  ;;  %3158 = vmatprep.subr.bf16.mxu1 %v4667_v25  ;;  %3188 = vmatprep.mubr.bf16.mxu1 %v5877_v43  ;;  %v4711_v43 = vld [vmem:[%s6285_s9 + $0x38] sm:$0xff]  }
 0x279   :  { %4040 = vmatpush3.bf16.msra.mxu0 %v4711_v43  ;;  %v4726_v25 = vld [vmem:[%s6285_s9 + $0xf8] sm:$0xff]   ;;  %v4736_v43 = vld [vmem:[%s6285_s9 + $0xd0] sm:$0xff]  }
 0x27a   :  { %v2238_v48 = vpop.f32.mrf.mxu0  ;;  %4041 = vmatprep.subr.bf16.mxu0 %v4712_v52  ;;  %v4737_v52 = vld [vmem:[%s6285_s9 + $0x90] sm:$0xff]  }
 0x27b   :  { %3159 = vmatpush1.bf16.msra.mxu1 %v4665_v46  ;;  %v4728_v46 = vld [vmem:[%s6285_s9 + $0xf0] sm:$0xff]   ;;  %v4731_v48 = vld [vmem:[%s6285_s9 + $0xa8] sm:$0xff]  }
 0x27c   :  { %v2239_v50 = vpop.f32.mrf.mxu0  ;;  %3160 = vmatprep.subr.bf16.mxu1 %v4670_v28  ;;  %v4730_v28 = vld [vmem:[%s6285_s9 + $0xe8] sm:$0xff]  }
 0x27d   :  { %4042 = vmatpush3.bf16.msra.mxu0 %v4713_v54  ;;  %v4734_v50 = vld [vmem:[%s6285_s9 + $0xd8] sm:$0xff]  }
 0x27e   :  { %4043 = vmatprep.subr.bf16.mxu0 %v4714_v56 }
 0x27f   :  { %3161 = vmatpush1.bf16.msra.mxu1 %v4668_v34  ;;  %v4732_v34 = vld [vmem:[%s6285_s9 + $0xe0] sm:$0xff]  }
 0x280   :  { %3162 = vmatprep.subr.bf16.mxu1 %v4673_v49  ;;  %v4733_v49 = vld [vmem:[%s6285_s9 + $0xa0] sm:$0xff]  }
 0x281   :  { %4044 = vmatpush3.bf16.msra.mxu0 %v4715_v58  ;;  %v4738_v58 = vld [vmem:[%s6285_s9 + $0xc8] sm:$0xff]  }
 0x282   :  { %4045 = vmatprep.subr.bf16.mxu0 %v4716_v60 }
 0x283   :  { %3163 = vmatpush1.bf16.msra.mxu1 %v4671_v53 }
 0x284   :  { %3164 = vmatprep.subr.bf16.mxu1 %v4676_v55 }
 0x285   :  { %4046 = vmatpush3.bf16.msra.mxu0 %v4717_v63 }
 0x286   :  { %4047 = vmatprep.subr.bf16.mxu0 %v4718_v1 }
 0x287   :  { %3165 = vmatpush1.bf16.msra.mxu1 %v4674_v57 }
 0x288   :  { %3166 = vmatprep.subr.bf16.mxu1 %v4679_v59 }
 0x289   :  { %4048 = vmatpush3.bf16.msra.mxu0 %v4719_v3 }
 0x28a   :  { %4049 = vmatprep.subr.bf16.mxu0 %v4720_v23 }
 0x28b   :  { %3167 = vmatpush1.bf16.msra.mxu1 %v4677_v62  ;;  %v4739_v62 = vld [vmem:[%s6285_s9 + $0x88] sm:$0xff]  }
 0x28c   :  { %3168 = vmatprep.subr.bf16.mxu1 %v4682_v0 }
 0x28d   :  { %4050 = vmatpush3.bf16.msra.mxu0 %v4721_v24 }
 0x28e   :  { %4051 = vmatprep.subr.bf16.mxu0 %v4722_v32 }
 0x28f   :  { %3169 = vmatpush1.bf16.msra.mxu1 %v4680_v2  ;;  %v4740_v2 = vld [vmem:[%s6285_s9 + $0xc0] sm:$0xff]  }
 0x290   :  { %3170 = vmatprep.subr.bf16.mxu1 %v4685_v5  ;;  %v4741_v5 = vld [vmem:[%s6285_s9 + $0x80] sm:$0xff]  }
 0x291   :  { %4052 = vmatpush3.bf16.msra.mxu0 %v4723_v33 }
 0x293   :  { %3171 = vmatpush1.bf16.msra.mxu1 %v4683_v6  ;;  %v3197_v6 = vld [vmem:[%s6284_s8] sm:$0xf] }
 0x294   :  { %3172 = vmatprep.subr.bf16.mxu1 %v4688_v7  ;;  %v3202_v7 = vrot.slane %v3197_v6, %v5127_v38 }
 0x297   :  { %3173 = vmatpush2.bf16.msra.mxu1 %v4686_v8 }
 0x298   :  { %3174 = vmatprep.subr.bf16.mxu1 %v4691_v9 }
 0x29b   :  { %3175 = vmatpush2.bf16.msra.mxu1 %v4689_v10 }
 0x29c   :  { %3176 = vmatprep.subr.bf16.mxu1 %v4694_v11 }
 0x29f   :  { %3177 = vmatpush2.bf16.msra.mxu1 %v4692_v12  ;;  %v3206_v12 = vrot.slane %v3197_v6, %v5136_v41 }
 0x2a0   :  { %3178 = vmatprep.subr.bf16.mxu1 %v4697_v61 }
 0x2a3   :  { %3179 = vmatpush2.bf16.msra.mxu1 %v4695_v4 }
 0x2a4   :  { %3180 = vmatprep.subr.bf16.mxu1 %v4700_v14 }
 0x2a7   :  { %3181 = vmatpush2.bf16.msra.mxu1 %v4698_v15 }
 0x2a8   :  { %3182 = vmatprep.subr.bf16.mxu1 %v4703_v16 }
 0x2ab   :  { %3183 = vmatpush2.bf16.msra.mxu1 %v4701_v17 }
 0x2ac   :  { %3184 = vmatprep.subr.bf16.mxu1 %v4706_v18 }
 0x2af   :  { %3185 = vmatpush2.bf16.msra.mxu1 %v4704_v19 }
 0x2b0   :  { %3186 = vmatprep.subr.bf16.mxu1 %v4709_v21 }
 0x2b3   :  { %3187 = vmatpush2.bf16.msra.mxu1 %v4707_v22 }
 0x2b4   :  { %4061 = vmatprep.subr.bf16.mxu1 %v4726_v25 }
 0x2b6   :  { %3189 = vmatmul.mubr.bf16.vlgmr.msra.gmra.mxu1 %v6062_v20  ;;  %v2275_v26 = vpop.f32.mrf.mxu1  ;;  %v2316_v37 = vpop.f32.mrf.mxu0  ;;  %v4724_v20 = vld [vmem:[%s6285_s9 + $0x40] sm:$0xff]  }
 0x2b7   :  { %v2276_v27 = vadd.f32 %v2275_v26, %v6071_v45  ;;  %4053 = vmatprep.subr.bf16.mxu0 %v4724_v20  ;;  %v4727_v45 = vld [vmem:[%s6285_s9 + $0xb8] sm:$0xff]  }
 0x2b8   :  { %v2277_v29 = vpop.f32.mrf.mxu1  ;;  %v2318_v31 = vpop.f32.mrf.mxu0  ;;  %4054 = vmatpush3.bf16.msra.mxu0 %v4725_v44  ;;  %4062 = vmatpush3.bf16.msra.mxu1 %v4727_v45 }
 0x2b9   :  { %v2278_v30 = vadd.f32 %v2277_v29, %v6077_v47  ;;  %v4729_v47 = vld [vmem:[%s6285_s9 + $0xb0] sm:$0xff]   ;;  %4063 = vmatprep.subr.bf16.mxu1 %v4728_v46 }
 0x2ba   :  { %v2279_v35 = vpop.f32.mrf.mxu1  ;;  %v2320_v36 = vpop.f32.mrf.mxu0 }
 0x2bc   :  { %v2280_v40 = vpop.f32.mrf.mxu1  ;;  %v2321_v13 = vpop.f32.mrf.mxu0  ;;  %4064 = vmatpush3.bf16.msra.mxu1 %v4729_v47 }
 0x2bd   :  { %4065 = vmatprep.subr.bf16.mxu1 %v4730_v28 }
 0x2c0   :  { %4066 = vmatpush3.bf16.msra.mxu1 %v4731_v48 }
 0x2c1   :  { %4067 = vmatprep.subr.bf16.mxu1 %v4732_v34 }
 0x2c4   :  { %4068 = vmatpush3.bf16.msra.mxu1 %v4733_v49 }
 0x2c5   :  { %4069 = vmatprep.subr.bf16.mxu1 %v4734_v50 }
 0x2c8   :  { %4070 = vmatpush3.bf16.msra.mxu1 %v4735_v51 }
 0x2c9   :  { %4071 = vmatprep.subr.bf16.mxu1 %v4736_v43 }
 0x2cc   :  { %4072 = vmatpush3.bf16.msra.mxu1 %v4737_v52 }
 0x2cd   :  { %4073 = vmatprep.subr.bf16.mxu1 %v4738_v58 }
 0x2d0   :  { %4074 = vmatpush3.bf16.msra.mxu1 %v4739_v62 }
 0x2d1   :  { %4075 = vmatprep.subr.bf16.mxu1 %v4740_v2 }
 0x2d4   :  { %4076 = vmatpush3.bf16.msra.mxu1 %v4741_v5 }
 0x2f6   :  { %v2357_v53 = vpop.f32.mrf.mxu1 }
 0x2f7   :  { %v2358_v54 = vadd.f32 %v2357_v53, %v2316_v37  ;;  %v3067_v55 = vpop.f32.mrf.mxu0  ;;  %v3210_v37 = vrot.slane %v3197_v6, %v5130_v39 }
 0x2f8   :  { %v3068_v56 = vadd.f32 %v3067_v55, %v2276_v27  ;;  %v2359_v57 = vpop.f32.mrf.mxu1 }
 0x2f9   :  { %v2360_v59 = vadd.f32 %v2359_v57, %v2318_v31  ;;  %v3069_v60 = vpop.f32.mrf.mxu0  ;;  %v3214_v31 = vrot.slane %v3197_v6, %v5139_v42  ;;  %v4006_v42 = vld [vmem:[%s6286_s10] ss:$0 sm:$0xff] }
 0x2fa   :  { %v2361_v63 = vpop.f32.mrf.mxu1  ;;  %v3070_v9 = vadd.f32 %v3069_v60, %v2278_v30 }
 0x2fb   :  { %v3071_v0 = vpop.f32.mrf.mxu0 }
 0x2fc   :  { %v2362_v1 = vpop.f32.mrf.mxu1 }
 0x2fd   :  { %v3072_v3 = vpop.f32.mrf.mxu0 }
 0x336   :  { %v3108_v8 = vpop.f32.mrf.mxu1 }
 0x337   :  { %v3109_v10 = vadd.f32 %v3108_v8, %v3068_v56  ;;  %v3149_v11 = vpop.f32.mrf.mxu0 }
 0x338   :  { %v3150_v61 = vadd.f32 %v3149_v11, %v2358_v54  ;;  %v3110_v4 = vpop.f32.mrf.mxu1 }
 0x339   :  { %v3219_v14 = vadd.f32 %v3202_v7, %v3109_v10  ;;  %v3111_v15 = vadd.f32 %v3110_v4, %v3070_v9  ;;  %v3151_v16 = vpop.f32.mrf.mxu0 }
 0x33a   :  { %v3112_v17 = vpop.f32.mrf.mxu1  ;;  %v3152_v41 = vadd.f32 %v3151_v16, %v2360_v59 }
 0x33b   :  { %v3220_v18 = vadd.f32 %v3206_v12, %v3111_v15  ;;  %v3153_v19 = vpop.f32.mrf.mxu0  ;;  %v3223_v21 = vmax.f32 %v3219_v14, 0.0 }
 0x33c   :  { %v3113_v22 = vpop.f32.mrf.mxu1 }
 0x33d   :  { %v3224_v23 = vmax.f32 %v3220_v18, 0.0  ;;  %v3154_v24 = vpop.f32.mrf.mxu0  ;;  %v3227_v38 = vpack.c.bf16 %v3223_v21, %v3223_v21 }
 0x33f   :  { %v3228_v26 = vpack.c.bf16 %v3224_v23, %v3224_v23 }
 0x341   :  { %3526 = vmatprep.mubr.bf16.mxu0 %v3228_v26 }
 0x342   :  { %3527 = vmatmul.mubr.bf16.vlgmr.msra.gmra.mxu0 %v3227_v38 }
 0x376   :  { %v3190_v27 = vpop.f32.mrf.mxu1 }
 0x377   :  { %v3191_v29 = vadd.f32 %v3190_v27, %v3150_v61 }
 0x378   :  { %v3192_v32 = vpop.f32.mrf.mxu1 }
 0x379   :  { %v3221_v30 = vadd.f32 %v3210_v37, %v3191_v29  ;;  %v3193_v33 = vadd.f32 %v3192_v32, %v3152_v41 }
 0x37a   :  { %v3194_v35 = vpop.f32.mrf.mxu1 }
 0x37b   :  { %v3222_v36 = vadd.f32 %v3214_v31, %v3193_v33  ;;  %v3225_v40 = vmax.f32 %v3221_v30, 0.0 }
 0x37c   :  { %v3195_v13 = vpop.f32.mrf.mxu1 }
 0x37d   :  { %v3226_v20 = vmax.f32 %v3222_v36, 0.0  ;;  %v3229_v25 = vpack.c.bf16 %v3225_v40, %v3225_v40 }
 0x37f   :  { %v3230_v44 = vpack.c.bf16 %v3226_v20, %v3226_v20 }
 0x381   :  { %3566 = vmatprep.mubr.bf16.mxu1 %v3230_v44 }
 0x382   :  { %3567 = vmatmul.mubr.bf16.vlgmr.msra.gmra.mxu1 %v3229_v25 }
 0x402   :  { %v4055_v45 = vpop.f32.mrf.mxu0 }
 0x404   :  { %v4056_v46 = vpop.f32.mrf.mxu0 }
 0x405   :  { %v4057_v28 = vadd.f32 %v4056_v46, %v4055_v45 }
 0x406   :  { %v4058_v39 = vpop.f32.mrf.mxu0 }
 0x407   :  { %v3529_v49 = vadd.f32 %v4057_v28, %v4006_v42 }
 0x408   :  { %v4059_v47 = vpop.f32.mrf.mxu0 }
 0x442   :  { %v4077_v48 = vpop.f32.mrf.mxu1 }
 0x444   :  { %v4078_v34 = vpop.f32.mrf.mxu1 }
 0x445   :  { %v4079_v50 = vadd.f32 %v4078_v34, %v4077_v48 }
 0x446   :  { %v4080_v51 = vpop.f32.mrf.mxu1 }
 0x447   :  { %v3569_v43 = vadd.f32 %v4079_v50, %v3529_v49 }
 0x448   :  { %v4081_v52 = vpop.f32.mrf.mxu1 }
 0x449   :  { %3574 = vst [vmem:[#allocation2] sm:$0x3] %v3569_v43 }
 0x44a   :  { %4753 = shalt.err (!%p4750_p4)
}
 0x44b   :  { %3584 = dma.vmem_to_hbm [thread:$0]  %s3582_s3, 32, %s6287_s11, [#allocation3]  }
 0x44c   :  { %4762 = dma.done.wait [#allocation3], 32  }
 0x44d   :  { %4763 = vsyncadd [#allocation3], 4294967264 }
 0x44e   :  { %3588 = vsyncpa [#allocation3], 1 }

</bundles_post_ra>
